<compile_context>
chip_gen: v6e
topology: v6e:2x2x1
jax: 0.10.0
libtpu: 0.0.40
codegen_flags: <defaults>
</compile_context>

<pallas_src>
import itertools

import numpy as np
import jax
import jax.numpy as jnp
from jax.experimental import pallas as pl
from jax.experimental.pallas import tpu as pltpu

LANE = 128          # all channel dims are padded to multiples of the lane width
BN_EPS = 1e-5


def _ceil_to(x, m):
    return ((x + m - 1) // m) * m


# ----------------------------------------------------------------------------
# In-kernel building blocks (MXU operands already bf16; f32 accumulation)
# ----------------------------------------------------------------------------

def _mm(a, b):
    return jnp.dot(a, b, preferred_element_type=jnp.float32)


def _bn_relu(h, g, be, ones_row, inv_n):
    """gnn.BatchNorm (training mode, biased variance) + ReLU.

    Batch statistics are computed on the MXU (ones-row matmuls) instead of a
    cross-sublane XLU reduction, so they scale with row count for free.
    """
    hb = h.astype(jnp.bfloat16)
    s1 = _mm(ones_row, hb)                              # (1, C) column sums
    s2 = _mm(ones_row, (h * h).astype(jnp.bfloat16))    # (1, C) column sum-sq
    mean = s1 * inv_n
    var = jnp.maximum(s2 * inv_n - mean * mean, 0.0)
    return jnp.maximum((h - mean) * jax.lax.rsqrt(var + BN_EPS) * g + be, 0.0)


def _hconv_bn_relu(L, x_bf, wsum, w1, b, g, be, ones_row, inv_n):
    """HodgeLaguerreConv(K=2) + BatchNorm + ReLU, fused.

    Laguerre K=2:  out = x@W0 + (x - L@x)@W1 + bias
                       = x@(W0+W1) - (L@x)@W1 + bias
    W0+W1 is pre-merged in the wrapper -> no in-kernel lane concatenation.
    """
    Lx = _mm(L, x_bf)
    h = _mm(x_bf, wsum) - _mm(Lx.astype(jnp.bfloat16), w1) + b
    return _bn_relu(h, g, be, ones_row, inv_n)


def _node_edge_int(xt0, xs0, B, BT, dinv,
                   wt, bt, wt2, bt2, ws, bs, ws2, bs2):
    """NodeEdgeInt stand-in (boundary-operator mediated node<->edge interaction).

    # TODO(synk): replace with the exact NodeEdgeInt math once its source is available.
      x_t' = ReLU( x_t Wt + bt + D^{-1} |par_1|   (x_s Ws2 + bs2) )
      x_s' = ReLU( x_s Ws + bs + 0.5   |par_1|^T  (x_t Wt2 + bt2) )
    The four activation matmuls are kept separate (no mid-tile lane slices).
    """
    t_self = _mm(xt0, wt) + bt
    s_msg = _mm(xs0, ws2) + bs2
    new_t = jnp.maximum(t_self + _mm(B, s_msg.astype(jnp.bfloat16)) * dinv, 0.0)

    s_self = _mm(xs0, ws) + bs
    t_msg = _mm(xt0, wt2) + bt2
    new_s = jnp.maximum(s_self + _mm(BT, t_msg.astype(jnp.bfloat16)) * 0.5, 0.0)
    return new_t, new_s


# ----------------------------------------------------------------------------
# The single fused forward kernel
# ----------------------------------------------------------------------------

def make_fused_forward_kernel(num_blocks):
    """Ref layout: 9 data refs, flattened params, output ref, 2 VMEM slabs."""

    def kernel(*refs):
        (x_t_ref, x_s_ref, L_t_ref, L_s_ref, B_ref, BT_ref, dinv_ref,
         P_t_ref, P_s_ref) = refs[:9]
        o_ref, xt_slab, xs_slab = refs[-3], refs[-2], refs[-1]
        p_iter = iter(refs[9:-3])

        def take(n):
            return tuple(next(p_iter)[...] for _ in range(n))

        L_t, L_s = L_t_ref[...], L_s_ref[...]          # already bf16
        B, BT = B_ref[...], BT_ref[...]                # already bf16
        dinv = dinv_ref[...]                           # f32 (n_t, 1)
        n_t, n_s = x_t_ref.shape[0], x_s_ref.shape[0]
        # hoisted broadcast constants (JAX does not CSE broadcast_in_dim)
        ones_t = jnp.ones((1, n_t), jnp.bfloat16)
        ones_s = jnp.ones((1, n_s), jnp.bfloat16)
        inv_nt, inv_ns = 1.0 / n_t, 1.0 / n_s

        # ---- HL_init_conv: Laguerre conv + BN + ReLU (Dropout p=0 == id) -----
        xt = _hconv_bn_relu(L_t, x_t_ref[...].astype(jnp.bfloat16),
                            *take(5), ones_t, inv_nt)
        xs = _hconv_bn_relu(L_s, x_s_ref[...].astype(jnp.bfloat16),
                            *take(5), ones_s, inv_ns)
        xt_bf = xt.astype(jnp.bfloat16)
        xs_bf = xs.astype(jnp.bfloat16)

        width = xt.shape[1]                    # multiple of 128 by construction
        xt_slab[:, :width] = xt_bf             # full-lane aligned slab stores
        xs_slab[:, :width] = xs_bf

        # ---- dense pyramid: NodeEdgeInt + (conv_t, conv_s) per block ---------
        for _ in range(num_blocks):
            ne = take(8)
            xt0 = xt_slab[:, :width]           # bf16, lane-aligned slab reads
            xs0 = xs_slab[:, :width]
            xt, xs = _node_edge_int(xt0, xs0, B, BT, dinv, *ne)
            xt = _hconv_bn_relu(L_t, xt.astype(jnp.bfloat16),
                                *take(5), ones_t, inv_nt)
            xs = _hconv_bn_relu(L_s, xs.astype(jnp.bfloat16),
                                *take(5), ones_s, inv_ns)
            xt_bf = xt.astype(jnp.bfloat16)
            xs_bf = xs.astype(jnp.bfloat16)
            fp = xt.shape[1]
            # dense growth stays resident in VMEM, 128-aligned column blocks
            xt_slab[:, width:width + fp] = xt_bf
            xs_slab[:, width:width + fp] = xs_bf
            width += fp

        # ---- global mean pooling (P rows = 1/n indicators) + readout ---------
        w_out, b_out = take(2)
        pooled = jnp.concatenate([_mm(P_s_ref[...], xs_bf),
                                  _mm(P_t_ref[...], xt_bf)], axis=1)
        o_ref[...] = _mm(pooled.astype(jnp.bfloat16), w_out) + b_out

    return kernel


# ----------------------------------------------------------------------------
# One-time preparation: fold/merge, pad to 128 lanes, cast to bf16
# ----------------------------------------------------------------------------

def _pad2(a, rows, cols):
    return jnp.pad(a, ((0, rows - a.shape[0]), (0, cols - a.shape[1])))


def _scatter_rows(w, true_widths, pad_widths, out_cols):
    """Place stacked true row-blocks of `w` at 128-padded slab row offsets."""
    out = jnp.zeros((sum(pad_widths), out_cols), w.dtype)
    r = rp = 0
    for tw, pw in zip(true_widths, pad_widths):
        out = out.at[rp:rp + tw, :w.shape[1]].set(w[r:r + tw])
        r += tw
        rp += pw
    return out


def prepare_inputs(params, data):
    blocks = params['blocks']
    nb = len(blocks)

    def prep_hconv(p, in_rows_pad=None):
        w0, w1 = p['w0'], p['w1']
        cin, cout = w0.shape
        cin_p = cin if in_rows_pad is None else in_rows_pad
        cout_p = _ceil_to(cout, LANE)
        wsum = _pad2(w0 + w1, cin_p, cout_p).astype(jnp.bfloat16)   # folded term
        w1p = _pad2(w1, cin_p, cout_p).astype(jnp.bfloat16)
        return ([wsum, w1p, _pad2(p['b'], 1, cout_p),
                 _pad2(p['g'], 1, cout_p), _pad2(p['be'], 1, cout_p)], cout_p)

    flat = []
    it, fp0 = prep_hconv(params['init_t'])
    is_, _ = prep_hconv(params['init_s'])
    flat += it + is_

    true_widths, pad_widths = [params['init_t']['w0'].shape[1]], [fp0]
    for blk in blocks:
        ne = blk['neint']
        f = blk['conv_t']['w0'].shape[1]
        fp = _ceil_to(f, LANE)

        def w_(w):
            return _scatter_rows(w, true_widths, pad_widths, fp).astype(jnp.bfloat16)

        def b_(b):
            return _pad2(b, 1, fp)

        flat += [w_(ne['wt']), b_(ne['bt']), w_(ne['wt2']), b_(ne['bt2']),
                 w_(ne['ws']), b_(ne['bs']), w_(ne['ws2']), b_(ne['bs2'])]
        ct, _ = prep_hconv(blk['conv_t'], in_rows_pad=fp)
        cs, _ = prep_hconv(blk['conv_s'], in_rows_pad=fp)
        flat += ct + cs
        true_widths.append(f)
        pad_widths.append(fp)

    f_last, fp_last = true_widths[-1], pad_widths[-1]
    num_classes = params['out']['w'].shape[1]
    w_out = _scatter_rows(params['out']['w'], [f_last, f_last],
                          [fp_last, fp_last], num_classes).astype(jnp.bfloat16)
    flat += [w_out, params['out']['b']]

    # reused dense graph operators: cast to bf16 ONCE here
    d = data
    inputs = [d['x_t'], d['x_s'],
              d['L_t'].astype(jnp.bfloat16), d['L_s'].astype(jnp.bfloat16),
              d['B'].astype(jnp.bfloat16), d['BT'].astype(jnp.bfloat16),
              d['dinv'],
              d['P_t'].astype(jnp.bfloat16), d['P_s'].astype(jnp.bfloat16)]
    inputs += flat

    n_t, n_s = d['x_t'].shape[0], d['x_s'].shape[0]
    num_graphs = d['P_t'].shape[0]
    c_total = sum(pad_widths)

    # ---- rough cost model for XLA scheduling + explicit VMEM budget ----------
    def mm(m, k, n):
        return 2 * m * k * n

    flops = 0
    for n, cin in ((n_t, d['x_t'].shape[1]), (n_s, d['x_s'].shape[1])):
        flops += mm(n, n, cin) + 2 * mm(n, cin, fp0) + 2 * mm(1, n, fp0)
    wp = fp0
    for fp in pad_widths[1:]:
        flops += 2 * (mm(n_t, wp, fp) + mm(n_s, wp, fp))      # NEInt activation mms
        flops += mm(n_t, n_s, fp) + mm(n_s, n_t, fp)          # boundary aggregation
        for n in (n_t, n_s):                                   # convs + BN stats
            flops += mm(n, n, fp) + 2 * mm(n, fp, fp) + 2 * mm(1, n, fp)
        wp += fp
    flops += mm(num_graphs, n_s, fp_last) + mm(num_graphs, n_t, fp_last)
    flops += mm(num_graphs, 2 * fp_last, num_classes)

    in_bytes = sum(int(np.prod(a.shape)) * a.dtype.itemsize for a in inputs)
    out_bytes = num_graphs * num_classes * 4
    scratch_bytes = (n_t + n_s) * c_total * 2                  # bf16 slabs
    footprint = in_bytes + out_bytes + scratch_bytes
    vmem_limit = int(min(64 << 20, max(16 << 20, 2 * footprint + (4 << 20))))

    return dict(inputs=tuple(inputs), num_blocks=nb, num_graphs=num_graphs,
                num_classes=num_classes, n_t=n_t, n_s=n_s, c_total=c_total,
                flops=int(flops), bytes=int(in_bytes + out_bytes),
                vmem_limit=vmem_limit)


def build_forward(params, data):
    prep = prepare_inputs(params, data)   # runs once; no per-call HBM concats
    call = pl.pallas_call(
        make_fused_forward_kernel(prep['num_blocks']),
        out_shape=jax.ShapeDtypeStruct((prep['num_graphs'], prep['num_classes']),
                                       jnp.float32),
        scratch_shapes=[pltpu.VMEM((prep['n_t'], prep['c_total']), jnp.bfloat16),
                        pltpu.VMEM((prep['n_s'], prep['c_total']), jnp.bfloat16)],
        compiler_params=pltpu.CompilerParams(vmem_limit_bytes=prep['vmem_limit']),
        cost_estimate=pl.CostEstimate(flops=prep['flops'], transcendentals=0,
                                      bytes_accessed=prep['bytes']),
        # TODO(synk): at real batch sizes add a "parallel" grid over graphs
        # (block-diagonal L/B) to use both v7x TensorCores; gnn.BatchNorm's
        # cross-graph batch statistics require a two-pass stats scheme first.
    )
    fwd = jax.jit(lambda *xs: call(*xs))
    return fwd, prep['inputs']


# ----------------------------------------------------------------------------
# Deterministic parameter construction (shapes follow the module's __init__)
# ----------------------------------------------------------------------------

def init_params(key, node_dim, edge_dim, filters, channels, num_classes):
    counter = itertools.count(1)

    def nk():
        return jax.random.fold_in(key, next(counter))

    def lin(cin, cout):
        w = 0.1 * jax.random.normal(nk(), (cin, cout), jnp.float32)
        b = jnp.zeros((1, cout), jnp.float32)
        return w, b

    def hconv(cin, cout):
        w0, _ = lin(cin, cout)
        w1, _ = lin(cin, cout)
        return dict(w0=w0, w1=w1, b=jnp.zeros((1, cout), jnp.float32),
                    g=jnp.ones((1, cout), jnp.float32),
                    be=jnp.zeros((1, cout), jnp.float32))

    params = dict(init_t=hconv(node_dim, filters[0]),
                  init_s=hconv(edge_dim, filters[0]),
                  blocks=[])
    insize = filters[0]
    for i, f in enumerate(filters):
        for _ in range(channels[i]):
            wt, bt = lin(insize, f)
            ws2, bs2 = lin(insize, f)
            ws, bs = lin(insize, f)
            wt2, bt2 = lin(insize, f)
            params['blocks'].append(dict(
                neint=dict(wt=wt, bt=bt, ws2=ws2, bs2=bs2,
                           ws=ws, bs=bs, wt2=wt2, bt2=bt2),
                conv_t=hconv(f, f),
                conv_s=hconv(f, f)))
            insize = f + insize
    wout, bout = lin(filters[-1] * 2, num_classes)
    params['out'] = dict(w=wout, b=bout)
    return params


# ----------------------------------------------------------------------------
# Synthetic graph data (dense operators)
# ----------------------------------------------------------------------------

def build_graph_data():
    # two small molecule-like graphs in one batch
    edges_1 = [(0, 1), (1, 2), (2, 3), (3, 4), (4, 0), (0, 2)]
    edges_2 = [(5, 6), (6, 7), (7, 8), (8, 9), (9, 10), (10, 5), (5, 8)]
    edges = edges_1 + edges_2
    num_node = [5, 6]
    num_edge = [len(edges_1), len(edges_2)]
    n_t, n_s = sum(num_node), len(edges)

    par1 = np.zeros((n_t, n_s), np.float32)          # signed incidence (adj2par1)
    A = np.zeros((n_t, n_t), np.float32)
    for e, (u, v) in enumerate(edges):
        par1[u, e], par1[v, e] = -1.0, 1.0
        A[u, v] = A[v, u] = 1.0
    deg = np.maximum(A.sum(axis=1), 1.0)             # guard isolated nodes
    dhalf = np.diag(1.0 / np.sqrt(deg)).astype(np.float32)
    L_t = (np.eye(n_t, dtype=np.float32) - dhalf @ A @ dhalf)   # Hodge-0 Laplacian
    L_s = 0.5 * (par1.T @ par1).astype(np.float32)              # Hodge-1 Laplacian
    B = np.abs(par1)

    # pooling matrices for global_mean_pool over n_batch / s_batch
    P_t = np.zeros((2, n_t), np.float32)
    P_t[0, :num_node[0]] = 1.0 / num_node[0]
    P_t[1, num_node[0]:] = 1.0 / num_node[1]
    P_s = np.zeros((2, n_s), np.float32)
    P_s[0, :num_edge[0]] = 1.0 / num_edge[0]
    P_s[1, num_edge[0]:] = 1.0 / num_edge[1]

    data = dict(
        L_t=jnp.asarray(L_t), L_s=jnp.asarray(L_s),
        B=jnp.asarray(B), BT=jnp.asarray(B.T),
        dinv=jnp.asarray((1.0 / deg).reshape(-1, 1).astype(np.float32)),
        P_t=jnp.asarray(P_t), P_s=jnp.asarray(P_s))
    return data, n_t, n_s


# ----------------------------------------------------------------------------
# Driver
# ----------------------------------------------------------------------------

if __name__ == "__main__":
    # small but structure-preserving config (reference: channels=[2,2,2,2],
    # filters=[64,128,256,512], mlp_channels=[]); channel widths are padded to
    # 128 lanes inside prepare_inputs regardless of the nominal filter sizes.
    channels = [2, 2]
    filters = [8, 16]
    node_dim, edge_dim, keig = 21, 3, 7
    num_classes = 1

    data, n_t, n_s = build_graph_data()
    key = jax.random.PRNGKey(0)
    k_xt, k_xs, k_p = jax.random.split(key, 3)
    data['x_t'] = jax.random.normal(k_xt, (n_t, node_dim + keig), jnp.float32)
    data['x_s'] = jax.random.normal(k_xs, (n_s, edge_dim + keig), jnp.float32)

    params = init_params(k_p, node_dim + keig, edge_dim + keig,
                         filters, channels, num_classes)

    fwd, inputs = build_forward(params, data)
    out = jax.block_until_ready(fwd(*inputs))

    assert out.shape == (data['P_t'].shape[0], num_classes)
    assert bool(jnp.all(jnp.isfinite(out)))
    print("KERNEL_OK")
</pallas_src>

<mosaic_0001>
module attributes {stable_mosaic.version = 11 : i64} {
  func.func @kernel(%arg0: memref<11x28xf32, #tpu.memory_space<vmem>>, %arg1: memref<13x10xf32, #tpu.memory_space<vmem>>, %arg2: memref<11x11xbf16, #tpu.memory_space<vmem>>, %arg3: memref<13x13xbf16, #tpu.memory_space<vmem>>, %arg4: memref<11x13xbf16, #tpu.memory_space<vmem>>, %arg5: memref<13x11xbf16, #tpu.memory_space<vmem>>, %arg6: memref<11x1xf32, #tpu.memory_space<vmem>>, %arg7: memref<2x11xbf16, #tpu.memory_space<vmem>>, %arg8: memref<2x13xbf16, #tpu.memory_space<vmem>>, %arg9: memref<28x128xbf16, #tpu.memory_space<vmem>>, %arg10: memref<28x128xbf16, #tpu.memory_space<vmem>>, %arg11: memref<1x128xf32, #tpu.memory_space<vmem>>, %arg12: memref<1x128xf32, #tpu.memory_space<vmem>>, %arg13: memref<1x128xf32, #tpu.memory_space<vmem>>, %arg14: memref<10x128xbf16, #tpu.memory_space<vmem>>, %arg15: memref<10x128xbf16, #tpu.memory_space<vmem>>, %arg16: memref<1x128xf32, #tpu.memory_space<vmem>>, %arg17: memref<1x128xf32, #tpu.memory_space<vmem>>, %arg18: memref<1x128xf32, #tpu.memory_space<vmem>>, %arg19: memref<128x128xbf16, #tpu.memory_space<vmem>>, %arg20: memref<1x128xf32, #tpu.memory_space<vmem>>, %arg21: memref<128x128xbf16, #tpu.memory_space<vmem>>, %arg22: memref<1x128xf32, #tpu.memory_space<vmem>>, %arg23: memref<128x128xbf16, #tpu.memory_space<vmem>>, %arg24: memref<1x128xf32, #tpu.memory_space<vmem>>, %arg25: memref<128x128xbf16, #tpu.memory_space<vmem>>, %arg26: memref<1x128xf32, #tpu.memory_space<vmem>>, %arg27: memref<128x128xbf16, #tpu.memory_space<vmem>>, %arg28: memref<128x128xbf16, #tpu.memory_space<vmem>>, %arg29: memref<1x128xf32, #tpu.memory_space<vmem>>, %arg30: memref<1x128xf32, #tpu.memory_space<vmem>>, %arg31: memref<1x128xf32, #tpu.memory_space<vmem>>, %arg32: memref<128x128xbf16, #tpu.memory_space<vmem>>, %arg33: memref<128x128xbf16, #tpu.memory_space<vmem>>, %arg34: memref<1x128xf32, #tpu.memory_space<vmem>>, %arg35: memref<1x128xf32, #tpu.memory_space<vmem>>, %arg36: memref<1x128xf32, #tpu.memory_space<vmem>>, %arg37: memref<256x128xbf16, #tpu.memory_space<vmem>>, %arg38: memref<1x128xf32, #tpu.memory_space<vmem>>, %arg39: memref<256x128xbf16, #tpu.memory_space<vmem>>, %arg40: memref<1x128xf32, #tpu.memory_space<vmem>>, %arg41: memref<256x128xbf16, #tpu.memory_space<vmem>>, %arg42: memref<1x128xf32, #tpu.memory_space<vmem>>, %arg43: memref<256x128xbf16, #tpu.memory_space<vmem>>, %arg44: memref<1x128xf32, #tpu.memory_space<vmem>>, %arg45: memref<128x128xbf16, #tpu.memory_space<vmem>>, %arg46: memref<128x128xbf16, #tpu.memory_space<vmem>>, %arg47: memref<1x128xf32, #tpu.memory_space<vmem>>, %arg48: memref<1x128xf32, #tpu.memory_space<vmem>>, %arg49: memref<1x128xf32, #tpu.memory_space<vmem>>, %arg50: memref<128x128xbf16, #tpu.memory_space<vmem>>, %arg51: memref<128x128xbf16, #tpu.memory_space<vmem>>, %arg52: memref<1x128xf32, #tpu.memory_space<vmem>>, %arg53: memref<1x128xf32, #tpu.memory_space<vmem>>, %arg54: memref<1x128xf32, #tpu.memory_space<vmem>>, %arg55: memref<384x128xbf16, #tpu.memory_space<vmem>>, %arg56: memref<1x128xf32, #tpu.memory_space<vmem>>, %arg57: memref<384x128xbf16, #tpu.memory_space<vmem>>, %arg58: memref<1x128xf32, #tpu.memory_space<vmem>>, %arg59: memref<384x128xbf16, #tpu.memory_space<vmem>>, %arg60: memref<1x128xf32, #tpu.memory_space<vmem>>, %arg61: memref<384x128xbf16, #tpu.memory_space<vmem>>, %arg62: memref<1x128xf32, #tpu.memory_space<vmem>>, %arg63: memref<128x128xbf16, #tpu.memory_space<vmem>>, %arg64: memref<128x128xbf16, #tpu.memory_space<vmem>>, %arg65: memref<1x128xf32, #tpu.memory_space<vmem>>, %arg66: memref<1x128xf32, #tpu.memory_space<vmem>>, %arg67: memref<1x128xf32, #tpu.memory_space<vmem>>, %arg68: memref<128x128xbf16, #tpu.memory_space<vmem>>, %arg69: memref<128x128xbf16, #tpu.memory_space<vmem>>, %arg70: memref<1x128xf32, #tpu.memory_space<vmem>>, %arg71: memref<1x128xf32, #tpu.memory_space<vmem>>, %arg72: memref<1x128xf32, #tpu.memory_space<vmem>>, %arg73: memref<512x128xbf16, #tpu.memory_space<vmem>>, %arg74: memref<1x128xf32, #tpu.memory_space<vmem>>, %arg75: memref<512x128xbf16, #tpu.memory_space<vmem>>, %arg76: memref<1x128xf32, #tpu.memory_space<vmem>>, %arg77: memref<512x128xbf16, #tpu.memory_space<vmem>>, %arg78: memref<1x128xf32, #tpu.memory_space<vmem>>, %arg79: memref<512x128xbf16, #tpu.memory_space<vmem>>, %arg80: memref<1x128xf32, #tpu.memory_space<vmem>>, %arg81: memref<128x128xbf16, #tpu.memory_space<vmem>>, %arg82: memref<128x128xbf16, #tpu.memory_space<vmem>>, %arg83: memref<1x128xf32, #tpu.memory_space<vmem>>, %arg84: memref<1x128xf32, #tpu.memory_space<vmem>>, %arg85: memref<1x128xf32, #tpu.memory_space<vmem>>, %arg86: memref<128x128xbf16, #tpu.memory_space<vmem>>, %arg87: memref<128x128xbf16, #tpu.memory_space<vmem>>, %arg88: memref<1x128xf32, #tpu.memory_space<vmem>>, %arg89: memref<1x128xf32, #tpu.memory_space<vmem>>, %arg90: memref<1x128xf32, #tpu.memory_space<vmem>>, %arg91: memref<256x1xbf16, #tpu.memory_space<vmem>>, %arg92: memref<1x1xf32, #tpu.memory_space<vmem>>, %arg93: memref<2x1xf32, #tpu.memory_space<vmem>>, %arg94: memref<11x640xbf16, #tpu.memory_space<vmem>>, %arg95: memref<13x640xbf16, #tpu.memory_space<vmem>>) attributes {dimension_semantics = [], scalar_prefetch = 0 : i64, scratch_operands = 2 : i64, tpu.core_type = #tpu.core_type<tc>} {
    %c0 = arith.constant 0 : index
    %c0_0 = arith.constant 0 : index
    %0 = vector.load %arg2[%c0, %c0_0] : memref<11x11xbf16, #tpu.memory_space<vmem>>, vector<11x11xbf16>
    %c0_1 = arith.constant 0 : index
    %c0_2 = arith.constant 0 : index
    %1 = vector.load %arg3[%c0_1, %c0_2] : memref<13x13xbf16, #tpu.memory_space<vmem>>, vector<13x13xbf16>
    %c0_3 = arith.constant 0 : index
    %c0_4 = arith.constant 0 : index
    %2 = vector.load %arg4[%c0_3, %c0_4] : memref<11x13xbf16, #tpu.memory_space<vmem>>, vector<11x13xbf16>
    %c0_5 = arith.constant 0 : index
    %c0_6 = arith.constant 0 : index
    %3 = vector.load %arg5[%c0_5, %c0_6] : memref<13x11xbf16, #tpu.memory_space<vmem>>, vector<13x11xbf16>
    %c0_7 = arith.constant 0 : index
    %c0_8 = arith.constant 0 : index
    %4 = vector.load %arg6[%c0_7, %c0_8] : memref<11x1xf32, #tpu.memory_space<vmem>>, vector<11x1xf32>
    %cst = arith.constant 1.000000e+00 : bf16
    %5 = vector.broadcast %cst : bf16 to vector<1x11xbf16>
    %cst_9 = arith.constant 1.000000e+00 : bf16
    %6 = vector.broadcast %cst_9 : bf16 to vector<1x13xbf16>
    %c0_10 = arith.constant 0 : index
    %c0_11 = arith.constant 0 : index
    %7 = vector.load %arg0[%c0_10, %c0_11] : memref<11x28xf32, #tpu.memory_space<vmem>>, vector<11x28xf32>
    %8 = arith.truncf %7 : vector<11x28xf32> to vector<11x28xbf16>
    %c0_12 = arith.constant 0 : index
    %c0_13 = arith.constant 0 : index
    %9 = vector.load %arg9[%c0_12, %c0_13] : memref<28x128xbf16, #tpu.memory_space<vmem>>, vector<28x128xbf16>
    %c0_14 = arith.constant 0 : index
    %c0_15 = arith.constant 0 : index
    %10 = vector.load %arg10[%c0_14, %c0_15] : memref<28x128xbf16, #tpu.memory_space<vmem>>, vector<28x128xbf16>
    %c0_16 = arith.constant 0 : index
    %c0_17 = arith.constant 0 : index
    %11 = vector.load %arg11[%c0_16, %c0_17] : memref<1x128xf32, #tpu.memory_space<vmem>>, vector<1x128xf32>
    %c0_18 = arith.constant 0 : index
    %c0_19 = arith.constant 0 : index
    %12 = vector.load %arg12[%c0_18, %c0_19] : memref<1x128xf32, #tpu.memory_space<vmem>>, vector<1x128xf32>
    %c0_20 = arith.constant 0 : index
    %c0_21 = arith.constant 0 : index
    %13 = vector.load %arg13[%c0_20, %c0_21] : memref<1x128xf32, #tpu.memory_space<vmem>>, vector<1x128xf32>
    %cst_22 = arith.constant dense<0.000000e+00> : vector<11x28xf32>
    %14 = tpu.matmul %0, %8, %cst_22 {dimension_numbers = #tpu.dot_dimension_numbers<[1], [0], [0], [1], [0, 0, 1, 1], [], []>} : vector<11x11xbf16>, vector<11x28xbf16>, vector<11x28xf32> -> vector<11x28xf32>
    %cst_23 = arith.constant dense<0.000000e+00> : vector<11x128xf32>
    %15 = tpu.matmul %8, %9, %cst_23 {dimension_numbers = #tpu.dot_dimension_numbers<[1], [0], [0], [1], [0, 0, 1, 1], [], []>} : vector<11x28xbf16>, vector<28x128xbf16>, vector<11x128xf32> -> vector<11x128xf32>
    %16 = arith.truncf %14 : vector<11x28xf32> to vector<11x28xbf16>
    %cst_24 = arith.constant dense<0.000000e+00> : vector<11x128xf32>
    %17 = tpu.matmul %16, %10, %cst_24 {dimension_numbers = #tpu.dot_dimension_numbers<[1], [0], [0], [1], [0, 0, 1, 1], [], []>} : vector<11x28xbf16>, vector<28x128xbf16>, vector<11x128xf32> -> vector<11x128xf32>
    %18 = arith.subf %15, %17 : vector<11x128xf32>
    %19 = vector.broadcast %11 : vector<1x128xf32> to vector<11x128xf32>
    %20 = arith.addf %18, %19 : vector<11x128xf32>
    %21 = arith.truncf %20 : vector<11x128xf32> to vector<11x128xbf16>
    %cst_25 = arith.constant dense<0.000000e+00> : vector<1x128xf32>
    %22 = tpu.matmul %5, %21, %cst_25 {dimension_numbers = #tpu.dot_dimension_numbers<[1], [0], [0], [1], [0, 0, 1, 1], [], []>} : vector<1x11xbf16>, vector<11x128xbf16>, vector<1x128xf32> -> vector<1x128xf32>
    %23 = arith.mulf %20, %20 : vector<11x128xf32>
    %24 = arith.truncf %23 : vector<11x128xf32> to vector<11x128xbf16>
    %cst_26 = arith.constant dense<0.000000e+00> : vector<1x128xf32>
    %25 = tpu.matmul %5, %24, %cst_26 {dimension_numbers = #tpu.dot_dimension_numbers<[1], [0], [0], [1], [0, 0, 1, 1], [], []>} : vector<1x11xbf16>, vector<11x128xbf16>, vector<1x128xf32> -> vector<1x128xf32>
    %cst_27 = arith.constant 0.0909090936 : f32
    %26 = vector.broadcast %cst_27 : f32 to vector<1x128xf32>
    %27 = arith.mulf %22, %26 : vector<1x128xf32>
    %cst_28 = arith.constant 0.0909090936 : f32
    %28 = vector.broadcast %cst_28 : f32 to vector<1x128xf32>
    %29 = arith.mulf %25, %28 : vector<1x128xf32>
    %30 = arith.mulf %27, %27 : vector<1x128xf32>
    %31 = arith.subf %29, %30 : vector<1x128xf32>
    %cst_29 = arith.constant 0.000000e+00 : f32
    %32 = vector.broadcast %cst_29 : f32 to vector<1x128xf32>
    %33 = arith.maximumf %31, %32 : vector<1x128xf32>
    %34 = vector.broadcast %27 : vector<1x128xf32> to vector<11x128xf32>
    %35 = arith.subf %20, %34 : vector<11x128xf32>
    %cst_30 = arith.constant 9.99999974E-6 : f32
    %36 = vector.broadcast %cst_30 : f32 to vector<1x128xf32>
    %37 = arith.addf %33, %36 : vector<1x128xf32>
    %38 = math.rsqrt %37 : vector<1x128xf32>
    %39 = vector.broadcast %38 : vector<1x128xf32> to vector<11x128xf32>
    %40 = arith.mulf %35, %39 : vector<11x128xf32>
    %41 = vector.broadcast %12 : vector<1x128xf32> to vector<11x128xf32>
    %42 = arith.mulf %40, %41 : vector<11x128xf32>
    %43 = vector.broadcast %13 : vector<1x128xf32> to vector<11x128xf32>
    %44 = arith.addf %42, %43 : vector<11x128xf32>
    %cst_31 = arith.constant 0.000000e+00 : f32
    %45 = vector.broadcast %cst_31 : f32 to vector<11x128xf32>
    %46 = arith.maximumf %44, %45 : vector<11x128xf32>
    %c0_32 = arith.constant 0 : index
    %c0_33 = arith.constant 0 : index
    %47 = vector.load %arg1[%c0_32, %c0_33] : memref<13x10xf32, #tpu.memory_space<vmem>>, vector<13x10xf32>
    %48 = arith.truncf %47 : vector<13x10xf32> to vector<13x10xbf16>
    %c0_34 = arith.constant 0 : index
    %c0_35 = arith.constant 0 : index
    %49 = vector.load %arg14[%c0_34, %c0_35] : memref<10x128xbf16, #tpu.memory_space<vmem>>, vector<10x128xbf16>
    %c0_36 = arith.constant 0 : index
    %c0_37 = arith.constant 0 : index
    %50 = vector.load %arg15[%c0_36, %c0_37] : memref<10x128xbf16, #tpu.memory_space<vmem>>, vector<10x128xbf16>
    %c0_38 = arith.constant 0 : index
    %c0_39 = arith.constant 0 : index
    %51 = vector.load %arg16[%c0_38, %c0_39] : memref<1x128xf32, #tpu.memory_space<vmem>>, vector<1x128xf32>
    %c0_40 = arith.constant 0 : index
    %c0_41 = arith.constant 0 : index
    %52 = vector.load %arg17[%c0_40, %c0_41] : memref<1x128xf32, #tpu.memory_space<vmem>>, vector<1x128xf32>
    %c0_42 = arith.constant 0 : index
    %c0_43 = arith.constant 0 : index
    %53 = vector.load %arg18[%c0_42, %c0_43] : memref<1x128xf32, #tpu.memory_space<vmem>>, vector<1x128xf32>
    %cst_44 = arith.constant dense<0.000000e+00> : vector<13x10xf32>
    %54 = tpu.matmul %1, %48, %cst_44 {dimension_numbers = #tpu.dot_dimension_numbers<[1], [0], [0], [1], [0, 0, 1, 1], [], []>} : vector<13x13xbf16>, vector<13x10xbf16>, vector<13x10xf32> -> vector<13x10xf32>
    %cst_45 = arith.constant dense<0.000000e+00> : vector<13x128xf32>
    %55 = tpu.matmul %48, %49, %cst_45 {dimension_numbers = #tpu.dot_dimension_numbers<[1], [0], [0], [1], [0, 0, 1, 1], [], []>} : vector<13x10xbf16>, vector<10x128xbf16>, vector<13x128xf32> -> vector<13x128xf32>
    %56 = arith.truncf %54 : vector<13x10xf32> to vector<13x10xbf16>
    %cst_46 = arith.constant dense<0.000000e+00> : vector<13x128xf32>
    %57 = tpu.matmul %56, %50, %cst_46 {dimension_numbers = #tpu.dot_dimension_numbers<[1], [0], [0], [1], [0, 0, 1, 1], [], []>} : vector<13x10xbf16>, vector<10x128xbf16>, vector<13x128xf32> -> vector<13x128xf32>
    %58 = arith.subf %55, %57 : vector<13x128xf32>
    %59 = vector.broadcast %51 : vector<1x128xf32> to vector<13x128xf32>
    %60 = arith.addf %58, %59 : vector<13x128xf32>
    %61 = arith.truncf %60 : vector<13x128xf32> to vector<13x128xbf16>
    %cst_47 = arith.constant dense<0.000000e+00> : vector<1x128xf32>
    %62 = tpu.matmul %6, %61, %cst_47 {dimension_numbers = #tpu.dot_dimension_numbers<[1], [0], [0], [1], [0, 0, 1, 1], [], []>} : vector<1x13xbf16>, vector<13x128xbf16>, vector<1x128xf32> -> vector<1x128xf32>
    %63 = arith.mulf %60, %60 : vector<13x128xf32>
    %64 = arith.truncf %63 : vector<13x128xf32> to vector<13x128xbf16>
    %cst_48 = arith.constant dense<0.000000e+00> : vector<1x128xf32>
    %65 = tpu.matmul %6, %64, %cst_48 {dimension_numbers = #tpu.dot_dimension_numbers<[1], [0], [0], [1], [0, 0, 1, 1], [], []>} : vector<1x13xbf16>, vector<13x128xbf16>, vector<1x128xf32> -> vector<1x128xf32>
    %cst_49 = arith.constant 0.0769230798 : f32
    %66 = vector.broadcast %cst_49 : f32 to vector<1x128xf32>
    %67 = arith.mulf %62, %66 : vector<1x128xf32>
    %cst_50 = arith.constant 0.0769230798 : f32
    %68 = vector.broadcast %cst_50 : f32 to vector<1x128xf32>
    %69 = arith.mulf %65, %68 : vector<1x128xf32>
    %70 = arith.mulf %67, %67 : vector<1x128xf32>
    %71 = arith.subf %69, %70 : vector<1x128xf32>
    %cst_51 = arith.constant 0.000000e+00 : f32
    %72 = vector.broadcast %cst_51 : f32 to vector<1x128xf32>
    %73 = arith.maximumf %71, %72 : vector<1x128xf32>
    %74 = vector.broadcast %67 : vector<1x128xf32> to vector<13x128xf32>
    %75 = arith.subf %60, %74 : vector<13x128xf32>
    %cst_52 = arith.constant 9.99999974E-6 : f32
    %76 = vector.broadcast %cst_52 : f32 to vector<1x128xf32>
    %77 = arith.addf %73, %76 : vector<1x128xf32>
    %78 = math.rsqrt %77 : vector<1x128xf32>
    %79 = vector.broadcast %78 : vector<1x128xf32> to vector<13x128xf32>
    %80 = arith.mulf %75, %79 : vector<13x128xf32>
    %81 = vector.broadcast %52 : vector<1x128xf32> to vector<13x128xf32>
    %82 = arith.mulf %80, %81 : vector<13x128xf32>
    %83 = vector.broadcast %53 : vector<1x128xf32> to vector<13x128xf32>
    %84 = arith.addf %82, %83 : vector<13x128xf32>
    %cst_53 = arith.constant 0.000000e+00 : f32
    %85 = vector.broadcast %cst_53 : f32 to vector<13x128xf32>
    %86 = arith.maximumf %84, %85 : vector<13x128xf32>
    %87 = arith.truncf %46 : vector<11x128xf32> to vector<11x128xbf16>
    %88 = arith.truncf %86 : vector<13x128xf32> to vector<13x128xbf16>
    %c0_54 = arith.constant 0 : index
    %c0_55 = arith.constant 0 : index
    %89 = vector.load %arg94[%c0_54, %c0_55] : memref<11x640xbf16, #tpu.memory_space<vmem>>, vector<11x128xbf16>
    tpu.vector_store %arg94[%c0_54, %c0_55], %87 {strides = array<i32>} : memref<11x640xbf16, #tpu.memory_space<vmem>>, vector<11x128xbf16>,
    %c0_56 = arith.constant 0 : index
    %c0_57 = arith.constant 0 : index
    %90 = vector.load %arg95[%c0_56, %c0_57] : memref<13x640xbf16, #tpu.memory_space<vmem>>, vector<13x128xbf16>
    tpu.vector_store %arg95[%c0_56, %c0_57], %88 {strides = array<i32>} : memref<13x640xbf16, #tpu.memory_space<vmem>>, vector<13x128xbf16>,
    %c0_58 = arith.constant 0 : index
    %c0_59 = arith.constant 0 : index
    %91 = vector.load %arg19[%c0_58, %c0_59] : memref<128x128xbf16, #tpu.memory_space<vmem>>, vector<128x128xbf16>
    %c0_60 = arith.constant 0 : index
    %c0_61 = arith.constant 0 : index
    %92 = vector.load %arg20[%c0_60, %c0_61] : memref<1x128xf32, #tpu.memory_space<vmem>>, vector<1x128xf32>
    %c0_62 = arith.constant 0 : index
    %c0_63 = arith.constant 0 : index
    %93 = vector.load %arg21[%c0_62, %c0_63] : memref<128x128xbf16, #tpu.memory_space<vmem>>, vector<128x128xbf16>
    %c0_64 = arith.constant 0 : index
    %c0_65 = arith.constant 0 : index
    %94 = vector.load %arg22[%c0_64, %c0_65] : memref<1x128xf32, #tpu.memory_space<vmem>>, vector<1x128xf32>
    %c0_66 = arith.constant 0 : index
    %c0_67 = arith.constant 0 : index
    %95 = vector.load %arg23[%c0_66, %c0_67] : memref<128x128xbf16, #tpu.memory_space<vmem>>, vector<128x128xbf16>
    %c0_68 = arith.constant 0 : index
    %c0_69 = arith.constant 0 : index
    %96 = vector.load %arg24[%c0_68, %c0_69] : memref<1x128xf32, #tpu.memory_space<vmem>>, vector<1x128xf32>
    %c0_70 = arith.constant 0 : index
    %c0_71 = arith.constant 0 : index
    %97 = vector.load %arg25[%c0_70, %c0_71] : memref<128x128xbf16, #tpu.memory_space<vmem>>, vector<128x128xbf16>
    %c0_72 = arith.constant 0 : index
    %c0_73 = arith.constant 0 : index
    %98 = vector.load %arg26[%c0_72, %c0_73] : memref<1x128xf32, #tpu.memory_space<vmem>>, vector<1x128xf32>
    %c0_74 = arith.constant 0 : index
    %c0_75 = arith.constant 0 : index
    %99 = vector.load %arg94[%c0_74, %c0_75] : memref<11x640xbf16, #tpu.memory_space<vmem>>, vector<11x128xbf16>
    %c0_76 = arith.constant 0 : index
    %c0_77 = arith.constant 0 : index
    %100 = vector.load %arg95[%c0_76, %c0_77] : memref<13x640xbf16, #tpu.memory_space<vmem>>, vector<13x128xbf16>
    %cst_78 = arith.constant dense<0.000000e+00> : vector<11x128xf32>
    %101 = tpu.matmul %99, %91, %cst_78 {dimension_numbers = #tpu.dot_dimension_numbers<[1], [0], [0], [1], [0, 0, 1, 1], [], []>} : vector<11x128xbf16>, vector<128x128xbf16>, vector<11x128xf32> -> vector<11x128xf32>
    %102 = vector.broadcast %92 : vector<1x128xf32> to vector<11x128xf32>
    %103 = arith.addf %101, %102 : vector<11x128xf32>
    %cst_79 = arith.constant dense<0.000000e+00> : vector<13x128xf32>
    %104 = tpu.matmul %100, %97, %cst_79 {dimension_numbers = #tpu.dot_dimension_numbers<[1], [0], [0], [1], [0, 0, 1, 1], [], []>} : vector<13x128xbf16>, vector<128x128xbf16>, vector<13x128xf32> -> vector<13x128xf32>
    %105 = vector.broadcast %98 : vector<1x128xf32> to vector<13x128xf32>
    %106 = arith.addf %104, %105 : vector<13x128xf32>
    %107 = arith.truncf %106 : vector<13x128xf32> to vector<13x128xbf16>
    %cst_80 = arith.constant dense<0.000000e+00> : vector<11x128xf32>
    %108 = tpu.matmul %2, %107, %cst_80 {dimension_numbers = #tpu.dot_dimension_numbers<[1], [0], [0], [1], [0, 0, 1, 1], [], []>} : vector<11x13xbf16>, vector<13x128xbf16>, vector<11x128xf32> -> vector<11x128xf32>
    %109 = vector.broadcast %4 : vector<11x1xf32> to vector<11x128xf32>
    %110 = arith.mulf %108, %109 : vector<11x128xf32>
    %111 = arith.addf %103, %110 : vector<11x128xf32>
    %cst_81 = arith.constant 0.000000e+00 : f32
    %112 = vector.broadcast %cst_81 : f32 to vector<11x128xf32>
    %113 = arith.maximumf %111, %112 : vector<11x128xf32>
    %cst_82 = arith.constant dense<0.000000e+00> : vector<13x128xf32>
    %114 = tpu.matmul %100, %95, %cst_82 {dimension_numbers = #tpu.dot_dimension_numbers<[1], [0], [0], [1], [0, 0, 1, 1], [], []>} : vector<13x128xbf16>, vector<128x128xbf16>, vector<13x128xf32> -> vector<13x128xf32>
    %115 = vector.broadcast %96 : vector<1x128xf32> to vector<13x128xf32>
    %116 = arith.addf %114, %115 : vector<13x128xf32>
    %cst_83 = arith.constant dense<0.000000e+00> : vector<11x128xf32>
    %117 = tpu.matmul %99, %93, %cst_83 {dimension_numbers = #tpu.dot_dimension_numbers<[1], [0], [0], [1], [0, 0, 1, 1], [], []>} : vector<11x128xbf16>, vector<128x128xbf16>, vector<11x128xf32> -> vector<11x128xf32>
    %118 = vector.broadcast %94 : vector<1x128xf32> to vector<11x128xf32>
    %119 = arith.addf %117, %118 : vector<11x128xf32>
    %120 = arith.truncf %119 : vector<11x128xf32> to vector<11x128xbf16>
    %cst_84 = arith.constant dense<0.000000e+00> : vector<13x128xf32>
    %121 = tpu.matmul %3, %120, %cst_84 {dimension_numbers = #tpu.dot_dimension_numbers<[1], [0], [0], [1], [0, 0, 1, 1], [], []>} : vector<13x11xbf16>, vector<11x128xbf16>, vector<13x128xf32> -> vector<13x128xf32>
    %cst_85 = arith.constant 5.000000e-01 : f32
    %122 = vector.broadcast %cst_85 : f32 to vector<13x128xf32>
    %123 = arith.mulf %121, %122 : vector<13x128xf32>
    %124 = arith.addf %116, %123 : vector<13x128xf32>
    %cst_86 = arith.constant 0.000000e+00 : f32
    %125 = vector.broadcast %cst_86 : f32 to vector<13x128xf32>
    %126 = arith.maximumf %124, %125 : vector<13x128xf32>
    %127 = arith.truncf %113 : vector<11x128xf32> to vector<11x128xbf16>
    %c0_87 = arith.constant 0 : index
    %c0_88 = arith.constant 0 : index
    %128 = vector.load %arg27[%c0_87, %c0_88] : memref<128x128xbf16, #tpu.memory_space<vmem>>, vector<128x128xbf16>
    %c0_89 = arith.constant 0 : index
    %c0_90 = arith.constant 0 : index
    %129 = vector.load %arg28[%c0_89, %c0_90] : memref<128x128xbf16, #tpu.memory_space<vmem>>, vector<128x128xbf16>
    %c0_91 = arith.constant 0 : index
    %c0_92 = arith.constant 0 : index
    %130 = vector.load %arg29[%c0_91, %c0_92] : memref<1x128xf32, #tpu.memory_space<vmem>>, vector<1x128xf32>
    %c0_93 = arith.constant 0 : index
    %c0_94 = arith.constant 0 : index
    %131 = vector.load %arg30[%c0_93, %c0_94] : memref<1x128xf32, #tpu.memory_space<vmem>>, vector<1x128xf32>
    %c0_95 = arith.constant 0 : index
    %c0_96 = arith.constant 0 : index
    %132 = vector.load %arg31[%c0_95, %c0_96] : memref<1x128xf32, #tpu.memory_space<vmem>>, vector<1x128xf32>
    %cst_97 = arith.constant dense<0.000000e+00> : vector<11x128xf32>
    %133 = tpu.matmul %0, %127, %cst_97 {dimension_numbers = #tpu.dot_dimension_numbers<[1], [0], [0], [1], [0, 0, 1, 1], [], []>} : vector<11x11xbf16>, vector<11x128xbf16>, vector<11x128xf32> -> vector<11x128xf32>
    %cst_98 = arith.constant dense<0.000000e+00> : vector<11x128xf32>
    %134 = tpu.matmul %127, %128, %cst_98 {dimension_numbers = #tpu.dot_dimension_numbers<[1], [0], [0], [1], [0, 0, 1, 1], [], []>} : vector<11x128xbf16>, vector<128x128xbf16>, vector<11x128xf32> -> vector<11x128xf32>
    %135 = arith.truncf %133 : vector<11x128xf32> to vector<11x128xbf16>
    %cst_99 = arith.constant dense<0.000000e+00> : vector<11x128xf32>
    %136 = tpu.matmul %135, %129, %cst_99 {dimension_numbers = #tpu.dot_dimension_numbers<[1], [0], [0], [1], [0, 0, 1, 1], [], []>} : vector<11x128xbf16>, vector<128x128xbf16>, vector<11x128xf32> -> vector<11x128xf32>
    %137 = arith.subf %134, %136 : vector<11x128xf32>
    %138 = vector.broadcast %130 : vector<1x128xf32> to vector<11x128xf32>
    %139 = arith.addf %137, %138 : vector<11x128xf32>
    %140 = arith.truncf %139 : vector<11x128xf32> to vector<11x128xbf16>
    %cst_100 = arith.constant dense<0.000000e+00> : vector<1x128xf32>
    %141 = tpu.matmul %5, %140, %cst_100 {dimension_numbers = #tpu.dot_dimension_numbers<[1], [0], [0], [1], [0, 0, 1, 1], [], []>} : vector<1x11xbf16>, vector<11x128xbf16>, vector<1x128xf32> -> vector<1x128xf32>
    %142 = arith.mulf %139, %139 : vector<11x128xf32>
    %143 = arith.truncf %142 : vector<11x128xf32> to vector<11x128xbf16>
    %cst_101 = arith.constant dense<0.000000e+00> : vector<1x128xf32>
    %144 = tpu.matmul %5, %143, %cst_101 {dimension_numbers = #tpu.dot_dimension_numbers<[1], [0], [0], [1], [0, 0, 1, 1], [], []>} : vector<1x11xbf16>, vector<11x128xbf16>, vector<1x128xf32> -> vector<1x128xf32>
    %cst_102 = arith.constant 0.0909090936 : f32
    %145 = vector.broadcast %cst_102 : f32 to vector<1x128xf32>
    %146 = arith.mulf %141, %145 : vector<1x128xf32>
    %cst_103 = arith.constant 0.0909090936 : f32
    %147 = vector.broadcast %cst_103 : f32 to vector<1x128xf32>
    %148 = arith.mulf %144, %147 : vector<1x128xf32>
    %149 = arith.mulf %146, %146 : vector<1x128xf32>
    %150 = arith.subf %148, %149 : vector<1x128xf32>
    %cst_104 = arith.constant 0.000000e+00 : f32
    %151 = vector.broadcast %cst_104 : f32 to vector<1x128xf32>
    %152 = arith.maximumf %150, %151 : vector<1x128xf32>
    %153 = vector.broadcast %146 : vector<1x128xf32> to vector<11x128xf32>
    %154 = arith.subf %139, %153 : vector<11x128xf32>
    %cst_105 = arith.constant 9.99999974E-6 : f32
    %155 = vector.broadcast %cst_105 : f32 to vector<1x128xf32>
    %156 = arith.addf %152, %155 : vector<1x128xf32>
    %157 = math.rsqrt %156 : vector<1x128xf32>
    %158 = vector.broadcast %157 : vector<1x128xf32> to vector<11x128xf32>
    %159 = arith.mulf %154, %158 : vector<11x128xf32>
    %160 = vector.broadcast %131 : vector<1x128xf32> to vector<11x128xf32>
    %161 = arith.mulf %159, %160 : vector<11x128xf32>
    %162 = vector.broadcast %132 : vector<1x128xf32> to vector<11x128xf32>
    %163 = arith.addf %161, %162 : vector<11x128xf32>
    %cst_106 = arith.constant 0.000000e+00 : f32
    %164 = vector.broadcast %cst_106 : f32 to vector<11x128xf32>
    %165 = arith.maximumf %163, %164 : vector<11x128xf32>
    %166 = arith.truncf %126 : vector<13x128xf32> to vector<13x128xbf16>
    %c0_107 = arith.constant 0 : index
    %c0_108 = arith.constant 0 : index
    %167 = vector.load %arg32[%c0_107, %c0_108] : memref<128x128xbf16, #tpu.memory_space<vmem>>, vector<128x128xbf16>
    %c0_109 = arith.constant 0 : index
    %c0_110 = arith.constant 0 : index
    %168 = vector.load %arg33[%c0_109, %c0_110] : memref<128x128xbf16, #tpu.memory_space<vmem>>, vector<128x128xbf16>
    %c0_111 = arith.constant 0 : index
    %c0_112 = arith.constant 0 : index
    %169 = vector.load %arg34[%c0_111, %c0_112] : memref<1x128xf32, #tpu.memory_space<vmem>>, vector<1x128xf32>
    %c0_113 = arith.constant 0 : index
    %c0_114 = arith.constant 0 : index
    %170 = vector.load %arg35[%c0_113, %c0_114] : memref<1x128xf32, #tpu.memory_space<vmem>>, vector<1x128xf32>
    %c0_115 = arith.constant 0 : index
    %c0_116 = arith.constant 0 : index
    %171 = vector.load %arg36[%c0_115, %c0_116] : memref<1x128xf32, #tpu.memory_space<vmem>>, vector<1x128xf32>
    %cst_117 = arith.constant dense<0.000000e+00> : vector<13x128xf32>
    %172 = tpu.matmul %1, %166, %cst_117 {dimension_numbers = #tpu.dot_dimension_numbers<[1], [0], [0], [1], [0, 0, 1, 1], [], []>} : vector<13x13xbf16>, vector<13x128xbf16>, vector<13x128xf32> -> vector<13x128xf32>
    %cst_118 = arith.constant dense<0.000000e+00> : vector<13x128xf32>
    %173 = tpu.matmul %166, %167, %cst_118 {dimension_numbers = #tpu.dot_dimension_numbers<[1], [0], [0], [1], [0, 0, 1, 1], [], []>} : vector<13x128xbf16>, vector<128x128xbf16>, vector<13x128xf32> -> vector<13x128xf32>
    %174 = arith.truncf %172 : vector<13x128xf32> to vector<13x128xbf16>
    %cst_119 = arith.constant dense<0.000000e+00> : vector<13x128xf32>
    %175 = tpu.matmul %174, %168, %cst_119 {dimension_numbers = #tpu.dot_dimension_numbers<[1], [0], [0], [1], [0, 0, 1, 1], [], []>} : vector<13x128xbf16>, vector<128x128xbf16>, vector<13x128xf32> -> vector<13x128xf32>
    %176 = arith.subf %173, %175 : vector<13x128xf32>
    %177 = vector.broadcast %169 : vector<1x128xf32> to vector<13x128xf32>
    %178 = arith.addf %176, %177 : vector<13x128xf32>
    %179 = arith.truncf %178 : vector<13x128xf32> to vector<13x128xbf16>
    %cst_120 = arith.constant dense<0.000000e+00> : vector<1x128xf32>
    %180 = tpu.matmul %6, %179, %cst_120 {dimension_numbers = #tpu.dot_dimension_numbers<[1], [0], [0], [1], [0, 0, 1, 1], [], []>} : vector<1x13xbf16>, vector<13x128xbf16>, vector<1x128xf32> -> vector<1x128xf32>
    %181 = arith.mulf %178, %178 : vector<13x128xf32>
    %182 = arith.truncf %181 : vector<13x128xf32> to vector<13x128xbf16>
    %cst_121 = arith.constant dense<0.000000e+00> : vector<1x128xf32>
    %183 = tpu.matmul %6, %182, %cst_121 {dimension_numbers = #tpu.dot_dimension_numbers<[1], [0], [0], [1], [0, 0, 1, 1], [], []>} : vector<1x13xbf16>, vector<13x128xbf16>, vector<1x128xf32> -> vector<1x128xf32>
    %cst_122 = arith.constant 0.0769230798 : f32
    %184 = vector.broadcast %cst_122 : f32 to vector<1x128xf32>
    %185 = arith.mulf %180, %184 : vector<1x128xf32>
    %cst_123 = arith.constant 0.0769230798 : f32
    %186 = vector.broadcast %cst_123 : f32 to vector<1x128xf32>
    %187 = arith.mulf %183, %186 : vector<1x128xf32>
    %188 = arith.mulf %185, %185 : vector<1x128xf32>
    %189 = arith.subf %187, %188 : vector<1x128xf32>
    %cst_124 = arith.constant 0.000000e+00 : f32
    %190 = vector.broadcast %cst_124 : f32 to vector<1x128xf32>
    %191 = arith.maximumf %189, %190 : vector<1x128xf32>
    %192 = vector.broadcast %185 : vector<1x128xf32> to vector<13x128xf32>
    %193 = arith.subf %178, %192 : vector<13x128xf32>
    %cst_125 = arith.constant 9.99999974E-6 : f32
    %194 = vector.broadcast %cst_125 : f32 to vector<1x128xf32>
    %195 = arith.addf %191, %194 : vector<1x128xf32>
    %196 = math.rsqrt %195 : vector<1x128xf32>
    %197 = vector.broadcast %196 : vector<1x128xf32> to vector<13x128xf32>
    %198 = arith.mulf %193, %197 : vector<13x128xf32>
    %199 = vector.broadcast %170 : vector<1x128xf32> to vector<13x128xf32>
    %200 = arith.mulf %198, %199 : vector<13x128xf32>
    %201 = vector.broadcast %171 : vector<1x128xf32> to vector<13x128xf32>
    %202 = arith.addf %200, %201 : vector<13x128xf32>
    %cst_126 = arith.constant 0.000000e+00 : f32
    %203 = vector.broadcast %cst_126 : f32 to vector<13x128xf32>
    %204 = arith.maximumf %202, %203 : vector<13x128xf32>
    %205 = arith.truncf %165 : vector<11x128xf32> to vector<11x128xbf16>
    %206 = arith.truncf %204 : vector<13x128xf32> to vector<13x128xbf16>
    %c0_127 = arith.constant 0 : index
    %c128 = arith.constant 128 : index
    %207 = vector.load %arg94[%c0_127, %c128] : memref<11x640xbf16, #tpu.memory_space<vmem>>, vector<11x128xbf16>
    tpu.vector_store %arg94[%c0_127, %c128], %205 {strides = array<i32>} : memref<11x640xbf16, #tpu.memory_space<vmem>>, vector<11x128xbf16>,
    %c0_128 = arith.constant 0 : index
    %c128_129 = arith.constant 128 : index
    %208 = vector.load %arg95[%c0_128, %c128_129] : memref<13x640xbf16, #tpu.memory_space<vmem>>, vector<13x128xbf16>
    tpu.vector_store %arg95[%c0_128, %c128_129], %206 {strides = array<i32>} : memref<13x640xbf16, #tpu.memory_space<vmem>>, vector<13x128xbf16>,
    %c0_130 = arith.constant 0 : index
    %c0_131 = arith.constant 0 : index
    %209 = vector.load %arg37[%c0_130, %c0_131] : memref<256x128xbf16, #tpu.memory_space<vmem>>, vector<256x128xbf16>
    %c0_132 = arith.constant 0 : index
    %c0_133 = arith.constant 0 : index
    %210 = vector.load %arg38[%c0_132, %c0_133] : memref<1x128xf32, #tpu.memory_space<vmem>>, vector<1x128xf32>
    %c0_134 = arith.constant 0 : index
    %c0_135 = arith.constant 0 : index
    %211 = vector.load %arg39[%c0_134, %c0_135] : memref<256x128xbf16, #tpu.memory_space<vmem>>, vector<256x128xbf16>
    %c0_136 = arith.constant 0 : index
    %c0_137 = arith.constant 0 : index
    %212 = vector.load %arg40[%c0_136, %c0_137] : memref<1x128xf32, #tpu.memory_space<vmem>>, vector<1x128xf32>
    %c0_138 = arith.constant 0 : index
    %c0_139 = arith.constant 0 : index
    %213 = vector.load %arg41[%c0_138, %c0_139] : memref<256x128xbf16, #tpu.memory_space<vmem>>, vector<256x128xbf16>
    %c0_140 = arith.constant 0 : index
    %c0_141 = arith.constant 0 : index
    %214 = vector.load %arg42[%c0_140, %c0_141] : memref<1x128xf32, #tpu.memory_space<vmem>>, vector<1x128xf32>
    %c0_142 = arith.constant 0 : index
    %c0_143 = arith.constant 0 : index
    %215 = vector.load %arg43[%c0_142, %c0_143] : memref<256x128xbf16, #tpu.memory_space<vmem>>, vector<256x128xbf16>
    %c0_144 = arith.constant 0 : index
    %c0_145 = arith.constant 0 : index
    %216 = vector.load %arg44[%c0_144, %c0_145] : memref<1x128xf32, #tpu.memory_space<vmem>>, vector<1x128xf32>
    %c0_146 = arith.constant 0 : index
    %c0_147 = arith.constant 0 : index
    %217 = vector.load %arg94[%c0_146, %c0_147] : memref<11x640xbf16, #tpu.memory_space<vmem>>, vector<11x256xbf16>
    %c0_148 = arith.constant 0 : index
    %c0_149 = arith.constant 0 : index
    %218 = vector.load %arg95[%c0_148, %c0_149] : memref<13x640xbf16, #tpu.memory_space<vmem>>, vector<13x256xbf16>
    %cst_150 = arith.constant dense<0.000000e+00> : vector<11x128xf32>
    %219 = tpu.matmul %217, %209, %cst_150 {dimension_numbers = #tpu.dot_dimension_numbers<[1], [0], [0], [1], [0, 0, 1, 1], [], []>} : vector<11x256xbf16>, vector<256x128xbf16>, vector<11x128xf32> -> vector<11x128xf32>
    %220 = vector.broadcast %210 : vector<1x128xf32> to vector<11x128xf32>
    %221 = arith.addf %219, %220 : vector<11x128xf32>
    %cst_151 = arith.constant dense<0.000000e+00> : vector<13x128xf32>
    %222 = tpu.matmul %218, %215, %cst_151 {dimension_numbers = #tpu.dot_dimension_numbers<[1], [0], [0], [1], [0, 0, 1, 1], [], []>} : vector<13x256xbf16>, vector<256x128xbf16>, vector<13x128xf32> -> vector<13x128xf32>
    %223 = vector.broadcast %216 : vector<1x128xf32> to vector<13x128xf32>
    %224 = arith.addf %222, %223 : vector<13x128xf32>
    %225 = arith.truncf %224 : vector<13x128xf32> to vector<13x128xbf16>
    %cst_152 = arith.constant dense<0.000000e+00> : vector<11x128xf32>
    %226 = tpu.matmul %2, %225, %cst_152 {dimension_numbers = #tpu.dot_dimension_numbers<[1], [0], [0], [1], [0, 0, 1, 1], [], []>} : vector<11x13xbf16>, vector<13x128xbf16>, vector<11x128xf32> -> vector<11x128xf32>
    %227 = vector.broadcast %4 : vector<11x1xf32> to vector<11x128xf32>
    %228 = arith.mulf %226, %227 : vector<11x128xf32>
    %229 = arith.addf %221, %228 : vector<11x128xf32>
    %cst_153 = arith.constant 0.000000e+00 : f32
    %230 = vector.broadcast %cst_153 : f32 to vector<11x128xf32>
    %231 = arith.maximumf %229, %230 : vector<11x128xf32>
    %cst_154 = arith.constant dense<0.000000e+00> : vector<13x128xf32>
    %232 = tpu.matmul %218, %213, %cst_154 {dimension_numbers = #tpu.dot_dimension_numbers<[1], [0], [0], [1], [0, 0, 1, 1], [], []>} : vector<13x256xbf16>, vector<256x128xbf16>, vector<13x128xf32> -> vector<13x128xf32>
    %233 = vector.broadcast %214 : vector<1x128xf32> to vector<13x128xf32>
    %234 = arith.addf %232, %233 : vector<13x128xf32>
    %cst_155 = arith.constant dense<0.000000e+00> : vector<11x128xf32>
    %235 = tpu.matmul %217, %211, %cst_155 {dimension_numbers = #tpu.dot_dimension_numbers<[1], [0], [0], [1], [0, 0, 1, 1], [], []>} : vector<11x256xbf16>, vector<256x128xbf16>, vector<11x128xf32> -> vector<11x128xf32>
    %236 = vector.broadcast %212 : vector<1x128xf32> to vector<11x128xf32>
    %237 = arith.addf %235, %236 : vector<11x128xf32>
    %238 = arith.truncf %237 : vector<11x128xf32> to vector<11x128xbf16>
    %cst_156 = arith.constant dense<0.000000e+00> : vector<13x128xf32>
    %239 = tpu.matmul %3, %238, %cst_156 {dimension_numbers = #tpu.dot_dimension_numbers<[1], [0], [0], [1], [0, 0, 1, 1], [], []>} : vector<13x11xbf16>, vector<11x128xbf16>, vector<13x128xf32> -> vector<13x128xf32>
    %cst_157 = arith.constant 5.000000e-01 : f32
    %240 = vector.broadcast %cst_157 : f32 to vector<13x128xf32>
    %241 = arith.mulf %239, %240 : vector<13x128xf32>
    %242 = arith.addf %234, %241 : vector<13x128xf32>
    %cst_158 = arith.constant 0.000000e+00 : f32
    %243 = vector.broadcast %cst_158 : f32 to vector<13x128xf32>
    %244 = arith.maximumf %242, %243 : vector<13x128xf32>
    %245 = arith.truncf %231 : vector<11x128xf32> to vector<11x128xbf16>
    %c0_159 = arith.constant 0 : index
    %c0_160 = arith.constant 0 : index
    %246 = vector.load %arg45[%c0_159, %c0_160] : memref<128x128xbf16, #tpu.memory_space<vmem>>, vector<128x128xbf16>
    %c0_161 = arith.constant 0 : index
    %c0_162 = arith.constant 0 : index
    %247 = vector.load %arg46[%c0_161, %c0_162] : memref<128x128xbf16, #tpu.memory_space<vmem>>, vector<128x128xbf16>
    %c0_163 = arith.constant 0 : index
    %c0_164 = arith.constant 0 : index
    %248 = vector.load %arg47[%c0_163, %c0_164] : memref<1x128xf32, #tpu.memory_space<vmem>>, vector<1x128xf32>
    %c0_165 = arith.constant 0 : index
    %c0_166 = arith.constant 0 : index
    %249 = vector.load %arg48[%c0_165, %c0_166] : memref<1x128xf32, #tpu.memory_space<vmem>>, vector<1x128xf32>
    %c0_167 = arith.constant 0 : index
    %c0_168 = arith.constant 0 : index
    %250 = vector.load %arg49[%c0_167, %c0_168] : memref<1x128xf32, #tpu.memory_space<vmem>>, vector<1x128xf32>
    %cst_169 = arith.constant dense<0.000000e+00> : vector<11x128xf32>
    %251 = tpu.matmul %0, %245, %cst_169 {dimension_numbers = #tpu.dot_dimension_numbers<[1], [0], [0], [1], [0, 0, 1, 1], [], []>} : vector<11x11xbf16>, vector<11x128xbf16>, vector<11x128xf32> -> vector<11x128xf32>
    %cst_170 = arith.constant dense<0.000000e+00> : vector<11x128xf32>
    %252 = tpu.matmul %245, %246, %cst_170 {dimension_numbers = #tpu.dot_dimension_numbers<[1], [0], [0], [1], [0, 0, 1, 1], [], []>} : vector<11x128xbf16>, vector<128x128xbf16>, vector<11x128xf32> -> vector<11x128xf32>
    %253 = arith.truncf %251 : vector<11x128xf32> to vector<11x128xbf16>
    %cst_171 = arith.constant dense<0.000000e+00> : vector<11x128xf32>
    %254 = tpu.matmul %253, %247, %cst_171 {dimension_numbers = #tpu.dot_dimension_numbers<[1], [0], [0], [1], [0, 0, 1, 1], [], []>} : vector<11x128xbf16>, vector<128x128xbf16>, vector<11x128xf32> -> vector<11x128xf32>
    %255 = arith.subf %252, %254 : vector<11x128xf32>
    %256 = vector.broadcast %248 : vector<1x128xf32> to vector<11x128xf32>
    %257 = arith.addf %255, %256 : vector<11x128xf32>
    %258 = arith.truncf %257 : vector<11x128xf32> to vector<11x128xbf16>
    %cst_172 = arith.constant dense<0.000000e+00> : vector<1x128xf32>
    %259 = tpu.matmul %5, %258, %cst_172 {dimension_numbers = #tpu.dot_dimension_numbers<[1], [0], [0], [1], [0, 0, 1, 1], [], []>} : vector<1x11xbf16>, vector<11x128xbf16>, vector<1x128xf32> -> vector<1x128xf32>
    %260 = arith.mulf %257, %257 : vector<11x128xf32>
    %261 = arith.truncf %260 : vector<11x128xf32> to vector<11x128xbf16>
    %cst_173 = arith.constant dense<0.000000e+00> : vector<1x128xf32>
    %262 = tpu.matmul %5, %261, %cst_173 {dimension_numbers = #tpu.dot_dimension_numbers<[1], [0], [0], [1], [0, 0, 1, 1], [], []>} : vector<1x11xbf16>, vector<11x128xbf16>, vector<1x128xf32> -> vector<1x128xf32>
    %cst_174 = arith.constant 0.0909090936 : f32
    %263 = vector.broadcast %cst_174 : f32 to vector<1x128xf32>
    %264 = arith.mulf %259, %263 : vector<1x128xf32>
    %cst_175 = arith.constant 0.0909090936 : f32
    %265 = vector.broadcast %cst_175 : f32 to vector<1x128xf32>
    %266 = arith.mulf %262, %265 : vector<1x128xf32>
    %267 = arith.mulf %264, %264 : vector<1x128xf32>
    %268 = arith.subf %266, %267 : vector<1x128xf32>
    %cst_176 = arith.constant 0.000000e+00 : f32
    %269 = vector.broadcast %cst_176 : f32 to vector<1x128xf32>
    %270 = arith.maximumf %268, %269 : vector<1x128xf32>
    %271 = vector.broadcast %264 : vector<1x128xf32> to vector<11x128xf32>
    %272 = arith.subf %257, %271 : vector<11x128xf32>
    %cst_177 = arith.constant 9.99999974E-6 : f32
    %273 = vector.broadcast %cst_177 : f32 to vector<1x128xf32>
    %274 = arith.addf %270, %273 : vector<1x128xf32>
    %275 = math.rsqrt %274 : vector<1x128xf32>
    %276 = vector.broadcast %275 : vector<1x128xf32> to vector<11x128xf32>
    %277 = arith.mulf %272, %276 : vector<11x128xf32>
    %278 = vector.broadcast %249 : vector<1x128xf32> to vector<11x128xf32>
    %279 = arith.mulf %277, %278 : vector<11x128xf32>
    %280 = vector.broadcast %250 : vector<1x128xf32> to vector<11x128xf32>
    %281 = arith.addf %279, %280 : vector<11x128xf32>
    %cst_178 = arith.constant 0.000000e+00 : f32
    %282 = vector.broadcast %cst_178 : f32 to vector<11x128xf32>
    %283 = arith.maximumf %281, %282 : vector<11x128xf32>
    %284 = arith.truncf %244 : vector<13x128xf32> to vector<13x128xbf16>
    %c0_179 = arith.constant 0 : index
    %c0_180 = arith.constant 0 : index
    %285 = vector.load %arg50[%c0_179, %c0_180] : memref<128x128xbf16, #tpu.memory_space<vmem>>, vector<128x128xbf16>
    %c0_181 = arith.constant 0 : index
    %c0_182 = arith.constant 0 : index
    %286 = vector.load %arg51[%c0_181, %c0_182] : memref<128x128xbf16, #tpu.memory_space<vmem>>, vector<128x128xbf16>
    %c0_183 = arith.constant 0 : index
    %c0_184 = arith.constant 0 : index
    %287 = vector.load %arg52[%c0_183, %c0_184] : memref<1x128xf32, #tpu.memory_space<vmem>>, vector<1x128xf32>
    %c0_185 = arith.constant 0 : index
    %c0_186 = arith.constant 0 : index
    %288 = vector.load %arg53[%c0_185, %c0_186] : memref<1x128xf32, #tpu.memory_space<vmem>>, vector<1x128xf32>
    %c0_187 = arith.constant 0 : index
    %c0_188 = arith.constant 0 : index
    %289 = vector.load %arg54[%c0_187, %c0_188] : memref<1x128xf32, #tpu.memory_space<vmem>>, vector<1x128xf32>
    %cst_189 = arith.constant dense<0.000000e+00> : vector<13x128xf32>
    %290 = tpu.matmul %1, %284, %cst_189 {dimension_numbers = #tpu.dot_dimension_numbers<[1], [0], [0], [1], [0, 0, 1, 1], [], []>} : vector<13x13xbf16>, vector<13x128xbf16>, vector<13x128xf32> -> vector<13x128xf32>
    %cst_190 = arith.constant dense<0.000000e+00> : vector<13x128xf32>
    %291 = tpu.matmul %284, %285, %cst_190 {dimension_numbers = #tpu.dot_dimension_numbers<[1], [0], [0], [1], [0, 0, 1, 1], [], []>} : vector<13x128xbf16>, vector<128x128xbf16>, vector<13x128xf32> -> vector<13x128xf32>
    %292 = arith.truncf %290 : vector<13x128xf32> to vector<13x128xbf16>
    %cst_191 = arith.constant dense<0.000000e+00> : vector<13x128xf32>
    %293 = tpu.matmul %292, %286, %cst_191 {dimension_numbers = #tpu.dot_dimension_numbers<[1], [0], [0], [1], [0, 0, 1, 1], [], []>} : vector<13x128xbf16>, vector<128x128xbf16>, vector<13x128xf32> -> vector<13x128xf32>
    %294 = arith.subf %291, %293 : vector<13x128xf32>
    %295 = vector.broadcast %287 : vector<1x128xf32> to vector<13x128xf32>
    %296 = arith.addf %294, %295 : vector<13x128xf32>
    %297 = arith.truncf %296 : vector<13x128xf32> to vector<13x128xbf16>
    %cst_192 = arith.constant dense<0.000000e+00> : vector<1x128xf32>
    %298 = tpu.matmul %6, %297, %cst_192 {dimension_numbers = #tpu.dot_dimension_numbers<[1], [0], [0], [1], [0, 0, 1, 1], [], []>} : vector<1x13xbf16>, vector<13x128xbf16>, vector<1x128xf32> -> vector<1x128xf32>
    %299 = arith.mulf %296, %296 : vector<13x128xf32>
    %300 = arith.truncf %299 : vector<13x128xf32> to vector<13x128xbf16>
    %cst_193 = arith.constant dense<0.000000e+00> : vector<1x128xf32>
    %301 = tpu.matmul %6, %300, %cst_193 {dimension_numbers = #tpu.dot_dimension_numbers<[1], [0], [0], [1], [0, 0, 1, 1], [], []>} : vector<1x13xbf16>, vector<13x128xbf16>, vector<1x128xf32> -> vector<1x128xf32>
    %cst_194 = arith.constant 0.0769230798 : f32
    %302 = vector.broadcast %cst_194 : f32 to vector<1x128xf32>
    %303 = arith.mulf %298, %302 : vector<1x128xf32>
    %cst_195 = arith.constant 0.0769230798 : f32
    %304 = vector.broadcast %cst_195 : f32 to vector<1x128xf32>
    %305 = arith.mulf %301, %304 : vector<1x128xf32>
    %306 = arith.mulf %303, %303 : vector<1x128xf32>
    %307 = arith.subf %305, %306 : vector<1x128xf32>
    %cst_196 = arith.constant 0.000000e+00 : f32
    %308 = vector.broadcast %cst_196 : f32 to vector<1x128xf32>
    %309 = arith.maximumf %307, %308 : vector<1x128xf32>
    %310 = vector.broadcast %303 : vector<1x128xf32> to vector<13x128xf32>
    %311 = arith.subf %296, %310 : vector<13x128xf32>
    %cst_197 = arith.constant 9.99999974E-6 : f32
    %312 = vector.broadcast %cst_197 : f32 to vector<1x128xf32>
    %313 = arith.addf %309, %312 : vector<1x128xf32>
    %314 = math.rsqrt %313 : vector<1x128xf32>
    %315 = vector.broadcast %314 : vector<1x128xf32> to vector<13x128xf32>
    %316 = arith.mulf %311, %315 : vector<13x128xf32>
    %317 = vector.broadcast %288 : vector<1x128xf32> to vector<13x128xf32>
    %318 = arith.mulf %316, %317 : vector<13x128xf32>
    %319 = vector.broadcast %289 : vector<1x128xf32> to vector<13x128xf32>
    %320 = arith.addf %318, %319 : vector<13x128xf32>
    %cst_198 = arith.constant 0.000000e+00 : f32
    %321 = vector.broadcast %cst_198 : f32 to vector<13x128xf32>
    %322 = arith.maximumf %320, %321 : vector<13x128xf32>
    %323 = arith.truncf %283 : vector<11x128xf32> to vector<11x128xbf16>
    %324 = arith.truncf %322 : vector<13x128xf32> to vector<13x128xbf16>
    %c0_199 = arith.constant 0 : index
    %c256 = arith.constant 256 : index
    %325 = vector.load %arg94[%c0_199, %c256] : memref<11x640xbf16, #tpu.memory_space<vmem>>, vector<11x128xbf16>
    tpu.vector_store %arg94[%c0_199, %c256], %323 {strides = array<i32>} : memref<11x640xbf16, #tpu.memory_space<vmem>>, vector<11x128xbf16>,
    %c0_200 = arith.constant 0 : index
    %c256_201 = arith.constant 256 : index
    %326 = vector.load %arg95[%c0_200, %c256_201] : memref<13x640xbf16, #tpu.memory_space<vmem>>, vector<13x128xbf16>
    tpu.vector_store %arg95[%c0_200, %c256_201], %324 {strides = array<i32>} : memref<13x640xbf16, #tpu.memory_space<vmem>>, vector<13x128xbf16>,
    %c0_202 = arith.constant 0 : index
    %c0_203 = arith.constant 0 : index
    %327 = vector.load %arg55[%c0_202, %c0_203] : memref<384x128xbf16, #tpu.memory_space<vmem>>, vector<384x128xbf16>
    %c0_204 = arith.constant 0 : index
    %c0_205 = arith.constant 0 : index
    %328 = vector.load %arg56[%c0_204, %c0_205] : memref<1x128xf32, #tpu.memory_space<vmem>>, vector<1x128xf32>
    %c0_206 = arith.constant 0 : index
    %c0_207 = arith.constant 0 : index
    %329 = vector.load %arg57[%c0_206, %c0_207] : memref<384x128xbf16, #tpu.memory_space<vmem>>, vector<384x128xbf16>
    %c0_208 = arith.constant 0 : index
    %c0_209 = arith.constant 0 : index
    %330 = vector.load %arg58[%c0_208, %c0_209] : memref<1x128xf32, #tpu.memory_space<vmem>>, vector<1x128xf32>
    %c0_210 = arith.constant 0 : index
    %c0_211 = arith.constant 0 : index
    %331 = vector.load %arg59[%c0_210, %c0_211] : memref<384x128xbf16, #tpu.memory_space<vmem>>, vector<384x128xbf16>
    %c0_212 = arith.constant 0 : index
    %c0_213 = arith.constant 0 : index
    %332 = vector.load %arg60[%c0_212, %c0_213] : memref<1x128xf32, #tpu.memory_space<vmem>>, vector<1x128xf32>
    %c0_214 = arith.constant 0 : index
    %c0_215 = arith.constant 0 : index
    %333 = vector.load %arg61[%c0_214, %c0_215] : memref<384x128xbf16, #tpu.memory_space<vmem>>, vector<384x128xbf16>
    %c0_216 = arith.constant 0 : index
    %c0_217 = arith.constant 0 : index
    %334 = vector.load %arg62[%c0_216, %c0_217] : memref<1x128xf32, #tpu.memory_space<vmem>>, vector<1x128xf32>
    %c0_218 = arith.constant 0 : index
    %c0_219 = arith.constant 0 : index
    %335 = vector.load %arg94[%c0_218, %c0_219] : memref<11x640xbf16, #tpu.memory_space<vmem>>, vector<11x384xbf16>
    %c0_220 = arith.constant 0 : index
    %c0_221 = arith.constant 0 : index
    %336 = vector.load %arg95[%c0_220, %c0_221] : memref<13x640xbf16, #tpu.memory_space<vmem>>, vector<13x384xbf16>
    %cst_222 = arith.constant dense<0.000000e+00> : vector<11x128xf32>
    %337 = tpu.matmul %335, %327, %cst_222 {dimension_numbers = #tpu.dot_dimension_numbers<[1], [0], [0], [1], [0, 0, 1, 1], [], []>} : vector<11x384xbf16>, vector<384x128xbf16>, vector<11x128xf32> -> vector<11x128xf32>
    %338 = vector.broadcast %328 : vector<1x128xf32> to vector<11x128xf32>
    %339 = arith.addf %337, %338 : vector<11x128xf32>
    %cst_223 = arith.constant dense<0.000000e+00> : vector<13x128xf32>
    %340 = tpu.matmul %336, %333, %cst_223 {dimension_numbers = #tpu.dot_dimension_numbers<[1], [0], [0], [1], [0, 0, 1, 1], [], []>} : vector<13x384xbf16>, vector<384x128xbf16>, vector<13x128xf32> -> vector<13x128xf32>
    %341 = vector.broadcast %334 : vector<1x128xf32> to vector<13x128xf32>
    %342 = arith.addf %340, %341 : vector<13x128xf32>
    %343 = arith.truncf %342 : vector<13x128xf32> to vector<13x128xbf16>
    %cst_224 = arith.constant dense<0.000000e+00> : vector<11x128xf32>
    %344 = tpu.matmul %2, %343, %cst_224 {dimension_numbers = #tpu.dot_dimension_numbers<[1], [0], [0], [1], [0, 0, 1, 1], [], []>} : vector<11x13xbf16>, vector<13x128xbf16>, vector<11x128xf32> -> vector<11x128xf32>
    %345 = vector.broadcast %4 : vector<11x1xf32> to vector<11x128xf32>
    %346 = arith.mulf %344, %345 : vector<11x128xf32>
    %347 = arith.addf %339, %346 : vector<11x128xf32>
    %cst_225 = arith.constant 0.000000e+00 : f32
    %348 = vector.broadcast %cst_225 : f32 to vector<11x128xf32>
    %349 = arith.maximumf %347, %348 : vector<11x128xf32>
    %cst_226 = arith.constant dense<0.000000e+00> : vector<13x128xf32>
    %350 = tpu.matmul %336, %331, %cst_226 {dimension_numbers = #tpu.dot_dimension_numbers<[1], [0], [0], [1], [0, 0, 1, 1], [], []>} : vector<13x384xbf16>, vector<384x128xbf16>, vector<13x128xf32> -> vector<13x128xf32>
    %351 = vector.broadcast %332 : vector<1x128xf32> to vector<13x128xf32>
    %352 = arith.addf %350, %351 : vector<13x128xf32>
    %cst_227 = arith.constant dense<0.000000e+00> : vector<11x128xf32>
    %353 = tpu.matmul %335, %329, %cst_227 {dimension_numbers = #tpu.dot_dimension_numbers<[1], [0], [0], [1], [0, 0, 1, 1], [], []>} : vector<11x384xbf16>, vector<384x128xbf16>, vector<11x128xf32> -> vector<11x128xf32>
    %354 = vector.broadcast %330 : vector<1x128xf32> to vector<11x128xf32>
    %355 = arith.addf %353, %354 : vector<11x128xf32>
    %356 = arith.truncf %355 : vector<11x128xf32> to vector<11x128xbf16>
    %cst_228 = arith.constant dense<0.000000e+00> : vector<13x128xf32>
    %357 = tpu.matmul %3, %356, %cst_228 {dimension_numbers = #tpu.dot_dimension_numbers<[1], [0], [0], [1], [0, 0, 1, 1], [], []>} : vector<13x11xbf16>, vector<11x128xbf16>, vector<13x128xf32> -> vector<13x128xf32>
    %cst_229 = arith.constant 5.000000e-01 : f32
    %358 = vector.broadcast %cst_229 : f32 to vector<13x128xf32>
    %359 = arith.mulf %357, %358 : vector<13x128xf32>
    %360 = arith.addf %352, %359 : vector<13x128xf32>
    %cst_230 = arith.constant 0.000000e+00 : f32
    %361 = vector.broadcast %cst_230 : f32 to vector<13x128xf32>
    %362 = arith.maximumf %360, %361 : vector<13x128xf32>
    %363 = arith.truncf %349 : vector<11x128xf32> to vector<11x128xbf16>
    %c0_231 = arith.constant 0 : index
    %c0_232 = arith.constant 0 : index
    %364 = vector.load %arg63[%c0_231, %c0_232] : memref<128x128xbf16, #tpu.memory_space<vmem>>, vector<128x128xbf16>
    %c0_233 = arith.constant 0 : index
    %c0_234 = arith.constant 0 : index
    %365 = vector.load %arg64[%c0_233, %c0_234] : memref<128x128xbf16, #tpu.memory_space<vmem>>, vector<128x128xbf16>
    %c0_235 = arith.constant 0 : index
    %c0_236 = arith.constant 0 : index
    %366 = vector.load %arg65[%c0_235, %c0_236] : memref<1x128xf32, #tpu.memory_space<vmem>>, vector<1x128xf32>
    %c0_237 = arith.constant 0 : index
    %c0_238 = arith.constant 0 : index
    %367 = vector.load %arg66[%c0_237, %c0_238] : memref<1x128xf32, #tpu.memory_space<vmem>>, vector<1x128xf32>
    %c0_239 = arith.constant 0 : index
    %c0_240 = arith.constant 0 : index
    %368 = vector.load %arg67[%c0_239, %c0_240] : memref<1x128xf32, #tpu.memory_space<vmem>>, vector<1x128xf32>
    %cst_241 = arith.constant dense<0.000000e+00> : vector<11x128xf32>
    %369 = tpu.matmul %0, %363, %cst_241 {dimension_numbers = #tpu.dot_dimension_numbers<[1], [0], [0], [1], [0, 0, 1, 1], [], []>} : vector<11x11xbf16>, vector<11x128xbf16>, vector<11x128xf32> -> vector<11x128xf32>
    %cst_242 = arith.constant dense<0.000000e+00> : vector<11x128xf32>
    %370 = tpu.matmul %363, %364, %cst_242 {dimension_numbers = #tpu.dot_dimension_numbers<[1], [0], [0], [1], [0, 0, 1, 1], [], []>} : vector<11x128xbf16>, vector<128x128xbf16>, vector<11x128xf32> -> vector<11x128xf32>
    %371 = arith.truncf %369 : vector<11x128xf32> to vector<11x128xbf16>
    %cst_243 = arith.constant dense<0.000000e+00> : vector<11x128xf32>
    %372 = tpu.matmul %371, %365, %cst_243 {dimension_numbers = #tpu.dot_dimension_numbers<[1], [0], [0], [1], [0, 0, 1, 1], [], []>} : vector<11x128xbf16>, vector<128x128xbf16>, vector<11x128xf32> -> vector<11x128xf32>
    %373 = arith.subf %370, %372 : vector<11x128xf32>
    %374 = vector.broadcast %366 : vector<1x128xf32> to vector<11x128xf32>
    %375 = arith.addf %373, %374 : vector<11x128xf32>
    %376 = arith.truncf %375 : vector<11x128xf32> to vector<11x128xbf16>
    %cst_244 = arith.constant dense<0.000000e+00> : vector<1x128xf32>
    %377 = tpu.matmul %5, %376, %cst_244 {dimension_numbers = #tpu.dot_dimension_numbers<[1], [0], [0], [1], [0, 0, 1, 1], [], []>} : vector<1x11xbf16>, vector<11x128xbf16>, vector<1x128xf32> -> vector<1x128xf32>
    %378 = arith.mulf %375, %375 : vector<11x128xf32>
    %379 = arith.truncf %378 : vector<11x128xf32> to vector<11x128xbf16>
    %cst_245 = arith.constant dense<0.000000e+00> : vector<1x128xf32>
    %380 = tpu.matmul %5, %379, %cst_245 {dimension_numbers = #tpu.dot_dimension_numbers<[1], [0], [0], [1], [0, 0, 1, 1], [], []>} : vector<1x11xbf16>, vector<11x128xbf16>, vector<1x128xf32> -> vector<1x128xf32>
    %cst_246 = arith.constant 0.0909090936 : f32
    %381 = vector.broadcast %cst_246 : f32 to vector<1x128xf32>
    %382 = arith.mulf %377, %381 : vector<1x128xf32>
    %cst_247 = arith.constant 0.0909090936 : f32
    %383 = vector.broadcast %cst_247 : f32 to vector<1x128xf32>
    %384 = arith.mulf %380, %383 : vector<1x128xf32>
    %385 = arith.mulf %382, %382 : vector<1x128xf32>
    %386 = arith.subf %384, %385 : vector<1x128xf32>
    %cst_248 = arith.constant 0.000000e+00 : f32
    %387 = vector.broadcast %cst_248 : f32 to vector<1x128xf32>
    %388 = arith.maximumf %386, %387 : vector<1x128xf32>
    %389 = vector.broadcast %382 : vector<1x128xf32> to vector<11x128xf32>
    %390 = arith.subf %375, %389 : vector<11x128xf32>
    %cst_249 = arith.constant 9.99999974E-6 : f32
    %391 = vector.broadcast %cst_249 : f32 to vector<1x128xf32>
    %392 = arith.addf %388, %391 : vector<1x128xf32>
    %393 = math.rsqrt %392 : vector<1x128xf32>
    %394 = vector.broadcast %393 : vector<1x128xf32> to vector<11x128xf32>
    %395 = arith.mulf %390, %394 : vector<11x128xf32>
    %396 = vector.broadcast %367 : vector<1x128xf32> to vector<11x128xf32>
    %397 = arith.mulf %395, %396 : vector<11x128xf32>
    %398 = vector.broadcast %368 : vector<1x128xf32> to vector<11x128xf32>
    %399 = arith.addf %397, %398 : vector<11x128xf32>
    %cst_250 = arith.constant 0.000000e+00 : f32
    %400 = vector.broadcast %cst_250 : f32 to vector<11x128xf32>
    %401 = arith.maximumf %399, %400 : vector<11x128xf32>
    %402 = arith.truncf %362 : vector<13x128xf32> to vector<13x128xbf16>
    %c0_251 = arith.constant 0 : index
    %c0_252 = arith.constant 0 : index
    %403 = vector.load %arg68[%c0_251, %c0_252] : memref<128x128xbf16, #tpu.memory_space<vmem>>, vector<128x128xbf16>
    %c0_253 = arith.constant 0 : index
    %c0_254 = arith.constant 0 : index
    %404 = vector.load %arg69[%c0_253, %c0_254] : memref<128x128xbf16, #tpu.memory_space<vmem>>, vector<128x128xbf16>
    %c0_255 = arith.constant 0 : index
    %c0_256 = arith.constant 0 : index
    %405 = vector.load %arg70[%c0_255, %c0_256] : memref<1x128xf32, #tpu.memory_space<vmem>>, vector<1x128xf32>
    %c0_257 = arith.constant 0 : index
    %c0_258 = arith.constant 0 : index
    %406 = vector.load %arg71[%c0_257, %c0_258] : memref<1x128xf32, #tpu.memory_space<vmem>>, vector<1x128xf32>
    %c0_259 = arith.constant 0 : index
    %c0_260 = arith.constant 0 : index
    %407 = vector.load %arg72[%c0_259, %c0_260] : memref<1x128xf32, #tpu.memory_space<vmem>>, vector<1x128xf32>
    %cst_261 = arith.constant dense<0.000000e+00> : vector<13x128xf32>
    %408 = tpu.matmul %1, %402, %cst_261 {dimension_numbers = #tpu.dot_dimension_numbers<[1], [0], [0], [1], [0, 0, 1, 1], [], []>} : vector<13x13xbf16>, vector<13x128xbf16>, vector<13x128xf32> -> vector<13x128xf32>
    %cst_262 = arith.constant dense<0.000000e+00> : vector<13x128xf32>
    %409 = tpu.matmul %402, %403, %cst_262 {dimension_numbers = #tpu.dot_dimension_numbers<[1], [0], [0], [1], [0, 0, 1, 1], [], []>} : vector<13x128xbf16>, vector<128x128xbf16>, vector<13x128xf32> -> vector<13x128xf32>
    %410 = arith.truncf %408 : vector<13x128xf32> to vector<13x128xbf16>
    %cst_263 = arith.constant dense<0.000000e+00> : vector<13x128xf32>
    %411 = tpu.matmul %410, %404, %cst_263 {dimension_numbers = #tpu.dot_dimension_numbers<[1], [0], [0], [1], [0, 0, 1, 1], [], []>} : vector<13x128xbf16>, vector<128x128xbf16>, vector<13x128xf32> -> vector<13x128xf32>
    %412 = arith.subf %409, %411 : vector<13x128xf32>
    %413 = vector.broadcast %405 : vector<1x128xf32> to vector<13x128xf32>
    %414 = arith.addf %412, %413 : vector<13x128xf32>
    %415 = arith.truncf %414 : vector<13x128xf32> to vector<13x128xbf16>
    %cst_264 = arith.constant dense<0.000000e+00> : vector<1x128xf32>
    %416 = tpu.matmul %6, %415, %cst_264 {dimension_numbers = #tpu.dot_dimension_numbers<[1], [0], [0], [1], [0, 0, 1, 1], [], []>} : vector<1x13xbf16>, vector<13x128xbf16>, vector<1x128xf32> -> vector<1x128xf32>
    %417 = arith.mulf %414, %414 : vector<13x128xf32>
    %418 = arith.truncf %417 : vector<13x128xf32> to vector<13x128xbf16>
    %cst_265 = arith.constant dense<0.000000e+00> : vector<1x128xf32>
    %419 = tpu.matmul %6, %418, %cst_265 {dimension_numbers = #tpu.dot_dimension_numbers<[1], [0], [0], [1], [0, 0, 1, 1], [], []>} : vector<1x13xbf16>, vector<13x128xbf16>, vector<1x128xf32> -> vector<1x128xf32>
    %cst_266 = arith.constant 0.0769230798 : f32
    %420 = vector.broadcast %cst_266 : f32 to vector<1x128xf32>
    %421 = arith.mulf %416, %420 : vector<1x128xf32>
    %cst_267 = arith.constant 0.0769230798 : f32
    %422 = vector.broadcast %cst_267 : f32 to vector<1x128xf32>
    %423 = arith.mulf %419, %422 : vector<1x128xf32>
    %424 = arith.mulf %421, %421 : vector<1x128xf32>
    %425 = arith.subf %423, %424 : vector<1x128xf32>
    %cst_268 = arith.constant 0.000000e+00 : f32
    %426 = vector.broadcast %cst_268 : f32 to vector<1x128xf32>
    %427 = arith.maximumf %425, %426 : vector<1x128xf32>
    %428 = vector.broadcast %421 : vector<1x128xf32> to vector<13x128xf32>
    %429 = arith.subf %414, %428 : vector<13x128xf32>
    %cst_269 = arith.constant 9.99999974E-6 : f32
    %430 = vector.broadcast %cst_269 : f32 to vector<1x128xf32>
    %431 = arith.addf %427, %430 : vector<1x128xf32>
    %432 = math.rsqrt %431 : vector<1x128xf32>
    %433 = vector.broadcast %432 : vector<1x128xf32> to vector<13x128xf32>
    %434 = arith.mulf %429, %433 : vector<13x128xf32>
    %435 = vector.broadcast %406 : vector<1x128xf32> to vector<13x128xf32>
    %436 = arith.mulf %434, %435 : vector<13x128xf32>
    %437 = vector.broadcast %407 : vector<1x128xf32> to vector<13x128xf32>
    %438 = arith.addf %436, %437 : vector<13x128xf32>
    %cst_270 = arith.constant 0.000000e+00 : f32
    %439 = vector.broadcast %cst_270 : f32 to vector<13x128xf32>
    %440 = arith.maximumf %438, %439 : vector<13x128xf32>
    %441 = arith.truncf %401 : vector<11x128xf32> to vector<11x128xbf16>
    %442 = arith.truncf %440 : vector<13x128xf32> to vector<13x128xbf16>
    %c0_271 = arith.constant 0 : index
    %c384 = arith.constant 384 : index
    %443 = vector.load %arg94[%c0_271, %c384] : memref<11x640xbf16, #tpu.memory_space<vmem>>, vector<11x128xbf16>
    tpu.vector_store %arg94[%c0_271, %c384], %441 {strides = array<i32>} : memref<11x640xbf16, #tpu.memory_space<vmem>>, vector<11x128xbf16>,
    %c0_272 = arith.constant 0 : index
    %c384_273 = arith.constant 384 : index
    %444 = vector.load %arg95[%c0_272, %c384_273] : memref<13x640xbf16, #tpu.memory_space<vmem>>, vector<13x128xbf16>
    tpu.vector_store %arg95[%c0_272, %c384_273], %442 {strides = array<i32>} : memref<13x640xbf16, #tpu.memory_space<vmem>>, vector<13x128xbf16>,
    %c0_274 = arith.constant 0 : index
    %c0_275 = arith.constant 0 : index
    %445 = vector.load %arg73[%c0_274, %c0_275] : memref<512x128xbf16, #tpu.memory_space<vmem>>, vector<512x128xbf16>
    %c0_276 = arith.constant 0 : index
    %c0_277 = arith.constant 0 : index
    %446 = vector.load %arg74[%c0_276, %c0_277] : memref<1x128xf32, #tpu.memory_space<vmem>>, vector<1x128xf32>
    %c0_278 = arith.constant 0 : index
    %c0_279 = arith.constant 0 : index
    %447 = vector.load %arg75[%c0_278, %c0_279] : memref<512x128xbf16, #tpu.memory_space<vmem>>, vector<512x128xbf16>
    %c0_280 = arith.constant 0 : index
    %c0_281 = arith.constant 0 : index
    %448 = vector.load %arg76[%c0_280, %c0_281] : memref<1x128xf32, #tpu.memory_space<vmem>>, vector<1x128xf32>
    %c0_282 = arith.constant 0 : index
    %c0_283 = arith.constant 0 : index
    %449 = vector.load %arg77[%c0_282, %c0_283] : memref<512x128xbf16, #tpu.memory_space<vmem>>, vector<512x128xbf16>
    %c0_284 = arith.constant 0 : index
    %c0_285 = arith.constant 0 : index
    %450 = vector.load %arg78[%c0_284, %c0_285] : memref<1x128xf32, #tpu.memory_space<vmem>>, vector<1x128xf32>
    %c0_286 = arith.constant 0 : index
    %c0_287 = arith.constant 0 : index
    %451 = vector.load %arg79[%c0_286, %c0_287] : memref<512x128xbf16, #tpu.memory_space<vmem>>, vector<512x128xbf16>
    %c0_288 = arith.constant 0 : index
    %c0_289 = arith.constant 0 : index
    %452 = vector.load %arg80[%c0_288, %c0_289] : memref<1x128xf32, #tpu.memory_space<vmem>>, vector<1x128xf32>
    %c0_290 = arith.constant 0 : index
    %c0_291 = arith.constant 0 : index
    %453 = vector.load %arg94[%c0_290, %c0_291] : memref<11x640xbf16, #tpu.memory_space<vmem>>, vector<11x512xbf16>
    %c0_292 = arith.constant 0 : index
    %c0_293 = arith.constant 0 : index
    %454 = vector.load %arg95[%c0_292, %c0_293] : memref<13x640xbf16, #tpu.memory_space<vmem>>, vector<13x512xbf16>
    %cst_294 = arith.constant dense<0.000000e+00> : vector<11x128xf32>
    %455 = tpu.matmul %453, %445, %cst_294 {dimension_numbers = #tpu.dot_dimension_numbers<[1], [0], [0], [1], [0, 0, 1, 1], [], []>} : vector<11x512xbf16>, vector<512x128xbf16>, vector<11x128xf32> -> vector<11x128xf32>
    %456 = vector.broadcast %446 : vector<1x128xf32> to vector<11x128xf32>
    %457 = arith.addf %455, %456 : vector<11x128xf32>
    %cst_295 = arith.constant dense<0.000000e+00> : vector<13x128xf32>
    %458 = tpu.matmul %454, %451, %cst_295 {dimension_numbers = #tpu.dot_dimension_numbers<[1], [0], [0], [1], [0, 0, 1, 1], [], []>} : vector<13x512xbf16>, vector<512x128xbf16>, vector<13x128xf32> -> vector<13x128xf32>
    %459 = vector.broadcast %452 : vector<1x128xf32> to vector<13x128xf32>
    %460 = arith.addf %458, %459 : vector<13x128xf32>
    %461 = arith.truncf %460 : vector<13x128xf32> to vector<13x128xbf16>
    %cst_296 = arith.constant dense<0.000000e+00> : vector<11x128xf32>
    %462 = tpu.matmul %2, %461, %cst_296 {dimension_numbers = #tpu.dot_dimension_numbers<[1], [0], [0], [1], [0, 0, 1, 1], [], []>} : vector<11x13xbf16>, vector<13x128xbf16>, vector<11x128xf32> -> vector<11x128xf32>
    %463 = vector.broadcast %4 : vector<11x1xf32> to vector<11x128xf32>
    %464 = arith.mulf %462, %463 : vector<11x128xf32>
    %465 = arith.addf %457, %464 : vector<11x128xf32>
    %cst_297 = arith.constant 0.000000e+00 : f32
    %466 = vector.broadcast %cst_297 : f32 to vector<11x128xf32>
    %467 = arith.maximumf %465, %466 : vector<11x128xf32>
    %cst_298 = arith.constant dense<0.000000e+00> : vector<13x128xf32>
    %468 = tpu.matmul %454, %449, %cst_298 {dimension_numbers = #tpu.dot_dimension_numbers<[1], [0], [0], [1], [0, 0, 1, 1], [], []>} : vector<13x512xbf16>, vector<512x128xbf16>, vector<13x128xf32> -> vector<13x128xf32>
    %469 = vector.broadcast %450 : vector<1x128xf32> to vector<13x128xf32>
    %470 = arith.addf %468, %469 : vector<13x128xf32>
    %cst_299 = arith.constant dense<0.000000e+00> : vector<11x128xf32>
    %471 = tpu.matmul %453, %447, %cst_299 {dimension_numbers = #tpu.dot_dimension_numbers<[1], [0], [0], [1], [0, 0, 1, 1], [], []>} : vector<11x512xbf16>, vector<512x128xbf16>, vector<11x128xf32> -> vector<11x128xf32>
    %472 = vector.broadcast %448 : vector<1x128xf32> to vector<11x128xf32>
    %473 = arith.addf %471, %472 : vector<11x128xf32>
    %474 = arith.truncf %473 : vector<11x128xf32> to vector<11x128xbf16>
    %cst_300 = arith.constant dense<0.000000e+00> : vector<13x128xf32>
    %475 = tpu.matmul %3, %474, %cst_300 {dimension_numbers = #tpu.dot_dimension_numbers<[1], [0], [0], [1], [0, 0, 1, 1], [], []>} : vector<13x11xbf16>, vector<11x128xbf16>, vector<13x128xf32> -> vector<13x128xf32>
    %cst_301 = arith.constant 5.000000e-01 : f32
    %476 = vector.broadcast %cst_301 : f32 to vector<13x128xf32>
    %477 = arith.mulf %475, %476 : vector<13x128xf32>
    %478 = arith.addf %470, %477 : vector<13x128xf32>
    %cst_302 = arith.constant 0.000000e+00 : f32
    %479 = vector.broadcast %cst_302 : f32 to vector<13x128xf32>
    %480 = arith.maximumf %478, %479 : vector<13x128xf32>
    %481 = arith.truncf %467 : vector<11x128xf32> to vector<11x128xbf16>
    %c0_303 = arith.constant 0 : index
    %c0_304 = arith.constant 0 : index
    %482 = vector.load %arg81[%c0_303, %c0_304] : memref<128x128xbf16, #tpu.memory_space<vmem>>, vector<128x128xbf16>
    %c0_305 = arith.constant 0 : index
    %c0_306 = arith.constant 0 : index
    %483 = vector.load %arg82[%c0_305, %c0_306] : memref<128x128xbf16, #tpu.memory_space<vmem>>, vector<128x128xbf16>
    %c0_307 = arith.constant 0 : index
    %c0_308 = arith.constant 0 : index
    %484 = vector.load %arg83[%c0_307, %c0_308] : memref<1x128xf32, #tpu.memory_space<vmem>>, vector<1x128xf32>
    %c0_309 = arith.constant 0 : index
    %c0_310 = arith.constant 0 : index
    %485 = vector.load %arg84[%c0_309, %c0_310] : memref<1x128xf32, #tpu.memory_space<vmem>>, vector<1x128xf32>
    %c0_311 = arith.constant 0 : index
    %c0_312 = arith.constant 0 : index
    %486 = vector.load %arg85[%c0_311, %c0_312] : memref<1x128xf32, #tpu.memory_space<vmem>>, vector<1x128xf32>
    %cst_313 = arith.constant dense<0.000000e+00> : vector<11x128xf32>
    %487 = tpu.matmul %0, %481, %cst_313 {dimension_numbers = #tpu.dot_dimension_numbers<[1], [0], [0], [1], [0, 0, 1, 1], [], []>} : vector<11x11xbf16>, vector<11x128xbf16>, vector<11x128xf32> -> vector<11x128xf32>
    %cst_314 = arith.constant dense<0.000000e+00> : vector<11x128xf32>
    %488 = tpu.matmul %481, %482, %cst_314 {dimension_numbers = #tpu.dot_dimension_numbers<[1], [0], [0], [1], [0, 0, 1, 1], [], []>} : vector<11x128xbf16>, vector<128x128xbf16>, vector<11x128xf32> -> vector<11x128xf32>
    %489 = arith.truncf %487 : vector<11x128xf32> to vector<11x128xbf16>
    %cst_315 = arith.constant dense<0.000000e+00> : vector<11x128xf32>
    %490 = tpu.matmul %489, %483, %cst_315 {dimension_numbers = #tpu.dot_dimension_numbers<[1], [0], [0], [1], [0, 0, 1, 1], [], []>} : vector<11x128xbf16>, vector<128x128xbf16>, vector<11x128xf32> -> vector<11x128xf32>
    %491 = arith.subf %488, %490 : vector<11x128xf32>
    %492 = vector.broadcast %484 : vector<1x128xf32> to vector<11x128xf32>
    %493 = arith.addf %491, %492 : vector<11x128xf32>
    %494 = arith.truncf %493 : vector<11x128xf32> to vector<11x128xbf16>
    %cst_316 = arith.constant dense<0.000000e+00> : vector<1x128xf32>
    %495 = tpu.matmul %5, %494, %cst_316 {dimension_numbers = #tpu.dot_dimension_numbers<[1], [0], [0], [1], [0, 0, 1, 1], [], []>} : vector<1x11xbf16>, vector<11x128xbf16>, vector<1x128xf32> -> vector<1x128xf32>
    %496 = arith.mulf %493, %493 : vector<11x128xf32>
    %497 = arith.truncf %496 : vector<11x128xf32> to vector<11x128xbf16>
    %cst_317 = arith.constant dense<0.000000e+00> : vector<1x128xf32>
    %498 = tpu.matmul %5, %497, %cst_317 {dimension_numbers = #tpu.dot_dimension_numbers<[1], [0], [0], [1], [0, 0, 1, 1], [], []>} : vector<1x11xbf16>, vector<11x128xbf16>, vector<1x128xf32> -> vector<1x128xf32>
    %cst_318 = arith.constant 0.0909090936 : f32
    %499 = vector.broadcast %cst_318 : f32 to vector<1x128xf32>
    %500 = arith.mulf %495, %499 : vector<1x128xf32>
    %cst_319 = arith.constant 0.0909090936 : f32
    %501 = vector.broadcast %cst_319 : f32 to vector<1x128xf32>
    %502 = arith.mulf %498, %501 : vector<1x128xf32>
    %503 = arith.mulf %500, %500 : vector<1x128xf32>
    %504 = arith.subf %502, %503 : vector<1x128xf32>
    %cst_320 = arith.constant 0.000000e+00 : f32
    %505 = vector.broadcast %cst_320 : f32 to vector<1x128xf32>
    %506 = arith.maximumf %504, %505 : vector<1x128xf32>
    %507 = vector.broadcast %500 : vector<1x128xf32> to vector<11x128xf32>
    %508 = arith.subf %493, %507 : vector<11x128xf32>
    %cst_321 = arith.constant 9.99999974E-6 : f32
    %509 = vector.broadcast %cst_321 : f32 to vector<1x128xf32>
    %510 = arith.addf %506, %509 : vector<1x128xf32>
    %511 = math.rsqrt %510 : vector<1x128xf32>
    %512 = vector.broadcast %511 : vector<1x128xf32> to vector<11x128xf32>
    %513 = arith.mulf %508, %512 : vector<11x128xf32>
    %514 = vector.broadcast %485 : vector<1x128xf32> to vector<11x128xf32>
    %515 = arith.mulf %513, %514 : vector<11x128xf32>
    %516 = vector.broadcast %486 : vector<1x128xf32> to vector<11x128xf32>
    %517 = arith.addf %515, %516 : vector<11x128xf32>
    %cst_322 = arith.constant 0.000000e+00 : f32
    %518 = vector.broadcast %cst_322 : f32 to vector<11x128xf32>
    %519 = arith.maximumf %517, %518 : vector<11x128xf32>
    %520 = arith.truncf %480 : vector<13x128xf32> to vector<13x128xbf16>
    %c0_323 = arith.constant 0 : index
    %c0_324 = arith.constant 0 : index
    %521 = vector.load %arg86[%c0_323, %c0_324] : memref<128x128xbf16, #tpu.memory_space<vmem>>, vector<128x128xbf16>
    %c0_325 = arith.constant 0 : index
    %c0_326 = arith.constant 0 : index
    %522 = vector.load %arg87[%c0_325, %c0_326] : memref<128x128xbf16, #tpu.memory_space<vmem>>, vector<128x128xbf16>
    %c0_327 = arith.constant 0 : index
    %c0_328 = arith.constant 0 : index
    %523 = vector.load %arg88[%c0_327, %c0_328] : memref<1x128xf32, #tpu.memory_space<vmem>>, vector<1x128xf32>
    %c0_329 = arith.constant 0 : index
    %c0_330 = arith.constant 0 : index
    %524 = vector.load %arg89[%c0_329, %c0_330] : memref<1x128xf32, #tpu.memory_space<vmem>>, vector<1x128xf32>
    %c0_331 = arith.constant 0 : index
    %c0_332 = arith.constant 0 : index
    %525 = vector.load %arg90[%c0_331, %c0_332] : memref<1x128xf32, #tpu.memory_space<vmem>>, vector<1x128xf32>
    %cst_333 = arith.constant dense<0.000000e+00> : vector<13x128xf32>
    %526 = tpu.matmul %1, %520, %cst_333 {dimension_numbers = #tpu.dot_dimension_numbers<[1], [0], [0], [1], [0, 0, 1, 1], [], []>} : vector<13x13xbf16>, vector<13x128xbf16>, vector<13x128xf32> -> vector<13x128xf32>
    %cst_334 = arith.constant dense<0.000000e+00> : vector<13x128xf32>
    %527 = tpu.matmul %520, %521, %cst_334 {dimension_numbers = #tpu.dot_dimension_numbers<[1], [0], [0], [1], [0, 0, 1, 1], [], []>} : vector<13x128xbf16>, vector<128x128xbf16>, vector<13x128xf32> -> vector<13x128xf32>
    %528 = arith.truncf %526 : vector<13x128xf32> to vector<13x128xbf16>
    %cst_335 = arith.constant dense<0.000000e+00> : vector<13x128xf32>
    %529 = tpu.matmul %528, %522, %cst_335 {dimension_numbers = #tpu.dot_dimension_numbers<[1], [0], [0], [1], [0, 0, 1, 1], [], []>} : vector<13x128xbf16>, vector<128x128xbf16>, vector<13x128xf32> -> vector<13x128xf32>
    %530 = arith.subf %527, %529 : vector<13x128xf32>
    %531 = vector.broadcast %523 : vector<1x128xf32> to vector<13x128xf32>
    %532 = arith.addf %530, %531 : vector<13x128xf32>
    %533 = arith.truncf %532 : vector<13x128xf32> to vector<13x128xbf16>
    %cst_336 = arith.constant dense<0.000000e+00> : vector<1x128xf32>
    %534 = tpu.matmul %6, %533, %cst_336 {dimension_numbers = #tpu.dot_dimension_numbers<[1], [0], [0], [1], [0, 0, 1, 1], [], []>} : vector<1x13xbf16>, vector<13x128xbf16>, vector<1x128xf32> -> vector<1x128xf32>
    %535 = arith.mulf %532, %532 : vector<13x128xf32>
    %536 = arith.truncf %535 : vector<13x128xf32> to vector<13x128xbf16>
    %cst_337 = arith.constant dense<0.000000e+00> : vector<1x128xf32>
    %537 = tpu.matmul %6, %536, %cst_337 {dimension_numbers = #tpu.dot_dimension_numbers<[1], [0], [0], [1], [0, 0, 1, 1], [], []>} : vector<1x13xbf16>, vector<13x128xbf16>, vector<1x128xf32> -> vector<1x128xf32>
    %cst_338 = arith.constant 0.0769230798 : f32
    %538 = vector.broadcast %cst_338 : f32 to vector<1x128xf32>
    %539 = arith.mulf %534, %538 : vector<1x128xf32>
    %cst_339 = arith.constant 0.0769230798 : f32
    %540 = vector.broadcast %cst_339 : f32 to vector<1x128xf32>
    %541 = arith.mulf %537, %540 : vector<1x128xf32>
    %542 = arith.mulf %539, %539 : vector<1x128xf32>
    %543 = arith.subf %541, %542 : vector<1x128xf32>
    %cst_340 = arith.constant 0.000000e+00 : f32
    %544 = vector.broadcast %cst_340 : f32 to vector<1x128xf32>
    %545 = arith.maximumf %543, %544 : vector<1x128xf32>
    %546 = vector.broadcast %539 : vector<1x128xf32> to vector<13x128xf32>
    %547 = arith.subf %532, %546 : vector<13x128xf32>
    %cst_341 = arith.constant 9.99999974E-6 : f32
    %548 = vector.broadcast %cst_341 : f32 to vector<1x128xf32>
    %549 = arith.addf %545, %548 : vector<1x128xf32>
    %550 = math.rsqrt %549 : vector<1x128xf32>
    %551 = vector.broadcast %550 : vector<1x128xf32> to vector<13x128xf32>
    %552 = arith.mulf %547, %551 : vector<13x128xf32>
    %553 = vector.broadcast %524 : vector<1x128xf32> to vector<13x128xf32>
    %554 = arith.mulf %552, %553 : vector<13x128xf32>
    %555 = vector.broadcast %525 : vector<1x128xf32> to vector<13x128xf32>
    %556 = arith.addf %554, %555 : vector<13x128xf32>
    %cst_342 = arith.constant 0.000000e+00 : f32
    %557 = vector.broadcast %cst_342 : f32 to vector<13x128xf32>
    %558 = arith.maximumf %556, %557 : vector<13x128xf32>
    %559 = arith.truncf %519 : vector<11x128xf32> to vector<11x128xbf16>
    %560 = arith.truncf %558 : vector<13x128xf32> to vector<13x128xbf16>
    %c0_343 = arith.constant 0 : index
    %c512 = arith.constant 512 : index
    %561 = vector.load %arg94[%c0_343, %c512] : memref<11x640xbf16, #tpu.memory_space<vmem>>, vector<11x128xbf16>
    tpu.vector_store %arg94[%c0_343, %c512], %559 {strides = array<i32>} : memref<11x640xbf16, #tpu.memory_space<vmem>>, vector<11x128xbf16>,
    %c0_344 = arith.constant 0 : index
    %c512_345 = arith.constant 512 : index
    %562 = vector.load %arg95[%c0_344, %c512_345] : memref<13x640xbf16, #tpu.memory_space<vmem>>, vector<13x128xbf16>
    tpu.vector_store %arg95[%c0_344, %c512_345], %560 {strides = array<i32>} : memref<13x640xbf16, #tpu.memory_space<vmem>>, vector<13x128xbf16>,
    %c0_346 = arith.constant 0 : index
    %c0_347 = arith.constant 0 : index
    %563 = vector.load %arg91[%c0_346, %c0_347] : memref<256x1xbf16, #tpu.memory_space<vmem>>, vector<256x1xbf16>
    %c0_348 = arith.constant 0 : index
    %c0_349 = arith.constant 0 : index
    %564 = vector.load %arg92[%c0_348, %c0_349] : memref<1x1xf32, #tpu.memory_space<vmem>>, vector<1x1xf32>
    %c0_350 = arith.constant 0 : index
    %c0_351 = arith.constant 0 : index
    %565 = vector.load %arg8[%c0_350, %c0_351] : memref<2x13xbf16, #tpu.memory_space<vmem>>, vector<2x13xbf16>
    %cst_352 = arith.constant dense<0.000000e+00> : vector<2x128xf32>
    %566 = tpu.matmul %565, %560, %cst_352 {dimension_numbers = #tpu.dot_dimension_numbers<[1], [0], [0], [1], [0, 0, 1, 1], [], []>} : vector<2x13xbf16>, vector<13x128xbf16>, vector<2x128xf32> -> vector<2x128xf32>
    %c0_353 = arith.constant 0 : index
    %c0_354 = arith.constant 0 : index
    %567 = vector.load %arg7[%c0_353, %c0_354] : memref<2x11xbf16, #tpu.memory_space<vmem>>, vector<2x11xbf16>
    %cst_355 = arith.constant dense<0.000000e+00> : vector<2x128xf32>
    %568 = tpu.matmul %567, %559, %cst_355 {dimension_numbers = #tpu.dot_dimension_numbers<[1], [0], [0], [1], [0, 0, 1, 1], [], []>} : vector<2x11xbf16>, vector<11x128xbf16>, vector<2x128xf32> -> vector<2x128xf32>
    %569 = tpu.concatenate %566, %568 in 1 : vector<2x128xf32>, vector<2x128xf32> -> vector<2x256xf32>
    %570 = arith.truncf %569 : vector<2x256xf32> to vector<2x256xbf16>
    %cst_356 = arith.constant dense<0.000000e+00> : vector<2x1xf32>
    %571 = tpu.matmul %570, %563, %cst_356 {dimension_numbers = #tpu.dot_dimension_numbers<[1], [0], [0], [1], [0, 0, 1, 1], [], []>} : vector<2x256xbf16>, vector<256x1xbf16>, vector<2x1xf32> -> vector<2x1xf32>
    %572 = vector.broadcast %564 : vector<1x1xf32> to vector<2x1xf32>
    %573 = arith.addf %571, %572 : vector<2x1xf32>
    %c0_357 = arith.constant 0 : index
    %c0_358 = arith.constant 0 : index
    %574 = vector.load %arg93[%c0_357, %c0_358] : memref<2x1xf32, #tpu.memory_space<vmem>>, vector<2x1xf32>
    tpu.vector_store %arg93[%c0_357, %c0_358], %573 {strides = array<i32>} : memref<2x1xf32, #tpu.memory_space<vmem>>, vector<2x1xf32>,
    return
  }
}

</mosaic_0001>

<bundles_post_ra>
// kernel: _lambda_.1
= control target key start
LH: loop header
LB: loop body
LE: loop exit
PB: predicated region body
PF: predicated region fallthrough
CT: control target
= control target key end

     0   :  { %s14266_s6 = smov 1   ;;  %s14267_s10 = smov 2   ;;  %s15997_s0 = inlined_call_operand.smem [shape: u32[94], index: -1, kind: input, shape index: {}] }
   0x1   :  { %s14452_s5 = sld [smem:[%s15997_s0]]   ;;  %s14268_s14 = smov 3  }
   0x2   :  { %s14457_s9 = sld [smem:[%s15997_s0 + %s14266_s6]]   ;;  %s14269_s18 = smov 4  }
   0x3   :  { %s14462_s13 = sld [smem:[%s15997_s0 + %s14267_s10]]   ;;  %s14270_s22 = smov 5  }
   0x4   :  { %s14467_s17 = sld [smem:[%s15997_s0 + %s14268_s14]]   ;;  %s14271_s26 = smov 6  }
   0x5   :  { %s14472_s21 = sld [smem:[%s15997_s0 + %s14269_s18]]   ;;  %s14272_s30 = smov 7  }
   0x6   :  { %s14477_s25 = sld [smem:[%s15997_s0 + %s14270_s22]]   ;;  %s14273_s4 = smov 8  }
   0x7   :  { %16002 = sst [smem:[#allocation159_spill]] %s14452_s5  ;;  %s14274_s10 = smov 9  }
   0x8   :  { %16003 = sst [smem:[#allocation160_spill]] %s14457_s9  ;;  %s14275_s15 = smov 10  }
   0x9   :  { %16004 = sst [smem:[#allocation161_spill]] %s14462_s13  ;;  %s14276_s20 = smov 11  }
   0xa   :  { %s14482_s29 = sld [smem:[%s15997_s0 + %s14271_s26]]   ;;  %s14277_s26 = smov 12  }
   0xb   :  { %16005 = sst [smem:[#allocation162_spill]] %s14472_s21  ;;  %s14278_s1 = smov 13  }
   0xc   :  { %s14487_s3 = sld [smem:[%s15997_s0 + %s14272_s30]]   ;;  %s14279_s7 = smov 14  }
   0xd   :  { %s14492_s8 = sld [smem:[%s15997_s0 + %s14273_s4]]   ;;  %s14281_s22 = smov 16  }
   0xe   :  { %s14497_s14 = sld [smem:[%s15997_s0 + %s14274_s10]]   ;;  %s14282_s28 = smov 17  }
   0xf   :  { %s14502_s19 = sld [smem:[%s15997_s0 + %s14275_s15]]   ;;  %s14280_s15 = smov 15  }
  0x10   :  { %16006 = sst [smem:[#allocation163_spill]] %s14482_s29 }
  0x11   :  { %s14507_s24 = sld [smem:[%s15997_s0 + %s14276_s20]]  }
  0x12   :  { %16007 = sst [smem:[#allocation164_spill]] %s14487_s3 }
  0x13   :  { %16008 = sst [smem:[#allocation165_spill]] %s14492_s8 }
  0x14   :  { %16009 = sst [smem:[#allocation166_spill]] %s14497_s14 }
  0x15   :  { %s14512_s30 = sld [smem:[%s15997_s0 + %s14277_s26]]  }
  0x16   :  { %s14517_s6 = sld [smem:[%s15997_s0 + %s14278_s1]]   ;;  %s14358_s1 = smov 93  }
  0x17   :  { %16010 = sst [smem:[#allocation167_spill]] %s14507_s24 }
  0x18   :  { %s14522_s12 = sld [smem:[%s15997_s0 + %s14279_s7]]   ;;  %s14283_s7 = smov 18  }
  0x19   :  { %s14527_s20 = sld [smem:[%s15997_s0 + %s14280_s15]]   ;;  %s14284_s15 = smov 19  }
  0x1a   :  { %s14532_s27 = sld [smem:[%s15997_s0 + %s14281_s22]]   ;;  %s14285_s22 = smov 20  }
  0x1b   :  { %s14537_s4 = sld [smem:[%s15997_s0 + %s14282_s28]]   ;;  %s14286_s28 = smov 21  }
  0x1c   :  { %16011 = sst [smem:[#allocation168_spill]] %s14517_s6 }
  0x1d   :  { %s14542_s8 = sld [smem:[%s15997_s0 + %s14283_s7]]   ;;  %s14287_s7 = smov 22  }
  0x1e   :  { %s14547_s3 = sld [smem:[%s15997_s0 + %s14284_s15]]   ;;  %s14288_s15 = smov 23  }
  0x1f   :  { %16012 = sst [smem:[#allocation169_spill]] %s14527_s20 }
  0x20   :  { %s14552_s29 = sld [smem:[%s15997_s0 + %s14285_s22]]   ;;  %s14289_s22 = smov 24  }
  0x21   :  { %16013 = sst [smem:[#allocation170_spill]] %s14537_s4 }
  0x22   :  { %s14557_s13 = sld [smem:[%s15997_s0 + %s14286_s28]]   ;;  %s14290_s28 = smov 25  }
  0x23   :  { %s14562_s5 = sld [smem:[%s15997_s0 + %s14287_s7]]   ;;  %s14291_s7 = smov 26  }
  0x24   :  { %16014 = sst [smem:[#allocation171_spill]] %s14547_s3 }
  0x25   :  { %s14567_s3 = sld [smem:[%s15997_s0 + %s14288_s15]]   ;;  %s14292_s15 = smov 27  }
  0x26   :  { %s14572_s4 = sld [smem:[%s15997_s0 + %s14289_s22]]   ;;  %s14293_s22 = smov 28  }
  0x27   :  { %s14582_s20 = sld [smem:[%s15997_s0 + %s14291_s7]]   ;;  %s14295_s7 = smov 30  }
  0x28   :  { %16015 = sst [smem:[#allocation172_spill]] %s14557_s13 }
  0x29   :  { %s14577_s13 = sld [smem:[%s15997_s0 + %s14290_s28]]   ;;  %s14294_s28 = smov 29  }
  0x2a   :  { %s14592_s6 = sld [smem:[%s15997_s0 + %s14293_s22]]   ;;  %s14297_s22 = smov 32  }
  0x2b   :  { %16016 = sst [smem:[#allocation173_spill]] %s14567_s3 }
  0x2c   :  { %s14587_s3 = sld [smem:[%s15997_s0 + %s14292_s15]]   ;;  %s14296_s15 = smov 31  }
  0x2d   :  { %s14602_s24 = sld [smem:[%s15997_s0 + %s14295_s7]]   ;;  %s14299_s7 = smov 34  }
  0x2e   :  { %s14612_s14 = sld [smem:[%s15997_s0 + %s14297_s22]]   ;;  %s14301_s22 = smov 36  }
  0x2f   :  { %16017 = sst [smem:[#allocation174_spill]] %s14577_s13 }
  0x30   :  { %s14597_s13 = sld [smem:[%s15997_s0 + %s14294_s28]]   ;;  %s14298_s28 = smov 33  }
  0x31   :  { %s14622_s21 = sld [smem:[%s15997_s0 + %s14299_s7]]   ;;  %s14303_s7 = smov 38  }
  0x32   :  { %16018 = sst [smem:[#allocation175_spill]] %s14587_s3 }
  0x33   :  { %s14607_s3 = sld [smem:[%s15997_s0 + %s14296_s15]]   ;;  %s14300_s15 = smov 35  }
  0x34   :  { %s14632_s9 = sld [smem:[%s15997_s0 + %s14301_s22]]   ;;  %s14305_s22 = smov 40  }
  0x36   :  { %16019 = sst [smem:[#allocation176_spill]] %s14597_s13 }
  0x37   :  { %s14617_s13 = sld [smem:[%s15997_s0 + %s14298_s28]]   ;;  %s14302_s28 = smov 37  }
  0x38   :  { %16022 = sst [smem:[#allocation179_spill]] %s14622_s21 }
  0x39   :  { %16020 = sst [smem:[#allocation177_spill]] %s14607_s3 }
  0x3a   :  { %s14627_s3 = sld [smem:[%s15997_s0 + %s14300_s15]]   ;;  %s14304_s15 = smov 39  }
  0x3b   :  { %16024 = sst [smem:[#allocation181_spill]] %s14632_s9 }
  0x3c   :  { %s14642_s21 = sld [smem:[%s15997_s0 + %s14303_s7]]   ;;  %s14307_s7 = smov 42  }
  0x3d   :  { %16021 = sst [smem:[#allocation178_spill]] %s14617_s13 }
  0x3e   :  { %s14637_s13 = sld [smem:[%s15997_s0 + %s14302_s28]]   ;;  %s14306_s28 = smov 41  }
  0x3f   :  { %s14652_s9 = sld [smem:[%s15997_s0 + %s14305_s22]]   ;;  %s14309_s22 = smov 44  }
  0x40   :  { %16023 = sst [smem:[#allocation180_spill]] %s14627_s3 }
  0x41   :  { %s14647_s3 = sld [smem:[%s15997_s0 + %s14304_s15]]   ;;  %s14308_s15 = smov 43  }
  0x42   :  { %16026 = sst [smem:[#allocation183_spill]] %s14642_s21 }
  0x43   :  { %s14662_s21 = sld [smem:[%s15997_s0 + %s14307_s7]]   ;;  %s14311_s7 = smov 46  }
  0x44   :  { %16025 = sst [smem:[#allocation182_spill]] %s14637_s13 }
  0x45   :  { %16028 = sst [smem:[#allocation185_spill]] %s14652_s9 }
  0x46   :  { %s14657_s13 = sld [smem:[%s15997_s0 + %s14306_s28]]   ;;  %s14310_s28 = smov 45  }
  0x47   :  { %16027 = sst [smem:[#allocation184_spill]] %s14647_s3 }
  0x48   :  { %s14667_s3 = sld [smem:[%s15997_s0 + %s14308_s15]]   ;;  %s14312_s15 = smov 47  }
  0x49   :  { %16030 = sst [smem:[#allocation187_spill]] %s14662_s21 }
  0x4a   :  { %s14672_s9 = sld [smem:[%s15997_s0 + %s14309_s22]]   ;;  %s14313_s22 = smov 48  }
  0x4b   :  { %s14682_s21 = sld [smem:[%s15997_s0 + %s14311_s7]]   ;;  %s14315_s7 = smov 50  }
  0x4c   :  { %16029 = sst [smem:[#allocation186_spill]] %s14657_s13 }
  0x4d   :  { %s14677_s13 = sld [smem:[%s15997_s0 + %s14310_s28]]   ;;  %s14314_s28 = smov 49  }
  0x4e   :  { %16031 = sst [smem:[#allocation188_spill]] %s14667_s3 }
  0x4f   :  { %s14687_s3 = sld [smem:[%s15997_s0 + %s14312_s15]]   ;;  %s14316_s15 = smov 51  }
  0x50   :  { %16032 = sst [smem:[#allocation189_spill]] %s14672_s9 }
  0x51   :  { %16034 = sst [smem:[#allocation191_spill]] %s14682_s21 }
  0x52   :  { %s14692_s9 = sld [smem:[%s15997_s0 + %s14313_s22]]   ;;  %s14317_s22 = smov 52  }
  0x53   :  { %16033 = sst [smem:[#allocation190_spill]] %s14677_s13 }
  0x54   :  { %s14697_s13 = sld [smem:[%s15997_s0 + %s14314_s28]]   ;;  %s14318_s28 = smov 53  }
  0x55   :  { %16035 = sst [smem:[#allocation192_spill]] %s14687_s3 }
  0x56   :  { %s14702_s21 = sld [smem:[%s15997_s0 + %s14315_s7]]   ;;  %s14319_s7 = smov 54  }
  0x57   :  { %s14707_s3 = sld [smem:[%s15997_s0 + %s14316_s15]]   ;;  %s14320_s15 = smov 55  }
  0x58   :  { %16036 = sst [smem:[#allocation193_spill]] %s14692_s9 }
  0x59   :  { %s14712_s9 = sld [smem:[%s15997_s0 + %s14317_s22]]   ;;  %s14321_s22 = smov 56  }
  0x5a   :  { %16037 = sst [smem:[#allocation194_spill]] %s14697_s13 }
  0x5b   :  { %s14717_s13 = sld [smem:[%s15997_s0 + %s14318_s28]]   ;;  %s14322_s28 = smov 57  }
  0x5c   :  { %16038 = sst [smem:[#allocation195_spill]] %s14702_s21 }
  0x5d   :  { %16039 = sst [smem:[#allocation196_spill]] %s14707_s3 }
  0x5e   :  { %s14722_s21 = sld [smem:[%s15997_s0 + %s14319_s7]]   ;;  %s14323_s7 = smov 58  }
  0x5f   :  { %16040 = sst [smem:[#allocation197_spill]] %s14712_s9 }
  0x60   :  { %s14727_s3 = sld [smem:[%s15997_s0 + %s14320_s15]]   ;;  %s14324_s15 = smov 59  }
  0x61   :  { %16041 = sst [smem:[#allocation198_spill]] %s14717_s13 }
  0x62   :  { %s14732_s9 = sld [smem:[%s15997_s0 + %s14321_s22]]   ;;  %s14325_s22 = smov 60  }
  0x63   :  { %s14737_s13 = sld [smem:[%s15997_s0 + %s14322_s28]]   ;;  %s14326_s28 = smov 61  }
  0x64   :  { %16042 = sst [smem:[#allocation199_spill]] %s14722_s21 }
  0x65   :  { %s14742_s21 = sld [smem:[%s15997_s0 + %s14323_s7]]   ;;  %s14327_s7 = smov 62  }
  0x66   :  { %16043 = sst [smem:[#allocation200_spill]] %s14727_s3 }
  0x67   :  { %s14747_s3 = sld [smem:[%s15997_s0 + %s14324_s15]]   ;;  %s14328_s15 = smov 63  }
  0x68   :  { %16044 = sst [smem:[#allocation201_spill]] %s14732_s9 }
  0x69   :  { %16045 = sst [smem:[#allocation202_spill]] %s14737_s13 }
  0x6a   :  { %s14752_s9 = sld [smem:[%s15997_s0 + %s14325_s22]]   ;;  %s14329_s22 = smov 64  }
  0x6b   :  { %16046 = sst [smem:[#allocation203_spill]] %s14742_s21 }
  0x6c   :  { %s14757_s13 = sld [smem:[%s15997_s0 + %s14326_s28]]   ;;  %s14330_s28 = smov 65  }
  0x6d   :  { %16047 = sst [smem:[#allocation204_spill]] %s14747_s3 }
  0x6e   :  { %s14762_s21 = sld [smem:[%s15997_s0 + %s14327_s7]]   ;;  %s14331_s7 = smov 66  }
  0x6f   :  { %s14767_s3 = sld [smem:[%s15997_s0 + %s14328_s15]]   ;;  %s14332_s15 = smov 67  }
  0x70   :  { %16048 = sst [smem:[#allocation205_spill]] %s14752_s9 }
  0x71   :  { %s14772_s9 = sld [smem:[%s15997_s0 + %s14329_s22]]   ;;  %s14333_s22 = smov 68  }
  0x72   :  { %16049 = sst [smem:[#allocation206_spill]] %s14757_s13 }
  0x73   :  { %s14777_s13 = sld [smem:[%s15997_s0 + %s14330_s28]]   ;;  %s14334_s28 = smov 69  }
  0x74   :  { %16050 = sst [smem:[#allocation207_spill]] %s14762_s21 }
  0x75   :  { %16051 = sst [smem:[#allocation208_spill]] %s14767_s3 }
  0x76   :  { %s14782_s21 = sld [smem:[%s15997_s0 + %s14331_s7]]   ;;  %s14335_s7 = smov 70  }
  0x77   :  { %16052 = sst [smem:[#allocation209_spill]] %s14772_s9 }
  0x78   :  { %s14787_s3 = sld [smem:[%s15997_s0 + %s14332_s15]]   ;;  %s14336_s15 = smov 71  }
  0x79   :  { %16053 = sst [smem:[#allocation210_spill]] %s14777_s13 }
  0x7a   :  { %s14792_s9 = sld [smem:[%s15997_s0 + %s14333_s22]]   ;;  %s14337_s22 = smov 72  }
  0x7b   :  { %s14797_s13 = sld [smem:[%s15997_s0 + %s14334_s28]]   ;;  %s14338_s28 = smov 73  }
  0x7c   :  { %16054 = sst [smem:[#allocation211_spill]] %s14782_s21 }
  0x7d   :  { %s14802_s21 = sld [smem:[%s15997_s0 + %s14335_s7]]   ;;  %s14339_s7 = smov 74  }
  0x7e   :  { %16055 = sst [smem:[#allocation212_spill]] %s14787_s3 }
  0x7f   :  { %s14807_s3 = sld [smem:[%s15997_s0 + %s14336_s15]]   ;;  %s14340_s15 = smov 75  }
  0x80   :  { %16056 = sst [smem:[#allocation213_spill]] %s14792_s9 }
  0x81   :  { %16057 = sst [smem:[#allocation214_spill]] %s14797_s13 }
  0x82   :  { %s14812_s9 = sld [smem:[%s15997_s0 + %s14337_s22]]   ;;  %s14341_s22 = smov 76  }
  0x83   :  { %16058 = sst [smem:[#allocation215_spill]] %s14802_s21 }
  0x84   :  { %s14817_s13 = sld [smem:[%s15997_s0 + %s14338_s28]]   ;;  %s14342_s28 = smov 77  }
  0x85   :  { %16059 = sst [smem:[#allocation216_spill]] %s14807_s3 }
  0x86   :  { %s14822_s21 = sld [smem:[%s15997_s0 + %s14339_s7]]   ;;  %s14343_s7 = smov 78  }
  0x87   :  { %s14827_s3 = sld [smem:[%s15997_s0 + %s14340_s15]]   ;;  %s14344_s15 = smov 79  }
  0x88   :  { %16060 = sst [smem:[#allocation217_spill]] %s14812_s9 }
  0x89   :  { %s14832_s9 = sld [smem:[%s15997_s0 + %s14341_s22]]   ;;  %s14345_s22 = smov 80  }
  0x8a   :  { %16061 = sst [smem:[#allocation218_spill]] %s14817_s13 }
  0x8b   :  { %s14837_s13 = sld [smem:[%s15997_s0 + %s14342_s28]]   ;;  %s14346_s28 = smov 81  }
  0x8c   :  { %16062 = sst [smem:[#allocation219_spill]] %s14822_s21 }
  0x8d   :  { %16063 = sst [smem:[#allocation220_spill]] %s14827_s3 }
  0x8e   :  { %s14842_s21 = sld [smem:[%s15997_s0 + %s14343_s7]]   ;;  %s14347_s7 = smov 82  }
  0x8f   :  { %16064 = sst [smem:[#allocation221_spill]] %s14832_s9 }
  0x90   :  { %s14847_s3 = sld [smem:[%s15997_s0 + %s14344_s15]]   ;;  %s14348_s15 = smov 83  }
  0x91   :  { %16065 = sst [smem:[#allocation222_spill]] %s14837_s13 }
  0x92   :  { %s14852_s9 = sld [smem:[%s15997_s0 + %s14345_s22]]   ;;  %s14349_s22 = smov 84  }
  0x93   :  { %s14857_s13 = sld [smem:[%s15997_s0 + %s14346_s28]]   ;;  %s14350_s28 = smov 85  }
  0x94   :  { %16066 = sst [smem:[#allocation223_spill]] %s14842_s21 }
  0x95   :  { %s14862_s21 = sld [smem:[%s15997_s0 + %s14347_s7]]   ;;  %s14351_s7 = smov 86  }
  0x96   :  { %16067 = sst [smem:[#allocation224_spill]] %s14847_s3 }
  0x97   :  { %s14867_s3 = sld [smem:[%s15997_s0 + %s14348_s15]]   ;;  %s14352_s15 = smov 87  }
  0x98   :  { %16068 = sst [smem:[#allocation225_spill]] %s14852_s9 }
  0x99   :  { %16069 = sst [smem:[#allocation226_spill]] %s14857_s13 }
  0x9a   :  { %s14872_s9 = sld [smem:[%s15997_s0 + %s14349_s22]]   ;;  %s14353_s22 = smov 88  }
  0x9b   :  { %16070 = sst [smem:[#allocation227_spill]] %s14862_s21 }
  0x9c   :  { %s14877_s13 = sld [smem:[%s15997_s0 + %s14350_s28]]   ;;  %s14354_s28 = smov 89  }
  0x9d   :  { %16071 = sst [smem:[#allocation228_spill]] %s14867_s3 }
  0x9e   :  { %s14882_s21 = sld [smem:[%s15997_s0 + %s14351_s7]]   ;;  %s14355_s7 = smov 90  }
  0x9f   :  { %s14887_s3 = sld [smem:[%s15997_s0 + %s14352_s15]]   ;;  %s14356_s15 = smov 91  }
  0xa0   :  { %16072 = sst [smem:[#allocation229_spill]] %s14872_s9 }
  0xa1   :  { %s14892_s9 = sld [smem:[%s15997_s0 + %s14353_s22]]   ;;  %s14357_s22 = smov 92  }
  0xa2   :  { %16073 = sst [smem:[#allocation230_spill]] %s14877_s13 }
  0xa3   :  { %s14897_s13 = sld [smem:[%s15997_s0 + %s14354_s28]]  }
  0xa4   :  { %16074 = sst [smem:[#allocation231_spill]] %s14882_s21 }
  0xa5   :  { %16075 = sst [smem:[#allocation232_spill]] %s14887_s3 }
  0xa6   :  { %s14902_s21 = sld [smem:[%s15997_s0 + %s14355_s7]]  }
  0xa7   :  { %16076 = sst [smem:[#allocation233_spill]] %s14892_s9 }
  0xa8   :  { %s14907_s3 = sld [smem:[%s15997_s0 + %s14356_s15]]  }
  0xa9   :  { %16077 = sst [smem:[#allocation234_spill]] %s14897_s13 }
  0xaa   :  { %s9902_s9 = sld [smem:[%s15997_s0 + %s14357_s22]]  }
  0xab   :  { %s14915_s13 = sld [smem:[%s15997_s0 + %s14358_s1]]  }
  0xb0   :  { %v192_v0 = vstv %s9902_s9 }
  0xb1   :  { %193 = vst [vmem:[#allocation4] sm:$0x1] %v192_v0 }
  0xb2   :  { %194 = vsyncpa [#allocation6], 0 }
  0xb3   :  { %195 = vsyncpa [#allocation8], 0 }
  0xb4   :  { %196 = vsyncpa [#allocation11], 0 }
  0xb5   :  { %197 = vsyncpa [#allocation14], 0 }
  0xb6   :  { %198 = vsyncpa [#allocation17], 0 }
  0xb7   :  { %199 = vsyncpa [#allocation20], 0 }
  0xb8   :  { %200 = vsyncpa [#allocation23], 0 }
  0xb9   :  { %201 = vsyncpa [#allocation26], 0 }
  0xba   :  { %202 = vsyncpa [#allocation29], 0 }
  0xbb   :  { %203 = vsyncpa [#allocation32], 0 }
  0xbc   :  { %204 = vsyncpa [#allocation35], 0 }
  0xbd   :  { %205 = vsyncpa [#allocation38], 0 }
  0xbe   :  { %206 = vsyncpa [#allocation41], 0 }
  0xbf   :  { %207 = vsyncpa [#allocation44], 0 }
  0xc0   :  { %208 = vsyncpa [#allocation47], 0 }
  0xc1   :  { %209 = vsyncpa [#allocation50], 0 }
  0xc2   :  { %210 = vsyncpa [#allocation53], 0 }
  0xc3   :  { %211 = vsyncpa [#allocation56], 0 }
  0xc4   :  { %212 = vsyncpa [#allocation59], 0 }
  0xc5   :  { %213 = vsyncpa [#allocation62], 0 }
  0xc6   :  { %214 = vsyncpa [#allocation65], 0 }
  0xc7   :  { %215 = vsyncpa [#allocation68], 0 }
  0xc8   :  { %216 = vsyncpa [#allocation71], 0 }
  0xc9   :  { %217 = vsyncpa [#allocation74], 0 }
  0xca   :  { %218 = vsyncpa [#allocation77], 0 }
  0xcb   :  { %219 = vsyncpa [#allocation80], 0 }
  0xcc   :  { %220 = vsyncpa [#allocation83], 0 }
  0xcd   :  { %221 = vsyncpa [#allocation86], 0 }
  0xce   :  { %222 = vsyncpa [#allocation89], 0 }
  0xcf   :  { %223 = vsyncpa [#allocation92], 0 }
  0xd0   :  { %224 = vsyncpa [#allocation95], 0 }
  0xd1   :  { %225 = vsyncpa [#allocation98], 0 }
  0xd2   :  { %226 = vsyncpa [#allocation101], 0 }
  0xd3   :  { %227 = vsyncpa [#allocation104], 0 }
  0xd4   :  { %228 = vsyncpa [#allocation107], 0 }
  0xd5   :  { %229 = vsyncpa [#allocation110], 0 }
  0xd6   :  { %230 = vsyncpa [#allocation113], 0 }
  0xd7   :  { %231 = vsyncpa [#allocation116], 0 }
  0xd8   :  { %232 = vsyncpa [#allocation119], 0  ;;  %s14359_s0 = smov [#allocation7]  }
  0xd9   :  { %s254_s9 = sshll.u32 %s14359_s0, 4  ;;  %s255_s9 = int_to_ptr.vmem [resolvable:$true] %s254_s9 }
  0xda   :  { %s12676_s7 = scalar_lea.vmem %s255_s9, 128  ;;  %p12681_p1 = scmp.lt.s32.totalorder %s255_s9, %s255_s9 }
  0xdb   :  { %p12677_p0 = scmp.ne.s32.totalorder %s255_s9, %s12676_s7  ;;  %p12682_p2 = scmp.lt.s32.totalorder %s12676_s7, %s12676_s7 }
  0xdd   :  { %p12683_p3 = por %p12682_p2, %p12681_p1 }
  0xdf   :  { %p12684_p4 = pnand %p12683_p3, %p12677_p0 }
  0xe1   :  { %12687 = shalt.err (!%p12684_p4)
}
  0xe2   :  { %s14360_s10 = smov 64   ;;  %s14361_s11 = smov 4  }
  0xe3   :  { %260 = dma.hbm_to_vmem [thread:$0]  %s14467_s17, 128, %s255_s9, [#allocation8], %s14360_s10, %s14360_s10, %s14361_s11  }
  0xe4   :  { %s14362_s15 = smov [#allocation10]   ;;  %s14363_s18 = smov [#allocation13]  }
  0xe5   :  { %s278_s16 = sshll.u32 %s14362_s15, 4  ;;  %s308_s22 = sshll.u32 %s14363_s18, 4  ;;  %s279_s16 = int_to_ptr.vmem [resolvable:$true] %s278_s16  ;;  %s309_s22 = int_to_ptr.vmem [resolvable:$true] %s308_s22 }
  0xe6   :  { %s12696_s23 = scalar_lea.vmem %s279_s16, 128  ;;  %p12701_p6 = scmp.lt.s32.totalorder %s279_s16, %s279_s16 }
  0xe7   :  { %p12697_p5 = scmp.ne.s32.totalorder %s279_s16, %s12696_s23  ;;  %p12702_p7 = scmp.lt.s32.totalorder %s12696_s23, %s12696_s23 }
  0xe9   :  { %p12703_p8 = por %p12702_p7, %p12701_p6 }
  0xeb   :  { %p12704_p9 = pnand %p12703_p8, %p12697_p5 }
  0xed   :  { %12707 = shalt.err (!%p12704_p9)
}
  0xee   :  { %284 = dma.hbm_to_vmem [thread:$0]  %s14477_s25, 128, %s279_s16, [#allocation11], %s14360_s10, %s14360_s10, %s14361_s11  }
  0xef   :  { %s12716_s26 = scalar_lea.vmem %s309_s22, 256  ;;  %p12721_p11 = scmp.lt.s32.totalorder %s309_s22, %s309_s22 }
  0xf0   :  { %p12717_p10 = scmp.ne.s32.totalorder %s309_s22, %s12716_s26  ;;  %p12722_p12 = scmp.lt.s32.totalorder %s12716_s26, %s12716_s26 }
  0xf2   :  { %p12723_p13 = por %p12722_p12, %p12721_p11 }
  0xf4   :  { %p12724_p0 = pnand %p12723_p13, %p12717_p10 }
  0xf6   :  { %12727 = shalt.err (!%p12724_p0)
}
  0xf7   :  { %314 = dma.hbm_to_vmem [thread:$0]  %s14502_s19, 256, %s309_s22, [#allocation14], %s14360_s10, %s14360_s10, %s14361_s11  }
  0xf8   :  { %s14364_s17 = smov [#allocation16]   ;;  %s14365_s28 = smov [#allocation19]  }
  0xf9   :  { %s331_s1 = sshll.u32 %s14364_s17, 4  ;;  %s350_s2 = sshll.u32 %s14365_s28, 4  ;;  %s332_s1 = int_to_ptr.vmem [resolvable:$true] %s331_s1  ;;  %s351_s2 = int_to_ptr.vmem [resolvable:$true] %s350_s2 }
  0xfa   :  { %s12736_s0 = scalar_lea.vmem %s332_s1, 16  ;;  %s12740_s25 = scalar_lea.vmem %s332_s1, 32 }
  0xfb   :  { %p12737_p1 = scmp.ne.s32.totalorder %s332_s1, %s12736_s0  ;;  %p12741_p2 = scmp.lt.s32.totalorder %s332_s1, %s332_s1 }
  0xfc   :  { %p12742_p3 = scmp.lt.s32.totalorder %s12740_s25, %s12736_s0 }
  0xfe   :  { %p12743_p4 = por %p12742_p3, %p12741_p2 }
 0x100   :  { %p12744_p5 = pnand %p12743_p4, %p12737_p1 }
 0x102   :  { %12747 = shalt.err (!%p12744_p5)
}
 0x103   :  { %334 = dma.hbm_to_vmem [thread:$0]  %s14512_s30, 16, %s332_s1, [#allocation17]  }
 0x104   :  { %s12756_s9 = scalar_lea.vmem %s351_s2, 128  ;;  %p12761_p7 = scmp.lt.s32.totalorder %s351_s2, %s351_s2 }
 0x105   :  { %p12757_p6 = scmp.ne.s32.totalorder %s351_s2, %s12756_s9  ;;  %p12762_p8 = scmp.lt.s32.totalorder %s12756_s9, %s12756_s9 }
 0x107   :  { %p12763_p9 = por %p12762_p8, %p12761_p7 }
 0x109   :  { %p12764_p10 = pnand %p12763_p9, %p12757_p6 }
 0x10b   :  { %12767 = shalt.err (!%p12764_p10)
}
 0x10c   :  { %356 = dma.hbm_to_vmem [thread:$0]  %s14522_s12, 128, %s351_s2, [#allocation20], %s14360_s10, %s14360_s10, %s14361_s11  }
 0x10d   :  { %s14366_s19 = smov [#allocation22]   ;;  %s14367_s15 = smov [#allocation25]  }
 0x10e   :  { %s375_s7 = sshll.u32 %s14366_s19, 4  ;;  %s395_s16 = sshll.u32 %s14367_s15, 4  ;;  %s376_s7 = int_to_ptr.vmem [resolvable:$true] %s375_s7  ;;  %s396_s16 = int_to_ptr.vmem [resolvable:$true] %s395_s16 }
 0x10f   :  { %s12776_s18 = scalar_lea.vmem %s376_s7, 16  ;;  %s12780_s30 = scalar_lea.vmem %s376_s7, 32 }
 0x110   :  { %p12777_p11 = scmp.ne.s32.totalorder %s376_s7, %s12776_s18  ;;  %p12781_p12 = scmp.lt.s32.totalorder %s376_s7, %s376_s7 }
 0x111   :  { %p12782_p13 = scmp.lt.s32.totalorder %s12780_s30, %s12776_s18 }
 0x113   :  { %p12783_p0 = por %p12782_p13, %p12781_p12 }
 0x115   :  { %p12784_p1 = pnand %p12783_p0, %p12777_p11 }
 0x117   :  { %12787 = shalt.err (!%p12784_p1)
}
 0x118   :  { %378 = dma.hbm_to_vmem [thread:$0]  %s14532_s27, 16, %s376_s7, [#allocation23]  }
 0x119   :  { %s12796_s22 = scalar_lea.vmem %s396_s16, 16  ;;  %s12800_s23 = scalar_lea.vmem %s396_s16, 32 }
 0x11a   :  { %p12797_p2 = scmp.ne.s32.totalorder %s396_s16, %s12796_s22  ;;  %p12801_p3 = scmp.lt.s32.totalorder %s396_s16, %s396_s16 }
 0x11b   :  { %p12802_p4 = scmp.lt.s32.totalorder %s12800_s23, %s12796_s22 }
 0x11d   :  { %p12803_p5 = por %p12802_p4, %p12801_p3 }
 0x11f   :  { %p12804_p6 = pnand %p12803_p5, %p12797_p2 }
 0x121   :  { %12807 = shalt.err (!%p12804_p6)
}
 0x122   :  { %398 = dma.hbm_to_vmem [thread:$0]  %s14542_s8, 16, %s396_s16, [#allocation26]  }
 0x123   :  { %s14368_s12 = smov [#allocation28]   ;;  %s14369_s17 = smov [#allocation31]  }
 0x124   :  { %s417_s26 = sshll.u32 %s14368_s12, 4  ;;  %s439_s1 = sshll.u32 %s14369_s17, 4  ;;  %s418_s26 = int_to_ptr.vmem [resolvable:$true] %s417_s26  ;;  %s440_s1 = int_to_ptr.vmem [resolvable:$true] %s439_s1 }
 0x125   :  { %s12816_s28 = scalar_lea.vmem %s418_s26, 16  ;;  %s12820_s2 = scalar_lea.vmem %s418_s26, 32 }
 0x126   :  { %p12817_p7 = scmp.ne.s32.totalorder %s418_s26, %s12816_s28  ;;  %p12821_p8 = scmp.lt.s32.totalorder %s418_s26, %s418_s26 }
 0x127   :  { %p12822_p9 = scmp.lt.s32.totalorder %s12820_s2, %s12816_s28 }
 0x129   :  { %p12823_p10 = por %p12822_p9, %p12821_p8 }
 0x12b   :  { %p12824_p11 = pnand %p12823_p10, %p12817_p7 }
 0x12d   :  { %12827 = shalt.err (!%p12824_p11)
}
 0x12e   :  { %420 = dma.hbm_to_vmem [thread:$0]  %s14552_s29, 16, %s418_s26, [#allocation29]  }
 0x12f   :  { %s12836_s27 = scalar_lea.vmem %s440_s1, 16  ;;  %s12840_s0 = scalar_lea.vmem %s440_s1, 32 }
 0x130   :  { %p12837_p12 = scmp.ne.s32.totalorder %s440_s1, %s12836_s27  ;;  %p12841_p13 = scmp.lt.s32.totalorder %s440_s1, %s440_s1 }
 0x131   :  { %p12842_p0 = scmp.lt.s32.totalorder %s12840_s0, %s12836_s27 }
 0x133   :  { %p12843_p1 = por %p12842_p0, %p12841_p13 }
 0x135   :  { %p12844_p2 = pnand %p12843_p1, %p12837_p12 }
 0x137   :  { %12847 = shalt.err (!%p12844_p2)
}
 0x138   :  { %442 = dma.hbm_to_vmem [thread:$0]  %s14562_s5, 16, %s440_s1, [#allocation32]  }
 0x139   :  { %s14370_s8 = smov [#allocation34]   ;;  %s14371_s9 = smov [#allocation37]  }
 0x13a   :  { %s461_s25 = sshll.u32 %s14370_s8, 4  ;;  %s483_s19 = sshll.u32 %s14371_s9, 4  ;;  %s462_s25 = int_to_ptr.vmem [resolvable:$true] %s461_s25  ;;  %s484_s19 = int_to_ptr.vmem [resolvable:$true] %s483_s19 }
 0x13b   :  { %s12856_s7 = scalar_lea.vmem %s462_s25, 16  ;;  %s12860_s15 = scalar_lea.vmem %s462_s25, 32 }
 0x13c   :  { %p12857_p3 = scmp.ne.s32.totalorder %s462_s25, %s12856_s7  ;;  %p12861_p4 = scmp.lt.s32.totalorder %s462_s25, %s462_s25 }
 0x13d   :  { %p12862_p5 = scmp.lt.s32.totalorder %s12860_s15, %s12856_s7 }
 0x13f   :  { %p12863_p6 = por %p12862_p5, %p12861_p4 }
 0x141   :  { %p12864_p7 = pnand %p12863_p6, %p12857_p3 }
 0x143   :  { %12867 = shalt.err (!%p12864_p7)
}
 0x144   :  { %464 = dma.hbm_to_vmem [thread:$0]  %s14572_s4, 16, %s462_s25, [#allocation35]  }
 0x145   :  { %s12876_s29 = scalar_lea.vmem %s484_s19, 16  ;;  %s12880_s16 = scalar_lea.vmem %s484_s19, 32 }
 0x146   :  { %p12877_p8 = scmp.ne.s32.totalorder %s484_s19, %s12876_s29  ;;  %p12881_p9 = scmp.lt.s32.totalorder %s484_s19, %s484_s19 }
 0x147   :  { %p12882_p10 = scmp.lt.s32.totalorder %s12880_s16, %s12876_s29 }
 0x149   :  { %p12883_p11 = por %p12882_p10, %p12881_p9 }
 0x14b   :  { %p12884_p12 = pnand %p12883_p11, %p12877_p8 }
 0x14d   :  { %12887 = shalt.err (!%p12884_p12)
}
 0x14e   :  { %486 = dma.hbm_to_vmem [thread:$0]  %s14582_s20, 16, %s484_s19, [#allocation38]  }
 0x14f   :  { %s14372_s5 = smov [#allocation40]   ;;  %s14373_s30 = smov [#allocation43]  }
 0x150   :  { %s504_s18 = sshll.u32 %s14372_s5, 4  ;;  %s527_s22 = sshll.u32 %s14373_s30, 4  ;;  %s505_s18 = int_to_ptr.vmem [resolvable:$true] %s504_s18  ;;  %s528_s22 = int_to_ptr.vmem [resolvable:$true] %s527_s22 }
 0x151   :  { %s12896_s23 = scalar_lea.vmem %s505_s18, 1024  ;;  %p12901_p0 = scmp.lt.s32.totalorder %s505_s18, %s505_s18 }
 0x152   :  { %p12897_p13 = scmp.ne.s32.totalorder %s505_s18, %s12896_s23  ;;  %p12902_p1 = scmp.lt.s32.totalorder %s12896_s23, %s12896_s23 }
 0x154   :  { %p12903_p2 = por %p12902_p1, %p12901_p0 }
 0x156   :  { %p12904_p3 = pnand %p12903_p2, %p12897_p13 }
 0x158   :  { %12907 = shalt.err (!%p12904_p3)
}
 0x159   :  { %510 = dma.hbm_to_vmem [thread:$0]  %s14592_s6, 1024, %s505_s18, [#allocation41], %s14360_s10, %s14360_s10, %s14361_s11  }
 0x15a   :  { %s12916_s4 = scalar_lea.vmem %s528_s22, 16  ;;  %s12920_s20 = scalar_lea.vmem %s528_s22, 32 }
 0x15b   :  { %p12917_p4 = scmp.ne.s32.totalorder %s528_s22, %s12916_s4  ;;  %p12921_p5 = scmp.lt.s32.totalorder %s528_s22, %s528_s22 }
 0x15c   :  { %p12922_p6 = scmp.lt.s32.totalorder %s12920_s20, %s12916_s4 }
 0x15e   :  { %p12923_p7 = por %p12922_p6, %p12921_p5 }
 0x160   :  { %p12924_p8 = pnand %p12923_p7, %p12917_p4 }
 0x162   :  { %12927 = shalt.err (!%p12924_p8)
}
 0x163   :  { %530 = dma.hbm_to_vmem [thread:$0]  %s14602_s24, 16, %s528_s22, [#allocation44]  }
 0x164   :  { %s14374_s12 = smov [#allocation46]   ;;  %s14375_s17 = smov [#allocation49]  }
 0x165   :  { %s546_s26 = sshll.u32 %s14374_s12, 4  ;;  %s571_s1 = sshll.u32 %s14375_s17, 4  ;;  %s547_s26 = int_to_ptr.vmem [resolvable:$true] %s546_s26  ;;  %s572_s1 = int_to_ptr.vmem [resolvable:$true] %s571_s1 }
 0x166   :  { %s12936_s28 = scalar_lea.vmem %s547_s26, 1024  ;;  %p12941_p10 = scmp.lt.s32.totalorder %s547_s26, %s547_s26 }
 0x167   :  { %p12937_p9 = scmp.ne.s32.totalorder %s547_s26, %s12936_s28  ;;  %p12942_p11 = scmp.lt.s32.totalorder %s12936_s28, %s12936_s28 }
 0x169   :  { %p12943_p12 = por %p12942_p11, %p12941_p10 }
 0x16b   :  { %p12944_p13 = pnand %p12943_p12, %p12937_p9 }
 0x16d   :  { %12947 = shalt.err (!%p12944_p13)
}
 0x16e   :  { %552 = dma.hbm_to_vmem [thread:$0]  %s14612_s14, 1024, %s547_s26, [#allocation47], %s14360_s10, %s14360_s10, %s14361_s11  }
 0x16f   :  { %s12956_s6 = scalar_lea.vmem %s572_s1, 16  ;;  %s12960_s24 = scalar_lea.vmem %s572_s1, 32 }
 0x170   :  { %p12957_p0 = scmp.ne.s32.totalorder %s572_s1, %s12956_s6  ;;  %p12961_p1 = scmp.lt.s32.totalorder %s572_s1, %s572_s1 }
 0x171   :  { %p12962_p2 = scmp.lt.s32.totalorder %s12960_s24, %s12956_s6 }
 0x173   :  { %p12963_p3 = por %p12962_p2, %p12961_p1 }
 0x175   :  { %p12964_p4 = pnand %p12963_p3, %p12957_p0 }
 0x177   :  { %12967 = shalt.err (!%p12964_p4)
}
 0x178   :  { %s16078_s2 = sld [smem:[#allocation179_spill]]  ;;  %s14376_s27 = smov [#allocation52]  }
 0x179   :  { %s591_s0 = sshll.u32 %s14376_s27, 4  ;;  %s14377_s8 = smov [#allocation55]   ;;  %s592_s0 = int_to_ptr.vmem [resolvable:$true] %s591_s0 }
 0x17a   :  { %s613_s25 = sshll.u32 %s14377_s8, 4  ;;  %s12976_s9 = scalar_lea.vmem %s592_s0, 16  ;;  %s614_s25 = int_to_ptr.vmem [resolvable:$true] %s613_s25 }
 0x17b   :  { %p12977_p5 = scmp.ne.s32.totalorder %s592_s0, %s12976_s9  ;;  %s12980_s19 = scalar_lea.vmem %s592_s0, 32 }
 0x17c   :  { %p12981_p6 = scmp.lt.s32.totalorder %s592_s0, %s592_s0  ;;  %p12982_p7 = scmp.lt.s32.totalorder %s12980_s19, %s12976_s9 }
 0x17e   :  { %574 = dma.hbm_to_vmem [thread:$0]  %s16078_s2, 16, %s572_s1, [#allocation50]  }
 0x17f   :  { %p12983_p8 = por %p12982_p7, %p12981_p6 }
 0x181   :  { %p12984_p9 = pnand %p12983_p8, %p12977_p5 }
 0x183   :  { %12987 = shalt.err (!%p12984_p9)
}
 0x184   :  { %s16079_s14 = sld [smem:[#allocation181_spill]]  ;;  %s12996_s7 = scalar_lea.vmem %s614_s25, 16 }
 0x185   :  { %p12997_p10 = scmp.ne.s32.totalorder %s614_s25, %s12996_s7  ;;  %s13000_s15 = scalar_lea.vmem %s614_s25, 32 }
 0x186   :  { %p13001_p11 = scmp.lt.s32.totalorder %s614_s25, %s614_s25  ;;  %p13002_p12 = scmp.lt.s32.totalorder %s13000_s15, %s12996_s7 }
 0x188   :  { %p13003_p13 = por %p13002_p12, %p13001_p11 }
 0x18a   :  { %594 = dma.hbm_to_vmem [thread:$0]  %s16079_s14, 16, %s592_s0, [#allocation53]  }
 0x18b   :  { %p13004_p0 = pnand %p13003_p13, %p12997_p10 }
 0x18d   :  { %13007 = shalt.err (!%p13004_p0)
}
 0x18e   :  { %s16080_s29 = sld [smem:[#allocation183_spill]]  ;;  %s14378_s16 = smov [#allocation58]  }
 0x18f   :  { %s635_s5 = sshll.u32 %s14378_s16, 4  ;;  %s14379_s18 = smov [#allocation61]   ;;  %s636_s5 = int_to_ptr.vmem [resolvable:$true] %s635_s5 }
 0x190   :  { %s657_s30 = sshll.u32 %s14379_s18, 4  ;;  %s13016_s22 = scalar_lea.vmem %s636_s5, 16  ;;  %s658_s30 = int_to_ptr.vmem [resolvable:$true] %s657_s30 }
 0x191   :  { %p13017_p1 = scmp.ne.s32.totalorder %s636_s5, %s13016_s22  ;;  %s13020_s23 = scalar_lea.vmem %s636_s5, 32 }
 0x192   :  { %p13021_p2 = scmp.lt.s32.totalorder %s636_s5, %s636_s5  ;;  %p13022_p3 = scmp.lt.s32.totalorder %s13020_s23, %s13016_s22 }
 0x194   :  { %616 = dma.hbm_to_vmem [thread:$0]  %s16080_s29, 16, %s614_s25, [#allocation56]  }
 0x195   :  { %p13023_p4 = por %p13022_p3, %p13021_p2 }
 0x197   :  { %p13024_p5 = pnand %p13023_p4, %p13017_p1 }
 0x199   :  { %13027 = shalt.err (!%p13024_p5)
}
 0x19a   :  { %s16081_s4 = sld [smem:[#allocation185_spill]]  ;;  %s13036_s20 = scalar_lea.vmem %s658_s30, 16 }
 0x19b   :  { %p13037_p6 = scmp.ne.s32.totalorder %s658_s30, %s13036_s20  ;;  %s13040_s12 = scalar_lea.vmem %s658_s30, 32 }
 0x19c   :  { %p13041_p7 = scmp.lt.s32.totalorder %s658_s30, %s658_s30  ;;  %p13042_p8 = scmp.lt.s32.totalorder %s13040_s12, %s13036_s20 }
 0x19e   :  { %p13043_p9 = por %p13042_p8, %p13041_p7 }
 0x1a0   :  { %638 = dma.hbm_to_vmem [thread:$0]  %s16081_s4, 16, %s636_s5, [#allocation59]  }
 0x1a1   :  { %p13044_p10 = pnand %p13043_p9, %p13037_p6 }
 0x1a3   :  { %13047 = shalt.err (!%p13044_p10)
}
 0x1a4   :  { %s16082_s26 = sld [smem:[#allocation187_spill]]  ;;  %s14380_s17 = smov [#allocation64]  }
 0x1a5   :  { %s679_s1 = sshll.u32 %s14380_s17, 4  ;;  %s14381_s28 = smov [#allocation67]   ;;  %s680_s1 = int_to_ptr.vmem [resolvable:$true] %s679_s1 }
 0x1a6   :  { %s700_s6 = sshll.u32 %s14381_s28, 4  ;;  %s13056_s24 = scalar_lea.vmem %s680_s1, 16  ;;  %s701_s6 = int_to_ptr.vmem [resolvable:$true] %s700_s6 }
 0x1a7   :  { %p13057_p11 = scmp.ne.s32.totalorder %s680_s1, %s13056_s24  ;;  %s13060_s2 = scalar_lea.vmem %s680_s1, 32 }
 0x1a8   :  { %p13061_p12 = scmp.lt.s32.totalorder %s680_s1, %s680_s1  ;;  %p13062_p13 = scmp.lt.s32.totalorder %s13060_s2, %s13056_s24 }
 0x1aa   :  { %660 = dma.hbm_to_vmem [thread:$0]  %s16082_s26, 16, %s658_s30, [#allocation62]  }
 0x1ab   :  { %p13063_p0 = por %p13062_p13, %p13061_p12 }
 0x1ad   :  { %p13064_p1 = pnand %p13063_p0, %p13057_p11 }
 0x1af   :  { %13067 = shalt.err (!%p13064_p1)
}
 0x1b0   :  { %s16083_s27 = sld [smem:[#allocation189_spill]]  ;;  %s13076_s0 = scalar_lea.vmem %s701_s6, 1024 }
 0x1b1   :  { %p13077_p2 = scmp.ne.s32.totalorder %s701_s6, %s13076_s0  ;;  %p13081_p3 = scmp.lt.s32.totalorder %s701_s6, %s701_s6 }
 0x1b2   :  { %p13082_p4 = scmp.lt.s32.totalorder %s13076_s0, %s13076_s0 }
 0x1b4   :  { %p13083_p5 = por %p13082_p4, %p13081_p3 }
 0x1b6   :  { %682 = dma.hbm_to_vmem [thread:$0]  %s16083_s27, 16, %s680_s1, [#allocation65]  }
 0x1b7   :  { %p13084_p6 = pnand %p13083_p5, %p13077_p2 }
 0x1b9   :  { %13087 = shalt.err (!%p13084_p6)
}
 0x1ba   :  { %s16084_s8 = sld [smem:[#allocation191_spill]]  ;;  %s14382_s25 = smov [#allocation70]  }
 0x1bb   :  { %s723_s9 = sshll.u32 %s14382_s25, 4  ;;  %s14383_s19 = smov [#allocation73]   ;;  %s724_s9 = int_to_ptr.vmem [resolvable:$true] %s723_s9 }
 0x1bc   :  { %s742_s14 = sshll.u32 %s14383_s19, 4  ;;  %s13096_s7 = scalar_lea.vmem %s724_s9, 16  ;;  %s743_s14 = int_to_ptr.vmem [resolvable:$true] %s742_s14 }
 0x1bd   :  { %p13097_p7 = scmp.ne.s32.totalorder %s724_s9, %s13096_s7  ;;  %s13100_s15 = scalar_lea.vmem %s724_s9, 32 }
 0x1be   :  { %p13101_p8 = scmp.lt.s32.totalorder %s724_s9, %s724_s9  ;;  %p13102_p9 = scmp.lt.s32.totalorder %s13100_s15, %s13096_s7 }
 0x1c0   :  { %706 = dma.hbm_to_vmem [thread:$0]  %s16084_s8, 1024, %s701_s6, [#allocation68], %s14360_s10, %s14360_s10, %s14361_s11  }
 0x1c1   :  { %p13103_p10 = por %p13102_p9, %p13101_p8 }
 0x1c3   :  { %p13104_p11 = pnand %p13103_p10, %p13097_p7 }
 0x1c5   :  { %13107 = shalt.err (!%p13104_p11)
}
 0x1c6   :  { %s16085_s29 = sld [smem:[#allocation193_spill]]  ;;  %s13116_s16 = scalar_lea.vmem %s743_s14, 1024 }
 0x1c7   :  { %p13117_p12 = scmp.ne.s32.totalorder %s743_s14, %s13116_s16  ;;  %p13121_p13 = scmp.lt.s32.totalorder %s743_s14, %s743_s14 }
 0x1c8   :  { %p13122_p0 = scmp.lt.s32.totalorder %s13116_s16, %s13116_s16 }
 0x1ca   :  { %p13123_p1 = por %p13122_p0, %p13121_p13 }
 0x1cc   :  { %726 = dma.hbm_to_vmem [thread:$0]  %s16085_s29, 16, %s724_s9, [#allocation71]  }
 0x1cd   :  { %p13124_p2 = pnand %p13123_p1, %p13117_p12 }
 0x1cf   :  { %13127 = shalt.err (!%p13124_p2)
}
 0x1d0   :  { %s16086_s5 = sld [smem:[#allocation195_spill]]  ;;  %s14384_s18 = smov [#allocation76]  }
 0x1d1   :  { %s767_s30 = sshll.u32 %s14384_s18, 4  ;;  %s14385_s22 = smov [#allocation79]   ;;  %s768_s30 = int_to_ptr.vmem [resolvable:$true] %s767_s30 }
 0x1d2   :  { %s787_s23 = sshll.u32 %s14385_s22, 4  ;;  %s13136_s4 = scalar_lea.vmem %s768_s30, 16  ;;  %s788_s23 = int_to_ptr.vmem [resolvable:$true] %s787_s23 }
 0x1d3   :  { %p13137_p3 = scmp.ne.s32.totalorder %s768_s30, %s13136_s4  ;;  %s13140_s20 = scalar_lea.vmem %s768_s30, 32 }
 0x1d4   :  { %p13141_p4 = scmp.lt.s32.totalorder %s768_s30, %s768_s30  ;;  %p13142_p5 = scmp.lt.s32.totalorder %s13140_s20, %s13136_s4 }
 0x1d6   :  { %748 = dma.hbm_to_vmem [thread:$0]  %s16086_s5, 1024, %s743_s14, [#allocation74], %s14360_s10, %s14360_s10, %s14361_s11  }
 0x1d7   :  { %p13143_p6 = por %p13142_p5, %p13141_p4 }
 0x1d9   :  { %p13144_p7 = pnand %p13143_p6, %p13137_p3 }
 0x1db   :  { %13147 = shalt.err (!%p13144_p7)
}
 0x1dc   :  { %s16087_s12 = sld [smem:[#allocation197_spill]]  ;;  %s13156_s26 = scalar_lea.vmem %s788_s23, 16 }
 0x1dd   :  { %p13157_p8 = scmp.ne.s32.totalorder %s788_s23, %s13156_s26  ;;  %s13160_s17 = scalar_lea.vmem %s788_s23, 32 }
 0x1de   :  { %p13161_p9 = scmp.lt.s32.totalorder %s788_s23, %s788_s23  ;;  %p13162_p10 = scmp.lt.s32.totalorder %s13160_s17, %s13156_s26 }
 0x1e0   :  { %p13163_p11 = por %p13162_p10, %p13161_p9 }
 0x1e2   :  { %770 = dma.hbm_to_vmem [thread:$0]  %s16087_s12, 16, %s768_s30, [#allocation77]  }
 0x1e3   :  { %p13164_p12 = pnand %p13163_p11, %p13157_p8 }
 0x1e5   :  { %13167 = shalt.err (!%p13164_p12)
}
 0x1e6   :  { %s16088_s1 = sld [smem:[#allocation199_spill]]  ;;  %s14386_s28 = smov [#allocation82]  }
 0x1e7   :  { %s809_s6 = sshll.u32 %s14386_s28, 4  ;;  %s14387_s24 = smov [#allocation85]   ;;  %s810_s6 = int_to_ptr.vmem [resolvable:$true] %s809_s6 }
 0x1e8   :  { %s831_s2 = sshll.u32 %s14387_s24, 4  ;;  %s13176_s27 = scalar_lea.vmem %s810_s6, 16  ;;  %s832_s2 = int_to_ptr.vmem [resolvable:$true] %s831_s2 }
 0x1e9   :  { %p13177_p13 = scmp.ne.s32.totalorder %s810_s6, %s13176_s27  ;;  %s13180_s0 = scalar_lea.vmem %s810_s6, 32 }
 0x1ea   :  { %p13181_p0 = scmp.lt.s32.totalorder %s810_s6, %s810_s6  ;;  %p13182_p1 = scmp.lt.s32.totalorder %s13180_s0, %s13176_s27 }
 0x1ec   :  { %790 = dma.hbm_to_vmem [thread:$0]  %s16088_s1, 16, %s788_s23, [#allocation80]  }
 0x1ed   :  { %p13183_p2 = por %p13182_p1, %p13181_p0 }
 0x1ef   :  { %p13184_p3 = pnand %p13183_p2, %p13177_p13 }
 0x1f1   :  { %13187 = shalt.err (!%p13184_p3)
}
 0x1f2   :  { %s16089_s8 = sld [smem:[#allocation201_spill]]  ;;  %s13196_s25 = scalar_lea.vmem %s832_s2, 16 }
 0x1f3   :  { %p13197_p4 = scmp.ne.s32.totalorder %s832_s2, %s13196_s25  ;;  %s13200_s9 = scalar_lea.vmem %s832_s2, 32 }
 0x1f4   :  { %p13201_p5 = scmp.lt.s32.totalorder %s832_s2, %s832_s2  ;;  %p13202_p6 = scmp.lt.s32.totalorder %s13200_s9, %s13196_s25 }
 0x1f6   :  { %p13203_p7 = por %p13202_p6, %p13201_p5 }
 0x1f8   :  { %812 = dma.hbm_to_vmem [thread:$0]  %s16089_s8, 16, %s810_s6, [#allocation83]  }
 0x1f9   :  { %p13204_p8 = pnand %p13203_p7, %p13197_p4 }
 0x1fb   :  { %13207 = shalt.err (!%p13204_p8)
}
 0x1fc   :  { %s16090_s19 = sld [smem:[#allocation203_spill]]  ;;  %s14388_s14 = smov [#allocation88]  }
 0x1fd   :  { %s853_s7 = sshll.u32 %s14388_s14, 4  ;;  %s14389_s15 = smov [#allocation91]   ;;  %s854_s7 = int_to_ptr.vmem [resolvable:$true] %s853_s7 }
 0x1fe   :  { %s875_s29 = sshll.u32 %s14389_s15, 4  ;;  %s13216_s16 = scalar_lea.vmem %s854_s7, 16  ;;  %s876_s29 = int_to_ptr.vmem [resolvable:$true] %s875_s29 }
 0x1ff   :  { %p13217_p9 = scmp.ne.s32.totalorder %s854_s7, %s13216_s16  ;;  %s13220_s5 = scalar_lea.vmem %s854_s7, 32 }
 0x200   :  { %p13221_p10 = scmp.lt.s32.totalorder %s854_s7, %s854_s7  ;;  %p13222_p11 = scmp.lt.s32.totalorder %s13220_s5, %s13216_s16 }
 0x202   :  { %834 = dma.hbm_to_vmem [thread:$0]  %s16090_s19, 16, %s832_s2, [#allocation86]  }
 0x203   :  { %p13223_p12 = por %p13222_p11, %p13221_p10 }
 0x205   :  { %p13224_p13 = pnand %p13223_p12, %p13217_p9 }
 0x207   :  { %13227 = shalt.err (!%p13224_p13)
}
 0x208   :  { %s16091_s18 = sld [smem:[#allocation205_spill]]  ;;  %s13236_s30 = scalar_lea.vmem %s876_s29, 16 }
 0x209   :  { %p13237_p0 = scmp.ne.s32.totalorder %s876_s29, %s13236_s30  ;;  %s13240_s22 = scalar_lea.vmem %s876_s29, 32 }
 0x20a   :  { %p13241_p1 = scmp.lt.s32.totalorder %s876_s29, %s876_s29  ;;  %p13242_p2 = scmp.lt.s32.totalorder %s13240_s22, %s13236_s30 }
 0x20c   :  { %p13243_p3 = por %p13242_p2, %p13241_p1 }
 0x20e   :  { %856 = dma.hbm_to_vmem [thread:$0]  %s16091_s18, 16, %s854_s7, [#allocation89]  }
 0x20f   :  { %p13244_p4 = pnand %p13243_p3, %p13237_p0 }
 0x211   :  { %13247 = shalt.err (!%p13244_p4)
}
 0x212   :  { %s16092_s23 = sld [smem:[#allocation207_spill]]  ;;  %s14390_s4 = smov [#allocation94]  }
 0x213   :  { %s896_s20 = sshll.u32 %s14390_s4, 4  ;;  %s14391_s12 = smov [#allocation97]   ;;  %s897_s20 = int_to_ptr.vmem [resolvable:$true] %s896_s20 }
 0x214   :  { %s919_s26 = sshll.u32 %s14391_s12, 4  ;;  %s13256_s17 = scalar_lea.vmem %s897_s20, 1024  ;;  %s920_s26 = int_to_ptr.vmem [resolvable:$true] %s919_s26 }
 0x215   :  { %p13257_p5 = scmp.ne.s32.totalorder %s897_s20, %s13256_s17  ;;  %p13261_p6 = scmp.lt.s32.totalorder %s897_s20, %s897_s20 }
 0x216   :  { %p13262_p7 = scmp.lt.s32.totalorder %s13256_s17, %s13256_s17 }
 0x218   :  { %878 = dma.hbm_to_vmem [thread:$0]  %s16092_s23, 16, %s876_s29, [#allocation92]  }
 0x219   :  { %p13263_p8 = por %p13262_p7, %p13261_p6 }
 0x21b   :  { %p13264_p9 = pnand %p13263_p8, %p13257_p5 }
 0x21d   :  { %13267 = shalt.err (!%p13264_p9)
}
 0x21e   :  { %s16093_s1 = sld [smem:[#allocation209_spill]]  ;;  %s13276_s28 = scalar_lea.vmem %s920_s26, 16 }
 0x21f   :  { %p13277_p10 = scmp.ne.s32.totalorder %s920_s26, %s13276_s28  ;;  %s13280_s6 = scalar_lea.vmem %s920_s26, 32 }
 0x220   :  { %p13281_p11 = scmp.lt.s32.totalorder %s920_s26, %s920_s26  ;;  %p13282_p12 = scmp.lt.s32.totalorder %s13280_s6, %s13276_s28 }
 0x222   :  { %p13283_p13 = por %p13282_p12, %p13281_p11 }
 0x224   :  { %902 = dma.hbm_to_vmem [thread:$0]  %s16093_s1, 1024, %s897_s20, [#allocation95], %s14360_s10, %s14360_s10, %s14361_s11  }
 0x225   :  { %p13284_p0 = pnand %p13283_p13, %p13277_p10 }
 0x227   :  { %13287 = shalt.err (!%p13284_p0)
}
 0x228   :  { %s16094_s24 = sld [smem:[#allocation211_spill]]  ;;  %s14392_s2 = smov [#allocation100]  }
 0x229   :  { %s938_s27 = sshll.u32 %s14392_s2, 4  ;;  %s14393_s0 = smov [#allocation103]   ;;  %s939_s27 = int_to_ptr.vmem [resolvable:$true] %s938_s27 }
 0x22a   :  { %s963_s8 = sshll.u32 %s14393_s0, 4  ;;  %s13296_s25 = scalar_lea.vmem %s939_s27, 1024  ;;  %s964_s8 = int_to_ptr.vmem [resolvable:$true] %s963_s8 }
 0x22b   :  { %p13297_p1 = scmp.ne.s32.totalorder %s939_s27, %s13296_s25  ;;  %p13301_p2 = scmp.lt.s32.totalorder %s939_s27, %s939_s27 }
 0x22c   :  { %p13302_p3 = scmp.lt.s32.totalorder %s13296_s25, %s13296_s25 }
 0x22e   :  { %922 = dma.hbm_to_vmem [thread:$0]  %s16094_s24, 16, %s920_s26, [#allocation98]  }
 0x22f   :  { %p13303_p4 = por %p13302_p3, %p13301_p2 }
 0x231   :  { %p13304_p5 = pnand %p13303_p4, %p13297_p1 }
 0x233   :  { %13307 = shalt.err (!%p13304_p5)
}
 0x234   :  { %s16095_s9 = sld [smem:[#allocation213_spill]]  ;;  %s13316_s19 = scalar_lea.vmem %s964_s8, 16 }
 0x235   :  { %p13317_p6 = scmp.ne.s32.totalorder %s964_s8, %s13316_s19  ;;  %s13320_s14 = scalar_lea.vmem %s964_s8, 32 }
 0x236   :  { %p13321_p7 = scmp.lt.s32.totalorder %s964_s8, %s964_s8  ;;  %p13322_p8 = scmp.lt.s32.totalorder %s13320_s14, %s13316_s19 }
 0x238   :  { %p13323_p9 = por %p13322_p8, %p13321_p7 }
 0x23a   :  { %944 = dma.hbm_to_vmem [thread:$0]  %s16095_s9, 1024, %s939_s27, [#allocation101], %s14360_s10, %s14360_s10, %s14361_s11  }
 0x23b   :  { %p13324_p10 = pnand %p13323_p9, %p13317_p6 }
 0x23d   :  { %13327 = shalt.err (!%p13324_p10)
}
 0x23e   :  { %s16096_s7 = sld [smem:[#allocation215_spill]]  ;;  %s14394_s15 = smov [#allocation106]  }
 0x23f   :  { %s983_s29 = sshll.u32 %s14394_s15, 4  ;;  %s14395_s16 = smov [#allocation109]   ;;  %s984_s29 = int_to_ptr.vmem [resolvable:$true] %s983_s29 }
 0x240   :  { %s1004_s5 = sshll.u32 %s14395_s16, 4  ;;  %s13336_s18 = scalar_lea.vmem %s984_s29, 16  ;;  %s1005_s5 = int_to_ptr.vmem [resolvable:$true] %s1004_s5 }
 0x241   :  { %p13337_p11 = scmp.ne.s32.totalorder %s984_s29, %s13336_s18  ;;  %s13340_s30 = scalar_lea.vmem %s984_s29, 32 }
 0x242   :  { %p13341_p12 = scmp.lt.s32.totalorder %s984_s29, %s984_s29  ;;  %p13342_p13 = scmp.lt.s32.totalorder %s13340_s30, %s13336_s18 }
 0x244   :  { %966 = dma.hbm_to_vmem [thread:$0]  %s16096_s7, 16, %s964_s8, [#allocation104]  }
 0x245   :  { %p13343_p0 = por %p13342_p13, %p13341_p12 }
 0x247   :  { %p13344_p1 = pnand %p13343_p0, %p13337_p11 }
 0x249   :  { %13347 = shalt.err (!%p13344_p1)
}
 0x24a   :  { %s16097_s22 = sld [smem:[#allocation217_spill]]  ;;  %s13356_s23 = scalar_lea.vmem %s1005_s5, 4096 }
 0x24b   :  { %p13357_p2 = scmp.ne.s32.totalorder %s1005_s5, %s13356_s23  ;;  %p13361_p3 = scmp.lt.s32.totalorder %s1005_s5, %s1005_s5 }
 0x24c   :  { %p13362_p4 = scmp.lt.s32.totalorder %s13356_s23, %s13356_s23 }
 0x24e   :  { %p13363_p5 = por %p13362_p4, %p13361_p3 }
 0x250   :  { %986 = dma.hbm_to_vmem [thread:$0]  %s16097_s22, 16, %s984_s29, [#allocation107]  }
 0x251   :  { %p13364_p6 = pnand %p13363_p5, %p13357_p2 }
 0x253   :  { %13367 = shalt.err (!%p13364_p6)
}
 0x254   :  { %s16098_s4 = sld [smem:[#allocation220_spill]]  ;;  %s14396_s20 = smov [#allocation112]  }
 0x255   :  { %s1032_s12 = sshll.u32 %s14396_s20, 4  ;;  %s14397_s26 = smov [#allocation115]   ;;  %s1033_s12 = int_to_ptr.vmem [resolvable:$true] %s1032_s12 }
 0x256   :  { %s1058_s17 = sshll.u32 %s14397_s26, 4  ;;  %s13376_s1 = scalar_lea.vmem %s1033_s12, 4096  ;;  %s1059_s17 = int_to_ptr.vmem [resolvable:$true] %s1058_s17 }
 0x257   :  { %p13377_p7 = scmp.ne.s32.totalorder %s1033_s12, %s13376_s1  ;;  %p13381_p8 = scmp.lt.s32.totalorder %s1033_s12, %s1033_s12 }
 0x258   :  { %p13382_p9 = scmp.lt.s32.totalorder %s13376_s1, %s13376_s1 }
 0x25a   :  { %1010 = dma.hbm_to_vmem [thread:$0]  %s16098_s4, 4096, %s1005_s5, [#allocation110], %s14360_s10, %s14360_s10, %s14361_s11  }
 0x25b   :  { %p13383_p10 = por %p13382_p9, %p13381_p8 }
 0x25d   :  { %p13384_p11 = pnand %p13383_p10, %p13377_p7 }
 0x25f   :  { %13387 = shalt.err (!%p13384_p11)
}
 0x260   :  { %s16099_s28 = sld [smem:[#allocation224_spill]]  ;;  %s13396_s6 = scalar_lea.vmem %s1059_s17, 1024 }
 0x261   :  { %p13397_p12 = scmp.ne.s32.totalorder %s1059_s17, %s13396_s6  ;;  %p13401_p13 = scmp.lt.s32.totalorder %s1059_s17, %s1059_s17 }
 0x262   :  { %p13402_p0 = scmp.lt.s32.totalorder %s13396_s6, %s13396_s6 }
 0x264   :  { %p13403_p1 = por %p13402_p0, %p13401_p13 }
 0x266   :  { %1038 = dma.hbm_to_vmem [thread:$0]  %s16099_s28, 4096, %s1033_s12, [#allocation113], %s14360_s10, %s14360_s10, %s14361_s11  }
 0x267   :  { %p13404_p2 = pnand %p13403_p1, %p13397_p12 }
 0x269   :  { %13407 = shalt.err (!%p13404_p2)
}
 0x26a   :  { %s16100_s24 = sld [smem:[#allocation227_spill]]  ;;  %s14398_s2 = smov [#allocation5]  }
 0x26b   :  { %s240_s27 = sshll.u32 %s14398_s2, 4  ;;  %s241_s27 = int_to_ptr.vmem [resolvable:$true] %s240_s27 }
 0x26c   :  { %s13416_s0 = scalar_lea.vmem %s241_s27, 256  ;;  %p13421_p4 = scmp.lt.s32.totalorder %s241_s27, %s241_s27 }
 0x26d   :  { %p13417_p3 = scmp.ne.s32.totalorder %s241_s27, %s13416_s0  ;;  %p13422_p5 = scmp.lt.s32.totalorder %s13416_s0, %s13416_s0 }
 0x26f   :  { %p13423_p6 = por %p13422_p5, %p13421_p4 }
 0x270   :  { %1064 = dma.hbm_to_vmem [thread:$0]  %s16100_s24, 1024, %s1059_s17, [#allocation116], %s14360_s10, %s14360_s10, %s14361_s11  }
 0x271   :  { %p13424_p7 = pnand %p13423_p6, %p13417_p3 }
 0x273   :  { %13427 = shalt.err (!%p13424_p7)
}
 0x274   :  { %s14399_s8 = smov 128   ;;  %s16101_s25 = sld [smem:[#allocation160_spill]] }
 0x275   :  { %s14400_s9 = smov 8   ;;  %s14401_s19 = smov [#allocation9]  }
 0x276   :  { %s266_s14 = sshll.u32 %s14401_s19, 4  ;;  %s14402_s7 = smov [#allocation12]   ;;  %s267_s14 = int_to_ptr.vmem [resolvable:$true] %s266_s14 }
 0x277   :  { %s296_s15 = sshll.u32 %s14402_s7, 4  ;;  %s13436_s29 = scalar_lea.vmem %s267_s14, 128  ;;  %s297_s15 = int_to_ptr.vmem [resolvable:$true] %s296_s15 }
 0x278   :  { %p13437_p8 = scmp.ne.s32.totalorder %s267_s14, %s13436_s29  ;;  %p13441_p9 = scmp.lt.s32.totalorder %s267_s14, %s267_s14 }
 0x279   :  { %p13442_p10 = scmp.lt.s32.totalorder %s13436_s29, %s13436_s29 }
 0x27a   :  { %246 = dma.hbm_to_vmem [thread:$0]  %s16101_s25, 256, %s241_s27, [#allocation6], %s14399_s8, %s14399_s8, %s14400_s9  }
 0x27b   :  { %p13443_p11 = por %p13442_p10, %p13441_p9 }
 0x27d   :  { %p13444_p12 = pnand %p13443_p11, %p13437_p8 }
 0x27f   :  { %13447 = shalt.err (!%p13444_p12)
}
 0x280   :  { %s16102_s16 = sld [smem:[#allocation162_spill]]  ;;  %s13456_s5 = scalar_lea.vmem %s297_s15, 256 }
 0x281   :  { %p13457_p13 = scmp.ne.s32.totalorder %s297_s15, %s13456_s5  ;;  %p13461_p0 = scmp.lt.s32.totalorder %s297_s15, %s297_s15 }
 0x282   :  { %p13462_p1 = scmp.lt.s32.totalorder %s13456_s5, %s13456_s5 }
 0x284   :  { %p13463_p2 = por %p13462_p1, %p13461_p0 }
 0x286   :  { %272 = dma.hbm_to_vmem [thread:$0]  %s16102_s16, 128, %s267_s14, [#allocation8], %s14360_s10, %s14360_s10, %s14361_s11  }
 0x287   :  { %p13464_p3 = pnand %p13463_p2, %p13457_p13 }
 0x289   :  { %13467 = shalt.err (!%p13464_p3)
}
 0x28a   :  { %s16103_s18 = sld [smem:[#allocation166_spill]]  ;;  %s14403_s30 = smov [#allocation15]  }
 0x28b   :  { %s321_s22 = sshll.u32 %s14403_s30, 4  ;;  %s14404_s23 = smov [#allocation18]   ;;  %s322_s22 = int_to_ptr.vmem [resolvable:$true] %s321_s22 }
 0x28c   :  { %s341_s4 = sshll.u32 %s14404_s23, 4  ;;  %s13476_s20 = scalar_lea.vmem %s322_s22, 16  ;;  %s342_s4 = int_to_ptr.vmem [resolvable:$true] %s341_s4 }
 0x28d   :  { %p13477_p4 = scmp.ne.s32.totalorder %s322_s22, %s13476_s20  ;;  %s13480_s12 = scalar_lea.vmem %s322_s22, 32 }
 0x28e   :  { %p13481_p5 = scmp.lt.s32.totalorder %s322_s22, %s322_s22  ;;  %p13482_p6 = scmp.lt.s32.totalorder %s13480_s12, %s13476_s20 }
 0x290   :  { %302 = dma.hbm_to_vmem [thread:$0]  %s16103_s18, 256, %s297_s15, [#allocation11], %s14360_s10, %s14360_s10, %s14361_s11  }
 0x291   :  { %p13483_p7 = por %p13482_p6, %p13481_p5 }
 0x293   :  { %p13484_p8 = pnand %p13483_p7, %p13477_p4 }
 0x295   :  { %13487 = shalt.err (!%p13484_p8)
}
 0x296   :  { %s16104_s26 = sld [smem:[#allocation167_spill]]  ;;  %s13496_s17 = scalar_lea.vmem %s342_s4, 16 }
 0x297   :  { %p13497_p9 = scmp.ne.s32.totalorder %s342_s4, %s13496_s17  ;;  %s13500_s1 = scalar_lea.vmem %s342_s4, 32 }
 0x298   :  { %p13501_p10 = scmp.lt.s32.totalorder %s342_s4, %s342_s4  ;;  %p13502_p11 = scmp.lt.s32.totalorder %s13500_s1, %s13496_s17 }
 0x29a   :  { %p13503_p12 = por %p13502_p11, %p13501_p10 }
 0x29c   :  { %324 = dma.hbm_to_vmem [thread:$0]  %s16104_s26, 16, %s322_s22, [#allocation14]  }
 0x29d   :  { %p13504_p13 = pnand %p13503_p12, %p13497_p9 }
 0x29f   :  { %13507 = shalt.err (!%p13504_p13)
}
 0x2a0   :  { %s16105_s28 = sld [smem:[#allocation168_spill]]  ;;  %s14405_s6 = smov [#allocation21]  }
 0x2a1   :  { %s362_s24 = sshll.u32 %s14405_s6, 4  ;;  %s14406_s2 = smov [#allocation24]   ;;  %s363_s24 = int_to_ptr.vmem [resolvable:$true] %s362_s24 }
 0x2a2   :  { %s385_s27 = sshll.u32 %s14406_s2, 4  ;;  %s13516_s0 = scalar_lea.vmem %s363_s24, 128  ;;  %s386_s27 = int_to_ptr.vmem [resolvable:$true] %s385_s27 }
 0x2a3   :  { %p13517_p0 = scmp.ne.s32.totalorder %s363_s24, %s13516_s0  ;;  %p13521_p1 = scmp.lt.s32.totalorder %s363_s24, %s363_s24 }
 0x2a4   :  { %p13522_p2 = scmp.lt.s32.totalorder %s13516_s0, %s13516_s0 }
 0x2a6   :  { %344 = dma.hbm_to_vmem [thread:$0]  %s16105_s28, 16, %s342_s4, [#allocation17]  }
 0x2a7   :  { %p13523_p3 = por %p13522_p2, %p13521_p1 }
 0x2a9   :  { %p13524_p4 = pnand %p13523_p3, %p13517_p0 }
 0x2ab   :  { %13527 = shalt.err (!%p13524_p4)
}
 0x2ac   :  { %s16106_s8 = sld [smem:[#allocation169_spill]]  ;;  %s13536_s25 = scalar_lea.vmem %s386_s27, 16 }
 0x2ad   :  { %p13537_p5 = scmp.ne.s32.totalorder %s386_s27, %s13536_s25  ;;  %s13540_s9 = scalar_lea.vmem %s386_s27, 32 }
 0x2ae   :  { %p13541_p6 = scmp.lt.s32.totalorder %s386_s27, %s386_s27  ;;  %p13542_p7 = scmp.lt.s32.totalorder %s13540_s9, %s13536_s25 }
 0x2b0   :  { %p13543_p8 = por %p13542_p7, %p13541_p6 }
 0x2b2   :  { %368 = dma.hbm_to_vmem [thread:$0]  %s16106_s8, 128, %s363_s24, [#allocation20], %s14360_s10, %s14360_s10, %s14361_s11  }
 0x2b3   :  { %p13544_p9 = pnand %p13543_p8, %p13537_p5 }
 0x2b5   :  { %13547 = shalt.err (!%p13544_p9)
}
 0x2b6   :  { %s16107_s19 = sld [smem:[#allocation170_spill]]  ;;  %s14407_s14 = smov [#allocation27]  }
 0x2b7   :  { %s404_s7 = sshll.u32 %s14407_s14, 4  ;;  %s14408_s15 = smov [#allocation30]   ;;  %s405_s7 = int_to_ptr.vmem [resolvable:$true] %s404_s7 }
 0x2b8   :  { %s426_s29 = sshll.u32 %s14408_s15, 4  ;;  %s13556_s16 = scalar_lea.vmem %s405_s7, 1024  ;;  %s427_s29 = int_to_ptr.vmem [resolvable:$true] %s426_s29 }
 0x2b9   :  { %p13557_p10 = scmp.ne.s32.totalorder %s405_s7, %s13556_s16  ;;  %p13561_p11 = scmp.lt.s32.totalorder %s405_s7, %s405_s7 }
 0x2ba   :  { %p13562_p12 = scmp.lt.s32.totalorder %s13556_s16, %s13556_s16 }
 0x2bc   :  { %388 = dma.hbm_to_vmem [thread:$0]  %s16107_s19, 16, %s386_s27, [#allocation23]  }
 0x2bd   :  { %p13563_p13 = por %p13562_p12, %p13561_p11 }
 0x2bf   :  { %p13564_p0 = pnand %p13563_p13, %p13557_p10 }
 0x2c1   :  { %13567 = shalt.err (!%p13564_p0)
}
 0x2c2   :  { %s16108_s5 = sld [smem:[#allocation171_spill]]  ;;  %s13576_s18 = scalar_lea.vmem %s427_s29, 1024 }
 0x2c3   :  { %p13577_p1 = scmp.ne.s32.totalorder %s427_s29, %s13576_s18  ;;  %p13581_p2 = scmp.lt.s32.totalorder %s427_s29, %s427_s29 }
 0x2c4   :  { %p13582_p3 = scmp.lt.s32.totalorder %s13576_s18, %s13576_s18 }
 0x2c6   :  { %p13583_p4 = por %p13582_p3, %p13581_p2 }
 0x2c8   :  { %410 = dma.hbm_to_vmem [thread:$0]  %s16108_s5, 1024, %s405_s7, [#allocation26], %s14360_s10, %s14360_s10, %s14361_s11  }
 0x2c9   :  { %p13584_p5 = pnand %p13583_p4, %p13577_p1 }
 0x2cb   :  { %13587 = shalt.err (!%p13584_p5)
}
 0x2cc   :  { %s16109_s30 = sld [smem:[#allocation172_spill]]  ;;  %s14409_s22 = smov [#allocation33]  }
 0x2cd   :  { %s448_s23 = sshll.u32 %s14409_s22, 4  ;;  %s14410_s4 = smov [#allocation36]   ;;  %s449_s23 = int_to_ptr.vmem [resolvable:$true] %s448_s23 }
 0x2ce   :  { %s470_s20 = sshll.u32 %s14410_s4, 4  ;;  %s13596_s12 = scalar_lea.vmem %s449_s23, 1024  ;;  %s471_s20 = int_to_ptr.vmem [resolvable:$true] %s470_s20 }
 0x2cf   :  { %p13597_p6 = scmp.ne.s32.totalorder %s449_s23, %s13596_s12  ;;  %p13601_p7 = scmp.lt.s32.totalorder %s449_s23, %s449_s23 }
 0x2d0   :  { %p13602_p8 = scmp.lt.s32.totalorder %s13596_s12, %s13596_s12 }
 0x2d2   :  { %432 = dma.hbm_to_vmem [thread:$0]  %s16109_s30, 1024, %s427_s29, [#allocation29], %s14360_s10, %s14360_s10, %s14361_s11  }
 0x2d3   :  { %p13603_p9 = por %p13602_p8, %p13601_p7 }
 0x2d5   :  { %p13604_p10 = pnand %p13603_p9, %p13597_p6 }
 0x2d7   :  { %13607 = shalt.err (!%p13604_p10)
}
 0x2d8   :  { %s16110_s26 = sld [smem:[#allocation173_spill]]  ;;  %s13616_s17 = scalar_lea.vmem %s471_s20, 1024 }
 0x2d9   :  { %p13617_p11 = scmp.ne.s32.totalorder %s471_s20, %s13616_s17  ;;  %p13621_p12 = scmp.lt.s32.totalorder %s471_s20, %s471_s20 }
 0x2da   :  { %p13622_p13 = scmp.lt.s32.totalorder %s13616_s17, %s13616_s17 }
 0x2dc   :  { %p13623_p0 = por %p13622_p13, %p13621_p12 }
 0x2de   :  { %454 = dma.hbm_to_vmem [thread:$0]  %s16110_s26, 1024, %s449_s23, [#allocation32], %s14360_s10, %s14360_s10, %s14361_s11  }
 0x2df   :  { %p13624_p1 = pnand %p13623_p0, %p13617_p11 }
 0x2e1   :  { %13627 = shalt.err (!%p13624_p1)
}
 0x2e2   :  { %s16111_s1 = sld [smem:[#allocation174_spill]]  ;;  %s14411_s28 = smov [#allocation39]  }
 0x2e3   :  { %s492_s6 = sshll.u32 %s14411_s28, 4  ;;  %s14412_s24 = smov [#allocation42]   ;;  %s493_s6 = int_to_ptr.vmem [resolvable:$true] %s492_s6 }
 0x2e4   :  { %s517_s2 = sshll.u32 %s14412_s24, 4  ;;  %s13636_s27 = scalar_lea.vmem %s493_s6, 1024  ;;  %s518_s2 = int_to_ptr.vmem [resolvable:$true] %s517_s2 }
 0x2e5   :  { %p13637_p2 = scmp.ne.s32.totalorder %s493_s6, %s13636_s27  ;;  %p13641_p3 = scmp.lt.s32.totalorder %s493_s6, %s493_s6 }
 0x2e6   :  { %p13642_p4 = scmp.lt.s32.totalorder %s13636_s27, %s13636_s27 }
 0x2e8   :  { %476 = dma.hbm_to_vmem [thread:$0]  %s16111_s1, 1024, %s471_s20, [#allocation35], %s14360_s10, %s14360_s10, %s14361_s11  }
 0x2e9   :  { %p13643_p5 = por %p13642_p4, %p13641_p3 }
 0x2eb   :  { %p13644_p6 = pnand %p13643_p5, %p13637_p2 }
 0x2ed   :  { %13647 = shalt.err (!%p13644_p6)
}
 0x2ee   :  { %s16112_s0 = sld [smem:[#allocation175_spill]]  ;;  %s13656_s8 = scalar_lea.vmem %s518_s2, 16 }
 0x2ef   :  { %p13657_p7 = scmp.ne.s32.totalorder %s518_s2, %s13656_s8  ;;  %s13660_s25 = scalar_lea.vmem %s518_s2, 32 }
 0x2f0   :  { %p13661_p8 = scmp.lt.s32.totalorder %s518_s2, %s518_s2  ;;  %p13662_p9 = scmp.lt.s32.totalorder %s13660_s25, %s13656_s8 }
 0x2f2   :  { %p13663_p10 = por %p13662_p9, %p13661_p8 }
 0x2f4   :  { %498 = dma.hbm_to_vmem [thread:$0]  %s16112_s0, 1024, %s493_s6, [#allocation38], %s14360_s10, %s14360_s10, %s14361_s11  }
 0x2f5   :  { %p13664_p11 = pnand %p13663_p10, %p13657_p7 }
 0x2f7   :  { %13667 = shalt.err (!%p13664_p11)
}
 0x2f8   :  { %s16113_s9 = sld [smem:[#allocation176_spill]]  ;;  %s14413_s19 = smov [#allocation45]  }
 0x2f9   :  { %s537_s14 = sshll.u32 %s14413_s19, 4  ;;  %s14414_s7 = smov [#allocation48]   ;;  %s538_s14 = int_to_ptr.vmem [resolvable:$true] %s537_s14 }
 0x2fa   :  { %s558_s15 = sshll.u32 %s14414_s7, 4  ;;  %s13676_s29 = scalar_lea.vmem %s538_s14, 16  ;;  %s559_s15 = int_to_ptr.vmem [resolvable:$true] %s558_s15 }
 0x2fb   :  { %p13677_p12 = scmp.ne.s32.totalorder %s538_s14, %s13676_s29  ;;  %s13680_s16 = scalar_lea.vmem %s538_s14, 32 }
 0x2fc   :  { %p13681_p13 = scmp.lt.s32.totalorder %s538_s14, %s538_s14  ;;  %p13682_p0 = scmp.lt.s32.totalorder %s13680_s16, %s13676_s29 }
 0x2fe   :  { %520 = dma.hbm_to_vmem [thread:$0]  %s16113_s9, 16, %s518_s2, [#allocation41]  }
 0x2ff   :  { %p13683_p1 = por %p13682_p0, %p13681_p13 }
 0x301   :  { %p13684_p2 = pnand %p13683_p1, %p13677_p12 }
 0x303   :  { %13687 = shalt.err (!%p13684_p2)
}
 0x304   :  { %s16114_s5 = sld [smem:[#allocation177_spill]]  ;;  %s13696_s18 = scalar_lea.vmem %s559_s15, 1024 }
 0x305   :  { %p13697_p3 = scmp.ne.s32.totalorder %s559_s15, %s13696_s18  ;;  %p13701_p4 = scmp.lt.s32.totalorder %s559_s15, %s559_s15 }
 0x306   :  { %p13702_p5 = scmp.lt.s32.totalorder %s13696_s18, %s13696_s18 }
 0x308   :  { %p13703_p6 = por %p13702_p5, %p13701_p4 }
 0x30a   :  { %540 = dma.hbm_to_vmem [thread:$0]  %s16114_s5, 16, %s538_s14, [#allocation44]  }
 0x30b   :  { %p13704_p7 = pnand %p13703_p6, %p13697_p3 }
 0x30d   :  { %13707 = shalt.err (!%p13704_p7)
}
 0x30e   :  { %s16115_s30 = sld [smem:[#allocation178_spill]]  ;;  %s14415_s22 = smov [#allocation51]  }
 0x30f   :  { %s581_s23 = sshll.u32 %s14415_s22, 4  ;;  %s14416_s4 = smov [#allocation54]   ;;  %s582_s23 = int_to_ptr.vmem [resolvable:$true] %s581_s23 }
 0x310   :  { %s600_s20 = sshll.u32 %s14416_s4, 4  ;;  %s13716_s12 = scalar_lea.vmem %s582_s23, 16  ;;  %s601_s20 = int_to_ptr.vmem [resolvable:$true] %s600_s20 }
 0x311   :  { %p13717_p8 = scmp.ne.s32.totalorder %s582_s23, %s13716_s12  ;;  %s13720_s26 = scalar_lea.vmem %s582_s23, 32 }
 0x312   :  { %p13721_p9 = scmp.lt.s32.totalorder %s582_s23, %s582_s23  ;;  %p13722_p10 = scmp.lt.s32.totalorder %s13720_s26, %s13716_s12 }
 0x314   :  { %564 = dma.hbm_to_vmem [thread:$0]  %s16115_s30, 1024, %s559_s15, [#allocation47], %s14360_s10, %s14360_s10, %s14361_s11  }
 0x315   :  { %p13723_p11 = por %p13722_p10, %p13721_p9 }
 0x317   :  { %p13724_p12 = pnand %p13723_p11, %p13717_p8 }
 0x319   :  { %13727 = shalt.err (!%p13724_p12)
}
 0x31a   :  { %s16116_s17 = sld [smem:[#allocation180_spill]]  ;;  %s13736_s1 = scalar_lea.vmem %s601_s20, 2048 }
 0x31b   :  { %p13737_p13 = scmp.ne.s32.totalorder %s601_s20, %s13736_s1  ;;  %p13741_p0 = scmp.lt.s32.totalorder %s601_s20, %s601_s20 }
 0x31c   :  { %p13742_p1 = scmp.lt.s32.totalorder %s13736_s1, %s13736_s1 }
 0x31e   :  { %p13743_p2 = por %p13742_p1, %p13741_p0 }
 0x320   :  { %584 = dma.hbm_to_vmem [thread:$0]  %s16116_s17, 16, %s582_s23, [#allocation50]  }
 0x321   :  { %p13744_p3 = pnand %p13743_p2, %p13737_p13 }
 0x323   :  { %13747 = shalt.err (!%p13744_p3)
}
 0x324   :  { %s16117_s28 = sld [smem:[#allocation182_spill]]  ;;  %s14417_s6 = smov [#allocation57]  }
 0x325   :  { %s622_s24 = sshll.u32 %s14417_s6, 4  ;;  %s14418_s2 = smov [#allocation60]   ;;  %s623_s24 = int_to_ptr.vmem [resolvable:$true] %s622_s24 }
 0x326   :  { %s644_s27 = sshll.u32 %s14418_s2, 4  ;;  %s13756_s0 = scalar_lea.vmem %s623_s24, 2048  ;;  %s645_s27 = int_to_ptr.vmem [resolvable:$true] %s644_s27 }
 0x327   :  { %p13757_p4 = scmp.ne.s32.totalorder %s623_s24, %s13756_s0  ;;  %p13761_p5 = scmp.lt.s32.totalorder %s623_s24, %s623_s24 }
 0x328   :  { %p13762_p6 = scmp.lt.s32.totalorder %s13756_s0, %s13756_s0 }
 0x32a   :  { %606 = dma.hbm_to_vmem [thread:$0]  %s16117_s28, 2048, %s601_s20, [#allocation53], %s14360_s10, %s14360_s10, %s14361_s11  }
 0x32b   :  { %p13763_p7 = por %p13762_p6, %p13761_p5 }
 0x32d   :  { %p13764_p8 = pnand %p13763_p7, %p13757_p4 }
 0x32f   :  { %13767 = shalt.err (!%p13764_p8)
}
 0x330   :  { %s16118_s8 = sld [smem:[#allocation184_spill]]  ;;  %s13776_s25 = scalar_lea.vmem %s645_s27, 2048 }
 0x331   :  { %p13777_p9 = scmp.ne.s32.totalorder %s645_s27, %s13776_s25  ;;  %p13781_p10 = scmp.lt.s32.totalorder %s645_s27, %s645_s27 }
 0x332   :  { %p13782_p11 = scmp.lt.s32.totalorder %s13776_s25, %s13776_s25 }
 0x334   :  { %p13783_p12 = por %p13782_p11, %p13781_p10 }
 0x336   :  { %628 = dma.hbm_to_vmem [thread:$0]  %s16118_s8, 2048, %s623_s24, [#allocation56], %s14360_s10, %s14360_s10, %s14361_s11  }
 0x337   :  { %p13784_p13 = pnand %p13783_p12, %p13777_p9 }
 0x339   :  { %13787 = shalt.err (!%p13784_p13)
}
 0x33a   :  { %s16119_s9 = sld [smem:[#allocation186_spill]]  ;;  %s14419_s19 = smov [#allocation63]  }
 0x33b   :  { %s666_s14 = sshll.u32 %s14419_s19, 4  ;;  %s14420_s7 = smov [#allocation66]   ;;  %s667_s14 = int_to_ptr.vmem [resolvable:$true] %s666_s14 }
 0x33c   :  { %s688_s15 = sshll.u32 %s14420_s7, 4  ;;  %s13796_s29 = scalar_lea.vmem %s667_s14, 2048  ;;  %s689_s15 = int_to_ptr.vmem [resolvable:$true] %s688_s15 }
 0x33d   :  { %p13797_p0 = scmp.ne.s32.totalorder %s667_s14, %s13796_s29  ;;  %p13801_p1 = scmp.lt.s32.totalorder %s667_s14, %s667_s14 }
 0x33e   :  { %p13802_p2 = scmp.lt.s32.totalorder %s13796_s29, %s13796_s29 }
 0x340   :  { %650 = dma.hbm_to_vmem [thread:$0]  %s16119_s9, 2048, %s645_s27, [#allocation59], %s14360_s10, %s14360_s10, %s14361_s11  }
 0x341   :  { %p13803_p3 = por %p13802_p2, %p13801_p1 }
 0x343   :  { %p13804_p4 = pnand %p13803_p3, %p13797_p0 }
 0x345   :  { %13807 = shalt.err (!%p13804_p4)
}
 0x346   :  { %s16120_s16 = sld [smem:[#allocation188_spill]]  ;;  %s13816_s5 = scalar_lea.vmem %s689_s15, 1024 }
 0x347   :  { %p13817_p5 = scmp.ne.s32.totalorder %s689_s15, %s13816_s5  ;;  %p13821_p6 = scmp.lt.s32.totalorder %s689_s15, %s689_s15 }
 0x348   :  { %p13822_p7 = scmp.lt.s32.totalorder %s13816_s5, %s13816_s5 }
 0x34a   :  { %p13823_p8 = por %p13822_p7, %p13821_p6 }
 0x34c   :  { %672 = dma.hbm_to_vmem [thread:$0]  %s16120_s16, 2048, %s667_s14, [#allocation62], %s14360_s10, %s14360_s10, %s14361_s11  }
 0x34d   :  { %p13824_p9 = pnand %p13823_p8, %p13817_p5 }
 0x34f   :  { %13827 = shalt.err (!%p13824_p9)
}
 0x350   :  { %s16121_s18 = sld [smem:[#allocation190_spill]]  ;;  %s14421_s30 = smov [#allocation69]  }
 0x351   :  { %s713_s22 = sshll.u32 %s14421_s30, 4  ;;  %s14422_s23 = smov [#allocation72]   ;;  %s714_s22 = int_to_ptr.vmem [resolvable:$true] %s713_s22 }
 0x352   :  { %s733_s4 = sshll.u32 %s14422_s23, 4  ;;  %s13836_s20 = scalar_lea.vmem %s714_s22, 16  ;;  %s734_s4 = int_to_ptr.vmem [resolvable:$true] %s733_s4 }
 0x353   :  { %p13837_p10 = scmp.ne.s32.totalorder %s714_s22, %s13836_s20  ;;  %s13840_s12 = scalar_lea.vmem %s714_s22, 32 }
 0x354   :  { %p13841_p11 = scmp.lt.s32.totalorder %s714_s22, %s714_s22  ;;  %p13842_p12 = scmp.lt.s32.totalorder %s13840_s12, %s13836_s20 }
 0x356   :  { %694 = dma.hbm_to_vmem [thread:$0]  %s16121_s18, 1024, %s689_s15, [#allocation65], %s14360_s10, %s14360_s10, %s14361_s11  }
 0x357   :  { %p13843_p13 = por %p13842_p12, %p13841_p11 }
 0x359   :  { %p13844_p0 = pnand %p13843_p13, %p13837_p10 }
 0x35b   :  { %13847 = shalt.err (!%p13844_p0)
}
 0x35c   :  { %s16122_s26 = sld [smem:[#allocation192_spill]]  ;;  %s13856_s17 = scalar_lea.vmem %s734_s4, 16 }
 0x35d   :  { %p13857_p1 = scmp.ne.s32.totalorder %s734_s4, %s13856_s17  ;;  %s13860_s1 = scalar_lea.vmem %s734_s4, 32 }
 0x35e   :  { %p13861_p2 = scmp.lt.s32.totalorder %s734_s4, %s734_s4  ;;  %p13862_p3 = scmp.lt.s32.totalorder %s13860_s1, %s13856_s17 }
 0x360   :  { %p13863_p4 = por %p13862_p3, %p13861_p2 }
 0x362   :  { %716 = dma.hbm_to_vmem [thread:$0]  %s16122_s26, 16, %s714_s22, [#allocation68]  }
 0x363   :  { %p13864_p5 = pnand %p13863_p4, %p13857_p1 }
 0x365   :  { %13867 = shalt.err (!%p13864_p5)
}
 0x366   :  { %s16123_s28 = sld [smem:[#allocation194_spill]]  ;;  %s14423_s6 = smov [#allocation75]  }
 0x367   :  { %s754_s24 = sshll.u32 %s14423_s6, 4  ;;  %s14424_s2 = smov [#allocation78]   ;;  %s755_s24 = int_to_ptr.vmem [resolvable:$true] %s754_s24 }
 0x368   :  { %s777_s27 = sshll.u32 %s14424_s2, 4  ;;  %s13876_s0 = scalar_lea.vmem %s755_s24, 1024  ;;  %s778_s27 = int_to_ptr.vmem [resolvable:$true] %s777_s27 }
 0x369   :  { %p13877_p6 = scmp.ne.s32.totalorder %s755_s24, %s13876_s0  ;;  %p13881_p7 = scmp.lt.s32.totalorder %s755_s24, %s755_s24 }
 0x36a   :  { %p13882_p8 = scmp.lt.s32.totalorder %s13876_s0, %s13876_s0 }
 0x36c   :  { %736 = dma.hbm_to_vmem [thread:$0]  %s16123_s28, 16, %s734_s4, [#allocation71]  }
 0x36d   :  { %p13883_p9 = por %p13882_p8, %p13881_p7 }
 0x36f   :  { %p13884_p10 = pnand %p13883_p9, %p13877_p6 }
 0x371   :  { %13887 = shalt.err (!%p13884_p10)
}
 0x372   :  { %s16124_s8 = sld [smem:[#allocation196_spill]]  ;;  %s13896_s25 = scalar_lea.vmem %s778_s27, 16 }
 0x373   :  { %p13897_p11 = scmp.ne.s32.totalorder %s778_s27, %s13896_s25  ;;  %s13900_s9 = scalar_lea.vmem %s778_s27, 32 }
 0x374   :  { %p13901_p12 = scmp.lt.s32.totalorder %s778_s27, %s778_s27  ;;  %p13902_p13 = scmp.lt.s32.totalorder %s13900_s9, %s13896_s25 }
 0x376   :  { %p13903_p0 = por %p13902_p13, %p13901_p12 }
 0x378   :  { %760 = dma.hbm_to_vmem [thread:$0]  %s16124_s8, 1024, %s755_s24, [#allocation74], %s14360_s10, %s14360_s10, %s14361_s11  }
 0x379   :  { %p13904_p1 = pnand %p13903_p0, %p13897_p11 }
 0x37b   :  { %13907 = shalt.err (!%p13904_p1)
}
 0x37c   :  { %s16125_s19 = sld [smem:[#allocation198_spill]]  ;;  %s14425_s14 = smov [#allocation81]  }
 0x37d   :  { %s796_s7 = sshll.u32 %s14425_s14, 4  ;;  %s14426_s15 = smov [#allocation84]   ;;  %s797_s7 = int_to_ptr.vmem [resolvable:$true] %s796_s7 }
 0x37e   :  { %s818_s29 = sshll.u32 %s14426_s15, 4  ;;  %s13916_s16 = scalar_lea.vmem %s797_s7, 3072  ;;  %s819_s29 = int_to_ptr.vmem [resolvable:$true] %s818_s29 }
 0x37f   :  { %p13917_p2 = scmp.ne.s32.totalorder %s797_s7, %s13916_s16  ;;  %p13921_p3 = scmp.lt.s32.totalorder %s797_s7, %s797_s7 }
 0x380   :  { %p13922_p4 = scmp.lt.s32.totalorder %s13916_s16, %s13916_s16 }
 0x382   :  { %780 = dma.hbm_to_vmem [thread:$0]  %s16125_s19, 16, %s778_s27, [#allocation77]  }
 0x383   :  { %p13923_p5 = por %p13922_p4, %p13921_p3 }
 0x385   :  { %p13924_p6 = pnand %p13923_p5, %p13917_p2 }
 0x387   :  { %13927 = shalt.err (!%p13924_p6)
}
 0x388   :  { %s16126_s5 = sld [smem:[#allocation200_spill]]  ;;  %s13936_s18 = scalar_lea.vmem %s819_s29, 3072 }
 0x389   :  { %p13937_p7 = scmp.ne.s32.totalorder %s819_s29, %s13936_s18  ;;  %p13941_p8 = scmp.lt.s32.totalorder %s819_s29, %s819_s29 }
 0x38a   :  { %p13942_p9 = scmp.lt.s32.totalorder %s13936_s18, %s13936_s18 }
 0x38c   :  { %p13943_p10 = por %p13942_p9, %p13941_p8 }
 0x38e   :  { %802 = dma.hbm_to_vmem [thread:$0]  %s16126_s5, 3072, %s797_s7, [#allocation80], %s14360_s10, %s14360_s10, %s14361_s11  }
 0x38f   :  { %p13944_p11 = pnand %p13943_p10, %p13937_p7 }
 0x391   :  { %13947 = shalt.err (!%p13944_p11)
}
 0x392   :  { %s16127_s30 = sld [smem:[#allocation202_spill]]  ;;  %s14427_s22 = smov [#allocation87]  }
 0x393   :  { %s840_s23 = sshll.u32 %s14427_s22, 4  ;;  %s14428_s4 = smov [#allocation90]   ;;  %s841_s23 = int_to_ptr.vmem [resolvable:$true] %s840_s23 }
 0x394   :  { %s862_s20 = sshll.u32 %s14428_s4, 4  ;;  %s13956_s12 = scalar_lea.vmem %s841_s23, 3072  ;;  %s863_s20 = int_to_ptr.vmem [resolvable:$true] %s862_s20 }
 0x395   :  { %p13957_p12 = scmp.ne.s32.totalorder %s841_s23, %s13956_s12  ;;  %p13961_p13 = scmp.lt.s32.totalorder %s841_s23, %s841_s23 }
 0x396   :  { %p13962_p0 = scmp.lt.s32.totalorder %s13956_s12, %s13956_s12 }
 0x398   :  { %824 = dma.hbm_to_vmem [thread:$0]  %s16127_s30, 3072, %s819_s29, [#allocation83], %s14360_s10, %s14360_s10, %s14361_s11  }
 0x399   :  { %p13963_p1 = por %p13962_p0, %p13961_p13 }
 0x39b   :  { %p13964_p2 = pnand %p13963_p1, %p13957_p12 }
 0x39d   :  { %13967 = shalt.err (!%p13964_p2)
}
 0x39e   :  { %s16128_s26 = sld [smem:[#allocation204_spill]]  ;;  %s13976_s17 = scalar_lea.vmem %s863_s20, 3072 }
 0x39f   :  { %p13977_p3 = scmp.ne.s32.totalorder %s863_s20, %s13976_s17  ;;  %p13981_p4 = scmp.lt.s32.totalorder %s863_s20, %s863_s20 }
 0x3a0   :  { %p13982_p5 = scmp.lt.s32.totalorder %s13976_s17, %s13976_s17 }
 0x3a2   :  { %p13983_p6 = por %p13982_p5, %p13981_p4 }
 0x3a4   :  { %846 = dma.hbm_to_vmem [thread:$0]  %s16128_s26, 3072, %s841_s23, [#allocation86], %s14360_s10, %s14360_s10, %s14361_s11  }
 0x3a5   :  { %p13984_p7 = pnand %p13983_p6, %p13977_p3 }
 0x3a7   :  { %13987 = shalt.err (!%p13984_p7)
}
 0x3a8   :  { %s16129_s1 = sld [smem:[#allocation206_spill]]  ;;  %s14429_s28 = smov [#allocation93]  }
 0x3a9   :  { %s884_s6 = sshll.u32 %s14429_s28, 4  ;;  %s14430_s24 = smov [#allocation96]   ;;  %s885_s6 = int_to_ptr.vmem [resolvable:$true] %s884_s6 }
 0x3aa   :  { %s909_s2 = sshll.u32 %s14430_s24, 4  ;;  %s13996_s27 = scalar_lea.vmem %s885_s6, 1024  ;;  %s910_s2 = int_to_ptr.vmem [resolvable:$true] %s909_s2 }
 0x3ab   :  { %p13997_p8 = scmp.ne.s32.totalorder %s885_s6, %s13996_s27  ;;  %p14001_p9 = scmp.lt.s32.totalorder %s885_s6, %s885_s6 }
 0x3ac   :  { %p14002_p10 = scmp.lt.s32.totalorder %s13996_s27, %s13996_s27 }
 0x3ae   :  { %868 = dma.hbm_to_vmem [thread:$0]  %s16129_s1, 3072, %s863_s20, [#allocation89], %s14360_s10, %s14360_s10, %s14361_s11  }
 0x3af   :  { %p14003_p11 = por %p14002_p10, %p14001_p9 }
 0x3b1   :  { %p14004_p12 = pnand %p14003_p11, %p13997_p8 }
 0x3b3   :  { %14007 = shalt.err (!%p14004_p12)
}
 0x3b4   :  { %s16130_s0 = sld [smem:[#allocation208_spill]]  ;;  %s14016_s8 = scalar_lea.vmem %s910_s2, 16 }
 0x3b5   :  { %p14017_p13 = scmp.ne.s32.totalorder %s910_s2, %s14016_s8  ;;  %s14020_s25 = scalar_lea.vmem %s910_s2, 32 }
 0x3b6   :  { %p14021_p0 = scmp.lt.s32.totalorder %s910_s2, %s910_s2  ;;  %p14022_p1 = scmp.lt.s32.totalorder %s14020_s25, %s14016_s8 }
 0x3b8   :  { %p14023_p2 = por %p14022_p1, %p14021_p0 }
 0x3ba   :  { %890 = dma.hbm_to_vmem [thread:$0]  %s16130_s0, 1024, %s885_s6, [#allocation92], %s14360_s10, %s14360_s10, %s14361_s11  }
 0x3bb   :  { %p14024_p3 = pnand %p14023_p2, %p14017_p13 }
 0x3bd   :  { %14027 = shalt.err (!%p14024_p3)
}
 0x3be   :  { %s16131_s9 = sld [smem:[#allocation210_spill]]  ;;  %s14431_s19 = smov [#allocation99]  }
 0x3bf   :  { %s929_s14 = sshll.u32 %s14431_s19, 4  ;;  %s14432_s7 = smov [#allocation102]   ;;  %s930_s14 = int_to_ptr.vmem [resolvable:$true] %s929_s14 }
 0x3c0   :  { %s950_s15 = sshll.u32 %s14432_s7, 4  ;;  %s14036_s29 = scalar_lea.vmem %s930_s14, 16  ;;  %s951_s15 = int_to_ptr.vmem [resolvable:$true] %s950_s15 }
 0x3c1   :  { %p14037_p4 = scmp.ne.s32.totalorder %s930_s14, %s14036_s29  ;;  %s14040_s16 = scalar_lea.vmem %s930_s14, 32 }
 0x3c2   :  { %p14041_p5 = scmp.lt.s32.totalorder %s930_s14, %s930_s14  ;;  %p14042_p6 = scmp.lt.s32.totalorder %s14040_s16, %s14036_s29 }
 0x3c4   :  { %912 = dma.hbm_to_vmem [thread:$0]  %s16131_s9, 16, %s910_s2, [#allocation95]  }
 0x3c5   :  { %p14043_p7 = por %p14042_p6, %p14041_p5 }
 0x3c7   :  { %p14044_p8 = pnand %p14043_p7, %p14037_p4 }
 0x3c9   :  { %14047 = shalt.err (!%p14044_p8)
}
 0x3ca   :  { %s16132_s5 = sld [smem:[#allocation212_spill]]  ;;  %s14056_s18 = scalar_lea.vmem %s951_s15, 1024 }
 0x3cb   :  { %p14057_p9 = scmp.ne.s32.totalorder %s951_s15, %s14056_s18  ;;  %p14061_p10 = scmp.lt.s32.totalorder %s951_s15, %s951_s15 }
 0x3cc   :  { %p14062_p11 = scmp.lt.s32.totalorder %s14056_s18, %s14056_s18 }
 0x3ce   :  { %p14063_p12 = por %p14062_p11, %p14061_p10 }
 0x3d0   :  { %932 = dma.hbm_to_vmem [thread:$0]  %s16132_s5, 16, %s930_s14, [#allocation98]  }
 0x3d1   :  { %p14064_p13 = pnand %p14063_p12, %p14057_p9 }
 0x3d3   :  { %14067 = shalt.err (!%p14064_p13)
}
 0x3d4   :  { %s16133_s30 = sld [smem:[#allocation214_spill]]  ;;  %s14433_s22 = smov [#allocation105]  }
 0x3d5   :  { %s973_s23 = sshll.u32 %s14433_s22, 4  ;;  %s14434_s4 = smov [#allocation108]   ;;  %s974_s23 = int_to_ptr.vmem [resolvable:$true] %s973_s23 }
 0x3d6   :  { %s995_s20 = sshll.u32 %s14434_s4, 4  ;;  %s14076_s12 = scalar_lea.vmem %s974_s23, 16  ;;  %s996_s20 = int_to_ptr.vmem [resolvable:$true] %s995_s20 }
 0x3d7   :  { %p14077_p0 = scmp.ne.s32.totalorder %s974_s23, %s14076_s12  ;;  %s14080_s26 = scalar_lea.vmem %s974_s23, 32 }
 0x3d8   :  { %p14081_p1 = scmp.lt.s32.totalorder %s974_s23, %s974_s23  ;;  %p14082_p2 = scmp.lt.s32.totalorder %s14080_s26, %s14076_s12 }
 0x3da   :  { %956 = dma.hbm_to_vmem [thread:$0]  %s16133_s30, 1024, %s951_s15, [#allocation101], %s14360_s10, %s14360_s10, %s14361_s11  }
 0x3db   :  { %p14083_p3 = por %p14082_p2, %p14081_p1 }
 0x3dd   :  { %p14084_p4 = pnand %p14083_p3, %p14077_p0 }
 0x3df   :  { %14087 = shalt.err (!%p14084_p4)
}
 0x3e0   :  { %s16134_s17 = sld [smem:[#allocation216_spill]]  ;;  %s14096_s1 = scalar_lea.vmem %s996_s20, 16 }
 0x3e1   :  { %p14097_p5 = scmp.ne.s32.totalorder %s996_s20, %s14096_s1  ;;  %s14100_s28 = scalar_lea.vmem %s996_s20, 32 }
 0x3e2   :  { %p14101_p6 = scmp.lt.s32.totalorder %s996_s20, %s996_s20  ;;  %p14102_p7 = scmp.lt.s32.totalorder %s14100_s28, %s14096_s1 }
 0x3e4   :  { %p14103_p8 = por %p14102_p7, %p14101_p6 }
 0x3e6   :  { %976 = dma.hbm_to_vmem [thread:$0]  %s16134_s17, 16, %s974_s23, [#allocation104]  }
 0x3e7   :  { %p14104_p9 = pnand %p14103_p8, %p14097_p5 }
 0x3e9   :  { %14107 = shalt.err (!%p14104_p9)
}
 0x3ea   :  { %s16135_s6 = sld [smem:[#allocation219_spill]]  ;;  %s14435_s24 = smov [#allocation111]  }
 0x3eb   :  { %s1018_s2 = sshll.u32 %s14435_s24, 4  ;;  %s14436_s27 = smov [#allocation114]   ;;  %s1019_s2 = int_to_ptr.vmem [resolvable:$true] %s1018_s2 }
 0x3ec   :  { %s1046_s0 = sshll.u32 %s14436_s27, 4  ;;  %s14116_s8 = scalar_lea.vmem %s1019_s2, 4096  ;;  %s1047_s0 = int_to_ptr.vmem [resolvable:$true] %s1046_s0 }
 0x3ed   :  { %p14117_p10 = scmp.ne.s32.totalorder %s1019_s2, %s14116_s8  ;;  %p14121_p11 = scmp.lt.s32.totalorder %s1019_s2, %s1019_s2 }
 0x3ee   :  { %p14122_p12 = scmp.lt.s32.totalorder %s14116_s8, %s14116_s8 }
 0x3f0   :  { %998 = dma.hbm_to_vmem [thread:$0]  %s16135_s6, 16, %s996_s20, [#allocation107]  }
 0x3f1   :  { %p14123_p13 = por %p14122_p12, %p14121_p11 }
 0x3f3   :  { %p14124_p0 = pnand %p14123_p13, %p14117_p10 }
 0x3f5   :  { %14127 = shalt.err (!%p14124_p0)
}
 0x3f6   :  { %s16136_s25 = sld [smem:[#allocation222_spill]]  ;;  %s14136_s9 = scalar_lea.vmem %s1047_s0, 1024 }
 0x3f7   :  { %p14137_p1 = scmp.ne.s32.totalorder %s1047_s0, %s14136_s9  ;;  %p14141_p2 = scmp.lt.s32.totalorder %s1047_s0, %s1047_s0 }
 0x3f8   :  { %p14142_p3 = scmp.lt.s32.totalorder %s14136_s9, %s14136_s9 }
 0x3fa   :  { %p14143_p4 = por %p14142_p3, %p14141_p2 }
 0x3fc   :  { %1024 = dma.hbm_to_vmem [thread:$0]  %s16136_s25, 4096, %s1019_s2, [#allocation110], %s14360_s10, %s14360_s10, %s14361_s11  }
 0x3fd   :  { %p14144_p5 = pnand %p14143_p4, %p14137_p1 }
 0x3ff   :  { %14147 = shalt.err (!%p14144_p5)
}
 0x400   :  { %s16137_s19 = sld [smem:[#allocation226_spill]]  ;;  %s14437_s14 = smov [#allocation117]  }
 0x401   :  { %s1076_s7 = sshll.u32 %s14437_s14, 4  ;;  %s14438_s15 = smov [#allocation118]   ;;  %s1077_s7 = int_to_ptr.vmem [resolvable:$true] %s1076_s7 }
 0x402   :  { %s1088_s29 = sshll.u32 %s14438_s15, 4  ;;  %s14156_s16 = scalar_lea.vmem %s1077_s7, 1024  ;;  %s1089_s29 = int_to_ptr.vmem [resolvable:$true] %s1088_s29 }
 0x403   :  { %p14157_p6 = scmp.ne.s32.totalorder %s1077_s7, %s14156_s16  ;;  %p14161_p7 = scmp.lt.s32.totalorder %s1077_s7, %s1077_s7 }
 0x404   :  { %p14162_p8 = scmp.lt.s32.totalorder %s14156_s16, %s14156_s16 }
 0x406   :  { %1052 = dma.hbm_to_vmem [thread:$0]  %s16137_s19, 1024, %s1047_s0, [#allocation113], %s14360_s10, %s14360_s10, %s14361_s11  }
 0x407   :  { %p14163_p9 = por %p14162_p8, %p14161_p7 }
 0x409   :  { %p14164_p10 = pnand %p14163_p9, %p14157_p6 }
 0x40b   :  { %14167 = shalt.err (!%p14164_p10)
}
 0x40c   :  { %s16138_s5 = sld [smem:[#allocation231_spill]]  ;;  %s14176_s18 = scalar_lea.vmem %s1089_s29, 1024 }
 0x40d   :  { %p14177_p11 = scmp.ne.s32.totalorder %s1089_s29, %s14176_s18  ;;  %p14181_p12 = scmp.lt.s32.totalorder %s1089_s29, %s1089_s29 }
 0x40e   :  { %p14182_p13 = scmp.lt.s32.totalorder %s14176_s18, %s14176_s18 }
 0x410   :  { %p14183_p0 = por %p14182_p13, %p14181_p12 }
 0x412   :  { %1082 = dma.hbm_to_vmem [thread:$0]  %s16138_s5, 1024, %s1077_s7, [#allocation116], %s14360_s10, %s14360_s10, %s14361_s11  }
 0x413   :  { %p14184_p1 = pnand %p14183_p0, %p14177_p11 }
 0x415   :  { %14187 = shalt.err (!%p14184_p1)
}
 0x416   :  { %s16139_s30 = sld [smem:[#allocation232_spill]] }
 0x41c   :  { %1094 = dma.hbm_to_vmem [thread:$0]  %s16139_s30, 1024, %s1089_s29, [#allocation119], %s14360_s10, %s14360_s10, %s14361_s11  }
 0x41d   :  { %14188 = dma.done.wait [#allocation6], 256  }
 0x41e   :  { %14189 = vsyncadd [#allocation6], 4294967040 }
 0x41f   :  { %14190 = dma.done.wait [#allocation8], 256  }
 0x420   :  { %14191 = vsyncadd [#allocation8], 4294967040 }
 0x421   :  { %14192 = dma.done.wait [#allocation11], 384  }
 0x422   :  { %14193 = vsyncadd [#allocation11], 4294966912 }
 0x423   :  { %14194 = dma.done.wait [#allocation14], 272  }
 0x424   :  { %14195 = vsyncadd [#allocation14], 4294967024 }
 0x425   :  { %14196 = dma.done.wait [#allocation17], 32  }
 0x426   :  { %14197 = vsyncadd [#allocation17], 4294967264 }
 0x427   :  { %14198 = dma.done.wait [#allocation20], 256  }
 0x428   :  { %14199 = vsyncadd [#allocation20], 4294967040 }
 0x429   :  { %14200 = dma.done.wait [#allocation23], 32  }
 0x42a   :  { %14201 = vsyncadd [#allocation23], 4294967264 }
 0x42b   :  { %14202 = dma.done.wait [#allocation26], 1040  }
 0x42c   :  { %14203 = vsyncadd [#allocation26], 4294966256 }
 0x42d   :  { %14204 = dma.done.wait [#allocation29], 1040  }
 0x42e   :  { %14205 = vsyncadd [#allocation29], 4294966256 }
 0x42f   :  { %14206 = dma.done.wait [#allocation32], 1040  }
 0x430   :  { %14207 = vsyncadd [#allocation32], 4294966256 }
 0x431   :  { %14208 = dma.done.wait [#allocation35], 1040  }
 0x432   :  { %14209 = vsyncadd [#allocation35], 4294966256 }
 0x433   :  { %14210 = dma.done.wait [#allocation38], 1040  }
 0x434   :  { %14211 = vsyncadd [#allocation38], 4294966256 }
 0x435   :  { %14212 = dma.done.wait [#allocation41], 1040  }
 0x436   :  { %14213 = vsyncadd [#allocation41], 4294966256 }
 0x437   :  { %14214 = dma.done.wait [#allocation44], 32  }
 0x438   :  { %14215 = vsyncadd [#allocation44], 4294967264 }
 0x439   :  { %14216 = dma.done.wait [#allocation47], 2048  }
 0x43a   :  { %14217 = vsyncadd [#allocation47], 4294965248 }
 0x43b   :  { %14218 = dma.done.wait [#allocation50], 32  }
 0x43c   :  { %14219 = vsyncadd [#allocation50], 4294967264 }
 0x43d   :  { %14220 = dma.done.wait [#allocation53], 2064  }
 0x43e   :  { %14221 = vsyncadd [#allocation53], 4294965232 }
 0x43f   :  { %14222 = dma.done.wait [#allocation56], 2064  }
 0x440   :  { %14223 = vsyncadd [#allocation56], 4294965232 }
 0x441   :  { %14224 = dma.done.wait [#allocation59], 2064  }
 0x442   :  { %14225 = vsyncadd [#allocation59], 4294965232 }
 0x443   :  { %14226 = dma.done.wait [#allocation62], 2064  }
 0x444   :  { %14227 = vsyncadd [#allocation62], 4294965232 }
 0x445   :  { %14228 = dma.done.wait [#allocation65], 1040  }
 0x446   :  { %14229 = vsyncadd [#allocation65], 4294966256 }
 0x447   :  { %14230 = dma.done.wait [#allocation68], 1040  }
 0x448   :  { %14231 = vsyncadd [#allocation68], 4294966256 }
 0x449   :  { %14232 = dma.done.wait [#allocation71], 32  }
 0x44a   :  { %14233 = vsyncadd [#allocation71], 4294967264 }
 0x44b   :  { %14234 = dma.done.wait [#allocation74], 2048  }
 0x44c   :  { %14235 = vsyncadd [#allocation74], 4294965248 }
 0x44d   :  { %14236 = dma.done.wait [#allocation77], 32  }
 0x44e   :  { %14237 = vsyncadd [#allocation77], 4294967264 }
 0x44f   :  { %14238 = dma.done.wait [#allocation80], 3088  }
 0x450   :  { %14239 = vsyncadd [#allocation80], 4294964208 }
 0x451   :  { %14240 = dma.done.wait [#allocation83], 3088  }
 0x452   :  { %14241 = vsyncadd [#allocation83], 4294964208 }
 0x453   :  { %14242 = dma.done.wait [#allocation86], 3088  }
 0x454   :  { %14243 = vsyncadd [#allocation86], 4294964208 }
 0x455   :  { %14244 = dma.done.wait [#allocation89], 3088  }
 0x456   :  { %14245 = vsyncadd [#allocation89], 4294964208 }
 0x457   :  { %14246 = dma.done.wait [#allocation92], 1040  }
 0x458   :  { %14247 = vsyncadd [#allocation92], 4294966256 }
 0x459   :  { %14248 = dma.done.wait [#allocation95], 1040  }
 0x45a   :  { %14249 = vsyncadd [#allocation95], 4294966256 }
 0x45b   :  { %14250 = dma.done.wait [#allocation98], 32  }
 0x45c   :  { %14251 = vsyncadd [#allocation98], 4294967264 }
 0x45d   :  { %14252 = dma.done.wait [#allocation101], 2048  }
 0x45e   :  { %14253 = vsyncadd [#allocation101], 4294965248 }
 0x45f   :  { %14254 = dma.done.wait [#allocation104], 32  }
 0x460   :  { %14255 = vsyncadd [#allocation104], 4294967264 }
 0x461   :  { %14256 = dma.done.wait [#allocation107], 32  }
 0x462   :  { %14257 = vsyncadd [#allocation107], 4294967264 }
 0x463   :  { %14258 = dma.done.wait [#allocation110], 8192  }
 0x464   :  { %14259 = vsyncadd [#allocation110], 4294959104 }
 0x465   :  { %14260 = dma.done.wait [#allocation113], 5120  }
 0x466   :  { %14261 = vsyncadd [#allocation113], 4294962176 }
 0x467   :  { %14262 = dma.done.wait [#allocation116], 2048  }
 0x468   :  { %14263 = vsyncadd [#allocation116], 4294965248 }
 0x469   :  { %14264 = dma.done.wait [#allocation119], 1024  }
 0x46a   :  { %14265 = vsyncadd [#allocation119], 4294966272  ;;  %s16140_s10 = sld [smem:[#allocation159_spill]]  ;;  %v14439_v1 = vmov 0.0   ;;  %vm1368_vm0 = vcmask 1044480   ;;  %vm14440_vm1 = vmmov 0  }
 0x46b   :  { %s16141_s11 = sld [smem:[#allocation161_spill]]  ;;  %11209 = vmatprep.subr.bf16.mxu1 %v14439_v1  ;;  %11237 = vmatprep.subr.bf16.mxu0 %v14439_v1  ;;  %vm1369_vm2 = vcmask 1045504   ;;  %v14441_v2 = vmov 65535   ;;  %v12137_v8 = vld [vmem:[#allocation12 + $0x8] sm:$0x3f]   ;;  %vm1364_vm3 = vcmask 89088  }
 0x46c   :  { %11211 = vmatprep.mubr.msk.bf16.mxu1 %vm14440_vm1, %v14439_v1  ;;  %11239 = vmatprep.mubr.msk.bf16.mxu0 %vm14440_vm1, %v14439_v1  ;;  %v1370_v3 = vsel %vm1368_vm0, 4294967295, %v14441_v2  ;;  %v1431_v11 = vsel %vm1369_vm2, %v12137_v8, 0  ;;  %vm1427_vm4 = vcmask 228352   ;;  %v12138_v12 = vld [vmem:[#allocation12] sm:$0xff]   ;;  %v12139_v13 = vld [vmem:[#allocation13 + $0x8] sm:$0x3f]  }
 0x46d   :  { %v15117_v6 = vsel %vm1369_vm2, %v1370_v3, 0  ;;  %v1490_v14 = vsel %vm1369_vm2, %v12139_v13, 0  ;;  %v12140_v15 = vld [vmem:[#allocation13] sm:$0xff]   ;;  %v9912_v27 = vld [vmem:[#allocation15] ss:$0 sm:$0xff]  ;;  %v1673_v33 = vld [vmem:[#allocation5] sm:$0xff]  ;;  %v1641_v3 = vlaneseq }
 0x46e   :  { %v1674_v34 = vld [vmem:[#allocation5 + $0x8] sm:$0x1f]  ;;  %vm1692_vm5 = vcmask 1046528   ;;  %v1693_v35 = vsel %vm1369_vm2, 4294967295, %v14441_v2  ;;  %v14442_v46 = vmov 1065369472  }
 0x46f   :  { %v1675_v40 = vpack.c.bf16 %v1674_v34, %v1673_v33  ;;  %v15148_v41 = vsel %vm1692_vm5, %v1693_v35, 0  ;;  %v15164_v47 = vld [vmem:[#allocation7] sm:$0x7f]   ;;  %vm1688_vm6 = vcmask 105472   ;;  %vm1744_vm7 = vcmask 80896   ;;  %s16146_s22 = sld [smem:[#allocation163_spill]] }
 0x470   :  { %v1345_v4 = vld [vmem:[%s16140_s10] sm:$0xff]  ;;  %v1346_v5 = vld [vmem:[%s16140_s10 + $0x8] sm:$0x7]  ;;  %v1642_v8 = vshrl.u32 %v1641_v3, 7  ;;  %vm1993_vm8 = vcmask 1041408   ;;  %vm2007_vm11 = vcmask 1042432  }
 0x471   :  { %v1347_v7 = vpack.c.bf16 %v1346_v5, %v1345_v4  ;;  %v12136_v10 = vld [vmem:[%s16141_s11] sm:$0x3f]   ;;  %v1696_v45 = vand.u32 %v15148_v41, %v1675_v40  ;;  %v12143_v50 = vld [vmem:[#allocation21] sm:$0x1f]   ;;  %vm1994_vm9 = vsmask.f32 1280 }
 0x472   :  { %v12142_v48 = vld [vmem:[#allocation19] sm:$0x1f]   ;;  %v1801_v51 = vsel %vm1368_vm0, %v12143_v50, 0  ;;  %vm15186_vm10 = vmand %vm1993_vm8, %vm1994_vm9  ;;  %vm2008_vm12 = vsmask.f32 2304  ;;  %s16147_s23 = sld [smem:[#allocation218_spill]] }
 0x473   :  { %v1373_v9 = vand.u32 %v15117_v6, %v1347_v7  ;;  %v1748_v49 = vsel %vm1368_vm0, %v12142_v48, 0  ;;  %v12156_v3 = vld [vmem:[#allocation36 + $0x20] sm:$0xff]   ;;  %vm15241_vm13 = vmand %vm2007_vm11, %vm2008_vm12  ;;  %s16148_s4 = sld [smem:[#allocation225_spill]]  ;;  %vm9766_vm14 = vcmask 1024  }
 0x474   :  { %s16149_s20 = sld [smem:[#allocation223_spill]] }
 0x475   :  { %11210 = vmatpush3.bf16.msra.mxu1 %v1373_v9  ;;  %s16150_s12 = sld [smem:[#allocation221_spill]] }
 0x476   :  { %11215 = vmatprep.subr.bf16.mxu1 %v14439_v1  ;;  %s16151_s26 = sld [smem:[#allocation228_spill]] }
 0x477   :  { %s16152_s17 = sld [smem:[#allocation229_spill]] }
 0x478   :  { %11212 = vmatmul.mubr.msk.bf16.vlgmr.msra.gmra.mxu1 %vm1364_vm3, %v12136_v10  ;;  %s16153_s1 = sld [smem:[#allocation230_spill]] }
 0x479   :  { %11216 = vmatpush3.bf16.msra.mxu1 %v1431_v11  ;;  %11219 = vmatprep.mubr.msk.bf16.mxu1 %vm14440_vm1, %v14439_v1  ;;  %v15180_v11 = vsub.s32 0, %v1642_v8  ;;  %v12160_v8 = vld [vmem:[#allocation36] sm:$0xff]   ;;  %s16154_s28 = sld [smem:[#allocation233_spill]] }
 0x47a   :  { %11217 = vmatprep.subr.bf16.mxu1 %v14439_v1  ;;  %s16155_s6 = sld [smem:[#allocation164_spill]] }
 0x47b   :  { %s16156_s24 = sld [smem:[#allocation234_spill]] }
 0x47c   :  { %s16157_s2 = sld [smem:[#allocation165_spill]] }
 0x47d   :  { %11218 = vmatpush3.bf16.msra.mxu1 %v12138_v12 }
 0x47e   :  { %11223 = vmatprep.subr.bf16.mxu1 %v14439_v1 }
 0x480   :  { %11220 = vmatmul.mubr.msk.bf16.vlgmr.msra.gmra.mxu1 %vm1427_vm4, %v1347_v7 }
 0x481   :  { %11227 = vmatprep.mubr.msk.bf16.mxu1 %vm14440_vm1, %v14439_v1  ;;  %11224 = vmatpush3.bf16.msra.mxu1 %v1490_v14 }
 0x482   :  { %11225 = vmatprep.subr.bf16.mxu1 %v14439_v1 }
 0x485   :  { %11226 = vmatpush3.bf16.msra.mxu1 %v12140_v15 }
 0x486   :  { %11231 = vmatprep.subr.bf16.mxu1 %v14439_v1 }
 0x538   :  { %v1409_v16 = vpop.f32.mrf.mxu1 }
 0x53a   :  { %v11213_v17 = vpop.f32.mrf.mxu1 }
 0x53b   :  { %v9915_v17 = vld [vmem:[#allocation16] ss:$0 sm:$0xff] }
 0x53c   :  { %v1412_v18 = vpop.f32.mrf.mxu1 }
 0x53d   :  { %v1474_v19 = vpack.c.bf16 %v1412_v18, %v1409_v16 }
 0x53e   :  { %v11214_v20 = vpop.f32.mrf.mxu1 }
 0x53f   :  { %11228 = vmatmul.mubr.msk.bf16.vlgmr.msra.gmra.mxu1 %vm1427_vm4, %v1474_v19  ;;  %v9916_v20 = vld [vmem:[#allocation18] ss:$0 sm:$0xff] }
 0x540   :  { %v1467_v21 = vpop.f32.mrf.mxu1  ;;  %11233 = vmatprep.mubr.msk.bf16.mxu1 %vm14440_vm1, %v14439_v1 }
 0x542   :  { %v11221_v22 = vpop.f32.mrf.mxu1 }
 0x544   :  { %v1470_v23 = vpop.f32.mrf.mxu1 }
 0x546   :  { %v11222_v24 = vpop.f32.mrf.mxu1 }
 0x5ff   :  { %v1526_v25 = vpop.f32.mrf.mxu1 }
 0x600   :  { %v1533_v26 = vsub.f32 %v1467_v21, %v1526_v25 }
 0x601   :  { %v11229_v28 = vpop.f32.mrf.mxu1 }
 0x602   :  { %v15137_v30 = vadd.f32 %v9912_v27, %v1533_v26  ;;  %v1996_v28 = vld [vmem:[#allocation2 + $0x14] sm:$0x3] }
 0x603   :  { %v1529_v29 = vpop.f32.mrf.mxu1 }
 0x604   :  { %v1534_v31 = vsub.f32 %v1470_v23, %v1529_v29  ;;  %v1590_v38 = vmul.f32 %v15137_v30, %v15137_v30 }
 0x605   :  { %v11230_v32 = vpop.f32.mrf.mxu1 }
 0x606   :  { %v15140_v36 = vadd.f32 %v9912_v27, %v1534_v31 }
 0x608   :  { %v1543_v37 = vpack.c.bf16 %v15140_v36, %v15137_v30  ;;  %v1591_v39 = vmul.f32 %v15140_v36, %v15140_v36 }
 0x60a   :  { %v1548_v42 = vand.u32 %v1543_v37, %v15117_v6  ;;  %v1592_v43 = vpack.c.bf16 %v1591_v39, %v1590_v38  ;;  %v9923_v38 = vld [vmem:[#allocation22] ss:$0 sm:$0xff] }
 0x60c   :  { %11232 = vmatpush3.bf16.msra.mxu1 %v1548_v42  ;;  %v1594_v44 = vand.u32 %v1592_v43, %v15117_v6 }
 0x60d   :  { %11243 = vmatprep.subr.bf16.mxu1 %v14439_v1 }
 0x60e   :  { %11238 = vmatpush3.bf16.msra.mxu0 %v1594_v44 }
 0x60f   :  { %11234 = vmatmul.mubr.msk.bf16.vlgmr.msra.gmra.mxu1 %vm1364_vm3, %v14442_v46  ;;  %11249 = vmatprep.subr.bf16.mxu0 %v14439_v1 }
 0x610   :  { %11244 = vmatpush3.bf16.msra.mxu1 %v1696_v45  ;;  %11245 = vmatprep.mubr.msk.bf16.mxu1 %vm14440_vm1, %v14439_v1 }
 0x611   :  { %11240 = vmatmul.mubr.msk.bf16.vlgmr.msra.gmra.mxu0 %vm1364_vm3, %v14442_v46  ;;  %11255 = vmatprep.subr.bf16.mxu1 %v14439_v1 }
 0x612   :  { %11251 = vmatprep.mubr.msk.bf16.mxu0 %vm14440_vm1, %v14439_v1  ;;  %11250 = vmatpush3.bf16.msra.mxu0 %v1748_v49 }
 0x613   :  { %11261 = vmatprep.subr.bf16.mxu0 %v14439_v1 }
 0x617   :  { %11246 = vmatmul.mubr.msk.bf16.vlgmr.msra.gmra.mxu1 %vm1688_vm6, %v15164_v47 }
 0x618   :  { %11257 = vmatprep.mubr.msk.bf16.mxu1 %vm14440_vm1, %v14439_v1  ;;  %11256 = vmatpush3.bf16.msra.mxu1 %v1801_v51 }
 0x619   :  { %11252 = vmatmul.mubr.msk.bf16.vlgmr.msra.gmra.mxu0 %vm1744_vm7, %v1675_v40  ;;  %11267 = vmatprep.subr.bf16.mxu1 %v14439_v1 }
 0x61a   :  { %11263 = vmatprep.mubr.msk.bf16.mxu0 %vm14440_vm1, %v14439_v1 }
 0x6cf   :  { %v1584_v52 = vpop.f32.mrf.mxu1 }
 0x6d0   :  { %v1636_v53 = vmul.f32 0.09090909, %v1584_v52 }
 0x6d1   :  { %v11235_v54 = vpop.f32.mrf.mxu1  ;;  %v1630_v55 = vpop.f32.mrf.mxu0 }
 0x6d2   :  { %v1638_v56 = vmul.f32 %v1636_v53, %v1636_v53  ;;  %v1637_v57 = vmul.f32 0.09090909, %v1630_v55  ;;  %v1644_v12 = vrot.slane %v1636_v53, %v15180_v11  ;;  %v12144_v54 = vld [vmem:[#allocation27 + $0x38] sm:$0xff]   ;;  %v12145_v55 = vld [vmem:[#allocation27 + $0x30] sm:$0xff]  }
 0x6d3   :  { %v1587_v58 = vpop.f32.mrf.mxu1  ;;  %v11241_v59 = vpop.f32.mrf.mxu0 }
 0x6d4   :  { %v1639_v60 = vsub.f32 %v1637_v57, %v1638_v56  ;;  %v1645_v14 = vsub.f32 %v15137_v30, %v1644_v12  ;;  %v1646_v15 = vsub.f32 %v15140_v36, %v1644_v12  ;;  %v12146_v56 = vld [vmem:[#allocation27 + $0x28] sm:$0xff]   ;;  %v12147_v57 = vld [vmem:[#allocation27 + $0x20] sm:$0xff]   ;;  %v12148_v58 = vld [vmem:[#allocation27 + $0x18] sm:$0xff]  }
 0x6d5   :  { %v11236_v61 = vpop.f32.mrf.mxu1  ;;  %v1633_v62 = vpop.f32.mrf.mxu0  ;;  %v12149_v59 = vld [vmem:[#allocation27 + $0x10] sm:$0xff]  }
 0x6d6   :  { %v1640_v63 = vmax.f32 %v1639_v60, 0.0  ;;  %v12150_v60 = vld [vmem:[#allocation27 + $0x8] sm:$0xff]   ;;  %v12151_v61 = vld [vmem:[#allocation27] sm:$0xff]  }
 0x6d7   :  { %v1732_v0 = vpop.f32.mrf.mxu1  ;;  %v11242_v2 = vpop.f32.mrf.mxu0 }
 0x6d8   :  { %v1647_v4 = vadd.f32 1e-05, %v1640_v63  ;;  %v12153_v63 = vld [vmem:[#allocation36 + $0x38] sm:$0xff]   ;;  %v12155_v2 = vld [vmem:[#allocation36 + $0x28] sm:$0xff]  }
 0x6d9   :  { %v11247_v5 = vpop.f32.mrf.mxu1  ;;  %v1784_v32 = vpop.f32.mrf.mxu0 }
 0x6da   :  { %12638 = vrsqrt.f32 %v1647_v4  ;;  %v12157_v4 = vld [vmem:[#allocation36 + $0x18] sm:$0xff]   ;;  %v12158_v5 = vld [vmem:[#allocation36 + $0x10] sm:$0xff]  }
 0x6db   :  { %v1735_v7 = vpop.f32.mrf.mxu1  ;;  %v11253_v33 = vpop.f32.mrf.mxu0 }
 0x6dc   :  { %v1791_v9 = vpack.c.bf16 %v1735_v7, %v1732_v0  ;;  %v12154_v0 = vld [vmem:[#allocation36 + $0x30] sm:$0xff]   ;;  %v12159_v7 = vld [vmem:[#allocation36 + $0x8] sm:$0xff]   ;;  %v9927_v33 = vld [vmem:[#allocation25] ss:$0 sm:$0xff] }
 0x6dd   :  { %v11248_v10 = vpop.f32.mrf.mxu1  ;;  %v1787_v34 = vpop.f32.mrf.mxu0 }
 0x6de   :  { %11258 = vmatmul.mubr.msk.bf16.vlgmr.msra.gmra.mxu1 %vm1744_vm7, %v1791_v9 }
 0x6df   :  { %11269 = vmatprep.mubr.msk.bf16.mxu1 %vm14440_vm1, %v14439_v1  ;;  %v11254_v35 = vpop.f32.mrf.mxu0 }
 0x6e7   :  { %v12639_v13 = vpop.eup %12638 }
 0x6e8   :  { %v1652_v16 = vrot.slane %v12639_v13, %v15180_v11 }
 0x6ea   :  { %v1653_v18 = vmul.f32 %v1652_v16, %v1645_v14  ;;  %v1654_v19 = vmul.f32 %v1652_v16, %v1646_v15 }
 0x6ec   :  { %v1661_v21 = vmul.f32 %v9915_v17, %v1653_v18  ;;  %v1662_v22 = vmul.f32 %v9915_v17, %v1654_v19 }
 0x6ee   :  { %v1669_v23 = vadd.f32 %v9916_v20, %v1661_v21  ;;  %v1670_v24 = vadd.f32 %v9916_v20, %v1662_v22 }
 0x6f0   :  { %v1671_v25 = vmax.f32 %v1669_v23, 0.0  ;;  %v1672_v26 = vmax.f32 %v1670_v24, 0.0 }
 0x6f2   :  { %v10509_v29 = vpack.c.bf16 %v1671_v25, %v1671_v25  ;;  %v10510_v30 = vpack.c.bf16 %v1672_v26, %v1672_v26 }
 0x6f4   :  { %1992 = vst [vmem:[#allocation2] sm:$0xf] %v10509_v29  ;;  %v1997_v31 = vsel %vm15186_vm10, %v10510_v30, %v1996_v28  ;;  %v9926_v30 = vld [vmem:[#allocation24] ss:$0 sm:$0xff] }
 0x6f5   :  { %1998 = vst [vmem:[#allocation2 + $0x14] sm:$0x3] %v1997_v31 }
 0x6fc   :  { %v15221_v62 = vld [vmem:[#allocation2] ss:$20 sps:$4 sm:$0x3f]  }
 0x79e   :  { %v1837_v36 = vpop.f32.mrf.mxu1 }
 0x79f   :  { %v1844_v37 = vsub.f32 %v1784_v32, %v1837_v36 }
 0x7a0   :  { %v11259_v39 = vpop.f32.mrf.mxu1 }
 0x7a1   :  { %v15192_v42 = vadd.f32 %v9923_v38, %v1844_v37 }
 0x7a2   :  { %v1840_v40 = vpop.f32.mrf.mxu1 }
 0x7a3   :  { %v1845_v43 = vsub.f32 %v1787_v34, %v1840_v40  ;;  %v1900_v48 = vmul.f32 %v15192_v42, %v15192_v42 }
 0x7a4   :  { %v11260_v44 = vpop.f32.mrf.mxu1 }
 0x7a5   :  { %v15194_v45 = vadd.f32 %v9923_v38, %v1845_v43  ;;  %v2010_v43 = vld [vmem:[#allocation3 + $0x14] sm:$0x7] }
 0x7a7   :  { %v1854_v49 = vpack.c.bf16 %v15194_v45, %v15192_v42  ;;  %v1901_v50 = vmul.f32 %v15194_v45, %v15194_v45 }
 0x7a9   :  { %v1902_v51 = vpack.c.bf16 %v1901_v50, %v1900_v48  ;;  %v1858_v52 = vand.u32 %v1854_v49, %v15148_v41 }
 0x7ab   :  { %11262 = vmatpush3.bf16.msra.mxu0 %v1858_v52  ;;  %v1904_v53 = vand.u32 %v1902_v51, %v15148_v41  ;;  %v12162_v52 = vld [vmem:[#allocation33 + $0x38] sm:$0xff]  }
 0x7ac   :  { %11273 = vmatprep.subr.bf16.mxu0 %v14439_v1 }
 0x7ad   :  { %11268 = vmatpush3.bf16.msra.mxu1 %v1904_v53 }
 0x7ae   :  { %11264 = vmatmul.mubr.msk.bf16.vlgmr.msra.gmra.mxu0 %vm1688_vm6, %v14442_v46  ;;  %11293 = vmatprep.subr.bf16.mxu1 %v14439_v1 }
 0x7af   :  { %11274 = vmatpush3.bf16.msra.mxu0 %v12144_v54  ;;  %11289 = vmatprep.mubr.msk.bf16.mxu0 %vm14440_vm1, %v14439_v1  ;;  %v12163_v54 = vld [vmem:[#allocation33 + $0x30] sm:$0xff]  }
 0x7b0   :  { %11270 = vmatmul.mubr.msk.bf16.vlgmr.msra.gmra.mxu1 %vm1688_vm6, %v14442_v46  ;;  %11275 = vmatprep.subr.bf16.mxu0 %v14439_v1 }
 0x7b1   :  { %11309 = vmatprep.mubr.msk.bf16.mxu1 %vm14440_vm1, %v14439_v1  ;;  %11294 = vmatpush3.bf16.msra.mxu1 %v12153_v63  ;;  %v14443_v63 = vmov 0  }
 0x7b2   :  { %11295 = vmatprep.subr.bf16.mxu1 %v14439_v1  ;;  %12135 = vset.pattern.permute.xlu0 %v14443_v63 }
 0x7b3   :  { %11276 = vmatpush3.bf16.msra.mxu0 %v12145_v55  ;;  %v12164_v55 = vld [vmem:[#allocation33 + $0x28] sm:$0xff]  }
 0x7b4   :  { %11277 = vmatprep.subr.bf16.mxu0 %v14439_v1 }
 0x7b5   :  { %11296 = vmatpush3.bf16.msra.mxu1 %v12154_v0  ;;  %v1344_v0 = vld [vmem:[%s16146_s22 + $0x8] sm:$0x7] }
 0x7b6   :  { %11297 = vmatprep.subr.bf16.mxu1 %v14439_v1 }
 0x7b7   :  { %11278 = vmatpush3.bf16.msra.mxu0 %v12146_v56  ;;  %v12165_v56 = vld [vmem:[#allocation33 + $0x20] sm:$0xff]  }
 0x7b8   :  { %11279 = vmatprep.subr.bf16.mxu0 %v14439_v1 }
 0x7b9   :  { %11298 = vmatpush3.bf16.msra.mxu1 %v12155_v2 }
 0x7ba   :  { %11299 = vmatprep.subr.bf16.mxu1 %v14439_v1 }
 0x7bb   :  { %11280 = vmatpush3.bf16.msra.mxu0 %v12147_v57  ;;  %v12166_v57 = vld [vmem:[#allocation33 + $0x18] sm:$0xff]  }
 0x7bc   :  { %11281 = vmatprep.subr.bf16.mxu0 %v14439_v1 }
 0x7bd   :  { %11300 = vmatpush3.bf16.msra.mxu1 %v12156_v3  ;;  %v9942_v3 = vld [vmem:[#allocation37] ss:$0 sm:$0xff] }
 0x7be   :  { %11301 = vmatprep.subr.bf16.mxu1 %v14439_v1 }
 0x7bf   :  { %11282 = vmatpush3.bf16.msra.mxu0 %v12148_v58  ;;  %v12167_v58 = vld [vmem:[#allocation33 + $0x10] sm:$0xff]  }
 0x7c0   :  { %11283 = vmatprep.subr.bf16.mxu0 %v14439_v1 }
 0x7c1   :  { %11302 = vmatpush3.bf16.msra.mxu1 %v12157_v4 }
 0x7c2   :  { %11303 = vmatprep.subr.bf16.mxu1 %v14439_v1 }
 0x7c3   :  { %11284 = vmatpush3.bf16.msra.mxu0 %v12149_v59  ;;  %v12168_v59 = vld [vmem:[#allocation33 + $0x8] sm:$0xff]  }
 0x7c4   :  { %11285 = vmatprep.subr.bf16.mxu0 %v14439_v1 }
 0x7c5   :  { %11304 = vmatpush3.bf16.msra.mxu1 %v12158_v5 }
 0x7c6   :  { %11305 = vmatprep.subr.bf16.mxu1 %v14439_v1 }
 0x7c7   :  { %11286 = vmatpush3.bf16.msra.mxu0 %v12150_v60  ;;  %v12169_v60 = vld [vmem:[#allocation33] sm:$0xff]  }
 0x7c8   :  { %11287 = vmatprep.subr.bf16.mxu0 %v14439_v1 }
 0x7c9   :  { %11306 = vmatpush3.bf16.msra.mxu1 %v12159_v7 }
 0x7ca   :  { %11307 = vmatprep.subr.bf16.mxu1 %v14439_v1 }
 0x7cb   :  { %11288 = vmatpush3.bf16.msra.mxu0 %v12151_v61  ;;  %v1343_v61 = vld [vmem:[%s16146_s22] sm:$0xff] }
 0x7cc   :  { %11313 = vmatprep.subr.bf16.mxu0 %v14439_v1  ;;  %2342 = vperm.xlu0 %12135, %v1343_v61  }
 0x7cd   :  { %11308 = vmatpush3.bf16.msra.mxu1 %v12160_v8 }
 0x7ce   :  { %11290 = vmatmul.mubr.bf16.vlgmr.msra.gmra.mxu0 %v15221_v62  ;;  %11319 = vmatprep.subr.bf16.mxu1 %v14439_v1 }
 0x7cf   :  { %11315 = vmatprep.mubr.msk.bf16.mxu0 %vm14440_vm1, %v14439_v1 }
 0x7d0   :  { %2347 = vperm.xlu0 %12135, %v1344_v0   ;;  %v15310_v0 = vld [vmem:[#allocation10] sm:$0x7f]  }
 0x86e   :  { %v1894_v9 = vpop.f32.mrf.mxu0 }
 0x86f   :  { %v1946_v10 = vmul.f32 0.07692308, %v1894_v9 }
 0x870   :  { %v11265_v12 = vpop.f32.mrf.mxu0  ;;  %v1940_v13 = vpop.f32.mrf.mxu1 }
 0x871   :  { %v1948_v14 = vmul.f32 %v1946_v10, %v1946_v10  ;;  %v1947_v15 = vmul.f32 0.07692308, %v1940_v13  ;;  %v1954_v24 = vrot.slane %v1946_v10, %v15180_v11  ;;  %v15264_v13 = vld [vmem:[#allocation9] sm:$0x3f]  }
 0x872   :  { %v1897_v16 = vpop.f32.mrf.mxu0  ;;  %v11271_v17 = vpop.f32.mrf.mxu1 }
 0x873   :  { %v1949_v18 = vsub.f32 %v1947_v15, %v1948_v14  ;;  %v1955_v26 = vsub.f32 %v15192_v42, %v1954_v24  ;;  %v1956_v28 = vsub.f32 %v15194_v45, %v1954_v24  ;;  %v12171_v14 = vld [vmem:[#allocation30 + $0x38] sm:$0xff]   ;;  %v12172_v15 = vld [vmem:[#allocation30 + $0x30] sm:$0xff]   ;;  %v12173_v16 = vld [vmem:[#allocation30 + $0x28] sm:$0xff]  }
 0x874   :  { %v11266_v19 = vpop.f32.mrf.mxu0  ;;  %v1943_v20 = vpop.f32.mrf.mxu1  ;;  %v12174_v17 = vld [vmem:[#allocation30 + $0x20] sm:$0xff]   ;;  %v12626_v42 = vld [vmem:[%s14907_s3 + $0x68] sm:$0xff]  }
 0x875   :  { %v1950_v21 = vmax.f32 %v1949_v18, 0.0  ;;  %v12175_v18 = vld [vmem:[#allocation30 + $0x18] sm:$0xff]   ;;  %v12176_v19 = vld [vmem:[#allocation30 + $0x10] sm:$0xff]  }
 0x876   :  { %v11272_v22 = vpop.f32.mrf.mxu1 }
 0x877   :  { %v1957_v23 = vadd.f32 1e-05, %v1950_v21  ;;  %v12177_v22 = vld [vmem:[#allocation30 + $0x8] sm:$0xff]  }
 0x879   :  { %12640 = vrsqrt.f32 %v1957_v23 }
 0x886   :  { %v12641_v25 = vpop.eup %12640 }
 0x887   :  { %v1962_v29 = vrot.slane %v12641_v25, %v15180_v11  ;;  %v12178_v25 = vld [vmem:[#allocation30] sm:$0xff]  }
 0x889   :  { %v1963_v31 = vmul.f32 %v1962_v29, %v1955_v26  ;;  %v1964_v32 = vmul.f32 %v1962_v29, %v1956_v28  ;;  %v15286_v26 = vpop.permute.xlu0 %2342  ;;  %v9932_v28 = vld [vmem:[#allocation28] ss:$0 sm:$0xff] }
 0x88b   :  { %v1971_v34 = vmul.f32 %v9926_v30, %v1963_v31  ;;  %v1972_v35 = vmul.f32 %v9926_v30, %v1964_v32 }
 0x88d   :  { %v1979_v36 = vadd.f32 %v9927_v33, %v1971_v34  ;;  %v1980_v37 = vadd.f32 %v9927_v33, %v1972_v35  ;;  %v15290_v33 = vpop.permute.xlu0 %2347 }
 0x88e   :  { %v15239_v38 = vpop.f32.mrf.mxu0 }
 0x88f   :  { %v1981_v39 = vmax.f32 %v1979_v36, 0.0  ;;  %v1982_v40 = vmax.f32 %v1980_v37, 0.0  ;;  %v2180_v32 = vadd.f32 %v9932_v28, %v15239_v38  ;;  %v15297_v38 = vld [vmem:[%s16141_s11] sm:$0x3f]  }
 0x890   :  { %v11291_v44 = vpop.f32.mrf.mxu0 }
 0x891   :  { %v10511_v45 = vpack.c.bf16 %v1981_v39, %v1981_v39  ;;  %v10512_v48 = vpack.c.bf16 %v1982_v40, %v1982_v40 }
 0x892   :  { %v15245_v49 = vpop.f32.mrf.mxu0 }
 0x893   :  { %2006 = vst [vmem:[#allocation3] sm:$0xf] %v10511_v45  ;;  %v2011_v50 = vsel %vm15241_vm13, %v10512_v48, %v2010_v43  ;;  %v2183_v35 = vadd.f32 %v9932_v28, %v15245_v49  ;;  %v12188_v48 = vld [vmem:[#allocation40 + $0x38] sm:$0xff]   ;;  %v12189_v49 = vld [vmem:[#allocation40 + $0x30] sm:$0xff]  }
 0x894   :  { %2012 = vst [vmem:[#allocation3 + $0x14] sm:$0x7] %v2011_v50  ;;  %v11292_v51 = vpop.f32.mrf.mxu0  ;;  %v12190_v50 = vld [vmem:[#allocation40 + $0x28] sm:$0xff]  }
 0x895   :  { %v12191_v51 = vld [vmem:[#allocation40 + $0x20] sm:$0xff]  }
 0x89b   :  { %v12161_v53 = vld [vmem:[#allocation3] ss:$20 sps:$4 sm:$0x7f]  }
 0x89c   :  { %11310 = vmatmul.mubr.bf16.vlgmr.msra.gmra.mxu1 %v12161_v53 }
 0x89d   :  { %11320 = vmatpush3.bf16.msra.mxu1 %v12162_v52  ;;  %11335 = vmatprep.mubr.msk.bf16.mxu1 %vm14440_vm1, %v14439_v1  ;;  %v12192_v52 = vld [vmem:[#allocation40 + $0x18] sm:$0xff]  }
 0x89e   :  { %11321 = vmatprep.subr.bf16.mxu1 %v14439_v1 }
 0x8a1   :  { %11322 = vmatpush3.bf16.msra.mxu1 %v12163_v54  ;;  %v9963_v54 = vld [vmem:[#allocation31] ss:$0 sm:$0xff] }
 0x8a2   :  { %11323 = vmatprep.subr.bf16.mxu1 %v14439_v1 }
 0x8a5   :  { %11324 = vmatpush3.bf16.msra.mxu1 %v12164_v55 }
 0x8a6   :  { %11325 = vmatprep.subr.bf16.mxu1 %v14439_v1 }
 0x8a9   :  { %11326 = vmatpush3.bf16.msra.mxu1 %v12165_v56  ;;  %v12193_v56 = vld [vmem:[#allocation40 + $0x10] sm:$0xff]  }
 0x8aa   :  { %11327 = vmatprep.subr.bf16.mxu1 %v14439_v1 }
 0x8ad   :  { %11328 = vmatpush3.bf16.msra.mxu1 %v12166_v57 }
 0x8ae   :  { %11329 = vmatprep.subr.bf16.mxu1 %v14439_v1 }
 0x8b1   :  { %11330 = vmatpush3.bf16.msra.mxu1 %v12167_v58 }
 0x8b2   :  { %11331 = vmatprep.subr.bf16.mxu1 %v14439_v1 }
 0x8b5   :  { %11332 = vmatpush3.bf16.msra.mxu1 %v12168_v59 }
 0x8b6   :  { %11333 = vmatprep.subr.bf16.mxu1 %v14439_v1 }
 0x8b9   :  { %11334 = vmatpush3.bf16.msra.mxu1 %v12169_v60 }
 0x8ba   :  { %11359 = vmatprep.subr.bf16.mxu1 %v14439_v1 }
 0x8bc   :  { %11336 = vmatmul.mubr.bf16.vlgmr.msra.gmra.mxu1 %v12161_v53 }
 0x8bd   :  { %11361 = vmatprep.mubr.msk.bf16.mxu1 %vm14440_vm1, %v14439_v1 }
 0x95c   :  { %v2280_v2 = vpop.f32.mrf.mxu1 }
 0x95d   :  { %v2281_v7 = vadd.f32 %v9942_v3, %v2280_v2  ;;  %v12180_v2 = vld [vmem:[#allocation39 + $0x38] sm:$0xff]  }
 0x95e   :  { %v11311_v4 = vpop.f32.mrf.mxu1 }
 0x95f   :  { %v12182_v4 = vld [vmem:[#allocation39 + $0x28] sm:$0xff]  }
 0x960   :  { %v2283_v5 = vpop.f32.mrf.mxu1 }
 0x961   :  { %v2284_v8 = vadd.f32 %v9942_v3, %v2283_v5  ;;  %v12181_v3 = vld [vmem:[#allocation39 + $0x30] sm:$0xff]   ;;  %v12183_v5 = vld [vmem:[#allocation39 + $0x20] sm:$0xff]  }
 0x962   :  { %v11312_v9 = vpop.f32.mrf.mxu1 }
 0x963   :  { %v2287_v10 = vpack.c.bf16 %v2284_v8, %v2281_v7  ;;  %v12184_v7 = vld [vmem:[#allocation39 + $0x18] sm:$0xff]   ;;  %v12185_v8 = vld [vmem:[#allocation39 + $0x10] sm:$0xff]   ;;  %v12186_v9 = vld [vmem:[#allocation39 + $0x8] sm:$0xff]  }
 0x965   :  { %v2297_v12 = vand.u32 %v2287_v10, %v15148_v41  ;;  %v12187_v10 = vld [vmem:[#allocation39] sm:$0xff]  }
 0x967   :  { %11314 = vmatpush3.bf16.msra.mxu0 %v2297_v12  ;;  %v12194_v12 = vld [vmem:[#allocation40 + $0x8] sm:$0xff]  }
 0x968   :  { %11339 = vmatprep.subr.bf16.mxu0 %v14439_v1 }
 0x96a   :  { %11316 = vmatmul.mubr.msk.bf16.vlgmr.msra.gmra.mxu0 %vm1688_vm6, %v15264_v13 }
 0x96b   :  { %11340 = vmatpush3.bf16.msra.mxu0 %v12171_v14  ;;  %11355 = vmatprep.mubr.msk.bf16.mxu0 %vm14440_vm1, %v14439_v1  ;;  %v12195_v14 = vld [vmem:[#allocation40] sm:$0xff]  }
 0x96c   :  { %11341 = vmatprep.subr.bf16.mxu0 %v14439_v1 }
 0x96f   :  { %11342 = vmatpush3.bf16.msra.mxu0 %v12172_v15 }
 0x970   :  { %11343 = vmatprep.subr.bf16.mxu0 %v14439_v1 }
 0x973   :  { %11344 = vmatpush3.bf16.msra.mxu0 %v12173_v16 }
 0x974   :  { %11345 = vmatprep.subr.bf16.mxu0 %v14439_v1 }
 0x977   :  { %11346 = vmatpush3.bf16.msra.mxu0 %v12174_v17 }
 0x978   :  { %11347 = vmatprep.subr.bf16.mxu0 %v14439_v1 }
 0x97b   :  { %11348 = vmatpush3.bf16.msra.mxu0 %v12175_v18 }
 0x97c   :  { %v15275_v20 = vpop.f32.mrf.mxu1  ;;  %11349 = vmatprep.subr.bf16.mxu0 %v14439_v1 }
 0x97e   :  { %v11337_v21 = vpop.f32.mrf.mxu1 }
 0x97f   :  { %11350 = vmatpush3.bf16.msra.mxu0 %v12176_v19  ;;  %v9954_v21 = vld [vmem:[#allocation34] ss:$0 sm:$0xff] }
 0x980   :  { %v15278_v23 = vpop.f32.mrf.mxu1  ;;  %11351 = vmatprep.subr.bf16.mxu0 %v14439_v1 }
 0x982   :  { %v11338_v24 = vpop.f32.mrf.mxu1 }
 0x983   :  { %11352 = vmatpush3.bf16.msra.mxu0 %v12177_v22  ;;  %v2445_v24 = vadd.f32 %v9954_v21, %v15275_v20  ;;  %v9991_v20 = vld [vmem:[#allocation42] ss:$0 sm:$0xff] }
 0x984   :  { %11353 = vmatprep.subr.bf16.mxu0 %v14439_v1 }
 0x987   :  { %11354 = vmatpush3.bf16.msra.mxu0 %v12178_v25 }
 0x988   :  { %11365 = vmatprep.subr.bf16.mxu0 %v14439_v1 }
 0x98a   :  { %11356 = vmatmul.mubr.bf16.vlgmr.msra.gmra.mxu0 %v15221_v62 }
 0x98b   :  { %11367 = vmatprep.mubr.msk.bf16.mxu0 %vm14440_vm1, %v14439_v1 }
 0xa2a   :  { %v2333_v29 = vpop.f32.mrf.mxu0 }
 0xa2b   :  { %v2350_v30 = vmul.f32 %v15286_v26, %v2333_v29 }
 0xa2c   :  { %v11317_v31 = vpop.f32.mrf.mxu0 }
 0xa2d   :  { %v2352_v36 = vadd.f32 %v2350_v30, %v2180_v32  ;;  %v2448_v31 = vadd.f32 %v9954_v21, %v15278_v23 }
 0xa2e   :  { %v2336_v34 = vpop.f32.mrf.mxu0 }
 0xa2f   :  { %v2351_v62 = vmul.f32 %v15290_v33, %v2336_v34  ;;  %v2354_v40 = vmax.f32 %v2352_v36, 0.0 }
 0xa30   :  { %v11318_v37 = vpop.f32.mrf.mxu0 }
 0xa31   :  { %v2353_v39 = vadd.f32 %v2351_v62, %v2183_v35 }
 0xa33   :  { %v2355_v43 = vmax.f32 %v2353_v39, 0.0 }
 0xa35   :  { %v2605_v44 = vpack.c.bf16 %v2355_v43, %v2354_v40 }
 0xa37   :  { %v2642_v45 = vand.u32 %v2605_v44, %v15117_v6 }
 0xa39   :  { %11366 = vmatpush3.bf16.msra.mxu0 %v2642_v45 }
 0xa3a   :  { %11391 = vmatprep.subr.bf16.mxu0 %v14439_v1 }
 0xa3c   :  { %11368 = vmatmul.mubr.msk.bf16.vlgmr.msra.gmra.mxu0 %vm1364_vm3, %v15297_v38 }
 0xa3d   :  { %11392 = vmatpush3.bf16.msra.mxu0 %v12188_v48  ;;  %11407 = vmatprep.mubr.msk.bf16.mxu0 %vm14440_vm1, %v14439_v1 }
 0xa3e   :  { %11393 = vmatprep.subr.bf16.mxu0 %v14439_v1 }
 0xa41   :  { %11394 = vmatpush3.bf16.msra.mxu0 %v12189_v49 }
 0xa42   :  { %11395 = vmatprep.subr.bf16.mxu0 %v14439_v1 }
 0xa45   :  { %11396 = vmatpush3.bf16.msra.mxu0 %v12190_v50 }
 0xa46   :  { %11397 = vmatprep.subr.bf16.mxu0 %v14439_v1 }
 0xa49   :  { %11398 = vmatpush3.bf16.msra.mxu0 %v12191_v51 }
 0xa4a   :  { %v2539_v53 = vpop.f32.mrf.mxu0  ;;  %11399 = vmatprep.subr.bf16.mxu0 %v14439_v1 }
 0xa4b   :  { %v2540_v58 = vadd.f32 %v9963_v54, %v2539_v53 }
 0xa4c   :  { %v11357_v55 = vpop.f32.mrf.mxu0 }
 0xa4d   :  { %11400 = vmatpush3.bf16.msra.mxu0 %v12192_v52 }
 0xa4e   :  { %v2542_v57 = vpop.f32.mrf.mxu0  ;;  %11401 = vmatprep.subr.bf16.mxu0 %v14439_v1 }
 0xa4f   :  { %v2543_v59 = vadd.f32 %v9963_v54, %v2542_v57 }
 0xa50   :  { %v11358_v60 = vpop.f32.mrf.mxu0 }
 0xa51   :  { %v2546_v61 = vpack.c.bf16 %v2543_v59, %v2540_v58  ;;  %11402 = vmatpush3.bf16.msra.mxu0 %v12193_v56 }
 0xa52   :  { %11403 = vmatprep.subr.bf16.mxu0 %v14439_v1 }
 0xa53   :  { %v2556_v63 = vand.u32 %v2546_v61, %v15117_v6  ;;  %v12196_v61 = vld [vmem:[#allocation46 + $0x38] sm:$0xff]  }
 0xa55   :  { %11360 = vmatpush3.bf16.msra.mxu1 %v2556_v63  ;;  %11404 = vmatpush3.bf16.msra.mxu0 %v12194_v12  ;;  %v12197_v63 = vld [vmem:[#allocation46 + $0x30] sm:$0xff]   ;;  %v12203_v12 = vld [vmem:[#allocation46] sm:$0xff]  }
 0xa56   :  { %11371 = vmatprep.subr.bf16.mxu1 %v14439_v1  ;;  %11405 = vmatprep.subr.bf16.mxu0 %v14439_v1 }
 0xa58   :  { %11362 = vmatmul.mubr.msk.bf16.vlgmr.msra.gmra.mxu1 %vm1364_vm3, %v15310_v0 }
 0xa59   :  { %11372 = vmatpush3.bf16.msra.mxu1 %v12180_v2  ;;  %11387 = vmatprep.mubr.msk.bf16.mxu1 %vm14440_vm1, %v14439_v1  ;;  %v12204_v2 = vld [vmem:[#allocation48 + $0x38] sm:$0xff]  }
 0xa5a   :  { %11373 = vmatprep.subr.bf16.mxu1 %v14439_v1  ;;  %11406 = vmatpush3.bf16.msra.mxu0 %v12195_v14  ;;  %v12208_v14 = vld [vmem:[#allocation48 + $0x18] sm:$0xff]  }
 0xa5b   :  { %11417 = vmatprep.subr.bf16.mxu0 %v14439_v1 }
 0xa5d   :  { %11374 = vmatpush3.bf16.msra.mxu1 %v12181_v3  ;;  %v12198_v3 = vld [vmem:[#allocation46 + $0x28] sm:$0xff]  }
 0xa5e   :  { %11375 = vmatprep.subr.bf16.mxu1 %v14439_v1 }
 0xa61   :  { %11376 = vmatpush3.bf16.msra.mxu1 %v12182_v4  ;;  %v12205_v4 = vld [vmem:[#allocation48 + $0x30] sm:$0xff]  }
 0xa62   :  { %11377 = vmatprep.subr.bf16.mxu1 %v14439_v1 }
 0xa65   :  { %11378 = vmatpush3.bf16.msra.mxu1 %v12183_v5  ;;  %v12199_v5 = vld [vmem:[#allocation46 + $0x20] sm:$0xff]  }
 0xa66   :  { %11379 = vmatprep.subr.bf16.mxu1 %v14439_v1 }
 0xa69   :  { %11380 = vmatpush3.bf16.msra.mxu1 %v12184_v7  ;;  %v12206_v7 = vld [vmem:[#allocation48 + $0x28] sm:$0xff]  }
 0xa6a   :  { %11381 = vmatprep.subr.bf16.mxu1 %v14439_v1 }
 0xa6d   :  { %11382 = vmatpush3.bf16.msra.mxu1 %v12185_v8  ;;  %v12200_v8 = vld [vmem:[#allocation46 + $0x18] sm:$0xff]  }
 0xa6e   :  { %11383 = vmatprep.subr.bf16.mxu1 %v14439_v1 }
 0xa71   :  { %11384 = vmatpush3.bf16.msra.mxu1 %v12186_v9  ;;  %v12201_v9 = vld [vmem:[#allocation46 + $0x10] sm:$0xff]  }
 0xa72   :  { %11385 = vmatprep.subr.bf16.mxu1 %v14439_v1 }
 0xa75   :  { %11386 = vmatpush3.bf16.msra.mxu1 %v12187_v10  ;;  %v12202_v10 = vld [vmem:[#allocation46 + $0x8] sm:$0xff]  }
 0xa76   :  { %11411 = vmatprep.subr.bf16.mxu1 %v14439_v1 }
 0xa78   :  { %11388 = vmatmul.mubr.bf16.vlgmr.msra.gmra.mxu1 %v2605_v44 }
 0xa79   :  { %11413 = vmatprep.mubr.msk.bf16.mxu1 %vm14440_vm1, %v14439_v1 }
 0xafc   :  { %v2678_v15 = vpop.f32.mrf.mxu0 }
 0xafe   :  { %v11369_v16 = vpop.f32.mrf.mxu0 }
 0xaff   :  { %v12210_v16 = vld [vmem:[#allocation48 + $0x8] sm:$0xff]  }
 0xb00   :  { %v2681_v17 = vpop.f32.mrf.mxu0 }
 0xb01   :  { %v2774_v18 = vpack.c.bf16 %v2681_v17, %v2678_v15  ;;  %v12209_v15 = vld [vmem:[#allocation48 + $0x10] sm:$0xff]   ;;  %v12211_v17 = vld [vmem:[#allocation48] sm:$0xff]  }
 0xb02   :  { %v11370_v19 = vpop.f32.mrf.mxu0 }
 0xb03   :  { %11408 = vmatmul.mubr.bf16.vlgmr.msra.gmra.mxu0 %v2774_v18 }
 0xb04   :  { %11419 = vmatprep.mubr.msk.bf16.mxu0 %vm14440_vm1, %v14439_v1 }
 0xb18   :  { %v2592_v22 = vpop.f32.mrf.mxu1 }
 0xb19   :  { %v2599_v25 = vmul.f32 0.5, %v2592_v22 }
 0xb1a   :  { %v11363_v28 = vpop.f32.mrf.mxu1 }
 0xb1b   :  { %v2601_v29 = vadd.f32 %v2599_v25, %v2445_v24 }
 0xb1c   :  { %v2595_v30 = vpop.f32.mrf.mxu1 }
 0xb1d   :  { %v2600_v32 = vmul.f32 0.5, %v2595_v30  ;;  %v2603_v36 = vmax.f32 %v2601_v29, 0.0 }
 0xb1e   :  { %v11364_v34 = vpop.f32.mrf.mxu1 }
 0xb1f   :  { %v2602_v35 = vadd.f32 %v2600_v32, %v2448_v31 }
 0xb21   :  { %v2604_v62 = vmax.f32 %v2602_v35, 0.0 }
 0xb23   :  { %v15333_v37 = vpack.c.bf16 %v2604_v62, %v2603_v36 }
 0xb25   :  { %v3038_v60 = vand.u32 %v15333_v37, %v15148_v41 }
 0xb38   :  { %v2767_v39 = vpop.f32.mrf.mxu1 }
 0xb3a   :  { %v11389_v40 = vpop.f32.mrf.mxu1 }
 0xb3c   :  { %v2770_v43 = vpop.f32.mrf.mxu1 }
 0xb3e   :  { %v11390_v44 = vpop.f32.mrf.mxu1 }
 0xbc3   :  { %v2857_v45 = vpop.f32.mrf.mxu0 }
 0xbc4   :  { %v2864_v48 = vsub.f32 %v2767_v39, %v2857_v45 }
 0xbc5   :  { %v11409_v49 = vpop.f32.mrf.mxu0 }
 0xbc6   :  { %v15335_v51 = vadd.f32 %v9991_v20, %v2864_v48 }
 0xbc7   :  { %v2860_v50 = vpop.f32.mrf.mxu0 }
 0xbc8   :  { %v2865_v52 = vsub.f32 %v2770_v43, %v2860_v50  ;;  %v2918_v54 = vmul.f32 %v15335_v51, %v15335_v51  ;;  %v9994_v50 = vld [vmem:[#allocation43] ss:$0 sm:$0xff] }
 0xbc9   :  { %v11410_v23 = vpop.f32.mrf.mxu0 }
 0xbca   :  { %v15337_v53 = vadd.f32 %v9991_v20, %v2865_v52 }
 0xbcc   :  { %v2874_v55 = vpack.c.bf16 %v15337_v53, %v15335_v51  ;;  %v2919_v56 = vmul.f32 %v15337_v53, %v15337_v53 }
 0xbce   :  { %v2920_v57 = vpack.c.bf16 %v2919_v56, %v2918_v54  ;;  %v2876_v58 = vand.u32 %v2874_v55, %v15117_v6  ;;  %v9995_v54 = vld [vmem:[#allocation45] ss:$0 sm:$0xff] }
 0xbd0   :  { %11412 = vmatpush3.bf16.msra.mxu1 %v2876_v58  ;;  %v2922_v59 = vand.u32 %v2920_v57, %v15117_v6 }
 0xbd1   :  { %11423 = vmatprep.subr.bf16.mxu1 %v14439_v1 }
 0xbd2   :  { %11418 = vmatpush3.bf16.msra.mxu0 %v2922_v59 }
 0xbd3   :  { %11414 = vmatmul.mubr.msk.bf16.vlgmr.msra.gmra.mxu1 %vm1364_vm3, %v14442_v46  ;;  %11429 = vmatprep.subr.bf16.mxu0 %v14439_v1 }
 0xbd4   :  { %11424 = vmatpush3.bf16.msra.mxu1 %v3038_v60  ;;  %11425 = vmatprep.mubr.msk.bf16.mxu1 %vm14440_vm1, %v14439_v1 }
 0xbd5   :  { %11420 = vmatmul.mubr.msk.bf16.vlgmr.msra.gmra.mxu0 %vm1364_vm3, %v14442_v46  ;;  %11449 = vmatprep.subr.bf16.mxu1 %v14439_v1 }
 0xbd6   :  { %11430 = vmatpush3.bf16.msra.mxu0 %v12196_v61  ;;  %11445 = vmatprep.mubr.msk.bf16.mxu0 %vm14440_vm1, %v14439_v1  ;;  %v3407_v61 = vld [vmem:[#allocation2 + $0x18] sm:$0x3] }
 0xbd7   :  { %11431 = vmatprep.subr.bf16.mxu0 %v14439_v1 }
 0xbda   :  { %11432 = vmatpush3.bf16.msra.mxu0 %v12197_v63 }
 0xbdb   :  { %11426 = vmatmul.mubr.msk.bf16.vlgmr.msra.gmra.mxu1 %vm1688_vm6, %v15164_v47  ;;  %11433 = vmatprep.subr.bf16.mxu0 %v14439_v1  ;;  %v12207_v47 = vld [vmem:[#allocation48 + $0x20] sm:$0xff]  }
 0xbdc   :  { %11450 = vmatpush3.bf16.msra.mxu1 %v12204_v2  ;;  %11465 = vmatprep.mubr.msk.bf16.mxu1 %vm14440_vm1, %v14439_v1 }
 0xbdd   :  { %11451 = vmatprep.subr.bf16.mxu1 %v14439_v1 }
 0xbde   :  { %11434 = vmatpush3.bf16.msra.mxu0 %v12198_v3 }
 0xbdf   :  { %11435 = vmatprep.subr.bf16.mxu0 %v14439_v1 }
 0xbe0   :  { %11452 = vmatpush3.bf16.msra.mxu1 %v12205_v4 }
 0xbe1   :  { %11453 = vmatprep.subr.bf16.mxu1 %v14439_v1 }
 0xbe2   :  { %11436 = vmatpush3.bf16.msra.mxu0 %v12199_v5 }
 0xbe3   :  { %11437 = vmatprep.subr.bf16.mxu0 %v14439_v1 }
 0xbe4   :  { %11454 = vmatpush3.bf16.msra.mxu1 %v12206_v7 }
 0xbe5   :  { %11455 = vmatprep.subr.bf16.mxu1 %v14439_v1 }
 0xbe6   :  { %11438 = vmatpush3.bf16.msra.mxu0 %v12200_v8 }
 0xbe7   :  { %11439 = vmatprep.subr.bf16.mxu0 %v14439_v1 }
 0xbe8   :  { %11456 = vmatpush3.bf16.msra.mxu1 %v12207_v47  ;;  %v10013_v47 = vld [vmem:[#allocation49] ss:$0 sm:$0xff] }
 0xbe9   :  { %11457 = vmatprep.subr.bf16.mxu1 %v14439_v1 }
 0xbea   :  { %11440 = vmatpush3.bf16.msra.mxu0 %v12201_v9 }
 0xbeb   :  { %11441 = vmatprep.subr.bf16.mxu0 %v14439_v1 }
 0xbec   :  { %11458 = vmatpush3.bf16.msra.mxu1 %v12208_v14 }
 0xbed   :  { %11459 = vmatprep.subr.bf16.mxu1 %v14439_v1 }
 0xbee   :  { %11442 = vmatpush3.bf16.msra.mxu0 %v12202_v10 }
 0xbef   :  { %11443 = vmatprep.subr.bf16.mxu0 %v14439_v1 }
 0xbf0   :  { %11460 = vmatpush3.bf16.msra.mxu1 %v12209_v15 }
 0xbf1   :  { %11461 = vmatprep.subr.bf16.mxu1 %v14439_v1 }
 0xbf2   :  { %11444 = vmatpush3.bf16.msra.mxu0 %v12203_v12 }
 0xbf3   :  { %11469 = vmatprep.subr.bf16.mxu0 %v14439_v1 }
 0xbf4   :  { %11462 = vmatpush3.bf16.msra.mxu1 %v12210_v16 }
 0xbf5   :  { %11446 = vmatmul.mubr.bf16.vlgmr.msra.gmra.mxu0 %v15333_v37  ;;  %11463 = vmatprep.subr.bf16.mxu1 %v14439_v1 }
 0xbf6   :  { %11471 = vmatprep.mubr.msk.bf16.mxu0 %vm14440_vm1, %v14439_v1 }
 0xbf8   :  { %11464 = vmatpush3.bf16.msra.mxu1 %v12211_v17 }
 0xbf9   :  { %11475 = vmatprep.subr.bf16.mxu1 %v14439_v1 }
 0xc93   :  { %v2912_v18 = vpop.f32.mrf.mxu1 }
 0xc94   :  { %v2964_v19 = vmul.f32 0.09090909, %v2912_v18 }
 0xc95   :  { %v11415_v21 = vpop.f32.mrf.mxu1  ;;  %v2958_v22 = vpop.f32.mrf.mxu0 }
 0xc96   :  { %v2966_v24 = vmul.f32 %v2964_v19, %v2964_v19  ;;  %v2965_v25 = vmul.f32 0.09090909, %v2958_v22  ;;  %v2972_v44 = vrot.slane %v2964_v19, %v15180_v11  ;;  %v12212_v21 = vld [vmem:[#allocation54 + $0x78] sm:$0xff]  }
 0xc97   :  { %v2915_v28 = vpop.f32.mrf.mxu1  ;;  %v11421_v29 = vpop.f32.mrf.mxu0 }
 0xc98   :  { %v2967_v30 = vsub.f32 %v2965_v25, %v2966_v24  ;;  %v2973_v48 = vsub.f32 %v15335_v51, %v2972_v44  ;;  %v2974_v20 = vsub.f32 %v15337_v53, %v2972_v44  ;;  %v12213_v28 = vld [vmem:[#allocation54 + $0x38] sm:$0xff]   ;;  %v12217_v29 = vld [vmem:[#allocation54 + $0x70] sm:$0xff]   ;;  %v12228_v44 = vld [vmem:[#allocation54 + $0x8] sm:$0xff]  }
 0xc99   :  { %v11416_v31 = vpop.f32.mrf.mxu1  ;;  %v2961_v32 = vpop.f32.mrf.mxu0 }
 0xc9a   :  { %v2968_v34 = vmax.f32 %v2967_v30, 0.0  ;;  %v12218_v31 = vld [vmem:[#allocation54 + $0x30] sm:$0xff]   ;;  %v12219_v32 = vld [vmem:[#allocation54 + $0x68] sm:$0xff]  }
 0xc9b   :  { %v3074_v35 = vpop.f32.mrf.mxu1  ;;  %v11422_v36 = vpop.f32.mrf.mxu0 }
 0xc9c   :  { %v2975_v62 = vadd.f32 1e-05, %v2968_v34  ;;  %v12220_v34 = vld [vmem:[#allocation54 + $0x28] sm:$0xff]   ;;  %v12222_v36 = vld [vmem:[#allocation54 + $0x20] sm:$0xff]  }
 0xc9d   :  { %v11427_v37 = vpop.f32.mrf.mxu1 }
 0xc9e   :  { %12642 = vrsqrt.f32 %v2975_v62  ;;  %v12223_v62 = vld [vmem:[#allocation54 + $0x58] sm:$0xff]  }
 0xc9f   :  { %v3077_v39 = vpop.f32.mrf.mxu1  ;;  %v12224_v37 = vld [vmem:[#allocation54 + $0x18] sm:$0xff]  }
 0xca0   :  { %v3170_v40 = vpack.c.bf16 %v3077_v39, %v3074_v35  ;;  %v12221_v35 = vld [vmem:[#allocation54 + $0x60] sm:$0xff]   ;;  %v12225_v39 = vld [vmem:[#allocation54 + $0x50] sm:$0xff]  }
 0xca1   :  { %v11428_v43 = vpop.f32.mrf.mxu1 }
 0xca2   :  { %11466 = vmatmul.mubr.bf16.vlgmr.msra.gmra.mxu1 %v3170_v40  ;;  %v12226_v40 = vld [vmem:[#allocation54 + $0x10] sm:$0xff]   ;;  %v12227_v43 = vld [vmem:[#allocation54 + $0x48] sm:$0xff]  }
 0xca3   :  { %11477 = vmatprep.mubr.msk.bf16.mxu1 %vm14440_vm1, %v14439_v1 }
 0xcab   :  { %v12643_v45 = vpop.eup %12642 }
 0xcac   :  { %v2980_v49 = vrot.slane %v12643_v45, %v15180_v11  ;;  %v12229_v45 = vld [vmem:[#allocation54 + $0x40] sm:$0xff]  }
 0xcae   :  { %v2981_v52 = vmul.f32 %v2980_v49, %v2973_v48  ;;  %v2982_v23 = vmul.f32 %v2980_v49, %v2974_v20  ;;  %v12230_v48 = vld [vmem:[#allocation54] sm:$0xff]   ;;  %v15410_v20 = vld [vmem:[#allocation2] ss:$20 sps:$4 sm:$0x3f]  }
 0xcaf   :  { %v12231_v49 = vld [vmem:[#allocation63 + $0x78] sm:$0xff]  }
 0xcb0   :  { %v2989_v55 = vmul.f32 %v9994_v50, %v2981_v52  ;;  %v2990_v56 = vmul.f32 %v9994_v50, %v2982_v23  ;;  %v12232_v50 = vld [vmem:[#allocation63 + $0x38] sm:$0xff]   ;;  %v12233_v52 = vld [vmem:[#allocation63 + $0x70] sm:$0xff]  }
 0xcb1   :  { %v12234_v23 = vld [vmem:[#allocation63 + $0x30] sm:$0xff]  }
 0xcb2   :  { %v2997_v57 = vadd.f32 %v9995_v54, %v2989_v55  ;;  %v2998_v58 = vadd.f32 %v9995_v54, %v2990_v56  ;;  %v12235_v54 = vld [vmem:[#allocation63 + $0x68] sm:$0xff]   ;;  %v12237_v56 = vld [vmem:[#allocation63 + $0x60] sm:$0xff]  }
 0xcb3   :  { %v12236_v55 = vld [vmem:[#allocation63 + $0x28] sm:$0xff]  }
 0xcb4   :  { %v2999_v59 = vmax.f32 %v2997_v57, 0.0  ;;  %v3000_v60 = vmax.f32 %v2998_v58, 0.0  ;;  %v12238_v57 = vld [vmem:[#allocation63 + $0x20] sm:$0xff]   ;;  %v12239_v58 = vld [vmem:[#allocation63 + $0x58] sm:$0xff]  }
 0xcb5   :  { %v3163_v63 = vpop.f32.mrf.mxu0 }
 0xcb6   :  { %v10513_v2 = vpack.c.bf16 %v2999_v59, %v2999_v59  ;;  %v10514_v3 = vpack.c.bf16 %v3000_v60, %v3000_v60  ;;  %v12240_v59 = vld [vmem:[#allocation63 + $0x18] sm:$0xff]   ;;  %v12241_v60 = vld [vmem:[#allocation63 + $0x50] sm:$0xff]  }
 0xcb7   :  { %v11447_v4 = vpop.f32.mrf.mxu0 }
 0xcb8   :  { %3406 = vst [vmem:[#allocation2 + $0x4] sm:$0xf] %v10513_v2  ;;  %v3408_v51 = vsel %vm15186_vm10, %v10514_v3, %v3407_v61  ;;  %v12242_v61 = vld [vmem:[#allocation63 + $0x10] sm:$0xff]   ;;  %v12244_v2 = vld [vmem:[#allocation63 + $0x8] sm:$0xff]   ;;  %v12245_v3 = vld [vmem:[#allocation63 + $0x40] sm:$0xff]  }
 0xcb9   :  { %3409 = vst [vmem:[#allocation2 + $0x18] sm:$0x3] %v3408_v51  ;;  %v3166_v53 = vpop.f32.mrf.mxu0  ;;  %v12246_v4 = vld [vmem:[#allocation63] sm:$0xff]   ;;  %v12250_v51 = vld [vmem:[#allocation60 + $0x78] sm:$0xff]  }
 0xcbb   :  { %v11448_v5 = vpop.f32.mrf.mxu0 }
 0xcc0   :  { %v15403_v30 = vld [vmem:[#allocation2 + $0x4] ss:$20 sps:$4 sm:$0x3f]  }
 0xd62   :  { %v3253_v7 = vpop.f32.mrf.mxu1 }
 0xd63   :  { %v3260_v8 = vsub.f32 %v3163_v63, %v3253_v7  ;;  %v12243_v63 = vld [vmem:[#allocation63 + $0x48] sm:$0xff]  }
 0xd64   :  { %v11467_v9 = vpop.f32.mrf.mxu1 }
 0xd65   :  { %v15391_v12 = vadd.f32 %v10013_v47, %v3260_v8 }
 0xd66   :  { %v3256_v10 = vpop.f32.mrf.mxu1 }
 0xd67   :  { %v3261_v14 = vsub.f32 %v3166_v53, %v3256_v10  ;;  %v3314_v17 = vmul.f32 %v15391_v12, %v15391_v12 }
 0xd68   :  { %v11468_v15 = vpop.f32.mrf.mxu1 }
 0xd69   :  { %v15393_v16 = vadd.f32 %v10013_v47, %v3261_v14 }
 0xd6b   :  { %v3270_v18 = vpack.c.bf16 %v15393_v16, %v15391_v12  ;;  %v3315_v19 = vmul.f32 %v15393_v16, %v15393_v16 }
 0xd6d   :  { %v3316_v22 = vpack.c.bf16 %v3315_v19, %v3314_v17  ;;  %v3272_v24 = vand.u32 %v3270_v18, %v15148_v41 }
 0xd6f   :  { %11470 = vmatpush3.bf16.msra.mxu0 %v3272_v24  ;;  %v3318_v25 = vand.u32 %v3316_v22, %v15148_v41 }
 0xd70   :  { %10639 = vmatprep.subr.bf16.mxu0 %v12212_v21 }
 0xd71   :  { %11476 = vmatpush3.bf16.msra.mxu1 %v3318_v25 }
 0xd72   :  { %11472 = vmatmul.mubr.msk.bf16.vlgmr.msra.gmra.mxu0 %vm1688_vm6, %v14442_v46  ;;  %10661 = vmatprep.subr.bf16.mxu1 %v12231_v49 }
 0xd73   :  { %10640 = vmatpush3.bf16.msra.mxu0 %v12213_v28  ;;  %3701 = vmatprep.mubr.bf16.mxu0 %v15403_v30 }
 0xd74   :  { %11478 = vmatmul.mubr.msk.bf16.vlgmr.msra.gmra.mxu1 %vm1688_vm6, %v14442_v46  ;;  %10641 = vmatprep.subr.bf16.mxu0 %v12217_v29 }
 0xd75   :  { %10662 = vmatpush3.bf16.msra.mxu1 %v12232_v50 }
 0xd76   :  { %10663 = vmatprep.subr.bf16.mxu1 %v12233_v52  ;;  %v12251_v52 = vld [vmem:[#allocation60 + $0x38] sm:$0xff]  }
 0xd77   :  { %10642 = vmatpush3.bf16.msra.mxu0 %v12218_v31 }
 0xd78   :  { %10643 = vmatprep.subr.bf16.mxu0 %v12219_v32  ;;  %v10016_v32 = vld [vmem:[#allocation51] ss:$0 sm:$0xff] }
 0xd79   :  { %10664 = vmatpush3.bf16.msra.mxu1 %v12234_v23  ;;  %v12252_v23 = vld [vmem:[#allocation60 + $0x70] sm:$0xff]  }
 0xd7a   :  { %10665 = vmatprep.subr.bf16.mxu1 %v12235_v54  ;;  %v12253_v54 = vld [vmem:[#allocation60 + $0x30] sm:$0xff]  }
 0xd7b   :  { %10644 = vmatpush3.bf16.msra.mxu0 %v12220_v34 }
 0xd7c   :  { %10645 = vmatprep.subr.bf16.mxu0 %v12221_v35 }
 0xd7d   :  { %10666 = vmatpush3.bf16.msra.mxu1 %v12236_v55  ;;  %v12254_v55 = vld [vmem:[#allocation60 + $0x68] sm:$0xff]  }
 0xd7e   :  { %10667 = vmatprep.subr.bf16.mxu1 %v12237_v56  ;;  %v12255_v56 = vld [vmem:[#allocation60 + $0x28] sm:$0xff]  }
 0xd7f   :  { %10646 = vmatpush3.bf16.msra.mxu0 %v12222_v36  ;;  %v10017_v36 = vld [vmem:[#allocation52] ss:$0 sm:$0xff] }
 0xd80   :  { %10647 = vmatprep.subr.bf16.mxu0 %v12223_v62 }
 0xd81   :  { %10668 = vmatpush3.bf16.msra.mxu1 %v12238_v57  ;;  %v12256_v57 = vld [vmem:[#allocation60 + $0x60] sm:$0xff]  }
 0xd82   :  { %10669 = vmatprep.subr.bf16.mxu1 %v12239_v58  ;;  %v12257_v58 = vld [vmem:[#allocation60 + $0x20] sm:$0xff]  }
 0xd83   :  { %10648 = vmatpush3.bf16.msra.mxu0 %v12224_v37 }
 0xd84   :  { %10649 = vmatprep.subr.bf16.mxu0 %v12225_v39 }
 0xd85   :  { %10670 = vmatpush3.bf16.msra.mxu1 %v12240_v59  ;;  %v12258_v59 = vld [vmem:[#allocation60 + $0x58] sm:$0xff]  }
 0xd86   :  { %10671 = vmatprep.subr.bf16.mxu1 %v12241_v60  ;;  %v12259_v60 = vld [vmem:[#allocation60 + $0x18] sm:$0xff]  }
 0xd87   :  { %10650 = vmatpush3.bf16.msra.mxu0 %v12226_v40 }
 0xd88   :  { %10651 = vmatprep.subr.bf16.mxu0 %v12227_v43 }
 0xd89   :  { %10672 = vmatpush3.bf16.msra.mxu1 %v12242_v61  ;;  %v12260_v61 = vld [vmem:[#allocation60 + $0x50] sm:$0xff]  }
 0xd8a   :  { %10673 = vmatprep.subr.bf16.mxu1 %v12243_v63  ;;  %v12261_v63 = vld [vmem:[#allocation60 + $0x10] sm:$0xff]  }
 0xd8b   :  { %10652 = vmatpush3.bf16.msra.mxu0 %v12228_v44 }
 0xd8c   :  { %10653 = vmatprep.subr.bf16.mxu0 %v12229_v45  ;;  %v3418_v45 = vld [vmem:[#allocation3 + $0x18] sm:$0x7] }
 0xd8d   :  { %10674 = vmatpush3.bf16.msra.mxu1 %v12244_v2  ;;  %v12262_v2 = vld [vmem:[#allocation60 + $0x48] sm:$0xff]  }
 0xd8e   :  { %10675 = vmatprep.subr.bf16.mxu1 %v12245_v3  ;;  %v12263_v3 = vld [vmem:[#allocation60 + $0x8] sm:$0xff]  }
 0xd8f   :  { %10654 = vmatpush3.bf16.msra.mxu0 %v12230_v48 }
 0xd90   :  { %11481 = vmatprep.subr.bf16.mxu0 %v14439_v1 }
 0xd91   :  { %10676 = vmatpush3.bf16.msra.mxu1 %v12246_v4  ;;  %v12264_v4 = vld [vmem:[#allocation60 + $0x40] sm:$0xff]  }
 0xd92   :  { %3702 = vmatmul.mubr.bf16.vlgmr.msra.gmra.mxu0 %v15410_v20  ;;  %10685 = vmatprep.subr.bf16.mxu1 %v12250_v51  ;;  %v12265_v51 = vld [vmem:[#allocation60] sm:$0xff]  }
 0xd93   :  { %11483 = vmatprep.mubr.msk.bf16.mxu0 %vm14440_vm1, %v14439_v1 }
 0xe32   :  { %v3308_v53 = vpop.f32.mrf.mxu0 }
 0xe33   :  { %v3360_v5 = vmul.f32 0.07692308, %v3308_v53 }
 0xe34   :  { %v11473_v7 = vpop.f32.mrf.mxu0  ;;  %v3354_v8 = vpop.f32.mrf.mxu1 }
 0xe35   :  { %v3362_v47 = vmul.f32 %v3360_v5, %v3360_v5  ;;  %v3361_v9 = vmul.f32 0.07692308, %v3354_v8  ;;  %v3368_v24 = vrot.slane %v3360_v5, %v15180_v11 }
 0xe36   :  { %v3311_v10 = vpop.f32.mrf.mxu0  ;;  %v11479_v14 = vpop.f32.mrf.mxu1 }
 0xe37   :  { %v3363_v15 = vsub.f32 %v3361_v9, %v3362_v47  ;;  %v3369_v28 = vsub.f32 %v15391_v12, %v3368_v24  ;;  %v3370_v29 = vsub.f32 %v15393_v16, %v3368_v24  ;;  %v12247_v16 = vld [vmem:[#allocation3] ss:$20 sps:$4 sm:$0x7f]   ;;  %v10041_v47 = vld [vmem:[#allocation64] ss:$0 sm:$0xff] }
 0xe38   :  { %v11474_v17 = vpop.f32.mrf.mxu0  ;;  %v3357_v18 = vpop.f32.mrf.mxu1  ;;  %v12269_v24 = vld [vmem:[#allocation57 + $0x30] sm:$0xff]  }
 0xe39   :  { %v3364_v19 = vmax.f32 %v3363_v15, 0.0  ;;  %v12266_v18 = vld [vmem:[#allocation57 + $0x78] sm:$0xff]  }
 0xe3a   :  { %v11480_v21 = vpop.f32.mrf.mxu1 }
 0xe3b   :  { %v3371_v22 = vadd.f32 1e-05, %v3364_v19  ;;  %v12267_v21 = vld [vmem:[#allocation57 + $0x38] sm:$0xff]  }
 0xe3d   :  { %12644 = vrsqrt.f32 %v3371_v22  ;;  %v12268_v22 = vld [vmem:[#allocation57 + $0x70] sm:$0xff]  }
 0xe4a   :  { %v12645_v25 = vpop.eup %12644 }
 0xe4b   :  { %v3376_v31 = vrot.slane %v12645_v25, %v15180_v11  ;;  %v12270_v25 = vld [vmem:[#allocation57 + $0x68] sm:$0xff]  }
 0xe4d   :  { %v3377_v34 = vmul.f32 %v3376_v31, %v3369_v28  ;;  %v3378_v35 = vmul.f32 %v3376_v31, %v3370_v29  ;;  %v12271_v28 = vld [vmem:[#allocation57 + $0x28] sm:$0xff]   ;;  %v12272_v29 = vld [vmem:[#allocation57 + $0x60] sm:$0xff]  }
 0xe4e   :  { %v12273_v31 = vld [vmem:[#allocation57 + $0x20] sm:$0xff]  }
 0xe4f   :  { %v3385_v62 = vmul.f32 %v10016_v32, %v3377_v34  ;;  %v3386_v37 = vmul.f32 %v10016_v32, %v3378_v35  ;;  %v12274_v32 = vld [vmem:[#allocation57 + $0x58] sm:$0xff]  }
 0xe50   :  { %v12275_v34 = vld [vmem:[#allocation57 + $0x18] sm:$0xff]  }
 0xe51   :  { %v3393_v39 = vadd.f32 %v10017_v36, %v3385_v62  ;;  %v3394_v40 = vadd.f32 %v10017_v36, %v3386_v37  ;;  %v12276_v36 = vld [vmem:[#allocation57 + $0x50] sm:$0xff]   ;;  %v12278_v37 = vld [vmem:[#allocation57 + $0x48] sm:$0xff]  }
 0xe53   :  { %v3395_v43 = vmax.f32 %v3393_v39, 0.0  ;;  %v3396_v44 = vmax.f32 %v3394_v40, 0.0  ;;  %v12279_v39 = vld [vmem:[#allocation57 + $0x8] sm:$0xff]   ;;  %v12280_v40 = vld [vmem:[#allocation57 + $0x40] sm:$0xff]  }
 0xe55   :  { %v10515_v48 = vpack.c.bf16 %v3395_v43, %v3395_v43  ;;  %v10516_v49 = vpack.c.bf16 %v3396_v44, %v3396_v44  ;;  %v12281_v43 = vld [vmem:[#allocation57] sm:$0xff]   ;;  %v10655_v44 = vpop.f32.mrf.mxu0 }
 0xe57   :  { %3417 = vst [vmem:[#allocation3 + $0x4] sm:$0xf] %v10515_v48  ;;  %v3419_v12 = vsel %vm15241_vm13, %v10516_v49, %v3418_v45  ;;  %v10656_v45 = vpop.f32.mrf.mxu0 }
 0xe58   :  { %3420 = vst [vmem:[#allocation3 + $0x18] sm:$0x7] %v3419_v12  ;;  %v10657_v12 = vadd.f32 %v10656_v45, %v10655_v44  ;;  %v10061_v44 = vld [vmem:[#allocation61] ss:$0 sm:$0xff] }
 0xe59   :  { %v10658_v48 = vpop.f32.mrf.mxu0 }
 0xe5b   :  { %v10659_v49 = vpop.f32.mrf.mxu0 }
 0xe5f   :  { %v12249_v50 = vld [vmem:[#allocation3 + $0x4] ss:$20 sps:$4 sm:$0x7f]  }
 0xe60   :  { %3854 = vmatprep.mubr.bf16.mxu1 %v12249_v50 }
 0xe61   :  { %3855 = vmatmul.mubr.bf16.vlgmr.msra.gmra.mxu1 %v12247_v16 }
 0xe62   :  { %10686 = vmatpush3.bf16.msra.mxu1 %v12251_v52  ;;  %4048 = vmatprep.mubr.bf16.mxu1 %v12249_v50  ;;  %v10660_v52 = vadd.f32 %v10659_v49, %v10658_v48 }
 0xe63   :  { %10687 = vmatprep.subr.bf16.mxu1 %v12252_v23 }
 0xe66   :  { %10688 = vmatpush3.bf16.msra.mxu1 %v12253_v54 }
 0xe67   :  { %10689 = vmatprep.subr.bf16.mxu1 %v12254_v55 }
 0xe6a   :  { %10690 = vmatpush3.bf16.msra.mxu1 %v12255_v56 }
 0xe6b   :  { %10691 = vmatprep.subr.bf16.mxu1 %v12256_v57 }
 0xe6e   :  { %10692 = vmatpush3.bf16.msra.mxu1 %v12257_v58 }
 0xe6f   :  { %10693 = vmatprep.subr.bf16.mxu1 %v12258_v59 }
 0xe72   :  { %10694 = vmatpush3.bf16.msra.mxu1 %v12259_v60 }
 0xe73   :  { %10695 = vmatprep.subr.bf16.mxu1 %v12260_v61 }
 0xe76   :  { %10696 = vmatpush3.bf16.msra.mxu1 %v12261_v63 }
 0xe77   :  { %10697 = vmatprep.subr.bf16.mxu1 %v12262_v2 }
 0xe7a   :  { %10698 = vmatpush3.bf16.msra.mxu1 %v12263_v3 }
 0xe7b   :  { %10699 = vmatprep.subr.bf16.mxu1 %v12264_v4  ;;  %v12290_v4 = vld [vmem:[#allocation67 + $0x38] sm:$0xff]  }
 0xe7e   :  { %10700 = vmatpush3.bf16.msra.mxu1 %v12265_v51  ;;  %v12291_v51 = vld [vmem:[#allocation67 + $0x30] sm:$0xff]  }
 0xe7f   :  { %11487 = vmatprep.subr.bf16.mxu1 %v14439_v1 }
 0xe81   :  { %4049 = vmatmul.mubr.bf16.vlgmr.msra.gmra.mxu1 %v12247_v16  ;;  %v10022_v16 = vld [vmem:[#allocation55] ss:$0 sm:$0xff] }
 0xe82   :  { %11489 = vmatprep.mubr.msk.bf16.mxu1 %vm14440_vm1, %v14439_v1  ;;  %v3704_v55 = vadd.f32 %v10657_v12, %v10022_v16  ;;  %v3707_v57 = vadd.f32 %v10660_v52, %v10022_v16 }
 0xf21   :  { %v10677_v53 = vpop.f32.mrf.mxu1 }
 0xf23   :  { %v10678_v5 = vpop.f32.mrf.mxu1 }
 0xf24   :  { %v10679_v8 = vadd.f32 %v10678_v5, %v10677_v53  ;;  %v12292_v53 = vld [vmem:[#allocation67 + $0x28] sm:$0xff]   ;;  %v12293_v5 = vld [vmem:[#allocation67 + $0x20] sm:$0xff]  }
 0xf25   :  { %v10680_v7 = vpop.f32.mrf.mxu1 }
 0xf26   :  { %v3857_v14 = vadd.f32 %v10679_v8, %v10041_v47 }
 0xf27   :  { %v10681_v9 = vpop.f32.mrf.mxu1 }
 0xf28   :  { %v10682_v10 = vadd.f32 %v10681_v9, %v10680_v7  ;;  %v12294_v7 = vld [vmem:[#allocation67 + $0x18] sm:$0xff]  }
 0xf2a   :  { %v3860_v15 = vadd.f32 %v10682_v10, %v10041_v47  ;;  %v12295_v47 = vld [vmem:[#allocation67 + $0x10] sm:$0xff]  }
 0xf2c   :  { %v3863_v17 = vpack.c.bf16 %v3860_v15, %v3857_v14  ;;  %v10078_v14 = vld [vmem:[#allocation58] ss:$0 sm:$0xff] }
 0xf2e   :  { %v3865_v19 = vand.u32 %v3863_v17, %v15148_v41 }
 0xf30   :  { %11482 = vmatpush3.bf16.msra.mxu0 %v3865_v19 }
 0xf31   :  { %10707 = vmatprep.subr.bf16.mxu0 %v12266_v18 }
 0xf33   :  { %11484 = vmatmul.mubr.msk.bf16.vlgmr.msra.gmra.mxu0 %vm1688_vm6, %v15264_v13 }
 0xf34   :  { %10708 = vmatpush3.bf16.msra.mxu0 %v12267_v21  ;;  %4191 = vmatprep.mubr.bf16.mxu0 %v15403_v30  ;;  %v12277_v30 = vld [vmem:[#allocation57 + $0x10] sm:$0xff]  }
 0xf35   :  { %10709 = vmatprep.subr.bf16.mxu0 %v12268_v22 }
 0xf38   :  { %10710 = vmatpush3.bf16.msra.mxu0 %v12269_v24  ;;  %v12282_v24 = vld [vmem:[#allocation66 + $0x38] sm:$0xff]  }
 0xf39   :  { %10711 = vmatprep.subr.bf16.mxu0 %v12270_v25  ;;  %v12283_v25 = vld [vmem:[#allocation66 + $0x30] sm:$0xff]  }
 0xf3c   :  { %10712 = vmatpush3.bf16.msra.mxu0 %v12271_v28  ;;  %v12284_v28 = vld [vmem:[#allocation66 + $0x28] sm:$0xff]  }
 0xf3d   :  { %10713 = vmatprep.subr.bf16.mxu0 %v12272_v29  ;;  %v12285_v29 = vld [vmem:[#allocation66 + $0x20] sm:$0xff]  }
 0xf40   :  { %10714 = vmatpush3.bf16.msra.mxu0 %v12273_v31  ;;  %v12286_v31 = vld [vmem:[#allocation66 + $0x18] sm:$0xff]  }
 0xf41   :  { %v10701_v35 = vpop.f32.mrf.mxu1  ;;  %10715 = vmatprep.subr.bf16.mxu0 %v12274_v32  ;;  %v12288_v32 = vld [vmem:[#allocation66 + $0x8] sm:$0xff]  }
 0xf43   :  { %v10702_v13 = vpop.f32.mrf.mxu1 }
 0xf44   :  { %v15429_v62 = vadd.f32 %v10702_v13, %v10701_v35  ;;  %10716 = vmatpush3.bf16.msra.mxu0 %v12275_v34  ;;  %v12289_v34 = vld [vmem:[#allocation66] sm:$0xff]   ;;  %v12296_v35 = vld [vmem:[#allocation67 + $0x8] sm:$0xff]  }
 0xf45   :  { %10717 = vmatprep.subr.bf16.mxu0 %v12276_v36  ;;  %v12297_v36 = vld [vmem:[#allocation67] sm:$0xff]  }
 0xf46   :  { %v4051_v49 = vadd.f32 %v15429_v62, %v10061_v44  ;;  %v10113_v62 = vld [vmem:[#allocation69] ss:$0 sm:$0xff] }
 0xf48   :  { %10718 = vmatpush3.bf16.msra.mxu0 %v12277_v30 }
 0xf49   :  { %10719 = vmatprep.subr.bf16.mxu0 %v12278_v37 }
 0xf4c   :  { %10720 = vmatpush3.bf16.msra.mxu0 %v12279_v39 }
 0xf4d   :  { %10721 = vmatprep.subr.bf16.mxu0 %v12280_v40 }
 0xf50   :  { %10722 = vmatpush3.bf16.msra.mxu0 %v12281_v43  ;;  %v10704_v43 = vpop.f32.mrf.mxu1 }
 0xf51   :  { %11493 = vmatprep.subr.bf16.mxu0 %v14439_v1 }
 0xf52   :  { %v10705_v45 = vpop.f32.mrf.mxu1 }
 0xf53   :  { %4192 = vmatmul.mubr.bf16.vlgmr.msra.gmra.mxu0 %v15410_v20  ;;  %v10706_v12 = vadd.f32 %v10705_v45, %v10704_v43 }
 0xf54   :  { %11495 = vmatprep.mubr.msk.bf16.mxu0 %vm14440_vm1, %v14439_v1 }
 0xff3   :  { %v3901_v50 = vpop.f32.mrf.mxu0 }
 0xff4   :  { %v3908_v23 = vmul.f32 %v3901_v50, %v15286_v26 }
 0xff5   :  { %v11485_v54 = vpop.f32.mrf.mxu0 }
 0xff6   :  { %v3910_v58 = vadd.f32 %v3908_v23, %v3704_v55  ;;  %v4054_v54 = vadd.f32 %v10706_v12, %v10061_v44 }
 0xff7   :  { %v3904_v56 = vpop.f32.mrf.mxu0 }
 0xff8   :  { %v3909_v20 = vmul.f32 %v3904_v56, %v15290_v33  ;;  %v3912_v61 = vmax.f32 %v3910_v58, 0.0 }
 0xff9   :  { %v11486_v59 = vpop.f32.mrf.mxu0 }
 0xffa   :  { %v3911_v60 = vadd.f32 %v3909_v20, %v3707_v57 }
 0xffc   :  { %v3913_v63 = vmax.f32 %v3911_v60, 0.0 }
 0xffe   :  { %v15437_v2 = vpack.c.bf16 %v3913_v63, %v3912_v61 }
0x1000   :  { %v4288_v3 = vand.u32 %v15437_v2, %v15117_v6 }
0x1002   :  { %11494 = vmatpush3.bf16.msra.mxu0 %v4288_v3 }
0x1003   :  { %11519 = vmatprep.subr.bf16.mxu0 %v14439_v1 }
0x1005   :  { %11496 = vmatmul.mubr.msk.bf16.vlgmr.msra.gmra.mxu0 %vm1364_vm3, %v15297_v38 }
0x1006   :  { %11520 = vmatpush3.bf16.msra.mxu0 %v12290_v4  ;;  %11535 = vmatprep.mubr.msk.bf16.mxu0 %vm14440_vm1, %v14439_v1 }
0x1007   :  { %11521 = vmatprep.subr.bf16.mxu0 %v14439_v1 }
0x100a   :  { %11522 = vmatpush3.bf16.msra.mxu0 %v12291_v51 }
0x100b   :  { %11523 = vmatprep.subr.bf16.mxu0 %v14439_v1 }
0x100e   :  { %11524 = vmatpush3.bf16.msra.mxu0 %v12292_v53 }
0x100f   :  { %11525 = vmatprep.subr.bf16.mxu0 %v14439_v1 }
0x1012   :  { %11526 = vmatpush3.bf16.msra.mxu0 %v12293_v5 }
0x1013   :  { %v10723_v8 = vpop.f32.mrf.mxu0  ;;  %11527 = vmatprep.subr.bf16.mxu0 %v14439_v1 }
0x1015   :  { %v10724_v38 = vpop.f32.mrf.mxu0 }
0x1016   :  { %11528 = vmatpush3.bf16.msra.mxu0 %v12294_v7  ;;  %v10725_v10 = vadd.f32 %v10724_v38, %v10723_v8 }
0x1017   :  { %v10726_v9 = vpop.f32.mrf.mxu0  ;;  %11529 = vmatprep.subr.bf16.mxu0 %v14439_v1 }
0x1018   :  { %v4194_v18 = vadd.f32 %v10725_v10, %v10078_v14 }
0x1019   :  { %v10727_v15 = vpop.f32.mrf.mxu0 }
0x101a   :  { %v10728_v17 = vadd.f32 %v10727_v15, %v10726_v9  ;;  %11530 = vmatpush3.bf16.msra.mxu0 %v12295_v47 }
0x101b   :  { %11531 = vmatprep.subr.bf16.mxu0 %v14439_v1 }
0x101c   :  { %v4197_v19 = vadd.f32 %v10728_v17, %v10078_v14 }
0x101e   :  { %v4200_v21 = vpack.c.bf16 %v4197_v19, %v4194_v18  ;;  %11532 = vmatpush3.bf16.msra.mxu0 %v12296_v35  ;;  %v12298_v19 = vld [vmem:[#allocation73 + $0x38] sm:$0xff]   ;;  %v12304_v35 = vld [vmem:[#allocation73 + $0x8] sm:$0xff]  }
0x101f   :  { %11533 = vmatprep.subr.bf16.mxu0 %v14439_v1 }
0x1020   :  { %v4202_v22 = vand.u32 %v4200_v21, %v15117_v6  ;;  %v12299_v21 = vld [vmem:[#allocation73 + $0x30] sm:$0xff]  }
0x1022   :  { %11488 = vmatpush3.bf16.msra.mxu1 %v4202_v22  ;;  %11534 = vmatpush3.bf16.msra.mxu0 %v12297_v36  ;;  %v12306_v22 = vld [vmem:[#allocation75 + $0x38] sm:$0xff]   ;;  %v12305_v36 = vld [vmem:[#allocation73] sm:$0xff]  }
0x1023   :  { %11499 = vmatprep.subr.bf16.mxu1 %v14439_v1  ;;  %11545 = vmatprep.subr.bf16.mxu0 %v14439_v1 }
0x1025   :  { %11490 = vmatmul.mubr.msk.bf16.vlgmr.msra.gmra.mxu1 %vm1364_vm3, %v15310_v0  ;;  %v12287_v0 = vld [vmem:[#allocation66 + $0x10] sm:$0xff]  }
0x1026   :  { %11500 = vmatpush3.bf16.msra.mxu1 %v12282_v24  ;;  %11515 = vmatprep.mubr.msk.bf16.mxu1 %vm14440_vm1, %v14439_v1  ;;  %v12300_v24 = vld [vmem:[#allocation73 + $0x28] sm:$0xff]  }
0x1027   :  { %11501 = vmatprep.subr.bf16.mxu1 %v14439_v1 }
0x102a   :  { %11502 = vmatpush3.bf16.msra.mxu1 %v12283_v25  ;;  %v12659_v25 = vld [vmem:[#allocation7] sm:$0x7f]  }
0x102b   :  { %11503 = vmatprep.subr.bf16.mxu1 %v14439_v1 }
0x102e   :  { %11504 = vmatpush3.bf16.msra.mxu1 %v12284_v28  ;;  %v12307_v28 = vld [vmem:[#allocation75 + $0x30] sm:$0xff]  }
0x102f   :  { %11505 = vmatprep.subr.bf16.mxu1 %v14439_v1 }
0x1032   :  { %11506 = vmatpush3.bf16.msra.mxu1 %v12285_v29  ;;  %v12301_v29 = vld [vmem:[#allocation73 + $0x20] sm:$0xff]  }
0x1033   :  { %11507 = vmatprep.subr.bf16.mxu1 %v14439_v1 }
0x1036   :  { %11508 = vmatpush3.bf16.msra.mxu1 %v12286_v31  ;;  %v12308_v31 = vld [vmem:[#allocation75 + $0x28] sm:$0xff]  }
0x1037   :  { %11509 = vmatprep.subr.bf16.mxu1 %v14439_v1 }
0x103a   :  { %11510 = vmatpush3.bf16.msra.mxu1 %v12287_v0  ;;  %v12302_v0 = vld [vmem:[#allocation73 + $0x18] sm:$0xff]  }
0x103b   :  { %11511 = vmatprep.subr.bf16.mxu1 %v14439_v1 }
0x103e   :  { %11512 = vmatpush3.bf16.msra.mxu1 %v12288_v32  ;;  %v12309_v32 = vld [vmem:[#allocation75 + $0x20] sm:$0xff]  }
0x103f   :  { %11513 = vmatprep.subr.bf16.mxu1 %v14439_v1 }
0x1042   :  { %11514 = vmatpush3.bf16.msra.mxu1 %v12289_v34  ;;  %v12303_v34 = vld [vmem:[#allocation73 + $0x10] sm:$0xff]  }
0x1043   :  { %11539 = vmatprep.subr.bf16.mxu1 %v14439_v1 }
0x1045   :  { %11516 = vmatmul.mubr.bf16.vlgmr.msra.gmra.mxu1 %v15437_v2 }
0x1046   :  { %11541 = vmatprep.mubr.msk.bf16.mxu1 %vm14440_vm1, %v14439_v1 }
0x10c5   :  { %v4324_v13 = vpop.f32.mrf.mxu0 }
0x10c7   :  { %v11497_v30 = vpop.f32.mrf.mxu0 }
0x10c8   :  { %v12311_v30 = vld [vmem:[#allocation75 + $0x10] sm:$0xff]  }
0x10c9   :  { %v4327_v37 = vpop.f32.mrf.mxu0 }
0x10ca   :  { %v4420_v39 = vpack.c.bf16 %v4327_v37, %v4324_v13  ;;  %v12310_v13 = vld [vmem:[#allocation75 + $0x18] sm:$0xff]   ;;  %v12312_v37 = vld [vmem:[#allocation75 + $0x8] sm:$0xff]  }
0x10cb   :  { %v11498_v40 = vpop.f32.mrf.mxu0 }
0x10cc   :  { %11536 = vmatmul.mubr.bf16.vlgmr.msra.gmra.mxu0 %v4420_v39  ;;  %v12313_v39 = vld [vmem:[#allocation75] sm:$0xff]  }
0x10cd   :  { %11547 = vmatprep.mubr.msk.bf16.mxu0 %vm14440_vm1, %v14439_v1 }
0x10e5   :  { %v4238_v48 = vpop.f32.mrf.mxu1 }
0x10e6   :  { %v4245_v16 = vmul.f32 0.5, %v4238_v48 }
0x10e7   :  { %v11491_v50 = vpop.f32.mrf.mxu1 }
0x10e8   :  { %v4247_v52 = vadd.f32 %v4245_v16, %v4051_v49 }
0x10e9   :  { %v4241_v23 = vpop.f32.mrf.mxu1 }
0x10ea   :  { %v4246_v55 = vmul.f32 0.5, %v4241_v23  ;;  %v4249_v58 = vmax.f32 %v4247_v52, 0.0 }
0x10eb   :  { %v11492_v56 = vpop.f32.mrf.mxu1 }
0x10ec   :  { %v4248_v57 = vadd.f32 %v4246_v55, %v4054_v54 }
0x10ee   :  { %v4250_v20 = vmax.f32 %v4248_v57, 0.0 }
0x10f0   :  { %v15474_v59 = vpack.c.bf16 %v4250_v20, %v4249_v58 }
0x10f2   :  { %v4684_v18 = vand.u32 %v15474_v59, %v15148_v41 }
0x1105   :  { %v4413_v60 = vpop.f32.mrf.mxu1 }
0x1107   :  { %v11517_v61 = vpop.f32.mrf.mxu1 }
0x1109   :  { %v4416_v63 = vpop.f32.mrf.mxu1 }
0x110b   :  { %v11518_v2 = vpop.f32.mrf.mxu1 }
0x118c   :  { %v4503_v3 = vpop.f32.mrf.mxu0 }
0x118d   :  { %v4510_v4 = vsub.f32 %v4413_v60, %v4503_v3 }
0x118e   :  { %v11537_v51 = vpop.f32.mrf.mxu0 }
0x118f   :  { %v15476_v5 = vadd.f32 %v10113_v62, %v4510_v4 }
0x1190   :  { %v4506_v53 = vpop.f32.mrf.mxu0 }
0x1191   :  { %v4511_v7 = vsub.f32 %v4416_v63, %v4506_v53  ;;  %v4564_v47 = vmul.f32 %v15476_v5, %v15476_v5 }
0x1192   :  { %v11538_v8 = vpop.f32.mrf.mxu0 }
0x1193   :  { %v15478_v38 = vadd.f32 %v10113_v62, %v4511_v7  ;;  %v10116_v62 = vld [vmem:[#allocation70] ss:$0 sm:$0xff]  ;;  %v10117_v7 = vld [vmem:[#allocation72] ss:$0 sm:$0xff] }
0x1195   :  { %v4520_v9 = vpack.c.bf16 %v15478_v38, %v15476_v5  ;;  %v4565_v10 = vmul.f32 %v15478_v38, %v15478_v38 }
0x1197   :  { %v4566_v14 = vpack.c.bf16 %v4565_v10, %v4564_v47  ;;  %v4522_v15 = vand.u32 %v4520_v9, %v15117_v6 }
0x1199   :  { %11540 = vmatpush3.bf16.msra.mxu1 %v4522_v15  ;;  %v4568_v17 = vand.u32 %v4566_v14, %v15117_v6 }
0x119a   :  { %11551 = vmatprep.subr.bf16.mxu1 %v14439_v1 }
0x119b   :  { %11546 = vmatpush3.bf16.msra.mxu0 %v4568_v17  ;;  %v5053_v17 = vld [vmem:[#allocation2 + $0x1c] sm:$0x3] }
0x119c   :  { %11542 = vmatmul.mubr.msk.bf16.vlgmr.msra.gmra.mxu1 %vm1364_vm3, %v14442_v46  ;;  %11557 = vmatprep.subr.bf16.mxu0 %v14439_v1 }
0x119d   :  { %11552 = vmatpush3.bf16.msra.mxu1 %v4684_v18  ;;  %11553 = vmatprep.mubr.msk.bf16.mxu1 %vm14440_vm1, %v14439_v1 }
0x119e   :  { %11548 = vmatmul.mubr.msk.bf16.vlgmr.msra.gmra.mxu0 %vm1364_vm3, %v14442_v46  ;;  %11577 = vmatprep.subr.bf16.mxu1 %v14439_v1 }
0x119f   :  { %11558 = vmatpush3.bf16.msra.mxu0 %v12298_v19  ;;  %11573 = vmatprep.mubr.msk.bf16.mxu0 %vm14440_vm1, %v14439_v1 }
0x11a0   :  { %11559 = vmatprep.subr.bf16.mxu0 %v14439_v1 }
0x11a3   :  { %11560 = vmatpush3.bf16.msra.mxu0 %v12299_v21 }
0x11a4   :  { %11554 = vmatmul.mubr.msk.bf16.vlgmr.msra.gmra.mxu1 %vm1688_vm6, %v12659_v25  ;;  %11561 = vmatprep.subr.bf16.mxu0 %v14439_v1 }
0x11a5   :  { %11578 = vmatpush3.bf16.msra.mxu1 %v12306_v22  ;;  %11593 = vmatprep.mubr.msk.bf16.mxu1 %vm14440_vm1, %v14439_v1 }
0x11a6   :  { %11579 = vmatprep.subr.bf16.mxu1 %v14439_v1 }
0x11a7   :  { %11562 = vmatpush3.bf16.msra.mxu0 %v12300_v24 }
0x11a8   :  { %11563 = vmatprep.subr.bf16.mxu0 %v14439_v1 }
0x11a9   :  { %11580 = vmatpush3.bf16.msra.mxu1 %v12307_v28 }
0x11aa   :  { %11581 = vmatprep.subr.bf16.mxu1 %v14439_v1 }
0x11ab   :  { %11564 = vmatpush3.bf16.msra.mxu0 %v12301_v29  ;;  %v10135_v29 = vld [vmem:[#allocation76] ss:$0 sm:$0xff] }
0x11ac   :  { %11565 = vmatprep.subr.bf16.mxu0 %v14439_v1 }
0x11ad   :  { %11582 = vmatpush3.bf16.msra.mxu1 %v12308_v31 }
0x11ae   :  { %11583 = vmatprep.subr.bf16.mxu1 %v14439_v1 }
0x11af   :  { %11566 = vmatpush3.bf16.msra.mxu0 %v12302_v0 }
0x11b0   :  { %11567 = vmatprep.subr.bf16.mxu0 %v14439_v1 }
0x11b1   :  { %11584 = vmatpush3.bf16.msra.mxu1 %v12309_v32 }
0x11b2   :  { %11585 = vmatprep.subr.bf16.mxu1 %v14439_v1 }
0x11b3   :  { %11568 = vmatpush3.bf16.msra.mxu0 %v12303_v34 }
0x11b4   :  { %11569 = vmatprep.subr.bf16.mxu0 %v14439_v1 }
0x11b5   :  { %11586 = vmatpush3.bf16.msra.mxu1 %v12310_v13 }
0x11b6   :  { %11587 = vmatprep.subr.bf16.mxu1 %v14439_v1 }
0x11b7   :  { %11570 = vmatpush3.bf16.msra.mxu0 %v12304_v35 }
0x11b8   :  { %11571 = vmatprep.subr.bf16.mxu0 %v14439_v1 }
0x11b9   :  { %11588 = vmatpush3.bf16.msra.mxu1 %v12311_v30 }
0x11ba   :  { %11589 = vmatprep.subr.bf16.mxu1 %v14439_v1 }
0x11bb   :  { %11572 = vmatpush3.bf16.msra.mxu0 %v12305_v36 }
0x11bc   :  { %11597 = vmatprep.subr.bf16.mxu0 %v14439_v1 }
0x11bd   :  { %11590 = vmatpush3.bf16.msra.mxu1 %v12312_v37 }
0x11be   :  { %11574 = vmatmul.mubr.bf16.vlgmr.msra.gmra.mxu0 %v15474_v59  ;;  %11591 = vmatprep.subr.bf16.mxu1 %v14439_v1 }
0x11bf   :  { %11599 = vmatprep.mubr.msk.bf16.mxu0 %vm14440_vm1, %v14439_v1 }
0x11c1   :  { %11592 = vmatpush3.bf16.msra.mxu1 %v12313_v39  ;;  %v12314_v39 = vld [vmem:[#allocation81 + $0x78] sm:$0xff]  }
0x11c2   :  { %11603 = vmatprep.subr.bf16.mxu1 %v14439_v1 }
0x125c   :  { %v4558_v40 = vpop.f32.mrf.mxu1 }
0x125d   :  { %v4610_v43 = vmul.f32 0.09090909, %v4558_v40 }
0x125e   :  { %v11543_v44 = vpop.f32.mrf.mxu1  ;;  %v4604_v45 = vpop.f32.mrf.mxu0 }
0x125f   :  { %v4612_v48 = vmul.f32 %v4610_v43, %v4610_v43  ;;  %v4611_v49 = vmul.f32 0.09090909, %v4604_v45  ;;  %v4618_v61 = vrot.slane %v4610_v43, %v15180_v11  ;;  %v12315_v45 = vld [vmem:[#allocation81 + $0x38] sm:$0xff]  }
0x1260   :  { %v4561_v12 = vpop.f32.mrf.mxu1  ;;  %v11549_v16 = vpop.f32.mrf.mxu0 }
0x1261   :  { %v4613_v50 = vsub.f32 %v4611_v49, %v4612_v48  ;;  %v4619_v2 = vsub.f32 %v15476_v5, %v4618_v61  ;;  %v4620_v3 = vsub.f32 %v15478_v38, %v4618_v61  ;;  %v12320_v48 = vld [vmem:[#allocation81 + $0x70] sm:$0xff]   ;;  %v15543_v49 = vld [vmem:[#allocation2 + $0x4] ss:$20 sps:$4 sm:$0x3f]  }
0x1262   :  { %v11544_v52 = vpop.f32.mrf.mxu1  ;;  %v4607_v23 = vpop.f32.mrf.mxu0  ;;  %v12319_v12 = vld [vmem:[#allocation81 + $0xb8] sm:$0xff]   ;;  %v12321_v16 = vld [vmem:[#allocation81 + $0x30] sm:$0xff]  }
0x1263   :  { %v4614_v54 = vmax.f32 %v4613_v50, 0.0  ;;  %v12323_v50 = vld [vmem:[#allocation81 + $0x68] sm:$0xff]   ;;  %v12322_v52 = vld [vmem:[#allocation81 + $0xb0] sm:$0xff]  }
0x1264   :  { %v4720_v55 = vpop.f32.mrf.mxu1  ;;  %v11550_v56 = vpop.f32.mrf.mxu0  ;;  %v12324_v23 = vld [vmem:[#allocation81 + $0x28] sm:$0xff]   ;;  %v12333_v61 = vld [vmem:[#allocation81 + $0x10] sm:$0xff]  }
0x1265   :  { %v4621_v57 = vadd.f32 1e-05, %v4614_v54  ;;  %v12326_v54 = vld [vmem:[#allocation81 + $0x60] sm:$0xff]  }
0x1266   :  { %v11555_v58 = vpop.f32.mrf.mxu1  ;;  %v12327_v56 = vld [vmem:[#allocation81 + $0x20] sm:$0xff]  }
0x1267   :  { %12646 = vrsqrt.f32 %v4621_v57  ;;  %v12329_v57 = vld [vmem:[#allocation81 + $0x58] sm:$0xff]   ;;  %v12328_v58 = vld [vmem:[#allocation81 + $0xa0] sm:$0xff]  }
0x1268   :  { %v4723_v20 = vpop.f32.mrf.mxu1 }
0x1269   :  { %v4816_v59 = vpack.c.bf16 %v4723_v20, %v4720_v55  ;;  %v12325_v55 = vld [vmem:[#allocation81 + $0xa8] sm:$0xff]   ;;  %v12330_v20 = vld [vmem:[#allocation81 + $0x18] sm:$0xff]  }
0x126a   :  { %v11556_v60 = vpop.f32.mrf.mxu1 }
0x126b   :  { %11594 = vmatmul.mubr.bf16.vlgmr.msra.gmra.mxu1 %v4816_v59  ;;  %v12332_v59 = vld [vmem:[#allocation81 + $0x50] sm:$0xff]   ;;  %v12331_v60 = vld [vmem:[#allocation81 + $0x98] sm:$0xff]  }
0x126c   :  { %11605 = vmatprep.mubr.msk.bf16.mxu1 %vm14440_vm1, %v14439_v1 }
0x1274   :  { %v12647_v63 = vpop.eup %12646 }
0x1275   :  { %v4626_v4 = vrot.slane %v12647_v63, %v15180_v11  ;;  %v12335_v63 = vld [vmem:[#allocation81 + $0x48] sm:$0xff]  }
0x1277   :  { %v4627_v51 = vmul.f32 %v4626_v4, %v4619_v2  ;;  %v4628_v53 = vmul.f32 %v4626_v4, %v4620_v3  ;;  %v12334_v2 = vld [vmem:[#allocation81 + $0x90] sm:$0xff]   ;;  %v12336_v3 = vld [vmem:[#allocation81 + $0x8] sm:$0xff]   ;;  %v12338_v4 = vld [vmem:[#allocation81 + $0x40] sm:$0xff]  }
0x1279   :  { %v4635_v8 = vmul.f32 %v10116_v62, %v4627_v51  ;;  %v4636_v47 = vmul.f32 %v10116_v62, %v4628_v53  ;;  %v12337_v62 = vld [vmem:[#allocation81 + $0x88] sm:$0xff]   ;;  %v12339_v51 = vld [vmem:[#allocation81] sm:$0xff]  }
0x127a   :  { %v12341_v53 = vld [vmem:[#allocation90 + $0x78] sm:$0xff]  }
0x127b   :  { %v4643_v9 = vadd.f32 %v10117_v7, %v4635_v8  ;;  %v4644_v10 = vadd.f32 %v10117_v7, %v4636_v47  ;;  %v12340_v7 = vld [vmem:[#allocation81 + $0x80] sm:$0xff]  }
0x127c   :  { %v12342_v8 = vld [vmem:[#allocation90 + $0x38] sm:$0xff]  }
0x127d   :  { %v4645_v14 = vmax.f32 %v4643_v9, 0.0  ;;  %v4646_v15 = vmax.f32 %v4644_v10, 0.0  ;;  %v15560_v47 = vld [vmem:[#allocation2] ss:$20 sps:$4 sm:$0x3f]  }
0x127e   :  { %v4809_v18 = vpop.f32.mrf.mxu0  ;;  %v12347_v9 = vld [vmem:[#allocation90 + $0x70] sm:$0xff]   ;;  %v15562_v10 = vld [vmem:[#allocation3 + $0x4] ss:$20 sps:$4 sm:$0x7f]  }
0x127f   :  { %v10517_v19 = vpack.c.bf16 %v4645_v14, %v4645_v14  ;;  %v10518_v21 = vpack.c.bf16 %v4646_v15, %v4646_v15  ;;  %v12348_v15 = vld [vmem:[#allocation90 + $0x30] sm:$0xff]  }
0x1280   :  { %v11575_v22 = vpop.f32.mrf.mxu0 }
0x1281   :  { %5052 = vst [vmem:[#allocation2 + $0x8] sm:$0xf] %v10517_v19  ;;  %v5054_v5 = vsel %vm15186_vm10, %v10518_v21, %v5053_v17  ;;  %v12349_v17 = vld [vmem:[#allocation90 + $0x68] sm:$0xff]   ;;  %v12351_v19 = vld [vmem:[#allocation90 + $0x60] sm:$0xff]   ;;  %v12353_v22 = vld [vmem:[#allocation90 + $0x58] sm:$0xff]  }
0x1282   :  { %5055 = vst [vmem:[#allocation2 + $0x1c] sm:$0x3] %v5054_v5  ;;  %v4812_v38 = vpop.f32.mrf.mxu0  ;;  %v12352_v21 = vld [vmem:[#allocation90 + $0x20] sm:$0xff]   ;;  %v12354_v5 = vld [vmem:[#allocation90 + $0x18] sm:$0xff]  }
0x1284   :  { %v11576_v24 = vpop.f32.mrf.mxu0 }
0x1285   :  { %v12356_v24 = vld [vmem:[#allocation90 + $0x10] sm:$0xff]  }
0x1289   :  { %v15565_v14 = vld [vmem:[#allocation2 + $0x8] ss:$20 sps:$4 sm:$0x3f]  }
0x132b   :  { %v4899_v25 = vpop.f32.mrf.mxu1 }
0x132c   :  { %v4906_v28 = vsub.f32 %v4809_v18, %v4899_v25  ;;  %v12350_v18 = vld [vmem:[#allocation90 + $0x28] sm:$0xff]  }
0x132d   :  { %v11595_v31 = vpop.f32.mrf.mxu1  ;;  %v12357_v25 = vld [vmem:[#allocation90 + $0x48] sm:$0xff]  }
0x132e   :  { %v15531_v32 = vadd.f32 %v10135_v29, %v4906_v28  ;;  %v12358_v28 = vld [vmem:[#allocation90 + $0x8] sm:$0xff]   ;;  %v12360_v31 = vld [vmem:[#allocation90] sm:$0xff]  }
0x132f   :  { %v4902_v0 = vpop.f32.mrf.mxu1 }
0x1330   :  { %v4907_v34 = vsub.f32 %v4812_v38, %v4902_v0  ;;  %v4960_v13 = vmul.f32 %v15531_v32, %v15531_v32  ;;  %v12355_v38 = vld [vmem:[#allocation90 + $0x50] sm:$0xff]   ;;  %v15572_v0 = vld [vmem:[#allocation3] ss:$20 sps:$4 sm:$0x7f]  }
0x1331   :  { %v11596_v35 = vpop.f32.mrf.mxu1 }
0x1332   :  { %v15533_v36 = vadd.f32 %v10135_v29, %v4907_v34  ;;  %v12359_v29 = vld [vmem:[#allocation90 + $0x40] sm:$0xff]   ;;  %v12361_v34 = vld [vmem:[#allocation90 + $0xb8] sm:$0xff]   ;;  %v12362_v35 = vld [vmem:[#allocation90 + $0xb0] sm:$0xff]  }
0x1334   :  { %v4916_v30 = vpack.c.bf16 %v15533_v36, %v15531_v32  ;;  %v4961_v37 = vmul.f32 %v15533_v36, %v15533_v36 }
0x1336   :  { %v4962_v40 = vpack.c.bf16 %v4961_v37, %v4960_v13  ;;  %v4918_v43 = vand.u32 %v4916_v30, %v15148_v41  ;;  %v12363_v13 = vld [vmem:[#allocation90 + $0xa8] sm:$0xff]   ;;  %v12364_v30 = vld [vmem:[#allocation90 + $0xa0] sm:$0xff]   ;;  %v12365_v37 = vld [vmem:[#allocation90 + $0x98] sm:$0xff]  }
0x1338   :  { %11598 = vmatpush3.bf16.msra.mxu0 %v4918_v43  ;;  %v4964_v44 = vand.u32 %v4962_v40, %v15148_v41  ;;  %v12367_v40 = vld [vmem:[#allocation90 + $0x88] sm:$0xff]   ;;  %v12368_v43 = vld [vmem:[#allocation90 + $0x80] sm:$0xff]  }
0x1339   :  { %10779 = vmatprep.subr.bf16.mxu0 %v12314_v39  ;;  %v12366_v39 = vld [vmem:[#allocation90 + $0x90] sm:$0xff]  }
0x133a   :  { %11604 = vmatpush3.bf16.msra.mxu1 %v4964_v44  ;;  %v12369_v44 = vld [vmem:[#allocation87 + $0x78] sm:$0xff]  }
0x133b   :  { %11600 = vmatmul.mubr.msk.bf16.vlgmr.msra.gmra.mxu0 %vm1688_vm6, %v14442_v46  ;;  %11609 = vmatprep.subr.bf16.mxu1 %v14439_v1 }
0x133c   :  { %10780 = vmatpush3.bf16.msra.mxu0 %v12315_v45  ;;  %5469 = vmatprep.mubr.bf16.mxu0 %v15543_v49 }
0x133d   :  { %11606 = vmatmul.mubr.msk.bf16.vlgmr.msra.gmra.mxu1 %vm1688_vm6, %v14442_v46  ;;  %10781 = vmatprep.subr.bf16.mxu0 %v12320_v48 }
0x133e   :  { %11610 = vmatpush3.bf16.msra.mxu1 %v12319_v12  ;;  %11625 = vmatprep.mubr.msk.bf16.mxu1 %vm14440_vm1, %v14439_v1 }
0x133f   :  { %11611 = vmatprep.subr.bf16.mxu1 %v14439_v1 }
0x1340   :  { %10782 = vmatpush3.bf16.msra.mxu0 %v12321_v16 }
0x1341   :  { %10783 = vmatprep.subr.bf16.mxu0 %v12323_v50 }
0x1342   :  { %11612 = vmatpush3.bf16.msra.mxu1 %v12322_v52 }
0x1343   :  { %11613 = vmatprep.subr.bf16.mxu1 %v14439_v1 }
0x1344   :  { %10784 = vmatpush3.bf16.msra.mxu0 %v12324_v23 }
0x1345   :  { %10785 = vmatprep.subr.bf16.mxu0 %v12326_v54 }
0x1346   :  { %11614 = vmatpush3.bf16.msra.mxu1 %v12325_v55 }
0x1347   :  { %11615 = vmatprep.subr.bf16.mxu1 %v14439_v1 }
0x1348   :  { %10786 = vmatpush3.bf16.msra.mxu0 %v12327_v56 }
0x1349   :  { %10787 = vmatprep.subr.bf16.mxu0 %v12329_v57 }
0x134a   :  { %11616 = vmatpush3.bf16.msra.mxu1 %v12328_v58 }
0x134b   :  { %11617 = vmatprep.subr.bf16.mxu1 %v14439_v1 }
0x134c   :  { %10788 = vmatpush3.bf16.msra.mxu0 %v12330_v20 }
0x134d   :  { %10789 = vmatprep.subr.bf16.mxu0 %v12332_v59 }
0x134e   :  { %11618 = vmatpush3.bf16.msra.mxu1 %v12331_v60 }
0x134f   :  { %11619 = vmatprep.subr.bf16.mxu1 %v14439_v1 }
0x1350   :  { %10790 = vmatpush3.bf16.msra.mxu0 %v12333_v61 }
0x1351   :  { %10791 = vmatprep.subr.bf16.mxu0 %v12335_v63 }
0x1352   :  { %11620 = vmatpush3.bf16.msra.mxu1 %v12334_v2 }
0x1353   :  { %11621 = vmatprep.subr.bf16.mxu1 %v14439_v1 }
0x1354   :  { %10792 = vmatpush3.bf16.msra.mxu0 %v12336_v3 }
0x1355   :  { %10793 = vmatprep.subr.bf16.mxu0 %v12338_v4  ;;  %v10138_v4 = vld [vmem:[#allocation78] ss:$0 sm:$0xff] }
0x1356   :  { %11622 = vmatpush3.bf16.msra.mxu1 %v12337_v62 }
0x1357   :  { %11623 = vmatprep.subr.bf16.mxu1 %v14439_v1 }
0x1358   :  { %10794 = vmatpush3.bf16.msra.mxu0 %v12339_v51 }
0x1359   :  { %10810 = vmatprep.subr.bf16.mxu0 %v12341_v53  ;;  %v10139_v53 = vld [vmem:[#allocation79] ss:$0 sm:$0xff] }
0x135a   :  { %11624 = vmatpush3.bf16.msra.mxu1 %v12340_v7 }
0x135b   :  { %5470 = vmatmul.mubr.bf16.vlgmr.msra.gmra.mxu0 %v15560_v47  ;;  %11629 = vmatprep.subr.bf16.mxu1 %v14439_v1 }
0x135c   :  { %10811 = vmatpush3.bf16.msra.mxu0 %v12342_v8  ;;  %5717 = vmatprep.mubr.bf16.mxu0 %v15562_v10 }
0x135d   :  { %11626 = vmatmul.mubr.bf16.vlgmr.msra.gmra.mxu1 %v15565_v14  ;;  %10812 = vmatprep.subr.bf16.mxu0 %v12347_v9 }
0x135e   :  { %11645 = vmatprep.mubr.msk.bf16.mxu1 %vm14440_vm1, %v14439_v1  ;;  %11630 = vmatpush3.bf16.msra.mxu1 %v12361_v34 }
0x135f   :  { %11631 = vmatprep.subr.bf16.mxu1 %v14439_v1 }
0x1360   :  { %10813 = vmatpush3.bf16.msra.mxu0 %v12348_v15 }
0x1361   :  { %10814 = vmatprep.subr.bf16.mxu0 %v12349_v17 }
0x1362   :  { %11632 = vmatpush3.bf16.msra.mxu1 %v12362_v35 }
0x1363   :  { %11633 = vmatprep.subr.bf16.mxu1 %v14439_v1 }
0x1364   :  { %10815 = vmatpush3.bf16.msra.mxu0 %v12350_v18 }
0x1365   :  { %10816 = vmatprep.subr.bf16.mxu0 %v12351_v19 }
0x1366   :  { %11634 = vmatpush3.bf16.msra.mxu1 %v12363_v13 }
0x1367   :  { %11635 = vmatprep.subr.bf16.mxu1 %v14439_v1 }
0x1368   :  { %10817 = vmatpush3.bf16.msra.mxu0 %v12352_v21  ;;  %v5064_v21 = vld [vmem:[#allocation3 + $0x1c] sm:$0x7] }
0x1369   :  { %10818 = vmatprep.subr.bf16.mxu0 %v12353_v22 }
0x136a   :  { %11636 = vmatpush3.bf16.msra.mxu1 %v12364_v30 }
0x136b   :  { %11637 = vmatprep.subr.bf16.mxu1 %v14439_v1 }
0x136c   :  { %10819 = vmatpush3.bf16.msra.mxu0 %v12354_v5  ;;  %v10144_v5 = vld [vmem:[#allocation82] ss:$0 sm:$0xff] }
0x136d   :  { %10820 = vmatprep.subr.bf16.mxu0 %v12355_v38 }
0x136e   :  { %11638 = vmatpush3.bf16.msra.mxu1 %v12365_v37 }
0x136f   :  { %11639 = vmatprep.subr.bf16.mxu1 %v14439_v1 }
0x1370   :  { %10821 = vmatpush3.bf16.msra.mxu0 %v12356_v24 }
0x1371   :  { %10822 = vmatprep.subr.bf16.mxu0 %v12357_v25 }
0x1372   :  { %11640 = vmatpush3.bf16.msra.mxu1 %v12366_v39 }
0x1373   :  { %11641 = vmatprep.subr.bf16.mxu1 %v14439_v1 }
0x1374   :  { %10823 = vmatpush3.bf16.msra.mxu0 %v12358_v28 }
0x1375   :  { %10824 = vmatprep.subr.bf16.mxu0 %v12359_v29 }
0x1376   :  { %11642 = vmatpush3.bf16.msra.mxu1 %v12367_v40 }
0x1377   :  { %11643 = vmatprep.subr.bf16.mxu1 %v14439_v1 }
0x1378   :  { %10825 = vmatpush3.bf16.msra.mxu0 %v12360_v31 }
0x1379   :  { %11649 = vmatprep.subr.bf16.mxu0 %v14439_v1 }
0x137a   :  { %11644 = vmatpush3.bf16.msra.mxu1 %v12368_v43  ;;  %v12371_v43 = vld [vmem:[#allocation87 + $0x38] sm:$0xff]  }
0x137b   :  { %5718 = vmatmul.mubr.bf16.vlgmr.msra.gmra.mxu0 %v15572_v0  ;;  %10843 = vmatprep.subr.bf16.mxu1 %v12369_v44 }
0x137c   :  { %11651 = vmatprep.mubr.msk.bf16.mxu0 %vm14440_vm1, %v14439_v1 }
0x13fb   :  { %v4954_v45 = vpop.f32.mrf.mxu0 }
0x13fc   :  { %v5006_v48 = vmul.f32 0.07692308, %v4954_v45  ;;  %v12372_v45 = vld [vmem:[#allocation87 + $0x70] sm:$0xff]  }
0x13fd   :  { %v11601_v12 = vpop.f32.mrf.mxu0  ;;  %v5000_v16 = vpop.f32.mrf.mxu1 }
0x13fe   :  { %v5008_v50 = vmul.f32 %v5006_v48, %v5006_v48  ;;  %v5007_v52 = vmul.f32 0.07692308, %v5000_v16  ;;  %v5014_v60 = vrot.slane %v5006_v48, %v15180_v11  ;;  %v12373_v48 = vld [vmem:[#allocation87 + $0x30] sm:$0xff]   ;;  %v12374_v12 = vld [vmem:[#allocation87 + $0x68] sm:$0xff]  }
0x13ff   :  { %v4957_v23 = vpop.f32.mrf.mxu0  ;;  %v11607_v54 = vpop.f32.mrf.mxu1  ;;  %v12375_v16 = vld [vmem:[#allocation87 + $0x28] sm:$0xff]  }
0x1400   :  { %v5009_v55 = vsub.f32 %v5007_v52, %v5008_v50  ;;  %v5015_v63 = vsub.f32 %v15531_v32, %v5014_v60  ;;  %v5016_v2 = vsub.f32 %v15533_v36, %v5014_v60  ;;  %v12376_v50 = vld [vmem:[#allocation87 + $0x60] sm:$0xff]   ;;  %v12378_v23 = vld [vmem:[#allocation87 + $0x58] sm:$0xff]  }
0x1401   :  { %v11602_v56 = vpop.f32.mrf.mxu0  ;;  %v5003_v57 = vpop.f32.mrf.mxu1  ;;  %v12377_v52 = vld [vmem:[#allocation87 + $0x20] sm:$0xff]   ;;  %v12379_v54 = vld [vmem:[#allocation87 + $0x18] sm:$0xff]  }
0x1402   :  { %v5010_v58 = vmax.f32 %v5009_v55, 0.0  ;;  %v12380_v55 = vld [vmem:[#allocation87 + $0x50] sm:$0xff]   ;;  %v12382_v57 = vld [vmem:[#allocation87 + $0x48] sm:$0xff]  }
0x1403   :  { %v11608_v20 = vpop.f32.mrf.mxu1  ;;  %v12381_v56 = vld [vmem:[#allocation87 + $0x10] sm:$0xff]  }
0x1404   :  { %v5017_v59 = vadd.f32 1e-05, %v5010_v58  ;;  %v12384_v58 = vld [vmem:[#allocation87 + $0x40] sm:$0xff]   ;;  %v12387_v60 = vld [vmem:[#allocation84 + $0x38] sm:$0xff]  }
0x1405   :  { %v12385_v20 = vld [vmem:[#allocation87] sm:$0xff]  }
0x1406   :  { %12648 = vrsqrt.f32 %v5017_v59  ;;  %v12386_v59 = vld [vmem:[#allocation84 + $0x78] sm:$0xff]  }
0x1413   :  { %v12649_v61 = vpop.eup %12648 }
0x1414   :  { %v5022_v3 = vrot.slane %v12649_v61, %v15180_v11  ;;  %v12388_v61 = vld [vmem:[#allocation84 + $0x70] sm:$0xff]  }
0x1416   :  { %v5023_v62 = vmul.f32 %v5022_v3, %v5015_v63  ;;  %v5024_v51 = vmul.f32 %v5022_v3, %v5016_v2  ;;  %v12389_v63 = vld [vmem:[#allocation84 + $0x30] sm:$0xff]   ;;  %v12390_v2 = vld [vmem:[#allocation84 + $0x68] sm:$0xff]  }
0x1417   :  { %v12391_v3 = vld [vmem:[#allocation84 + $0x28] sm:$0xff]  }
0x1418   :  { %v5031_v7 = vmul.f32 %v10138_v4, %v5023_v62  ;;  %v5032_v8 = vmul.f32 %v10138_v4, %v5024_v51  ;;  %v12392_v4 = vld [vmem:[#allocation84 + $0x60] sm:$0xff]   ;;  %v12394_v51 = vld [vmem:[#allocation84 + $0x58] sm:$0xff]  }
0x1419   :  { %v12393_v62 = vld [vmem:[#allocation84 + $0x20] sm:$0xff]  }
0x141a   :  { %v5039_v9 = vadd.f32 %v10139_v53, %v5031_v7  ;;  %v5040_v15 = vadd.f32 %v10139_v53, %v5032_v8  ;;  %v12395_v53 = vld [vmem:[#allocation84 + $0x18] sm:$0xff]   ;;  %v12396_v7 = vld [vmem:[#allocation84 + $0x50] sm:$0xff]   ;;  %v12398_v8 = vld [vmem:[#allocation84 + $0x48] sm:$0xff]  }
0x141b   :  { %v10795_v17 = vpop.f32.mrf.mxu0 }
0x141c   :  { %v5041_v18 = vmax.f32 %v5039_v9, 0.0  ;;  %v5042_v19 = vmax.f32 %v5040_v15, 0.0  ;;  %v12400_v9 = vld [vmem:[#allocation84 + $0x40] sm:$0xff]  }
0x141d   :  { %v10796_v22 = vpop.f32.mrf.mxu0  ;;  %v5512_v38 = vpop.f32.mrf.mxu1  ;;  %v12401_v15 = vld [vmem:[#allocation84] sm:$0xff]  }
0x141e   :  { %v10519_v32 = vpack.c.bf16 %v5041_v18, %v5041_v18  ;;  %v10520_v24 = vpack.c.bf16 %v5042_v19, %v5042_v19  ;;  %v10797_v36 = vadd.f32 %v10796_v22, %v10795_v17 }
0x141f   :  { %v10798_v25 = vpop.f32.mrf.mxu0  ;;  %v11627_v28 = vpop.f32.mrf.mxu1 }
0x1420   :  { %5063 = vst [vmem:[#allocation3 + $0x8] sm:$0xf] %v10519_v32  ;;  %v5065_v29 = vsel %vm15241_vm13, %v10520_v24, %v5064_v21  ;;  %v5472_v31 = vadd.f32 %v10797_v36, %v10144_v5 }
0x1421   :  { %5066 = vst [vmem:[#allocation3 + $0x1c] sm:$0x7] %v5065_v29  ;;  %v10799_v34 = vpop.f32.mrf.mxu0  ;;  %v5515_v35 = vpop.f32.mrf.mxu1 }
0x1422   :  { %v15591_v13 = vadd.f32 %v5512_v38, %v5472_v31  ;;  %v10800_v30 = vadd.f32 %v10799_v34, %v10798_v25  ;;  %v10172_v38 = vld [vmem:[#allocation91] ss:$0 sm:$0xff] }
0x1423   :  { %v11628_v37 = vpop.f32.mrf.mxu1 }
0x1424   :  { %v5475_v39 = vadd.f32 %v10800_v30, %v10144_v5  ;;  %v12402_v30 = vld [vmem:[#allocation87 + $0xb8] sm:$0xff]   ;;  %v12660_v37 = vld [vmem:[#allocation9] sm:$0x3f]  }
0x1426   :  { %v15593_v40 = vadd.f32 %v5515_v35, %v5475_v39  ;;  %v12403_v39 = vld [vmem:[#allocation87 + $0xb0] sm:$0xff]  }
0x1428   :  { %v15595_v44 = vld [vmem:[#allocation3 + $0x8] ss:$20 sps:$4 sm:$0x7f]  }
0x1429   :  { %11646 = vmatmul.mubr.bf16.vlgmr.msra.gmra.mxu1 %v15595_v44 }
0x142a   :  { %10844 = vmatpush3.bf16.msra.mxu1 %v12371_v43  ;;  %6000 = vmatprep.mubr.bf16.mxu1 %v15562_v10  ;;  %v12383_v10 = vld [vmem:[#allocation87 + $0x8] sm:$0xff]  }
0x142b   :  { %10845 = vmatprep.subr.bf16.mxu1 %v12372_v45  ;;  %v12404_v43 = vld [vmem:[#allocation87 + $0xa8] sm:$0xff]   ;;  %v12405_v45 = vld [vmem:[#allocation87 + $0xa0] sm:$0xff]  }
0x142e   :  { %10846 = vmatpush3.bf16.msra.mxu1 %v12373_v48  ;;  %v12406_v48 = vld [vmem:[#allocation87 + $0x98] sm:$0xff]  }
0x142f   :  { %10847 = vmatprep.subr.bf16.mxu1 %v12374_v12  ;;  %v12407_v12 = vld [vmem:[#allocation87 + $0x90] sm:$0xff]  }
0x1432   :  { %10848 = vmatpush3.bf16.msra.mxu1 %v12375_v16 }
0x1433   :  { %10849 = vmatprep.subr.bf16.mxu1 %v12376_v50 }
0x1436   :  { %10850 = vmatpush3.bf16.msra.mxu1 %v12377_v52 }
0x1437   :  { %10851 = vmatprep.subr.bf16.mxu1 %v12378_v23  ;;  %v12408_v23 = vld [vmem:[#allocation87 + $0x88] sm:$0xff]  }
0x143a   :  { %10852 = vmatpush3.bf16.msra.mxu1 %v12379_v54 }
0x143b   :  { %10853 = vmatprep.subr.bf16.mxu1 %v12380_v55  ;;  %v10826_v17 = vpop.f32.mrf.mxu0 }
0x143d   :  { %v10827_v18 = vpop.f32.mrf.mxu0 }
0x143e   :  { %10854 = vmatpush3.bf16.msra.mxu1 %v12381_v56  ;;  %v10828_v22 = vadd.f32 %v10827_v18, %v10826_v17  ;;  %v12661_v17 = vld [vmem:[%s16141_s11] sm:$0x3f]  }
0x143f   :  { %10855 = vmatprep.subr.bf16.mxu1 %v12382_v57  ;;  %v10829_v19 = vpop.f32.mrf.mxu0  ;;  %v12409_v57 = vld [vmem:[#allocation87 + $0x80] sm:$0xff]  }
0x1440   :  { %v5720_v36 = vadd.f32 %v10828_v22, %v10172_v38  ;;  %v12429_v18 = vld [vmem:[#allocation94 + $0x20] sm:$0xff]   ;;  %v12430_v22 = vld [vmem:[#allocation94 + $0x18] sm:$0xff]  }
0x1441   :  { %v10830_v21 = vpop.f32.mrf.mxu0 }
0x1442   :  { %10856 = vmatpush3.bf16.msra.mxu1 %v12383_v10  ;;  %v10831_v5 = vadd.f32 %v10830_v21, %v10829_v19  ;;  %v12410_v10 = vld [vmem:[#allocation84 + $0xb8] sm:$0xff]   ;;  %v10201_v19 = vld [vmem:[#allocation88] ss:$0 sm:$0xff] }
0x1443   :  { %10857 = vmatprep.subr.bf16.mxu1 %v12384_v58  ;;  %v12411_v58 = vld [vmem:[#allocation84 + $0xb0] sm:$0xff]  }
0x1444   :  { %v5723_v25 = vadd.f32 %v10831_v5, %v10172_v38 }
0x1446   :  { %10858 = vmatpush3.bf16.msra.mxu1 %v12385_v20  ;;  %v12412_v20 = vld [vmem:[#allocation84 + $0xa8] sm:$0xff]  }
0x1447   :  { %10874 = vmatprep.subr.bf16.mxu1 %v12386_v59  ;;  %v12413_v59 = vld [vmem:[#allocation84 + $0xa0] sm:$0xff]  }
0x1449   :  { %6001 = vmatmul.mubr.bf16.vlgmr.msra.gmra.mxu1 %v15572_v0  ;;  %v12397_v0 = vld [vmem:[#allocation84 + $0x10] sm:$0xff]  }
0x144a   :  { %10875 = vmatpush3.bf16.msra.mxu1 %v12387_v60  ;;  %6232 = vmatprep.mubr.bf16.mxu1 %v15543_v49  ;;  %v12399_v49 = vld [vmem:[#allocation84 + $0x8] sm:$0xff]   ;;  %v12414_v60 = vld [vmem:[#allocation84 + $0x98] sm:$0xff]  }
0x144b   :  { %10876 = vmatprep.subr.bf16.mxu1 %v12388_v61  ;;  %v12416_v61 = vld [vmem:[#allocation84 + $0x88] sm:$0xff]  }
0x144e   :  { %10877 = vmatpush3.bf16.msra.mxu1 %v12389_v63  ;;  %v12417_v63 = vld [vmem:[#allocation84 + $0x80] sm:$0xff]  }
0x144f   :  { %10878 = vmatprep.subr.bf16.mxu1 %v12390_v2 }
0x1452   :  { %10879 = vmatpush3.bf16.msra.mxu1 %v12391_v3 }
0x1453   :  { %10880 = vmatprep.subr.bf16.mxu1 %v12392_v4 }
0x1456   :  { %10881 = vmatpush3.bf16.msra.mxu1 %v12393_v62 }
0x1457   :  { %10882 = vmatprep.subr.bf16.mxu1 %v12394_v51 }
0x145a   :  { %10883 = vmatpush3.bf16.msra.mxu1 %v12395_v53 }
0x145b   :  { %10884 = vmatprep.subr.bf16.mxu1 %v12396_v7 }
0x145e   :  { %10885 = vmatpush3.bf16.msra.mxu1 %v12397_v0 }
0x145f   :  { %10886 = vmatprep.subr.bf16.mxu1 %v12398_v8 }
0x1462   :  { %10887 = vmatpush3.bf16.msra.mxu1 %v12399_v49 }
0x1463   :  { %10888 = vmatprep.subr.bf16.mxu1 %v12400_v9 }
0x1466   :  { %10889 = vmatpush3.bf16.msra.mxu1 %v12401_v15  ;;  %v12426_v15 = vld [vmem:[#allocation94 + $0x38] sm:$0xff]  }
0x1467   :  { %11695 = vmatprep.subr.bf16.mxu1 %v14439_v1 }
0x1469   :  { %6233 = vmatmul.mubr.bf16.vlgmr.msra.gmra.mxu1 %v15560_v47 }
0x146a   :  { %11697 = vmatprep.mubr.msk.bf16.mxu1 %vm14440_vm1, %v14439_v1 }
0x14e9   :  { %v5760_v32 = vpop.f32.mrf.mxu1 }
0x14ea   :  { %v5761_v29 = vadd.f32 %v5760_v32, %v5720_v36  ;;  %v12431_v36 = vld [vmem:[#allocation94 + $0x10] sm:$0xff]  }
0x14eb   :  { %v11647_v24 = vpop.f32.mrf.mxu1 }
0x14ed   :  { %v5763_v28 = vpop.f32.mrf.mxu1 }
0x14ee   :  { %v5764_v31 = vadd.f32 %v5763_v28, %v5723_v25 }
0x14ef   :  { %v11648_v34 = vpop.f32.mrf.mxu1 }
0x14f0   :  { %v5767_v35 = vpack.c.bf16 %v5764_v31, %v5761_v29 }
0x14f2   :  { %v5769_v47 = vand.u32 %v5767_v35, %v15148_v41 }
0x14f4   :  { %11650 = vmatpush3.bf16.msra.mxu0 %v5769_v47 }
0x14f5   :  { %11655 = vmatprep.subr.bf16.mxu0 %v14439_v1 }
0x14f7   :  { %11652 = vmatmul.mubr.msk.bf16.vlgmr.msra.gmra.mxu0 %vm1688_vm6, %v12660_v37 }
0x14f8   :  { %11656 = vmatpush3.bf16.msra.mxu0 %v12402_v30  ;;  %11671 = vmatprep.mubr.msk.bf16.mxu0 %vm14440_vm1, %v14439_v1 }
0x14f9   :  { %11657 = vmatprep.subr.bf16.mxu0 %v14439_v1 }
0x14fc   :  { %11658 = vmatpush3.bf16.msra.mxu0 %v12403_v39  ;;  %v10226_v39 = vld [vmem:[#allocation85] ss:$0 sm:$0xff] }
0x14fd   :  { %11659 = vmatprep.subr.bf16.mxu0 %v14439_v1 }
0x1500   :  { %11660 = vmatpush3.bf16.msra.mxu0 %v12404_v43 }
0x1501   :  { %11661 = vmatprep.subr.bf16.mxu0 %v14439_v1 }
0x1504   :  { %11662 = vmatpush3.bf16.msra.mxu0 %v12405_v45 }
0x1505   :  { %11663 = vmatprep.subr.bf16.mxu0 %v14439_v1 }
0x1508   :  { %11664 = vmatpush3.bf16.msra.mxu0 %v12406_v48 }
0x1509   :  { %v10859_v16 = vpop.f32.mrf.mxu1  ;;  %11665 = vmatprep.subr.bf16.mxu0 %v14439_v1 }
0x150b   :  { %v10860_v50 = vpop.f32.mrf.mxu1 }
0x150c   :  { %v15615_v52 = vadd.f32 %v10860_v50, %v10859_v16  ;;  %11666 = vmatpush3.bf16.msra.mxu0 %v12407_v12 }
0x150d   :  { %v10862_v54 = vpop.f32.mrf.mxu1  ;;  %11667 = vmatprep.subr.bf16.mxu0 %v14439_v1 }
0x150e   :  { %v6003_v21 = vadd.f32 %v15615_v52, %v10201_v19 }
0x150f   :  { %v10863_v55 = vpop.f32.mrf.mxu1 }
0x1510   :  { %v15618_v56 = vadd.f32 %v10863_v55, %v10862_v54  ;;  %11668 = vmatpush3.bf16.msra.mxu0 %v12408_v23 }
0x1511   :  { %11669 = vmatprep.subr.bf16.mxu0 %v14439_v1 }
0x1512   :  { %v6006_v24 = vadd.f32 %v15618_v56, %v10201_v19  ;;  %v12418_v56 = vld [vmem:[#allocation93 + $0x38] sm:$0xff]  }
0x1514   :  { %11670 = vmatpush3.bf16.msra.mxu0 %v12409_v57  ;;  %v12662_v57 = vld [vmem:[#allocation10] sm:$0x7f]  }
0x1515   :  { %11675 = vmatprep.subr.bf16.mxu0 %v14439_v1 }
0x1517   :  { %11672 = vmatmul.mubr.bf16.vlgmr.msra.gmra.mxu0 %v15595_v44  ;;  %v12415_v44 = vld [vmem:[#allocation84 + $0x90] sm:$0xff]  }
0x1518   :  { %11676 = vmatpush3.bf16.msra.mxu0 %v12410_v10  ;;  %11691 = vmatprep.mubr.msk.bf16.mxu0 %vm14440_vm1, %v14439_v1  ;;  %v12419_v10 = vld [vmem:[#allocation93 + $0x30] sm:$0xff]  }
0x1519   :  { %11677 = vmatprep.subr.bf16.mxu0 %v14439_v1 }
0x151c   :  { %11678 = vmatpush3.bf16.msra.mxu0 %v12411_v58  ;;  %v12432_v58 = vld [vmem:[#allocation94 + $0x8] sm:$0xff]  }
0x151d   :  { %11679 = vmatprep.subr.bf16.mxu0 %v14439_v1 }
0x1520   :  { %11680 = vmatpush3.bf16.msra.mxu0 %v12412_v20  ;;  %v12420_v20 = vld [vmem:[#allocation93 + $0x28] sm:$0xff]  }
0x1521   :  { %11681 = vmatprep.subr.bf16.mxu0 %v14439_v1 }
0x1524   :  { %11682 = vmatpush3.bf16.msra.mxu0 %v12413_v59  ;;  %v12433_v59 = vld [vmem:[#allocation94] sm:$0xff]  }
0x1525   :  { %11683 = vmatprep.subr.bf16.mxu0 %v14439_v1 }
0x1528   :  { %11684 = vmatpush3.bf16.msra.mxu0 %v12414_v60  ;;  %v12421_v60 = vld [vmem:[#allocation93 + $0x20] sm:$0xff]  }
0x1529   :  { %11685 = vmatprep.subr.bf16.mxu0 %v14439_v1  ;;  %v10890_v31 = vpop.f32.mrf.mxu1 }
0x152b   :  { %v10891_v34 = vpop.f32.mrf.mxu1 }
0x152c   :  { %11686 = vmatpush3.bf16.msra.mxu0 %v12415_v44  ;;  %v10892_v30 = vadd.f32 %v10891_v34, %v10890_v31  ;;  %v12422_v44 = vld [vmem:[#allocation93 + $0x18] sm:$0xff]  }
0x152d   :  { %11687 = vmatprep.subr.bf16.mxu0 %v14439_v1  ;;  %v10893_v35 = vpop.f32.mrf.mxu1 }
0x152e   :  { %v6235_v48 = vadd.f32 %v10892_v30, %v10226_v39 }
0x152f   :  { %v10894_v47 = vpop.f32.mrf.mxu1 }
0x1530   :  { %11688 = vmatpush3.bf16.msra.mxu0 %v12416_v61  ;;  %v10895_v37 = vadd.f32 %v10894_v47, %v10893_v35  ;;  %v12423_v61 = vld [vmem:[#allocation93 + $0x10] sm:$0xff]  }
0x1531   :  { %11689 = vmatprep.subr.bf16.mxu0 %v14439_v1 }
0x1532   :  { %v6238_v12 = vadd.f32 %v10895_v37, %v10226_v39 }
0x1534   :  { %11690 = vmatpush3.bf16.msra.mxu0 %v12417_v63  ;;  %v12424_v63 = vld [vmem:[#allocation93 + $0x8] sm:$0xff]  }
0x1535   :  { %11701 = vmatprep.subr.bf16.mxu0 %v14439_v1 }
0x1537   :  { %11692 = vmatmul.mubr.bf16.vlgmr.msra.gmra.mxu0 %v15565_v14 }
0x1538   :  { %11703 = vmatprep.mubr.msk.bf16.mxu0 %vm14440_vm1, %v14439_v1 }
0x15b7   :  { %v5805_v2 = vpop.f32.mrf.mxu0 }
0x15b8   :  { %v5812_v3 = vmul.f32 %v5805_v2, %v15286_v26  ;;  %v12425_v2 = vld [vmem:[#allocation93] sm:$0xff]  }
0x15b9   :  { %v11653_v4 = vpop.f32.mrf.mxu0 }
0x15ba   :  { %v5814_v51 = vadd.f32 %v5812_v3, %v15591_v13  ;;  %v12427_v13 = vld [vmem:[#allocation94 + $0x30] sm:$0xff]  }
0x15bb   :  { %v5808_v62 = vpop.f32.mrf.mxu0 }
0x15bc   :  { %v5813_v53 = vmul.f32 %v5808_v62, %v15290_v33  ;;  %v5816_v8 = vmax.f32 %v5814_v51, 0.0 }
0x15bd   :  { %v11654_v7 = vpop.f32.mrf.mxu0 }
0x15be   :  { %v5815_v0 = vadd.f32 %v5813_v53, %v15593_v40  ;;  %v12428_v40 = vld [vmem:[#allocation94 + $0x28] sm:$0xff]  }
0x15c0   :  { %v5817_v49 = vmax.f32 %v5815_v0, 0.0 }
0x15c2   :  { %v15640_v9 = vpack.c.bf16 %v5817_v49, %v5816_v8 }
0x15c4   :  { %v6370_v14 = vand.u32 %v15640_v9, %v15117_v6 }
0x15c6   :  { %11702 = vmatpush3.bf16.msra.mxu0 %v6370_v14 }
0x15c7   :  { %11727 = vmatprep.subr.bf16.mxu0 %v14439_v1 }
0x15c9   :  { %11704 = vmatmul.mubr.msk.bf16.vlgmr.msra.gmra.mxu0 %vm1364_vm3, %v12661_v17 }
0x15ca   :  { %11728 = vmatpush3.bf16.msra.mxu0 %v12426_v15  ;;  %11743 = vmatprep.mubr.msk.bf16.mxu0 %vm14440_vm1, %v14439_v1 }
0x15cb   :  { %11729 = vmatprep.subr.bf16.mxu0 %v14439_v1 }
0x15ce   :  { %11730 = vmatpush3.bf16.msra.mxu0 %v12427_v13 }
0x15cf   :  { %11731 = vmatprep.subr.bf16.mxu0 %v14439_v1 }
0x15d2   :  { %11732 = vmatpush3.bf16.msra.mxu0 %v12428_v40 }
0x15d3   :  { %11733 = vmatprep.subr.bf16.mxu0 %v14439_v1 }
0x15d6   :  { %11734 = vmatpush3.bf16.msra.mxu0 %v12429_v18 }
0x15d7   :  { %v6043_v5 = vpop.f32.mrf.mxu0  ;;  %11735 = vmatprep.subr.bf16.mxu0 %v14439_v1 }
0x15d8   :  { %v15654_v38 = vadd.f32 %v6043_v5, %v6003_v21 }
0x15d9   :  { %v11673_v32 = vpop.f32.mrf.mxu0 }
0x15da   :  { %11736 = vmatpush3.bf16.msra.mxu0 %v12430_v22 }
0x15db   :  { %v6046_v25 = vpop.f32.mrf.mxu0  ;;  %11737 = vmatprep.subr.bf16.mxu0 %v14439_v1 }
0x15dc   :  { %v15658_v28 = vadd.f32 %v6046_v25, %v6006_v24 }
0x15dd   :  { %v11674_v29 = vpop.f32.mrf.mxu0 }
0x15de   :  { %11738 = vmatpush3.bf16.msra.mxu0 %v12431_v36  ;;  %v10269_v36 = vld [vmem:[#allocation96] ss:$0 sm:$0xff] }
0x15df   :  { %11739 = vmatprep.subr.bf16.mxu0 %v14439_v1 }
0x15e2   :  { %11740 = vmatpush3.bf16.msra.mxu0 %v12432_v58  ;;  %v12440_v58 = vld [vmem:[#allocation100 + $0x8] sm:$0xff]  }
0x15e3   :  { %11741 = vmatprep.subr.bf16.mxu0 %v14439_v1 }
0x15e6   :  { %11742 = vmatpush3.bf16.msra.mxu0 %v12433_v59  ;;  %v12446_v59 = vld [vmem:[#allocation102 + $0x18] sm:$0xff]  }
0x15e7   :  { %11753 = vmatprep.subr.bf16.mxu0 %v14439_v1 }
0x15f7   :  { %v6275_v43 = vpop.f32.mrf.mxu0 }
0x15f8   :  { %v6276_v50 = vadd.f32 %v6275_v43, %v6235_v48  ;;  %v12434_v48 = vld [vmem:[#allocation100 + $0x38] sm:$0xff]  }
0x15f9   :  { %v11693_v45 = vpop.f32.mrf.mxu0 }
0x15fb   :  { %v6278_v16 = vpop.f32.mrf.mxu0 }
0x15fc   :  { %v6279_v52 = vadd.f32 %v6278_v16, %v6238_v12  ;;  %v12435_v12 = vld [vmem:[#allocation100 + $0x30] sm:$0xff]   ;;  %v12442_v16 = vld [vmem:[#allocation102 + $0x38] sm:$0xff]  }
0x15fd   :  { %v11694_v23 = vpop.f32.mrf.mxu0 }
0x15fe   :  { %v6282_v54 = vpack.c.bf16 %v6279_v52, %v6276_v50  ;;  %v12436_v50 = vld [vmem:[#allocation100 + $0x28] sm:$0xff]   ;;  %v12663_v52 = vld [vmem:[#allocation7] sm:$0x7f]  }
0x15ff   :  { %v12443_v23 = vld [vmem:[#allocation102 + $0x30] sm:$0xff]  }
0x1600   :  { %v6284_v55 = vand.u32 %v6282_v54, %v15117_v6  ;;  %v12437_v54 = vld [vmem:[#allocation100 + $0x20] sm:$0xff]  }
0x1602   :  { %11696 = vmatpush3.bf16.msra.mxu1 %v6284_v55  ;;  %v12444_v55 = vld [vmem:[#allocation102 + $0x28] sm:$0xff]  }
0x1603   :  { %11707 = vmatprep.subr.bf16.mxu1 %v14439_v1 }
0x1605   :  { %11698 = vmatmul.mubr.msk.bf16.vlgmr.msra.gmra.mxu1 %vm1364_vm3, %v12662_v57  ;;  %v12445_v57 = vld [vmem:[#allocation102 + $0x20] sm:$0xff]  }
0x1606   :  { %11708 = vmatpush3.bf16.msra.mxu1 %v12418_v56  ;;  %11723 = vmatprep.mubr.msk.bf16.mxu1 %vm14440_vm1, %v14439_v1  ;;  %v12438_v56 = vld [vmem:[#allocation100 + $0x18] sm:$0xff]  }
0x1607   :  { %11709 = vmatprep.subr.bf16.mxu1 %v14439_v1 }
0x160a   :  { %11710 = vmatpush3.bf16.msra.mxu1 %v12419_v10  ;;  %v12439_v10 = vld [vmem:[#allocation100 + $0x10] sm:$0xff]  }
0x160b   :  { %11711 = vmatprep.subr.bf16.mxu1 %v14439_v1 }
0x160e   :  { %11712 = vmatpush3.bf16.msra.mxu1 %v12420_v20  ;;  %v12441_v20 = vld [vmem:[#allocation100] sm:$0xff]  }
0x160f   :  { %11713 = vmatprep.subr.bf16.mxu1 %v14439_v1 }
0x1612   :  { %11714 = vmatpush3.bf16.msra.mxu1 %v12421_v60  ;;  %v12447_v60 = vld [vmem:[#allocation102 + $0x10] sm:$0xff]  }
0x1613   :  { %11715 = vmatprep.subr.bf16.mxu1 %v14439_v1 }
0x1616   :  { %11716 = vmatpush3.bf16.msra.mxu1 %v12422_v44  ;;  %v12448_v44 = vld [vmem:[#allocation102 + $0x8] sm:$0xff]  }
0x1617   :  { %11717 = vmatprep.subr.bf16.mxu1 %v14439_v1 }
0x161a   :  { %11718 = vmatpush3.bf16.msra.mxu1 %v12423_v61  ;;  %v12449_v61 = vld [vmem:[#allocation102] sm:$0xff]  }
0x161b   :  { %11719 = vmatprep.subr.bf16.mxu1 %v14439_v1 }
0x161e   :  { %11720 = vmatpush3.bf16.msra.mxu1 %v12424_v63 }
0x161f   :  { %11721 = vmatprep.subr.bf16.mxu1 %v14439_v1 }
0x1622   :  { %11722 = vmatpush3.bf16.msra.mxu1 %v12425_v2 }
0x1623   :  { %11747 = vmatprep.subr.bf16.mxu1 %v14439_v1 }
0x1625   :  { %11724 = vmatmul.mubr.bf16.vlgmr.msra.gmra.mxu1 %v15640_v9 }
0x1626   :  { %11749 = vmatprep.mubr.msk.bf16.mxu1 %vm14440_vm1, %v14439_v1 }
0x1689   :  { %v6406_v3 = vpop.f32.mrf.mxu0 }
0x168b   :  { %v11705_v4 = vpop.f32.mrf.mxu0 }
0x168d   :  { %v6409_v62 = vpop.f32.mrf.mxu0 }
0x168e   :  { %v6502_v51 = vpack.c.bf16 %v6409_v62, %v6406_v3 }
0x168f   :  { %v11706_v53 = vpop.f32.mrf.mxu0 }
0x1690   :  { %11744 = vmatmul.mubr.bf16.vlgmr.msra.gmra.mxu0 %v6502_v51 }
0x1691   :  { %11755 = vmatprep.mubr.msk.bf16.mxu0 %vm14440_vm1, %v14439_v1 }
0x16c5   :  { %v6320_v7 = vpop.f32.mrf.mxu1 }
0x16c6   :  { %v6327_v0 = vmul.f32 0.5, %v6320_v7 }
0x16c7   :  { %v11699_v8 = vpop.f32.mrf.mxu1 }
0x16c8   :  { %v6329_v49 = vadd.f32 %v6327_v0, %v15654_v38 }
0x16c9   :  { %v6323_v14 = vpop.f32.mrf.mxu1 }
0x16ca   :  { %v6328_v15 = vmul.f32 0.5, %v6323_v14  ;;  %v6331_v13 = vmax.f32 %v6329_v49, 0.0 }
0x16cb   :  { %v11700_v9 = vpop.f32.mrf.mxu1 }
0x16cc   :  { %v6330_v17 = vadd.f32 %v6328_v15, %v15658_v28 }
0x16ce   :  { %v6332_v40 = vmax.f32 %v6330_v17, 0.0 }
0x16d0   :  { %v15683_v18 = vpack.c.bf16 %v6332_v40, %v6331_v13 }
0x16d2   :  { %v6766_v45 = vand.u32 %v15683_v18, %v15148_v41 }
0x16e5   :  { %v6495_v19 = vpop.f32.mrf.mxu1 }
0x16e7   :  { %v11725_v21 = vpop.f32.mrf.mxu1 }
0x16e9   :  { %v6498_v22 = vpop.f32.mrf.mxu1 }
0x16eb   :  { %v11726_v5 = vpop.f32.mrf.mxu1 }
0x1750   :  { %v6585_v32 = vpop.f32.mrf.mxu0 }
0x1751   :  { %v6592_v24 = vsub.f32 %v6495_v19, %v6585_v32 }
0x1752   :  { %v11745_v25 = vpop.f32.mrf.mxu0 }
0x1753   :  { %v15685_v31 = vadd.f32 %v10269_v36, %v6592_v24 }
0x1754   :  { %v6588_v29 = vpop.f32.mrf.mxu0 }
0x1755   :  { %v6593_v38 = vsub.f32 %v6498_v22, %v6588_v29  ;;  %v6646_v28 = vmul.f32 %v15685_v31, %v15685_v31 }
0x1756   :  { %v11746_v34 = vpop.f32.mrf.mxu0 }
0x1757   :  { %v15687_v35 = vadd.f32 %v10269_v36, %v6593_v38  ;;  %v10272_v36 = vld [vmem:[#allocation97] ss:$0 sm:$0xff]  ;;  %v10273_v38 = vld [vmem:[#allocation99] ss:$0 sm:$0xff] }
0x1759   :  { %v6602_v47 = vpack.c.bf16 %v15687_v35, %v15685_v31  ;;  %v6647_v30 = vmul.f32 %v15687_v35, %v15687_v35 }
0x175b   :  { %v6648_v37 = vpack.c.bf16 %v6647_v30, %v6646_v28  ;;  %v6604_v39 = vand.u32 %v6602_v47, %v15117_v6 }
0x175d   :  { %11748 = vmatpush3.bf16.msra.mxu1 %v6604_v39  ;;  %v6650_v43 = vand.u32 %v6648_v37, %v15117_v6 }
0x175e   :  { %11759 = vmatprep.subr.bf16.mxu1 %v14439_v1 }
0x175f   :  { %11754 = vmatpush3.bf16.msra.mxu0 %v6650_v43  ;;  %v7135_v43 = vld [vmem:[#allocation2 + $0x20] sm:$0x3] }
0x1760   :  { %11750 = vmatmul.mubr.msk.bf16.vlgmr.msra.gmra.mxu1 %vm1364_vm3, %v14442_v46  ;;  %11765 = vmatprep.subr.bf16.mxu0 %v14439_v1 }
0x1761   :  { %11760 = vmatpush3.bf16.msra.mxu1 %v6766_v45  ;;  %11761 = vmatprep.mubr.msk.bf16.mxu1 %vm14440_vm1, %v14439_v1 }
0x1762   :  { %11756 = vmatmul.mubr.msk.bf16.vlgmr.msra.gmra.mxu0 %vm1364_vm3, %v14442_v46  ;;  %11785 = vmatprep.subr.bf16.mxu1 %v14439_v1 }
0x1763   :  { %11766 = vmatpush3.bf16.msra.mxu0 %v12434_v48  ;;  %11781 = vmatprep.mubr.msk.bf16.mxu0 %vm14440_vm1, %v14439_v1 }
0x1764   :  { %11767 = vmatprep.subr.bf16.mxu0 %v14439_v1 }
0x1767   :  { %11768 = vmatpush3.bf16.msra.mxu0 %v12435_v12 }
0x1768   :  { %11762 = vmatmul.mubr.msk.bf16.vlgmr.msra.gmra.mxu1 %vm1688_vm6, %v12663_v52  ;;  %11769 = vmatprep.subr.bf16.mxu0 %v14439_v1 }
0x1769   :  { %11786 = vmatpush3.bf16.msra.mxu1 %v12442_v16  ;;  %11801 = vmatprep.mubr.msk.bf16.mxu1 %vm14440_vm1, %v14439_v1 }
0x176a   :  { %11787 = vmatprep.subr.bf16.mxu1 %v14439_v1 }
0x176b   :  { %11770 = vmatpush3.bf16.msra.mxu0 %v12436_v50 }
0x176c   :  { %11771 = vmatprep.subr.bf16.mxu0 %v14439_v1 }
0x176d   :  { %11788 = vmatpush3.bf16.msra.mxu1 %v12443_v23 }
0x176e   :  { %11789 = vmatprep.subr.bf16.mxu1 %v14439_v1 }
0x176f   :  { %11772 = vmatpush3.bf16.msra.mxu0 %v12437_v54  ;;  %v10291_v54 = vld [vmem:[#allocation103] ss:$0 sm:$0xff] }
0x1770   :  { %11773 = vmatprep.subr.bf16.mxu0 %v14439_v1 }
0x1771   :  { %11790 = vmatpush3.bf16.msra.mxu1 %v12444_v55 }
0x1772   :  { %11791 = vmatprep.subr.bf16.mxu1 %v14439_v1 }
0x1773   :  { %11774 = vmatpush3.bf16.msra.mxu0 %v12438_v56 }
0x1774   :  { %11775 = vmatprep.subr.bf16.mxu0 %v14439_v1 }
0x1775   :  { %11792 = vmatpush3.bf16.msra.mxu1 %v12445_v57 }
0x1776   :  { %11793 = vmatprep.subr.bf16.mxu1 %v14439_v1 }
0x1777   :  { %11776 = vmatpush3.bf16.msra.mxu0 %v12439_v10 }
0x1778   :  { %11777 = vmatprep.subr.bf16.mxu0 %v14439_v1 }
0x1779   :  { %11794 = vmatpush3.bf16.msra.mxu1 %v12446_v59 }
0x177a   :  { %11795 = vmatprep.subr.bf16.mxu1 %v14439_v1 }
0x177b   :  { %11778 = vmatpush3.bf16.msra.mxu0 %v12440_v58 }
0x177c   :  { %11779 = vmatprep.subr.bf16.mxu0 %v14439_v1 }
0x177d   :  { %11796 = vmatpush3.bf16.msra.mxu1 %v12447_v60 }
0x177e   :  { %11797 = vmatprep.subr.bf16.mxu1 %v14439_v1 }
0x177f   :  { %11780 = vmatpush3.bf16.msra.mxu0 %v12441_v20 }
0x1780   :  { %11805 = vmatprep.subr.bf16.mxu0 %v14439_v1 }
0x1781   :  { %11798 = vmatpush3.bf16.msra.mxu1 %v12448_v44 }
0x1782   :  { %11782 = vmatmul.mubr.bf16.vlgmr.msra.gmra.mxu0 %v15683_v18  ;;  %11799 = vmatprep.subr.bf16.mxu1 %v14439_v1 }
0x1783   :  { %11807 = vmatprep.mubr.msk.bf16.mxu0 %vm14440_vm1, %v14439_v1 }
0x1785   :  { %11800 = vmatpush3.bf16.msra.mxu1 %v12449_v61  ;;  %v12450_v61 = vld [vmem:[%s16147_s23 + $0x78] sm:$0xff]  }
0x1786   :  { %11811 = vmatprep.subr.bf16.mxu1 %v14439_v1 }
0x1820   :  { %v6640_v63 = vpop.f32.mrf.mxu1 }
0x1821   :  { %v6692_v2 = vmul.f32 0.09090909, %v6640_v63 }
0x1822   :  { %v11751_v3 = vpop.f32.mrf.mxu1  ;;  %v6686_v4 = vpop.f32.mrf.mxu0 }
0x1823   :  { %v6694_v62 = vmul.f32 %v6692_v2, %v6692_v2  ;;  %v6693_v51 = vmul.f32 0.09090909, %v6686_v4  ;;  %v6700_v21 = vrot.slane %v6692_v2, %v15180_v11  ;;  %v12455_v3 = vld [vmem:[%s16147_s23 + $0xf8] sm:$0xff]  }
0x1824   :  { %v6643_v53 = vpop.f32.mrf.mxu1  ;;  %v11757_v7 = vpop.f32.mrf.mxu0 }
0x1825   :  { %v6695_v0 = vsub.f32 %v6693_v51, %v6694_v62  ;;  %v6701_v5 = vsub.f32 %v15685_v31, %v6700_v21  ;;  %v6702_v32 = vsub.f32 %v15687_v35, %v6700_v21  ;;  %v12451_v62 = vld [vmem:[%s16147_s23 + $0x38] sm:$0xff]   ;;  %v12460_v51 = vld [vmem:[%s16147_s23 + $0x70] sm:$0xff]  }
0x1826   :  { %v11752_v8 = vpop.f32.mrf.mxu1  ;;  %v6689_v49 = vpop.f32.mrf.mxu0  ;;  %v15756_v53 = vld [vmem:[#allocation2 + $0x4] ss:$20 sps:$4 sm:$0x3f]  }
0x1827   :  { %v6696_v14 = vmax.f32 %v6695_v0, 0.0  ;;  %v12456_v7 = vld [vmem:[%s16147_s23 + $0xb8] sm:$0xff]   ;;  %v12462_v0 = vld [vmem:[%s16147_s23 + $0xf0] sm:$0xff]  }
0x1828   :  { %v6802_v15 = vpop.f32.mrf.mxu1  ;;  %v11758_v9 = vpop.f32.mrf.mxu0  ;;  %v12461_v49 = vld [vmem:[%s16147_s23 + $0x30] sm:$0xff]   ;;  %v12472_v21 = vld [vmem:[%s16147_s23 + $0x58] sm:$0xff]  }
0x1829   :  { %v6703_v17 = vadd.f32 1e-05, %v6696_v14  ;;  %v12464_v14 = vld [vmem:[%s16147_s23 + $0x68] sm:$0xff]  }
0x182a   :  { %v11763_v13 = vpop.f32.mrf.mxu1  ;;  %v12466_v9 = vld [vmem:[%s16147_s23 + $0xe8] sm:$0xff]  }
0x182b   :  { %12650 = vrsqrt.f32 %v6703_v17  ;;  %v12465_v17 = vld [vmem:[%s16147_s23 + $0x28] sm:$0xff]   ;;  %v12468_v13 = vld [vmem:[%s16147_s23 + $0x60] sm:$0xff]  }
0x182c   :  { %v6805_v40 = vpop.f32.mrf.mxu1 }
0x182d   :  { %v6898_v18 = vpack.c.bf16 %v6805_v40, %v6802_v15  ;;  %v12463_v15 = vld [vmem:[%s16147_s23 + $0xb0] sm:$0xff]   ;;  %v12467_v40 = vld [vmem:[%s16147_s23 + $0xa8] sm:$0xff]  }
0x182e   :  { %v11764_v19 = vpop.f32.mrf.mxu1 }
0x182f   :  { %11802 = vmatmul.mubr.bf16.vlgmr.msra.gmra.mxu1 %v6898_v18  ;;  %v12470_v18 = vld [vmem:[%s16147_s23 + $0xe0] sm:$0xff]  }
0x1830   :  { %11813 = vmatprep.mubr.msk.bf16.mxu1 %vm14440_vm1, %v14439_v1  ;;  %v12469_v19 = vld [vmem:[%s16147_s23 + $0x20] sm:$0xff]  }
0x1838   :  { %v12651_v22 = vpop.eup %12650 }
0x1839   :  { %v6708_v24 = vrot.slane %v12651_v22, %v15180_v11  ;;  %v12471_v22 = vld [vmem:[%s16147_s23 + $0xa0] sm:$0xff]  }
0x183b   :  { %v6709_v25 = vmul.f32 %v6708_v24, %v6701_v5  ;;  %v6710_v29 = vmul.f32 %v6708_v24, %v6702_v32  ;;  %v12474_v5 = vld [vmem:[%s16147_s23 + $0xd8] sm:$0xff]   ;;  %v12476_v24 = vld [vmem:[%s16147_s23 + $0x50] sm:$0xff]  }
0x183c   :  { %v12473_v32 = vld [vmem:[%s16147_s23 + $0x18] sm:$0xff]  }
0x183d   :  { %v6717_v34 = vmul.f32 %v10272_v36, %v6709_v25  ;;  %v6718_v28 = vmul.f32 %v10272_v36, %v6710_v29  ;;  %v12475_v36 = vld [vmem:[%s16147_s23 + $0x98] sm:$0xff]   ;;  %v12478_v25 = vld [vmem:[%s16147_s23 + $0xd0] sm:$0xff]  }
0x183e   :  { %v12477_v29 = vld [vmem:[%s16147_s23 + $0x10] sm:$0xff]  }
0x183f   :  { %v6725_v47 = vadd.f32 %v10273_v38, %v6717_v34  ;;  %v6726_v30 = vadd.f32 %v10273_v38, %v6718_v28  ;;  %v12480_v38 = vld [vmem:[%s16147_s23 + $0x48] sm:$0xff]   ;;  %v12479_v34 = vld [vmem:[%s16147_s23 + $0x90] sm:$0xff]  }
0x1840   :  { %v12482_v28 = vld [vmem:[%s16147_s23 + $0xc8] sm:$0xff]  }
0x1841   :  { %v6727_v37 = vmax.f32 %v6725_v47, 0.0  ;;  %v6728_v39 = vmax.f32 %v6726_v30, 0.0  ;;  %v12481_v47 = vld [vmem:[%s16147_s23 + $0x8] sm:$0xff]   ;;  %v12484_v30 = vld [vmem:[%s16147_s23 + $0x40] sm:$0xff]  }
0x1842   :  { %v6891_v45 = vpop.f32.mrf.mxu0 }
0x1843   :  { %v10521_v48 = vpack.c.bf16 %v6727_v37, %v6727_v37  ;;  %v10522_v12 = vpack.c.bf16 %v6728_v39, %v6728_v39  ;;  %v12483_v37 = vld [vmem:[%s16147_s23 + $0x88] sm:$0xff]   ;;  %v12486_v39 = vld [vmem:[%s16147_s23 + $0xc0] sm:$0xff]  }
0x1844   :  { %v11783_v16 = vpop.f32.mrf.mxu0 }
0x1845   :  { %7134 = vst [vmem:[#allocation2 + $0xc] sm:$0xf] %v10521_v48  ;;  %v7136_v31 = vsel %vm15186_vm10, %v10522_v12, %v7135_v43  ;;  %v12485_v43 = vld [vmem:[%s16147_s23] sm:$0xff]   ;;  %v12489_v12 = vld [vmem:[#allocation112 + $0x38] sm:$0xff]  }
0x1846   :  { %7137 = vst [vmem:[#allocation2 + $0x20] sm:$0x3] %v7136_v31  ;;  %v6894_v35 = vpop.f32.mrf.mxu0  ;;  %v12487_v48 = vld [vmem:[%s16147_s23 + $0x80] sm:$0xff]  }
0x1847   :  { %v15794_v16 = vld [vmem:[#allocation2] ss:$20 sps:$4 sm:$0x3f]  }
0x1848   :  { %v11784_v50 = vpop.f32.mrf.mxu0  ;;  %v12493_v31 = vld [vmem:[#allocation112 + $0x70] sm:$0xff]  }
0x1849   :  { %v15798_v50 = vld [vmem:[#allocation2 + $0x8] ss:$20 sps:$4 sm:$0x3f]  }
0x184d   :  { %v15763_v8 = vld [vmem:[#allocation2 + $0xc] ss:$20 sps:$4 sm:$0x3f]  }
0x18ef   :  { %v6981_v52 = vpop.f32.mrf.mxu1 }
0x18f0   :  { %v6988_v23 = vsub.f32 %v6891_v45, %v6981_v52  ;;  %v12488_v45 = vld [vmem:[#allocation112 + $0x78] sm:$0xff]   ;;  %v12494_v52 = vld [vmem:[#allocation112 + $0x30] sm:$0xff]  }
0x18f1   :  { %v11803_v55 = vpop.f32.mrf.mxu1 }
0x18f2   :  { %v15740_v57 = vadd.f32 %v10291_v54, %v6988_v23  ;;  %v12495_v23 = vld [vmem:[#allocation112 + $0x68] sm:$0xff]   ;;  %v12497_v55 = vld [vmem:[#allocation112 + $0x60] sm:$0xff]  }
0x18f3   :  { %v6984_v56 = vpop.f32.mrf.mxu1 }
0x18f4   :  { %v6989_v10 = vsub.f32 %v6894_v35, %v6984_v56  ;;  %v7042_v59 = vmul.f32 %v15740_v57, %v15740_v57  ;;  %v15796_v35 = vld [vmem:[#allocation3 + $0x4] ss:$20 sps:$4 sm:$0x7f]   ;;  %v12498_v56 = vld [vmem:[#allocation112 + $0x20] sm:$0xff]  }
0x18f5   :  { %v11804_v58 = vpop.f32.mrf.mxu1 }
0x18f6   :  { %v15742_v20 = vadd.f32 %v10291_v54, %v6989_v10  ;;  %v12496_v54 = vld [vmem:[#allocation112 + $0x28] sm:$0xff]   ;;  %v12499_v10 = vld [vmem:[#allocation112 + $0x58] sm:$0xff]  }
0x18f7   :  { %v12500_v58 = vld [vmem:[#allocation112 + $0x18] sm:$0xff]  }
0x18f8   :  { %v6998_v60 = vpack.c.bf16 %v15742_v20, %v15740_v57  ;;  %v7043_v44 = vmul.f32 %v15742_v20, %v15742_v20 }
0x18fa   :  { %v7044_v63 = vpack.c.bf16 %v7043_v44, %v7042_v59  ;;  %v7000_v2 = vand.u32 %v6998_v60, %v15148_v41  ;;  %v12501_v59 = vld [vmem:[#allocation112 + $0x50] sm:$0xff]   ;;  %v12503_v44 = vld [vmem:[#allocation112 + $0x48] sm:$0xff]  }
0x18fb   :  { %v12502_v60 = vld [vmem:[#allocation112 + $0x10] sm:$0xff]  }
0x18fc   :  { %11806 = vmatpush3.bf16.msra.mxu0 %v7000_v2  ;;  %v7046_v4 = vand.u32 %v7044_v63, %v15148_v41  ;;  %v12505_v63 = vld [vmem:[#allocation112 + $0x40] sm:$0xff]  }
0x18fd   :  { %10955 = vmatprep.subr.bf16.mxu0 %v12450_v61  ;;  %v12504_v61 = vld [vmem:[#allocation112 + $0x8] sm:$0xff]   ;;  %v12506_v2 = vld [vmem:[#allocation112] sm:$0xff]  }
0x18fe   :  { %11812 = vmatpush3.bf16.msra.mxu1 %v7046_v4  ;;  %v12507_v4 = vld [vmem:[#allocation112 + $0xf8] sm:$0xff]  }
0x18ff   :  { %11808 = vmatmul.mubr.msk.bf16.vlgmr.msra.gmra.mxu0 %vm1688_vm6, %v14442_v46  ;;  %10977 = vmatprep.subr.bf16.mxu1 %v12455_v3  ;;  %v15803_v3 = vld [vmem:[#allocation3] ss:$20 sps:$4 sm:$0x7f]  }
0x1900   :  { %10956 = vmatpush3.bf16.msra.mxu0 %v12451_v62  ;;  %7667 = vmatprep.mubr.bf16.mxu0 %v15756_v53  ;;  %v12508_v62 = vld [vmem:[#allocation112 + $0xb8] sm:$0xff]  }
0x1901   :  { %11814 = vmatmul.mubr.msk.bf16.vlgmr.msra.gmra.mxu1 %vm1688_vm6, %v14442_v46  ;;  %10957 = vmatprep.subr.bf16.mxu0 %v12460_v51  ;;  %v12509_v51 = vld [vmem:[#allocation112 + $0xf0] sm:$0xff]  }
0x1902   :  { %10978 = vmatpush3.bf16.msra.mxu1 %v12456_v7  ;;  %7708 = vmatprep.mubr.bf16.mxu1 %v15763_v8  ;;  %v12510_v7 = vld [vmem:[#allocation112 + $0xb0] sm:$0xff]  }
0x1903   :  { %10979 = vmatprep.subr.bf16.mxu1 %v12462_v0  ;;  %v12511_v0 = vld [vmem:[#allocation112 + $0xe8] sm:$0xff]  }
0x1904   :  { %10958 = vmatpush3.bf16.msra.mxu0 %v12461_v49  ;;  %v12512_v49 = vld [vmem:[#allocation112 + $0xa8] sm:$0xff]  }
0x1905   :  { %10959 = vmatprep.subr.bf16.mxu0 %v12464_v14  ;;  %v12513_v14 = vld [vmem:[#allocation112 + $0xe0] sm:$0xff]  }
0x1906   :  { %10980 = vmatpush3.bf16.msra.mxu1 %v12463_v15  ;;  %v12514_v15 = vld [vmem:[#allocation112 + $0xa0] sm:$0xff]  }
0x1907   :  { %10981 = vmatprep.subr.bf16.mxu1 %v12466_v9  ;;  %v12515_v9 = vld [vmem:[#allocation112 + $0xd8] sm:$0xff]  }
0x1908   :  { %10960 = vmatpush3.bf16.msra.mxu0 %v12465_v17  ;;  %v12516_v17 = vld [vmem:[#allocation112 + $0x98] sm:$0xff]  }
0x1909   :  { %10961 = vmatprep.subr.bf16.mxu0 %v12468_v13  ;;  %v12517_v13 = vld [vmem:[#allocation112 + $0xd0] sm:$0xff]  }
0x190a   :  { %10982 = vmatpush3.bf16.msra.mxu1 %v12467_v40  ;;  %v12518_v40 = vld [vmem:[#allocation112 + $0x90] sm:$0xff]  }
0x190b   :  { %10983 = vmatprep.subr.bf16.mxu1 %v12470_v18  ;;  %v12519_v18 = vld [vmem:[#allocation112 + $0xc8] sm:$0xff]  }
0x190c   :  { %10962 = vmatpush3.bf16.msra.mxu0 %v12469_v19  ;;  %v12520_v19 = vld [vmem:[#allocation112 + $0x88] sm:$0xff]  }
0x190d   :  { %10963 = vmatprep.subr.bf16.mxu0 %v12472_v21  ;;  %v12521_v21 = vld [vmem:[#allocation112 + $0xc0] sm:$0xff]  }
0x190e   :  { %10984 = vmatpush3.bf16.msra.mxu1 %v12471_v22  ;;  %v12522_v22 = vld [vmem:[#allocation112 + $0x80] sm:$0xff]  }
0x190f   :  { %10985 = vmatprep.subr.bf16.mxu1 %v12474_v5  ;;  %v12526_v5 = vld [vmem:[#allocation111 + $0x78] sm:$0xff]  }
0x1910   :  { %10964 = vmatpush3.bf16.msra.mxu0 %v12473_v32 }
0x1911   :  { %10965 = vmatprep.subr.bf16.mxu0 %v12476_v24 }
0x1912   :  { %10986 = vmatpush3.bf16.msra.mxu1 %v12475_v36 }
0x1913   :  { %10987 = vmatprep.subr.bf16.mxu1 %v12478_v25 }
0x1914   :  { %10966 = vmatpush3.bf16.msra.mxu0 %v12477_v29 }
0x1915   :  { %10967 = vmatprep.subr.bf16.mxu0 %v12480_v38 }
0x1916   :  { %10988 = vmatpush3.bf16.msra.mxu1 %v12479_v34 }
0x1917   :  { %10989 = vmatprep.subr.bf16.mxu1 %v12482_v28 }
0x1918   :  { %10968 = vmatpush3.bf16.msra.mxu0 %v12481_v47 }
0x1919   :  { %10969 = vmatprep.subr.bf16.mxu0 %v12484_v30 }
0x191a   :  { %10990 = vmatpush3.bf16.msra.mxu1 %v12483_v37 }
0x191b   :  { %10991 = vmatprep.subr.bf16.mxu1 %v12486_v39 }
0x191c   :  { %10970 = vmatpush3.bf16.msra.mxu0 %v12485_v43 }
0x191d   :  { %10999 = vmatprep.subr.bf16.mxu0 %v12488_v45 }
0x191e   :  { %10992 = vmatpush3.bf16.msra.mxu1 %v12487_v48 }
0x191f   :  { %7668 = vmatmul.mubr.bf16.vlgmr.msra.gmra.mxu0 %v15794_v16  ;;  %11021 = vmatprep.subr.bf16.mxu1 %v12507_v4  ;;  %v7146_v4 = vld [vmem:[#allocation3 + $0x20] sm:$0x7] }
0x1920   :  { %11000 = vmatpush3.bf16.msra.mxu0 %v12489_v12  ;;  %7967 = vmatprep.mubr.bf16.mxu0 %v15796_v35 }
0x1921   :  { %7709 = vmatmul.mubr.bf16.vlgmr.msra.gmra.mxu1 %v15798_v50  ;;  %11001 = vmatprep.subr.bf16.mxu0 %v12493_v31 }
0x1922   :  { %11022 = vmatpush3.bf16.msra.mxu1 %v12508_v62  ;;  %v10300_v62 = vld [vmem:[#allocation108] ss:$0 sm:$0xff] }
0x1923   :  { %11023 = vmatprep.subr.bf16.mxu1 %v12509_v51 }
0x1924   :  { %11002 = vmatpush3.bf16.msra.mxu0 %v12494_v52 }
0x1925   :  { %11003 = vmatprep.subr.bf16.mxu0 %v12495_v23 }
0x1926   :  { %11024 = vmatpush3.bf16.msra.mxu1 %v12510_v7 }
0x1927   :  { %11025 = vmatprep.subr.bf16.mxu1 %v12511_v0 }
0x1928   :  { %11004 = vmatpush3.bf16.msra.mxu0 %v12496_v54  ;;  %v10294_v54 = vld [vmem:[#allocation105] ss:$0 sm:$0xff] }
0x1929   :  { %11005 = vmatprep.subr.bf16.mxu0 %v12497_v55 }
0x192a   :  { %11026 = vmatpush3.bf16.msra.mxu1 %v12512_v49 }
0x192b   :  { %11027 = vmatprep.subr.bf16.mxu1 %v12513_v14 }
0x192c   :  { %11006 = vmatpush3.bf16.msra.mxu0 %v12498_v56 }
0x192d   :  { %11007 = vmatprep.subr.bf16.mxu0 %v12499_v10  ;;  %v10295_v10 = vld [vmem:[#allocation106] ss:$0 sm:$0xff] }
0x192e   :  { %11028 = vmatpush3.bf16.msra.mxu1 %v12514_v15 }
0x192f   :  { %11029 = vmatprep.subr.bf16.mxu1 %v12515_v9 }
0x1930   :  { %11008 = vmatpush3.bf16.msra.mxu0 %v12500_v58 }
0x1931   :  { %11009 = vmatprep.subr.bf16.mxu0 %v12501_v59 }
0x1932   :  { %11030 = vmatpush3.bf16.msra.mxu1 %v12516_v17 }
0x1933   :  { %11031 = vmatprep.subr.bf16.mxu1 %v12517_v13 }
0x1934   :  { %11010 = vmatpush3.bf16.msra.mxu0 %v12502_v60 }
0x1935   :  { %11011 = vmatprep.subr.bf16.mxu0 %v12503_v44 }
0x1936   :  { %11032 = vmatpush3.bf16.msra.mxu1 %v12518_v40 }
0x1937   :  { %11033 = vmatprep.subr.bf16.mxu1 %v12519_v18 }
0x1938   :  { %11012 = vmatpush3.bf16.msra.mxu0 %v12504_v61 }
0x1939   :  { %11013 = vmatprep.subr.bf16.mxu0 %v12505_v63 }
0x193a   :  { %11034 = vmatpush3.bf16.msra.mxu1 %v12520_v19 }
0x193b   :  { %11035 = vmatprep.subr.bf16.mxu1 %v12521_v21 }
0x193c   :  { %11014 = vmatpush3.bf16.msra.mxu0 %v12506_v2 }
0x193d   :  { %11817 = vmatprep.subr.bf16.mxu0 %v14439_v1 }
0x193e   :  { %11036 = vmatpush3.bf16.msra.mxu1 %v12522_v22 }
0x193f   :  { %7968 = vmatmul.mubr.bf16.vlgmr.msra.gmra.mxu0 %v15803_v3  ;;  %11045 = vmatprep.subr.bf16.mxu1 %v12526_v5 }
0x1940   :  { %11819 = vmatprep.mubr.msk.bf16.mxu0 %vm14440_vm1, %v14439_v1 }
0x19bf   :  { %v7036_v32 = vpop.f32.mrf.mxu0 }
0x19c0   :  { %v7088_v24 = vmul.f32 0.07692308, %v7036_v32 }
0x19c1   :  { %v11809_v36 = vpop.f32.mrf.mxu0  ;;  %v7082_v25 = vpop.f32.mrf.mxu1 }
0x19c2   :  { %v7090_v29 = vmul.f32 %v7088_v24, %v7088_v24  ;;  %v7089_v38 = vmul.f32 0.07692308, %v7082_v25  ;;  %v7096_v48 = vrot.slane %v7088_v24, %v15180_v11  ;;  %v15819_v24 = vld [vmem:[#allocation3 + $0x8] ss:$20 sps:$4 sm:$0x7f]  }
0x19c3   :  { %v7039_v34 = vpop.f32.mrf.mxu0  ;;  %v11815_v28 = vpop.f32.mrf.mxu1  ;;  %v12527_v25 = vld [vmem:[#allocation111 + $0x38] sm:$0xff]  }
0x19c4   :  { %v7091_v47 = vsub.f32 %v7089_v38, %v7090_v29  ;;  %v7097_v31 = vsub.f32 %v15740_v57, %v7096_v48  ;;  %v7098_v52 = vsub.f32 %v15742_v20, %v7096_v48  ;;  %v12528_v29 = vld [vmem:[#allocation111 + $0x70] sm:$0xff]   ;;  %v12530_v34 = vld [vmem:[#allocation111 + $0x68] sm:$0xff]  }
0x19c5   :  { %v11810_v30 = vpop.f32.mrf.mxu0  ;;  %v7085_v37 = vpop.f32.mrf.mxu1  ;;  %v12529_v38 = vld [vmem:[#allocation111 + $0x30] sm:$0xff]   ;;  %v12531_v28 = vld [vmem:[#allocation111 + $0x28] sm:$0xff]  }
0x19c6   :  { %v7092_v39 = vmax.f32 %v7091_v47, 0.0  ;;  %v12532_v47 = vld [vmem:[#allocation111 + $0x60] sm:$0xff]   ;;  %v12534_v37 = vld [vmem:[#allocation111 + $0x58] sm:$0xff]   ;;  %v12538_v48 = vld [vmem:[#allocation111 + $0x48] sm:$0xff]  }
0x19c7   :  { %v11816_v43 = vpop.f32.mrf.mxu1  ;;  %v12533_v30 = vld [vmem:[#allocation111 + $0x20] sm:$0xff]  }
0x19c8   :  { %v7099_v45 = vadd.f32 1e-05, %v7092_v39  ;;  %v12535_v39 = vld [vmem:[#allocation111 + $0x18] sm:$0xff]   ;;  %v12536_v43 = vld [vmem:[#allocation111 + $0x50] sm:$0xff]  }
0x19ca   :  { %12652 = vrsqrt.f32 %v7099_v45  ;;  %v12537_v45 = vld [vmem:[#allocation111 + $0x10] sm:$0xff]  }
0x19d7   :  { %v12653_v12 = vpop.eup %12652 }
0x19d8   :  { %v7104_v23 = vrot.slane %v12653_v12, %v15180_v11  ;;  %v12540_v12 = vld [vmem:[#allocation111 + $0x40] sm:$0xff]  }
0x19da   :  { %v7105_v55 = vmul.f32 %v7104_v23, %v7097_v31  ;;  %v7106_v56 = vmul.f32 %v7104_v23, %v7098_v52  ;;  %v12541_v31 = vld [vmem:[#allocation111] sm:$0xff]   ;;  %v12542_v52 = vld [vmem:[#allocation109 + $0x78] sm:$0xff]  }
0x19db   :  { %v12543_v23 = vld [vmem:[#allocation109 + $0x38] sm:$0xff]  }
0x19dc   :  { %v7113_v58 = vmul.f32 %v10294_v54, %v7105_v55  ;;  %v7114_v59 = vmul.f32 %v10294_v54, %v7106_v56  ;;  %v12544_v54 = vld [vmem:[#allocation109 + $0x70] sm:$0xff]   ;;  %v12546_v56 = vld [vmem:[#allocation109 + $0x68] sm:$0xff]  }
0x19dd   :  { %v12545_v55 = vld [vmem:[#allocation109 + $0x30] sm:$0xff]  }
0x19de   :  { %v7121_v60 = vadd.f32 %v10295_v10, %v7113_v58  ;;  %v7122_v44 = vadd.f32 %v10295_v10, %v7114_v59  ;;  %v12547_v10 = vld [vmem:[#allocation109 + $0x28] sm:$0xff]   ;;  %v12548_v58 = vld [vmem:[#allocation109 + $0x60] sm:$0xff]  }
0x19df   :  { %v10971_v61 = vpop.f32.mrf.mxu0  ;;  %v12549_v59 = vld [vmem:[#allocation109 + $0x20] sm:$0xff]  }
0x19e0   :  { %v7123_v63 = vmax.f32 %v7121_v60, 0.0  ;;  %v7124_v2 = vmax.f32 %v7122_v44, 0.0  ;;  %v12550_v60 = vld [vmem:[#allocation109 + $0x58] sm:$0xff]  }
0x19e1   :  { %v10972_v51 = vpop.f32.mrf.mxu0  ;;  %v10993_v7 = vpop.f32.mrf.mxu1  ;;  %v12551_v44 = vld [vmem:[#allocation109 + $0x18] sm:$0xff]  }
0x19e2   :  { %v10523_v57 = vpack.c.bf16 %v7123_v63, %v7123_v63  ;;  %v10524_v0 = vpack.c.bf16 %v7124_v2, %v7124_v2  ;;  %v10973_v20 = vadd.f32 %v10972_v51, %v10971_v61  ;;  %v12552_v61 = vld [vmem:[#allocation109 + $0x50] sm:$0xff]   ;;  %v12554_v63 = vld [vmem:[#allocation109 + $0x48] sm:$0xff]   ;;  %v12556_v2 = vld [vmem:[#allocation109 + $0x40] sm:$0xff]  }
0x19e3   :  { %v10974_v49 = vpop.f32.mrf.mxu0  ;;  %v10994_v14 = vpop.f32.mrf.mxu1 }
0x19e4   :  { %7145 = vst [vmem:[#allocation3 + $0xc] sm:$0xf] %v10523_v57  ;;  %v7147_v15 = vsel %vm15241_vm13, %v10524_v0, %v7146_v4  ;;  %v7670_v9 = vadd.f32 %v10973_v20, %v10300_v62  ;;  %v10995_v17 = vadd.f32 %v10994_v14, %v10993_v7  ;;  %v12557_v4 = vld [vmem:[#allocation109] sm:$0xff]  }
0x19e5   :  { %7148 = vst [vmem:[#allocation3 + $0x20] sm:$0x7] %v7147_v15  ;;  %v10975_v13 = vpop.f32.mrf.mxu0  ;;  %v10996_v40 = vpop.f32.mrf.mxu1  ;;  %v10337_v15 = vld [vmem:[%s16148_s4] ss:$0 sm:$0xff] }
0x19e6   :  { %v15815_v18 = vadd.f32 %v10995_v17, %v7670_v9  ;;  %v10976_v19 = vadd.f32 %v10975_v13, %v10974_v49 }
0x19e7   :  { %v10997_v21 = vpop.f32.mrf.mxu1 }
0x19e8   :  { %v7673_v22 = vadd.f32 %v10976_v19, %v10300_v62  ;;  %v10998_v5 = vadd.f32 %v10997_v21, %v10996_v40 }
0x19ea   :  { %v15817_v32 = vadd.f32 %v10998_v5, %v7673_v22 }
0x19ec   :  { %v15821_v36 = vld [vmem:[#allocation3 + $0xc] ss:$20 sps:$4 sm:$0x7f]  }
0x19ed   :  { %8008 = vmatprep.mubr.bf16.mxu1 %v15821_v36 }
0x19ee   :  { %8009 = vmatmul.mubr.bf16.vlgmr.msra.gmra.mxu1 %v15819_v24 }
0x19ef   :  { %11046 = vmatpush3.bf16.msra.mxu1 %v12527_v25  ;;  %8298 = vmatprep.mubr.bf16.mxu1 %v15796_v35  ;;  %v12539_v35 = vld [vmem:[#allocation111 + $0x8] sm:$0xff]   ;;  %v12558_v25 = vld [vmem:[#allocation111 + $0xf8] sm:$0xff]  }
0x19f0   :  { %11047 = vmatprep.subr.bf16.mxu1 %v12528_v29 }
0x19f3   :  { %11048 = vmatpush3.bf16.msra.mxu1 %v12529_v38  ;;  %v12559_v38 = vld [vmem:[#allocation111 + $0xb8] sm:$0xff]  }
0x19f4   :  { %11049 = vmatprep.subr.bf16.mxu1 %v12530_v34  ;;  %v12560_v34 = vld [vmem:[#allocation111 + $0xf0] sm:$0xff]  }
0x19f7   :  { %11050 = vmatpush3.bf16.msra.mxu1 %v12531_v28  ;;  %v12664_v28 = vld [vmem:[#allocation9] sm:$0x3f]  }
0x19f8   :  { %11051 = vmatprep.subr.bf16.mxu1 %v12532_v47  ;;  %v12561_v47 = vld [vmem:[#allocation111 + $0xb0] sm:$0xff]  }
0x19fb   :  { %11052 = vmatpush3.bf16.msra.mxu1 %v12533_v30  ;;  %v12562_v30 = vld [vmem:[#allocation111 + $0xe8] sm:$0xff]  }
0x19fc   :  { %11053 = vmatprep.subr.bf16.mxu1 %v12534_v37  ;;  %v12563_v37 = vld [vmem:[#allocation111 + $0xa8] sm:$0xff]  }
0x19ff   :  { %11054 = vmatpush3.bf16.msra.mxu1 %v12535_v39  ;;  %v11015_v62 = vpop.f32.mrf.mxu0  ;;  %v12564_v39 = vld [vmem:[#allocation111 + $0xe0] sm:$0xff]  }
0x1a00   :  { %11055 = vmatprep.subr.bf16.mxu1 %v12536_v43  ;;  %v12565_v43 = vld [vmem:[#allocation111 + $0xa0] sm:$0xff]  }
0x1a01   :  { %v11016_v51 = vpop.f32.mrf.mxu0 }
0x1a02   :  { %v11017_v49 = vadd.f32 %v11016_v51, %v11015_v62  ;;  %v12582_v62 = vld [vmem:[#allocation109 + $0xd8] sm:$0xff]  }
0x1a03   :  { %11056 = vmatpush3.bf16.msra.mxu1 %v12537_v45  ;;  %v11018_v7 = vpop.f32.mrf.mxu0  ;;  %v12566_v45 = vld [vmem:[#allocation111 + $0xd8] sm:$0xff]  }
0x1a04   :  { %11057 = vmatprep.subr.bf16.mxu1 %v12538_v48  ;;  %v7970_v40 = vadd.f32 %v11017_v49, %v10337_v15  ;;  %v12567_v48 = vld [vmem:[#allocation111 + $0x98] sm:$0xff]  }
0x1a05   :  { %v11019_v57 = vpop.f32.mrf.mxu0  ;;  %v12583_v51 = vld [vmem:[#allocation109 + $0x98] sm:$0xff]  }
0x1a06   :  { %v11020_v14 = vadd.f32 %v11019_v57, %v11018_v7  ;;  %v12584_v7 = vld [vmem:[#allocation109 + $0xd0] sm:$0xff]   ;;  %v12586_v57 = vld [vmem:[#allocation109 + $0xc8] sm:$0xff]  }
0x1a07   :  { %11058 = vmatpush3.bf16.msra.mxu1 %v12539_v35 }
0x1a08   :  { %11059 = vmatprep.subr.bf16.mxu1 %v12540_v12  ;;  %v7973_v19 = vadd.f32 %v11020_v14, %v10337_v15  ;;  %v12568_v12 = vld [vmem:[#allocation111 + $0xd0] sm:$0xff]  }
0x1a0b   :  { %11060 = vmatpush3.bf16.msra.mxu1 %v12541_v31 }
0x1a0c   :  { %11089 = vmatprep.subr.bf16.mxu1 %v12542_v52 }
0x1a0e   :  { %8299 = vmatmul.mubr.bf16.vlgmr.msra.gmra.mxu1 %v15803_v3  ;;  %v12553_v3 = vld [vmem:[#allocation109 + $0x10] sm:$0xff]  }
0x1a0f   :  { %11090 = vmatpush3.bf16.msra.mxu1 %v12543_v23  ;;  %8578 = vmatprep.mubr.bf16.mxu1 %v15756_v53  ;;  %v12555_v53 = vld [vmem:[#allocation109 + $0x8] sm:$0xff]  }
0x1a10   :  { %11091 = vmatprep.subr.bf16.mxu1 %v12544_v54  ;;  %v12570_v54 = vld [vmem:[#allocation111 + $0xc8] sm:$0xff]  }
0x1a13   :  { %11092 = vmatpush3.bf16.msra.mxu1 %v12545_v55 }
0x1a14   :  { %11093 = vmatprep.subr.bf16.mxu1 %v12546_v56 }
0x1a17   :  { %11094 = vmatpush3.bf16.msra.mxu1 %v12547_v10  ;;  %v12571_v10 = vld [vmem:[#allocation111 + $0x88] sm:$0xff]  }
0x1a18   :  { %11095 = vmatprep.subr.bf16.mxu1 %v12548_v58  ;;  %v12572_v58 = vld [vmem:[#allocation111 + $0xc0] sm:$0xff]  }
0x1a1b   :  { %11096 = vmatpush3.bf16.msra.mxu1 %v12549_v59  ;;  %v12573_v59 = vld [vmem:[#allocation111 + $0x80] sm:$0xff]  }
0x1a1c   :  { %11097 = vmatprep.subr.bf16.mxu1 %v12550_v60  ;;  %v12574_v60 = vld [vmem:[#allocation109 + $0xf8] sm:$0xff]  }
0x1a1f   :  { %11098 = vmatpush3.bf16.msra.mxu1 %v12551_v44  ;;  %v12575_v44 = vld [vmem:[#allocation109 + $0xb8] sm:$0xff]  }
0x1a20   :  { %11099 = vmatprep.subr.bf16.mxu1 %v12552_v61  ;;  %v12576_v61 = vld [vmem:[#allocation109 + $0xf0] sm:$0xff]  }
0x1a23   :  { %11100 = vmatpush3.bf16.msra.mxu1 %v12553_v3  ;;  %v12577_v3 = vld [vmem:[#allocation109 + $0xb0] sm:$0xff]  }
0x1a24   :  { %11101 = vmatprep.subr.bf16.mxu1 %v12554_v63  ;;  %v12578_v63 = vld [vmem:[#allocation109 + $0xe8] sm:$0xff]  }
0x1a27   :  { %11102 = vmatpush3.bf16.msra.mxu1 %v12555_v53  ;;  %v12579_v53 = vld [vmem:[#allocation109 + $0xa8] sm:$0xff]  }
0x1a28   :  { %11103 = vmatprep.subr.bf16.mxu1 %v12556_v2  ;;  %v12580_v2 = vld [vmem:[#allocation109 + $0xe0] sm:$0xff]  }
0x1a2b   :  { %11104 = vmatpush3.bf16.msra.mxu1 %v12557_v4  ;;  %v12581_v4 = vld [vmem:[#allocation109 + $0xa0] sm:$0xff]  }
0x1a2c   :  { %11823 = vmatprep.subr.bf16.mxu1 %v14439_v1 }
0x1a2e   :  { %8579 = vmatmul.mubr.bf16.vlgmr.msra.gmra.mxu1 %v15794_v16 }
0x1a2f   :  { %11825 = vmatprep.mubr.msk.bf16.mxu1 %vm14440_vm1, %v14439_v1 }
0x1aae   :  { %v11037_v0 = vpop.f32.mrf.mxu1 }
0x1ab0   :  { %v11038_v20 = vpop.f32.mrf.mxu1 }
0x1ab1   :  { %v11039_v17 = vadd.f32 %v11038_v20, %v11037_v0  ;;  %v12588_v0 = vld [vmem:[#allocation109 + $0xc0] sm:$0xff]  }
0x1ab2   :  { %v11040_v9 = vpop.f32.mrf.mxu1  ;;  %v12589_v20 = vld [vmem:[#allocation109 + $0x80] sm:$0xff]  }
0x1ab3   :  { %v8011_v22 = vadd.f32 %v11039_v17, %v7970_v40 }
0x1ab4   :  { %v11041_v13 = vpop.f32.mrf.mxu1 }
0x1ab5   :  { %v11042_v21 = vadd.f32 %v11041_v13, %v11040_v9 }
0x1ab7   :  { %v8014_v16 = vadd.f32 %v11042_v21, %v7973_v19 }
0x1ab9   :  { %v8017_v5 = vpack.c.bf16 %v8014_v16, %v8011_v22 }
0x1abb   :  { %v8019_v29 = vand.u32 %v8017_v5, %v15148_v41  ;;  %v12598_v5 = vld [vmem:[#allocation115 + $0x38] sm:$0xff]  }
0x1abd   :  { %11818 = vmatpush3.bf16.msra.mxu0 %v8019_v29  ;;  %v10375_v29 = vld [vmem:[%s16149_s20] ss:$0 sm:$0xff] }
0x1abe   :  { %11067 = vmatprep.subr.bf16.mxu0 %v12558_v25  ;;  %v12602_v25 = vld [vmem:[#allocation115 + $0x18] sm:$0xff]  }
0x1ac0   :  { %11820 = vmatmul.mubr.msk.bf16.vlgmr.msra.gmra.mxu0 %vm1688_vm6, %v12664_v28 }
0x1ac1   :  { %11068 = vmatpush3.bf16.msra.mxu0 %v12559_v38  ;;  %8339 = vmatprep.mubr.bf16.mxu0 %v15821_v36  ;;  %v12569_v36 = vld [vmem:[#allocation111 + $0x90] sm:$0xff]  }
0x1ac2   :  { %11069 = vmatprep.subr.bf16.mxu0 %v12560_v34 }
0x1ac5   :  { %11070 = vmatpush3.bf16.msra.mxu0 %v12561_v47 }
0x1ac6   :  { %11071 = vmatprep.subr.bf16.mxu0 %v12562_v30  ;;  %v12603_v30 = vld [vmem:[#allocation115 + $0x10] sm:$0xff]  }
0x1ac9   :  { %11072 = vmatpush3.bf16.msra.mxu0 %v12563_v37 }
0x1aca   :  { %11073 = vmatprep.subr.bf16.mxu0 %v12564_v39 }
0x1acd   :  { %11074 = vmatpush3.bf16.msra.mxu0 %v12565_v43 }
0x1ace   :  { %v11061_v35 = vpop.f32.mrf.mxu1  ;;  %11075 = vmatprep.subr.bf16.mxu0 %v12566_v45 }
0x1ad0   :  { %v11062_v31 = vpop.f32.mrf.mxu1 }
0x1ad1   :  { %v15836_v52 = vadd.f32 %v11062_v31, %v11061_v35  ;;  %11076 = vmatpush3.bf16.msra.mxu0 %v12567_v48 }
0x1ad2   :  { %v11064_v23 = vpop.f32.mrf.mxu1  ;;  %11077 = vmatprep.subr.bf16.mxu0 %v12568_v12 }
0x1ad3   :  { %v8301_v28 = vadd.f32 %v15836_v52, %v10375_v29 }
0x1ad4   :  { %v11065_v55 = vpop.f32.mrf.mxu1 }
0x1ad5   :  { %v15838_v56 = vadd.f32 %v11065_v55, %v11064_v23  ;;  %11078 = vmatpush3.bf16.msra.mxu0 %v12569_v36 }
0x1ad6   :  { %11079 = vmatprep.subr.bf16.mxu0 %v12570_v54 }
0x1ad7   :  { %v8304_v45 = vadd.f32 %v15838_v56, %v10375_v29 }
0x1ad9   :  { %11080 = vmatpush3.bf16.msra.mxu0 %v12571_v10 }
0x1ada   :  { %11081 = vmatprep.subr.bf16.mxu0 %v12572_v58  ;;  %v10408_v58 = vld [vmem:[%s16150_s12] ss:$0 sm:$0xff] }
0x1add   :  { %11082 = vmatpush3.bf16.msra.mxu0 %v12573_v59 }
0x1ade   :  { %11111 = vmatprep.subr.bf16.mxu0 %v12574_v60 }
0x1ae0   :  { %8340 = vmatmul.mubr.bf16.vlgmr.msra.gmra.mxu0 %v15819_v24  ;;  %v12585_v24 = vld [vmem:[#allocation109 + $0x90] sm:$0xff]  }
0x1ae1   :  { %11112 = vmatpush3.bf16.msra.mxu0 %v12575_v44  ;;  %8619 = vmatprep.mubr.bf16.mxu0 %v15763_v8  ;;  %v12587_v8 = vld [vmem:[#allocation109 + $0x88] sm:$0xff]  }
0x1ae2   :  { %11113 = vmatprep.subr.bf16.mxu0 %v12576_v61 }
0x1ae5   :  { %11114 = vmatpush3.bf16.msra.mxu0 %v12577_v3 }
0x1ae6   :  { %11115 = vmatprep.subr.bf16.mxu0 %v12578_v63 }
0x1ae9   :  { %11116 = vmatpush3.bf16.msra.mxu0 %v12579_v53 }
0x1aea   :  { %11117 = vmatprep.subr.bf16.mxu0 %v12580_v2 }
0x1aed   :  { %11118 = vmatpush3.bf16.msra.mxu0 %v12581_v4 }
0x1aee   :  { %11119 = vmatprep.subr.bf16.mxu0 %v12582_v62  ;;  %v11105_v12 = vpop.f32.mrf.mxu1  ;;  %v12590_v62 = vld [vmem:[#allocation114 + $0x38] sm:$0xff]  }
0x1af0   :  { %v11106_v31 = vpop.f32.mrf.mxu1 }
0x1af1   :  { %11120 = vmatpush3.bf16.msra.mxu0 %v12583_v51  ;;  %v11107_v55 = vadd.f32 %v11106_v31, %v11105_v12  ;;  %v12666_v51 = vld [vmem:[#allocation10] sm:$0x7f]  }
0x1af2   :  { %11121 = vmatprep.subr.bf16.mxu0 %v12584_v7  ;;  %v11108_v52 = vpop.f32.mrf.mxu1  ;;  %v12604_v7 = vld [vmem:[#allocation115 + $0x8] sm:$0xff]  }
0x1af3   :  { %v8581_v61 = vadd.f32 %v11107_v55, %v10408_v58 }
0x1af4   :  { %v11109_v36 = vpop.f32.mrf.mxu1 }
0x1af5   :  { %11122 = vmatpush3.bf16.msra.mxu0 %v12585_v24  ;;  %v11110_v10 = vadd.f32 %v11109_v36, %v11108_v52  ;;  %v12591_v24 = vld [vmem:[#allocation114 + $0x30] sm:$0xff]  }
0x1af6   :  { %11123 = vmatprep.subr.bf16.mxu0 %v12586_v57  ;;  %v12605_v57 = vld [vmem:[#allocation115] sm:$0xff]  }
0x1af7   :  { %v8584_v56 = vadd.f32 %v11110_v10, %v10408_v58 }
0x1af9   :  { %11124 = vmatpush3.bf16.msra.mxu0 %v12587_v8  ;;  %v12592_v8 = vld [vmem:[#allocation114 + $0x28] sm:$0xff]  }
0x1afa   :  { %11125 = vmatprep.subr.bf16.mxu0 %v12588_v0  ;;  %v12593_v0 = vld [vmem:[#allocation114 + $0x20] sm:$0xff]  }
0x1afd   :  { %11126 = vmatpush3.bf16.msra.mxu0 %v12589_v20  ;;  %v12594_v20 = vld [vmem:[#allocation114 + $0x18] sm:$0xff]  }
0x1afe   :  { %11829 = vmatprep.subr.bf16.mxu0 %v14439_v1 }
0x1b00   :  { %8620 = vmatmul.mubr.bf16.vlgmr.msra.gmra.mxu0 %v15798_v50 }
0x1b01   :  { %11831 = vmatprep.mubr.msk.bf16.mxu0 %vm14440_vm1, %v14439_v1 }
0x1b80   :  { %v8055_v49 = vpop.f32.mrf.mxu0 }
0x1b81   :  { %v8062_v14 = vmul.f32 %v8055_v49, %v15286_v26  ;;  %v12665_v26 = vld [vmem:[%s16141_s11] sm:$0x3f]  }
0x1b82   :  { %v11821_v15 = vpop.f32.mrf.mxu0  ;;  %v12595_v49 = vld [vmem:[#allocation114 + $0x10] sm:$0xff]  }
0x1b83   :  { %v8064_v17 = vadd.f32 %v8062_v14, %v15815_v18  ;;  %v12600_v18 = vld [vmem:[#allocation115 + $0x28] sm:$0xff]   ;;  %v12597_v15 = vld [vmem:[#allocation114] sm:$0xff]  }
0x1b84   :  { %v8058_v9 = vpop.f32.mrf.mxu0  ;;  %v12596_v14 = vld [vmem:[#allocation114 + $0x8] sm:$0xff]  }
0x1b85   :  { %v8063_v13 = vmul.f32 %v8058_v9, %v15290_v33  ;;  %v8066_v21 = vmax.f32 %v8064_v17, 0.0  ;;  %v12599_v33 = vld [vmem:[#allocation115 + $0x30] sm:$0xff]  }
0x1b86   :  { %v11822_v40 = vpop.f32.mrf.mxu0 }
0x1b87   :  { %v8065_v19 = vadd.f32 %v8063_v13, %v15817_v32  ;;  %v12601_v32 = vld [vmem:[#allocation115 + $0x20] sm:$0xff]  }
0x1b89   :  { %v8067_v22 = vmax.f32 %v8065_v19, 0.0 }
0x1b8b   :  { %v15850_v16 = vpack.c.bf16 %v8067_v22, %v8066_v21 }
0x1b8d   :  { %v8716_v50 = vand.u32 %v15850_v16, %v15117_v6 }
0x1b8f   :  { %11830 = vmatpush3.bf16.msra.mxu0 %v8716_v50 }
0x1b90   :  { %11855 = vmatprep.subr.bf16.mxu0 %v14439_v1 }
0x1b92   :  { %11832 = vmatmul.mubr.msk.bf16.vlgmr.msra.gmra.mxu0 %vm1364_vm3, %v12665_v26 }
0x1b93   :  { %11856 = vmatpush3.bf16.msra.mxu0 %v12598_v5  ;;  %11871 = vmatprep.mubr.msk.bf16.mxu0 %vm14440_vm1, %v14439_v1 }
0x1b94   :  { %11857 = vmatprep.subr.bf16.mxu0 %v14439_v1 }
0x1b97   :  { %11858 = vmatpush3.bf16.msra.mxu0 %v12599_v33 }
0x1b98   :  { %11859 = vmatprep.subr.bf16.mxu0 %v14439_v1 }
0x1b9b   :  { %11860 = vmatpush3.bf16.msra.mxu0 %v12600_v18 }
0x1b9c   :  { %11861 = vmatprep.subr.bf16.mxu0 %v14439_v1 }
0x1b9f   :  { %11862 = vmatpush3.bf16.msra.mxu0 %v12601_v32 }
0x1ba0   :  { %v11083_v38 = vpop.f32.mrf.mxu0  ;;  %11863 = vmatprep.subr.bf16.mxu0 %v14439_v1 }
0x1ba2   :  { %v11084_v34 = vpop.f32.mrf.mxu0 }
0x1ba3   :  { %v11085_v47 = vadd.f32 %v11084_v34, %v11083_v38  ;;  %11864 = vmatpush3.bf16.msra.mxu0 %v12602_v25 }
0x1ba4   :  { %v11086_v37 = vpop.f32.mrf.mxu0  ;;  %11865 = vmatprep.subr.bf16.mxu0 %v14439_v1 }
0x1ba5   :  { %v15866_v39 = vadd.f32 %v11085_v47, %v8301_v28 }
0x1ba6   :  { %v11087_v43 = vpop.f32.mrf.mxu0 }
0x1ba7   :  { %v11088_v48 = vadd.f32 %v11087_v43, %v11086_v37  ;;  %11866 = vmatpush3.bf16.msra.mxu0 %v12603_v30  ;;  %v10459_v43 = vld [vmem:[%s16151_s26] ss:$0 sm:$0xff] }
0x1ba8   :  { %11867 = vmatprep.subr.bf16.mxu0 %v14439_v1 }
0x1ba9   :  { %v15870_v35 = vadd.f32 %v11088_v48, %v8304_v45 }
0x1bab   :  { %11868 = vmatpush3.bf16.msra.mxu0 %v12604_v7  ;;  %v12613_v7 = vld [vmem:[#allocation117] sm:$0xff]  }
0x1bac   :  { %11869 = vmatprep.subr.bf16.mxu0 %v14439_v1 }
0x1baf   :  { %11870 = vmatpush3.bf16.msra.mxu0 %v12605_v57  ;;  %v12619_v57 = vld [vmem:[#allocation118 + $0x10] sm:$0xff]  }
0x1bb0   :  { %11881 = vmatprep.subr.bf16.mxu0 %v14439_v1 }
0x1bc0   :  { %v11127_v23 = vpop.f32.mrf.mxu0 }
0x1bc2   :  { %v11128_v54 = vpop.f32.mrf.mxu0 }
0x1bc3   :  { %v11129_v60 = vadd.f32 %v11128_v54, %v11127_v23 }
0x1bc4   :  { %v11130_v59 = vpop.f32.mrf.mxu0 }
0x1bc5   :  { %v8622_v63 = vadd.f32 %v11129_v60, %v8581_v61  ;;  %v12607_v60 = vld [vmem:[#allocation117 + $0x30] sm:$0xff]   ;;  %v12608_v61 = vld [vmem:[#allocation117 + $0x28] sm:$0xff]  }
0x1bc6   :  { %v11131_v44 = vpop.f32.mrf.mxu0 }
0x1bc7   :  { %v11132_v3 = vadd.f32 %v11131_v44, %v11130_v59  ;;  %v12606_v59 = vld [vmem:[#allocation117 + $0x38] sm:$0xff]  }
0x1bc8   :  { %v12614_v44 = vld [vmem:[#allocation118 + $0x38] sm:$0xff]  }
0x1bc9   :  { %v8625_v53 = vadd.f32 %v11132_v3, %v8584_v56  ;;  %v12667_v56 = vld [vmem:[#allocation7] sm:$0x7f]  }
0x1bca   :  { %v12615_v3 = vld [vmem:[#allocation118 + $0x30] sm:$0xff]  }
0x1bcb   :  { %v8628_v2 = vpack.c.bf16 %v8625_v53, %v8622_v63  ;;  %v12609_v63 = vld [vmem:[#allocation117 + $0x20] sm:$0xff]   ;;  %v12616_v53 = vld [vmem:[#allocation118 + $0x28] sm:$0xff]  }
0x1bcd   :  { %v8630_v4 = vand.u32 %v8628_v2, %v15117_v6  ;;  %v12610_v2 = vld [vmem:[#allocation117 + $0x18] sm:$0xff]  }
0x1bcf   :  { %11824 = vmatpush3.bf16.msra.mxu1 %v8630_v4  ;;  %v12617_v4 = vld [vmem:[#allocation118 + $0x20] sm:$0xff]  }
0x1bd0   :  { %11835 = vmatprep.subr.bf16.mxu1 %v14439_v1 }
0x1bd2   :  { %11826 = vmatmul.mubr.msk.bf16.vlgmr.msra.gmra.mxu1 %vm1364_vm3, %v12666_v51  ;;  %v12612_v51 = vld [vmem:[#allocation117 + $0x8] sm:$0xff]  }
0x1bd3   :  { %11836 = vmatpush3.bf16.msra.mxu1 %v12590_v62  ;;  %11851 = vmatprep.mubr.msk.bf16.mxu1 %vm14440_vm1, %v14439_v1  ;;  %v12611_v62 = vld [vmem:[#allocation117 + $0x10] sm:$0xff]  }
0x1bd4   :  { %11837 = vmatprep.subr.bf16.mxu1 %v14439_v1 }
0x1bd7   :  { %11838 = vmatpush3.bf16.msra.mxu1 %v12591_v24  ;;  %v12618_v24 = vld [vmem:[#allocation118 + $0x18] sm:$0xff]  }
0x1bd8   :  { %11839 = vmatprep.subr.bf16.mxu1 %v14439_v1 }
0x1bdb   :  { %11840 = vmatpush3.bf16.msra.mxu1 %v12592_v8  ;;  %v12620_v8 = vld [vmem:[#allocation118 + $0x8] sm:$0xff]  }
0x1bdc   :  { %11841 = vmatprep.subr.bf16.mxu1 %v14439_v1 }
0x1bdf   :  { %11842 = vmatpush3.bf16.msra.mxu1 %v12593_v0  ;;  %v12621_v0 = vld [vmem:[#allocation118] sm:$0xff]  }
0x1be0   :  { %11843 = vmatprep.subr.bf16.mxu1 %v14439_v1 }
0x1be3   :  { %11844 = vmatpush3.bf16.msra.mxu1 %v12594_v20 }
0x1be4   :  { %11845 = vmatprep.subr.bf16.mxu1 %v14439_v1 }
0x1be7   :  { %11846 = vmatpush3.bf16.msra.mxu1 %v12595_v49 }
0x1be8   :  { %11847 = vmatprep.subr.bf16.mxu1 %v14439_v1 }
0x1beb   :  { %11848 = vmatpush3.bf16.msra.mxu1 %v12596_v14 }
0x1bec   :  { %11849 = vmatprep.subr.bf16.mxu1 %v14439_v1 }
0x1bef   :  { %11850 = vmatpush3.bf16.msra.mxu1 %v12597_v15 }
0x1bf0   :  { %11875 = vmatprep.subr.bf16.mxu1 %v14439_v1 }
0x1bf2   :  { %11852 = vmatmul.mubr.bf16.vlgmr.msra.gmra.mxu1 %v15850_v16 }
0x1bf3   :  { %11877 = vmatprep.mubr.msk.bf16.mxu1 %vm14440_vm1, %v14439_v1 }
0x1c52   :  { %v8752_v9 = vpop.f32.mrf.mxu0 }
0x1c54   :  { %v11833_v17 = vpop.f32.mrf.mxu0 }
0x1c56   :  { %v8755_v13 = vpop.f32.mrf.mxu0 }
0x1c57   :  { %v8848_v40 = vpack.c.bf16 %v8755_v13, %v8752_v9 }
0x1c58   :  { %v11834_v19 = vpop.f32.mrf.mxu0 }
0x1c59   :  { %11872 = vmatmul.mubr.bf16.vlgmr.msra.gmra.mxu0 %v8848_v40 }
0x1c5a   :  { %11883 = vmatprep.mubr.msk.bf16.mxu0 %vm14440_vm1, %v14439_v1 }
0x1c92   :  { %v8666_v21 = vpop.f32.mrf.mxu1 }
0x1c93   :  { %v8673_v22 = vmul.f32 0.5, %v8666_v21 }
0x1c94   :  { %v11827_v50 = vpop.f32.mrf.mxu1 }
0x1c95   :  { %v8675_v5 = vadd.f32 %v8673_v22, %v15866_v39 }
0x1c96   :  { %v8669_v26 = vpop.f32.mrf.mxu1 }
0x1c97   :  { %v8674_v16 = vmul.f32 0.5, %v8669_v26  ;;  %v8677_v32 = vmax.f32 %v8675_v5, 0.0 }
0x1c98   :  { %v11828_v33 = vpop.f32.mrf.mxu1 }
0x1c99   :  { %v8676_v18 = vadd.f32 %v8674_v16, %v15870_v35 }
0x1c9b   :  { %v8678_v25 = vmax.f32 %v8676_v18, 0.0 }
0x1c9d   :  { %v15895_v29 = vpack.c.bf16 %v8678_v25, %v8677_v32 }
0x1c9f   :  { %v9112_v58 = vand.u32 %v15895_v29, %v15148_v41 }
0x1cb2   :  { %v8841_v38 = vpop.f32.mrf.mxu1 }
0x1cb4   :  { %v11853_v34 = vpop.f32.mrf.mxu1 }
0x1cb6   :  { %v8844_v28 = vpop.f32.mrf.mxu1 }
0x1cb8   :  { %v11854_v47 = vpop.f32.mrf.mxu1 }
0x1d19   :  { %v8931_v30 = vpop.f32.mrf.mxu0 }
0x1d1a   :  { %v8938_v37 = vsub.f32 %v8841_v38, %v8931_v30  ;;  %v10462_v30 = vld [vmem:[%s16152_s17] ss:$0 sm:$0xff] }
0x1d1b   :  { %v11873_v45 = vpop.f32.mrf.mxu0 }
0x1d1c   :  { %v15898_v12 = vadd.f32 %v10459_v43, %v8938_v37  ;;  %v10463_v45 = vld [vmem:[%s16153_s1] ss:$0 sm:$0xff] }
0x1d1d   :  { %v8934_v48 = vpop.f32.mrf.mxu0 }
0x1d1e   :  { %v8939_v39 = vsub.f32 %v8844_v28, %v8934_v48  ;;  %v8992_v35 = vmul.f32 %v15898_v12, %v15898_v12 }
0x1d1f   :  { %v11874_v31 = vpop.f32.mrf.mxu0 }
0x1d20   :  { %v15900_v52 = vadd.f32 %v10459_v43, %v8939_v39 }
0x1d22   :  { %v8948_v36 = vpack.c.bf16 %v15900_v52, %v15898_v12  ;;  %v8993_v23 = vmul.f32 %v15900_v52, %v15900_v52 }
0x1d24   :  { %v8994_v54 = vpack.c.bf16 %v8993_v23, %v8992_v35  ;;  %v8950_v55 = vand.u32 %v8948_v36, %v15117_v6 }
0x1d26   :  { %11876 = vmatpush3.bf16.msra.mxu1 %v8950_v55  ;;  %v8996_v10 = vand.u32 %v8994_v54, %v15117_v6  ;;  %v9481_v55 = vld [vmem:[#allocation2 + $0x24] sm:$0x3] }
0x1d27   :  { %11887 = vmatprep.subr.bf16.mxu1 %v14439_v1 }
0x1d28   :  { %11882 = vmatpush3.bf16.msra.mxu0 %v8996_v10 }
0x1d29   :  { %11878 = vmatmul.mubr.msk.bf16.vlgmr.msra.gmra.mxu1 %vm1364_vm3, %v14442_v46  ;;  %11893 = vmatprep.subr.bf16.mxu0 %v14439_v1 }
0x1d2a   :  { %11888 = vmatpush3.bf16.msra.mxu1 %v9112_v58  ;;  %11889 = vmatprep.mubr.msk.bf16.mxu1 %vm14440_vm1, %v14439_v1 }
0x1d2b   :  { %11884 = vmatmul.mubr.msk.bf16.vlgmr.msra.gmra.mxu0 %vm1364_vm3, %v14442_v46  ;;  %11913 = vmatprep.subr.bf16.mxu1 %v14439_v1 }
0x1d2c   :  { %11894 = vmatpush3.bf16.msra.mxu0 %v12606_v59  ;;  %11909 = vmatprep.mubr.msk.bf16.mxu0 %vm14440_vm1, %v14439_v1 }
0x1d2d   :  { %11895 = vmatprep.subr.bf16.mxu0 %v14439_v1 }
0x1d30   :  { %11896 = vmatpush3.bf16.msra.mxu0 %v12607_v60 }
0x1d31   :  { %11890 = vmatmul.mubr.msk.bf16.vlgmr.msra.gmra.mxu1 %vm1688_vm6, %v12667_v56  ;;  %11897 = vmatprep.subr.bf16.mxu0 %v14439_v1  ;;  %v10481_v56 = vld [vmem:[%s16154_s28] ss:$0 sm:$0xff] }
0x1d32   :  { %11914 = vmatpush3.bf16.msra.mxu1 %v12614_v44  ;;  %11929 = vmatprep.mubr.msk.bf16.mxu1 %vm14440_vm1, %v14439_v1 }
0x1d33   :  { %11915 = vmatprep.subr.bf16.mxu1 %v14439_v1 }
0x1d34   :  { %11898 = vmatpush3.bf16.msra.mxu0 %v12608_v61 }
0x1d35   :  { %11899 = vmatprep.subr.bf16.mxu0 %v14439_v1 }
0x1d36   :  { %11916 = vmatpush3.bf16.msra.mxu1 %v12615_v3 }
0x1d37   :  { %11917 = vmatprep.subr.bf16.mxu1 %v14439_v1 }
0x1d38   :  { %11900 = vmatpush3.bf16.msra.mxu0 %v12609_v63 }
0x1d39   :  { %11901 = vmatprep.subr.bf16.mxu0 %v14439_v1 }
0x1d3a   :  { %11918 = vmatpush3.bf16.msra.mxu1 %v12616_v53 }
0x1d3b   :  { %11919 = vmatprep.subr.bf16.mxu1 %v14439_v1 }
0x1d3c   :  { %11902 = vmatpush3.bf16.msra.mxu0 %v12610_v2 }
0x1d3d   :  { %11903 = vmatprep.subr.bf16.mxu0 %v14439_v1 }
0x1d3e   :  { %11920 = vmatpush3.bf16.msra.mxu1 %v12617_v4 }
0x1d3f   :  { %11921 = vmatprep.subr.bf16.mxu1 %v14439_v1 }
0x1d40   :  { %11904 = vmatpush3.bf16.msra.mxu0 %v12611_v62 }
0x1d41   :  { %11905 = vmatprep.subr.bf16.mxu0 %v14439_v1 }
0x1d42   :  { %11922 = vmatpush3.bf16.msra.mxu1 %v12618_v24 }
0x1d43   :  { %11923 = vmatprep.subr.bf16.mxu1 %v14439_v1 }
0x1d44   :  { %11906 = vmatpush3.bf16.msra.mxu0 %v12612_v51 }
0x1d45   :  { %11907 = vmatprep.subr.bf16.mxu0 %v14439_v1 }
0x1d46   :  { %11924 = vmatpush3.bf16.msra.mxu1 %v12619_v57 }
0x1d47   :  { %11925 = vmatprep.subr.bf16.mxu1 %v14439_v1 }
0x1d48   :  { %11908 = vmatpush3.bf16.msra.mxu0 %v12613_v7 }
0x1d49   :  { %11933 = vmatprep.subr.bf16.mxu0 %v14439_v1 }
0x1d4a   :  { %11926 = vmatpush3.bf16.msra.mxu1 %v12620_v8 }
0x1d4b   :  { %11910 = vmatmul.mubr.bf16.vlgmr.msra.gmra.mxu0 %v15895_v29  ;;  %11927 = vmatprep.subr.bf16.mxu1 %v14439_v1 }
0x1d4c   :  { %11935 = vmatprep.mubr.msk.bf16.mxu0 %vm14440_vm1, %v14439_v1 }
0x1d4e   :  { %11928 = vmatpush3.bf16.msra.mxu1 %v12621_v0 }
0x1d4f   :  { %11939 = vmatprep.subr.bf16.mxu1 %v14439_v1 }
0x1de9   :  { %v8986_v20 = vpop.f32.mrf.mxu1 }
0x1dea   :  { %v9038_v49 = vmul.f32 0.09090909, %v8986_v20  ;;  %v9575_v20 = vld [vmem:[%s16155_s6] sm:$0x1] }
0x1deb   :  { %v11879_v14 = vpop.f32.mrf.mxu1  ;;  %v9032_v15 = vpop.f32.mrf.mxu0 }
0x1dec   :  { %v9040_v9 = vmul.f32 %v9038_v49, %v9038_v49  ;;  %v9039_v17 = vmul.f32 0.09090909, %v9032_v15  ;;  %v9046_v29 = vrot.slane %v9038_v49, %v15180_v11 }
0x1ded   :  { %v8989_v13 = vpop.f32.mrf.mxu1  ;;  %v11885_v40 = vpop.f32.mrf.mxu0 }
0x1dee   :  { %v9041_v19 = vsub.f32 %v9039_v17, %v9040_v9  ;;  %v9047_v34 = vsub.f32 %v15898_v12, %v9046_v29  ;;  %v9048_v28 = vsub.f32 %v15900_v52, %v9046_v29 }
0x1def   :  { %v11880_v21 = vpop.f32.mrf.mxu1  ;;  %v9035_v22 = vpop.f32.mrf.mxu0 }
0x1df0   :  { %v9042_v50 = vmax.f32 %v9041_v19, 0.0 }
0x1df1   :  { %v9148_v5 = vpop.f32.mrf.mxu1  ;;  %v11886_v26 = vpop.f32.mrf.mxu0 }
0x1df2   :  { %v9049_v16 = vadd.f32 1e-05, %v9042_v50 }
0x1df3   :  { %v11891_v33 = vpop.f32.mrf.mxu1 }
0x1df4   :  { %12654 = vrsqrt.f32 %v9049_v16 }
0x1df5   :  { %v9151_v18 = vpop.f32.mrf.mxu1 }
0x1df6   :  { %v9244_v32 = vpack.c.bf16 %v9151_v18, %v9148_v5 }
0x1df7   :  { %v11892_v25 = vpop.f32.mrf.mxu1 }
0x1df8   :  { %11930 = vmatmul.mubr.bf16.vlgmr.msra.gmra.mxu1 %v9244_v32  ;;  %v10484_v32 = vld [vmem:[%s16156_s24] ss:$0 sm:$0xff] }
0x1df9   :  { %11941 = vmatprep.mubr.msk.bf16.mxu1 %vm14440_vm1, %v14439_v1 }
0x1e01   :  { %v12655_v38 = vpop.eup %12654 }
0x1e02   :  { %v9054_v47 = vrot.slane %v12655_v38, %v15180_v11  ;;  %v10485_v38 = vld [vmem:[%s14902_s21] ss:$0 sm:$0xff] }
0x1e04   :  { %v9055_v37 = vmul.f32 %v9054_v47, %v9047_v34  ;;  %v9056_v43 = vmul.f32 %v9054_v47, %v9048_v28 }
0x1e06   :  { %v9063_v48 = vmul.f32 %v10462_v30, %v9055_v37  ;;  %v9064_v39 = vmul.f32 %v10462_v30, %v9056_v43 }
0x1e08   :  { %v9071_v31 = vadd.f32 %v10463_v45, %v9063_v48  ;;  %v9072_v35 = vadd.f32 %v10463_v45, %v9064_v39  ;;  %v9492_v45 = vld [vmem:[#allocation3 + $0x24] sm:$0x7] }
0x1e0a   :  { %v9073_v36 = vmax.f32 %v9071_v31, 0.0  ;;  %v9074_v23 = vmax.f32 %v9072_v35, 0.0 }
0x1e0b   :  { %v9237_v54 = vpop.f32.mrf.mxu0 }
0x1e0c   :  { %v9471_v10 = vpack.c.bf16 %v9074_v23, %v9073_v36  ;;  %v10526_v58 = vpack.c.bf16 %v9074_v23, %v9074_v23  ;;  %v9528_v36 = vld [vmem:[%s16157_s2] sm:$0x1]  ;;  %v12623_v23 = vld [vmem:[%s14907_s3 + $0x38] sm:$0xff]  }
0x1e0d   :  { %v11911_v12 = vpop.f32.mrf.mxu0 }
0x1e0e   :  { %v9482_v52 = vsel %vm15186_vm10, %v10526_v58, %v9481_v55  ;;  %v9580_v0 = vand.u32 %v9471_v10, %v15117_v6  ;;  %v12625_v55 = vld [vmem:[%s14907_s3 + $0x30] sm:$0xff]   ;;  %v12628_v10 = vld [vmem:[%s14907_s3 + $0x60] sm:$0xff]   ;;  %v12630_v12 = vld [vmem:[%s14907_s3 + $0x58] sm:$0xff]  }
0x1e0f   :  { %v9240_v59 = vpop.f32.mrf.mxu0  ;;  %9483 = vst [vmem:[#allocation2 + $0x24] sm:$0x3] %v9482_v52  ;;  %v12629_v58 = vld [vmem:[%s14907_s3 + $0x20] sm:$0xff]   ;;  %v12631_v52 = vld [vmem:[%s14907_s3 + $0x18] sm:$0xff]  }
0x1e11   :  { %v11912_v60 = vpop.f32.mrf.mxu0 }
0x1e12   :  { %v12633_v60 = vld [vmem:[%s14907_s3 + $0x10] sm:$0xff]  }
0x1eb8   :  { %v9327_v44 = vpop.f32.mrf.mxu1 }
0x1eb9   :  { %v9334_v61 = vsub.f32 %v9237_v54, %v9327_v44  ;;  %v12624_v54 = vld [vmem:[%s14907_s3 + $0x70] sm:$0xff]   ;;  %v12634_v44 = vld [vmem:[%s14907_s3 + $0x48] sm:$0xff]  }
0x1eba   :  { %v11931_v3 = vpop.f32.mrf.mxu1 }
0x1ebb   :  { %v9342_v53 = vadd.f32 %v10481_v56, %v9334_v61  ;;  %v12635_v61 = vld [vmem:[%s14907_s3 + $0x8] sm:$0xff]  }
0x1ebc   :  { %v9330_v63 = vpop.f32.mrf.mxu1 }
0x1ebd   :  { %v9335_v2 = vsub.f32 %v9240_v59, %v9330_v63  ;;  %v9388_v51 = vmul.f32 %v9342_v53, %v9342_v53  ;;  %v12632_v59 = vld [vmem:[%s14907_s3 + $0x50] sm:$0xff]  }
0x1ebe   :  { %v11932_v4 = vpop.f32.mrf.mxu1 }
0x1ebf   :  { %v9343_v62 = vadd.f32 %v10481_v56, %v9335_v2  ;;  %v12636_v56 = vld [vmem:[%s14907_s3 + $0x40] sm:$0xff]  }
0x1ec0   :  { %v12637_v4 = vld [vmem:[%s14907_s3] sm:$0xff]  }
0x1ec1   :  { %v9344_v7 = vpack.c.bf16 %v9343_v62, %v9342_v53  ;;  %v9389_v24 = vmul.f32 %v9343_v62, %v9343_v62 }
0x1ec3   :  { %v9390_v57 = vpack.c.bf16 %v9389_v24, %v9388_v51  ;;  %v9346_v27 = vand.u32 %v9344_v7, %v15148_v41 }
0x1ec5   :  { %11934 = vmatpush3.bf16.msra.mxu0 %v9346_v27  ;;  %v9392_v8 = vand.u32 %v9390_v57, %v15148_v41 }
0x1ec6   :  { %11945 = vmatprep.subr.bf16.mxu0 %v14439_v1 }
0x1ec7   :  { %11940 = vmatpush3.bf16.msra.mxu1 %v9392_v8 }
0x1ec8   :  { %11936 = vmatmul.mubr.msk.bf16.vlgmr.msra.gmra.mxu0 %vm1688_vm6, %v14442_v46  ;;  %11951 = vmatprep.subr.bf16.mxu1 %v14439_v1 }
0x1ec9   :  { %11947 = vmatprep.mubr.msk.bf16.mxu0 %vm14440_vm1, %v14439_v1 }
0x1eca   :  { %11942 = vmatmul.mubr.msk.bf16.vlgmr.msra.gmra.mxu1 %vm1688_vm6, %v14442_v46 }
0x1ecb   :  { %11952 = vmatpush3.bf16.msra.mxu1 %v9580_v0  ;;  %11953 = vmatprep.mubr.msk.bf16.mxu1 %vm14440_vm1, %v14439_v1  ;;  %v10492_v0 = vld [vmem:[#allocation4] ss:$0 sm:$0xff] }
0x1ed2   :  { %11954 = vmatmul.mubr.msk.bf16.vlgmr.msra.gmra.mxu1 %vm1364_vm3, %v9575_v20 }
0x1f88   :  { %v9382_v49 = vpop.f32.mrf.mxu0 }
0x1f89   :  { %v9434_v14 = vmul.f32 0.07692308, %v9382_v49 }
0x1f8a   :  { %v11937_v15 = vpop.f32.mrf.mxu0  ;;  %v9428_v9 = vpop.f32.mrf.mxu1 }
0x1f8b   :  { %v9436_v17 = vmul.f32 %v9434_v14, %v9434_v14  ;;  %v9435_v6 = vmul.f32 0.07692308, %v9428_v9  ;;  %v9442_v1 = vrot.slane %v9434_v14, %v15180_v11 }
0x1f8c   :  { %v9385_v13 = vpop.f32.mrf.mxu0  ;;  %v11943_v40 = vpop.f32.mrf.mxu1 }
0x1f8d   :  { %v9437_v19 = vsub.f32 %v9435_v6, %v9436_v17  ;;  %v9443_v16 = vsub.f32 %v9342_v53, %v9442_v1  ;;  %v9444_v33 = vsub.f32 %v9343_v62, %v9442_v1 }
0x1f8e   :  { %v11938_v21 = vpop.f32.mrf.mxu0  ;;  %v9431_v46 = vpop.f32.mrf.mxu1 }
0x1f8f   :  { %v9438_v22 = vmax.f32 %v9437_v19, 0.0 }
0x1f90   :  { %v11944_v50 = vpop.f32.mrf.mxu1 }
0x1f91   :  { %v9445_v5 = vadd.f32 1e-05, %v9438_v22 }
0x1f92   :  { %v9616_v3 = vpop.f32.mrf.mxu1 }
0x1f93   :  { %12656 = vrsqrt.f32 %v9445_v5  ;;  %v9623_v63 = vpack.c.bf16 %v9616_v3, %v9616_v3 }
0x1f94   :  { %v11955_v53 = vpop.f32.mrf.mxu1 }
0x1f96   :  { %v9619_v2 = vpop.f32.mrf.mxu1 }
0x1f98   :  { %v11956_v62 = vpop.f32.mrf.mxu1 }
0x1fa0   :  { %v12657_v26 = vpop.eup %12656 }
0x1fa1   :  { %v9450_v18 = vrot.slane %v12657_v26, %v15180_v11  ;;  %v12622_v11 = vld [vmem:[%s14907_s3 + $0x78] sm:$0xff]  }
0x1fa3   :  { %v9451_v25 = vmul.f32 %v9450_v18, %v9443_v16  ;;  %v9452_v29 = vmul.f32 %v9450_v18, %v9444_v33 }
0x1fa5   :  { %v9459_v34 = vmul.f32 %v10484_v32, %v9451_v25  ;;  %v9460_v28 = vmul.f32 %v10484_v32, %v9452_v29 }
0x1fa7   :  { %v9467_v47 = vadd.f32 %v10485_v38, %v9459_v34  ;;  %v9468_v30 = vadd.f32 %v10485_v38, %v9460_v28 }
0x1fa9   :  { %v9469_v37 = vmax.f32 %v9467_v47, 0.0  ;;  %v9470_v43 = vmax.f32 %v9468_v30, 0.0 }
0x1fab   :  { %v9472_v48 = vpack.c.bf16 %v9470_v43, %v9469_v37  ;;  %v10528_v39 = vpack.c.bf16 %v9470_v43, %v9470_v43 }
0x1fad   :  { %v9493_v31 = vsel %vm15241_vm13, %v10528_v39, %v9492_v45  ;;  %v9533_v35 = vand.u32 %v9472_v48, %v15148_v41  ;;  %v12627_v41 = vld [vmem:[%s14907_s3 + $0x28] sm:$0xff]  }
0x1fae   :  { %9494 = vst [vmem:[#allocation3 + $0x24] sm:$0x7] %v9493_v31 }
0x1faf   :  { %11946 = vmatpush3.bf16.msra.mxu0 %v9533_v35 }
0x1fb0   :  { %11187 = vmatprep.subr.bf16.mxu0 %v12622_v11 }
0x1fb2   :  { %11948 = vmatmul.mubr.msk.bf16.vlgmr.msra.gmra.mxu0 %vm1688_vm6, %v9528_v36 }
0x1fb3   :  { %11188 = vmatpush3.bf16.msra.mxu0 %v12623_v23  ;;  %9758 = vmatprep.mubr.bf16.mxu0 %v9623_v63 }
0x1fb4   :  { %11189 = vmatprep.subr.bf16.mxu0 %v12624_v54 }
0x1fb7   :  { %11190 = vmatpush3.bf16.msra.mxu0 %v12625_v55 }
0x1fb8   :  { %11191 = vmatprep.subr.bf16.mxu0 %v12626_v42 }
0x1fbb   :  { %11192 = vmatpush3.bf16.msra.mxu0 %v12627_v41 }
0x1fbc   :  { %11193 = vmatprep.subr.bf16.mxu0 %v12628_v10 }
0x1fbf   :  { %11194 = vmatpush3.bf16.msra.mxu0 %v12629_v58 }
0x1fc0   :  { %11195 = vmatprep.subr.bf16.mxu0 %v12630_v12 }
0x1fc3   :  { %11196 = vmatpush3.bf16.msra.mxu0 %v12631_v52 }
0x1fc4   :  { %11197 = vmatprep.subr.bf16.mxu0 %v12632_v59 }
0x1fc7   :  { %11198 = vmatpush3.bf16.msra.mxu0 %v12633_v60 }
0x1fc8   :  { %11199 = vmatprep.subr.bf16.mxu0 %v12634_v44 }
0x1fcb   :  { %11200 = vmatpush3.bf16.msra.mxu0 %v12635_v61 }
0x1fcc   :  { %11201 = vmatprep.subr.bf16.mxu0 %v12636_v56 }
0x1fcf   :  { %11202 = vmatpush3.bf16.msra.mxu0 %v12637_v4 }
0x2072   :  { %v9569_v51 = vpop.f32.mrf.mxu0 }
0x2073   :  { %v9622_v7 = vpack.c.bf16 %v9569_v51, %v9569_v51 }
0x2074   :  { %v11949_v24 = vpop.f32.mrf.mxu0 }
0x2075   :  { %9759 = vmatmul.mubr.bf16.vlgmr.msra.gmra.mxu0 %v9622_v7 }
0x2076   :  { %v9572_v57 = vpop.f32.mrf.mxu0 }
0x2078   :  { %v11950_v27 = vpop.f32.mrf.mxu0 }
0x2135   :  { %v11203_v8 = vpop.f32.mrf.mxu0 }
0x2137   :  { %v11204_v20 = vpop.f32.mrf.mxu0 }
0x2138   :  { %v11205_v49 = vadd.f32 %v11204_v20, %v11203_v8 }
0x2139   :  { %v11206_v14 = vpop.f32.mrf.mxu0 }
0x213a   :  { %v9761_v15 = vadd.f32 %v11205_v49, %v10492_v0 }
0x213b   :  { %v11207_v9 = vpop.f32.mrf.mxu0 }
0x213c   :  { %9767 = vst.msk [vmem:[%s14915_s13] sm:$0x3] %vm9766_vm14, %v9761_v15 }
0x213d   :  { %9772 = vsyncpa [#allocation6], 1 }
0x213e   :  { %9773 = vsyncpa [#allocation8], 1 }
0x213f   :  { %9774 = vsyncpa [#allocation11], 1 }
0x2140   :  { %9775 = vsyncpa [#allocation14], 1 }
0x2141   :  { %9776 = vsyncpa [#allocation17], 1 }
0x2142   :  { %9777 = vsyncpa [#allocation20], 1 }
0x2143   :  { %9778 = vsyncpa [#allocation23], 1 }
0x2144   :  { %9779 = vsyncpa [#allocation26], 1 }
0x2145   :  { %9780 = vsyncpa [#allocation29], 1 }
0x2146   :  { %9781 = vsyncpa [#allocation32], 1 }
0x2147   :  { %9782 = vsyncpa [#allocation35], 1 }
0x2148   :  { %9783 = vsyncpa [#allocation38], 1 }
0x2149   :  { %9784 = vsyncpa [#allocation41], 1 }
0x214a   :  { %9785 = vsyncpa [#allocation44], 1 }
0x214b   :  { %9786 = vsyncpa [#allocation47], 1 }
0x214c   :  { %9787 = vsyncpa [#allocation50], 1 }
0x214d   :  { %9788 = vsyncpa [#allocation53], 1 }
0x214e   :  { %9789 = vsyncpa [#allocation56], 1 }
0x214f   :  { %9790 = vsyncpa [#allocation59], 1 }
0x2150   :  { %9791 = vsyncpa [#allocation62], 1 }
0x2151   :  { %9792 = vsyncpa [#allocation65], 1 }
0x2152   :  { %9793 = vsyncpa [#allocation68], 1 }
0x2153   :  { %9794 = vsyncpa [#allocation71], 1 }
0x2154   :  { %9795 = vsyncpa [#allocation74], 1 }
0x2155   :  { %9796 = vsyncpa [#allocation77], 1 }
0x2156   :  { %9797 = vsyncpa [#allocation80], 1 }
0x2157   :  { %9798 = vsyncpa [#allocation83], 1 }
0x2158   :  { %9799 = vsyncpa [#allocation86], 1 }
0x2159   :  { %9800 = vsyncpa [#allocation89], 1 }
0x215a   :  { %9801 = vsyncpa [#allocation92], 1 }
0x215b   :  { %9802 = vsyncpa [#allocation95], 1 }
0x215c   :  { %9803 = vsyncpa [#allocation98], 1 }
0x215d   :  { %9804 = vsyncpa [#allocation101], 1 }
0x215e   :  { %9805 = vsyncpa [#allocation104], 1 }
0x215f   :  { %9806 = vsyncpa [#allocation107], 1 }
0x2160   :  { %9807 = vsyncpa [#allocation110], 1 }
0x2161   :  { %9808 = vsyncpa [#allocation113], 1 }
0x2162   :  { %9809 = vsyncpa [#allocation116], 1 }
0x2163   :  { %9810 = vsyncpa [#allocation119], 1 }

</bundles_post_ra>
